<compile_context>
chip_gen: v5e
topology: v5e:2x2
jax: 0.10.0
libtpu: 0.0.40
codegen_flags: <defaults>
</compile_context>

<pallas_src>
import math
import numpy as np
import jax
import jax.numpy as jnp
from jax.experimental import pallas as pl
from jax.experimental.pallas import tpu as pltpu

# dtype fed to the MXU (f32 accumulation everywhere). jnp.float32 => exact-fp32 matmuls.
MXU_DTYPE = jnp.bfloat16


# ----------------------------------------------------------------------------
# Host-side helpers (built once per configuration)
# ----------------------------------------------------------------------------

def build_pos_enc(max_len, d_model):
    pe = np.zeros((max_len, d_model), dtype=np.float32)
    position = np.arange(0, max_len, dtype=np.float32)[:, None]
    div_term = np.exp(np.arange(0, d_model, 2, dtype=np.float32)
                      * (-np.log(10000.0) / d_model))
    pe[:, 0::2] = np.sin(position * div_term)
    pe[:, 1::2] = np.cos(position * div_term)
    return jnp.asarray(pe[:, None, :])          # (max_len, 1, d_model)


def generate_mask_np(tgt_sz, src_sz, agent_num, agent_mask):
    assert tgt_sz % agent_num == 0 and src_sz % agent_num == 0
    return np.tile(agent_mask, (tgt_sz // agent_num, src_sz // agent_num)).astype(np.float32)


def generate_ar_mask_np(sz, agent_num, agent_mask):
    assert sz % agent_num == 0
    T = sz // agent_num
    mask = np.tile(agent_mask, (T, T)).astype(np.float32)
    for t in range(T - 1):
        i1, i2 = t * agent_num, (t + 1) * agent_num
        mask[i1:i2, i2:] = -np.inf
    return mask


# ----------------------------------------------------------------------------
# Fused decoder forward (one pallas_call per autoregressive frame)
# ----------------------------------------------------------------------------

def build_forward(cfg, sample_num, agent_mask_np):
    A = cfg['agent_num']
    D = cfg['model_dim']
    ff = cfg['ff_dim']
    nhead = cfg['nhead']
    nlayer = cfg['nlayer']
    F = cfg['future_frames']
    Tp = cfg['past_frames']
    nz = cfg['nz']
    fdim = cfg['forecast_dim']
    mdim = cfg['motion_dim']
    S = sample_num
    L = F * A                       # fixed (padded) decode length
    Tc = Tp * A                     # memory (context) length
    in_dim = mdim + nz
    dh = D // nhead
    BL = S * L

    # Masks built ONCE for the fixed padded length (AR mask makes padding exact).
    tgt_mask = jnp.asarray(generate_ar_mask_np(L, A, agent_mask_np))   # (L, L)
    mem_mask = jnp.asarray(generate_mask_np(L, Tc, A, agent_mask_np))  # (L, Tc)

    # ---- the single fused kernel: input_fc + pos + nlayer decoder layers ----
    def decoder_kernel(x_ref, pos_ref, mem_ref, tgtm_ref, memm_ref,
                       w_in_ref, b_in_ref,
                       wqkv_ref, bqkv_ref, wo_s_ref, bo_s_ref,
                       wq_c_ref, bq_c_ref, wkv_c_ref, bkv_c_ref, wo_c_ref, bo_c_ref,
                       w1_ref, b1_ref, w2_ref, b2_ref,
                       ln1g_ref, ln1b_ref, ln2g_ref, ln2b_ref, ln3g_ref, ln3b_ref,
                       o_ref, attn_buf):
        f32 = jnp.float32

        def mm(x, w, b):                       # MXU matmul, f32 accumulation + bias
            return jnp.dot(x.astype(MXU_DTYPE), w.astype(MXU_DTYPE),
                           preferred_element_type=f32) + b

        def lnorm(x, g, b):                    # LayerNorm epilogue (f32 stats)
            mu = jnp.mean(x, axis=-1, keepdims=True)
            xc = x - mu
            var = jnp.mean(xc * xc, axis=-1, keepdims=True)
            return xc * jax.lax.rsqrt(var + 1e-5) * g + b

        def attend(q, k, v, mask):             # one (batch, head) attention block
            s = jax.lax.dot_general(q.astype(MXU_DTYPE), k.astype(MXU_DTYPE),
                                    (((1,), (1,)), ((), ())),
                                    preferred_element_type=f32)
            s = s + mask
            # guarded softmax: a fully masked row yields zeros, never NaN
            m = jnp.maximum(jnp.max(s, axis=-1, keepdims=True), -1e30)
            p = jnp.exp(s - m)
            den = jnp.sum(p, axis=-1, keepdims=True)
            p = p / jnp.where(den == 0.0, 1.0, den)
            return jnp.dot(p.astype(MXU_DTYPE), v.astype(MXU_DTYPE),
                           preferred_element_type=f32)

        tgt_m = tgtm_ref[...]                  # (L, L)
        mem_m = memm_ref[...]                  # (L, Tc)
        mem2d = mem_ref[...]                   # (S*Tc, D), batch-major

        # input projection + positional encoding (pos already expanded batch-major)
        x = mm(x_ref[...], w_in_ref[...], b_in_ref[...]) + pos_ref[...]   # (BL, D)

        for l in range(nlayer):
            # ---- self-attention: fused QKV, 1/sqrt(dh) pre-folded into Wq/bq ----
            qkv = mm(x, wqkv_ref[l], bqkv_ref[l])                          # (BL, 3D)
            for b in range(S):
                r = b * L
                for h in range(nhead):
                    c = h * dh
                    attn_buf[r:r + L, c:c + dh] = attend(
                        qkv[r:r + L, c:c + dh],
                        qkv[r:r + L, D + c:D + c + dh],
                        qkv[r:r + L, 2 * D + c:2 * D + c + dh],
                        tgt_m)
            a = mm(attn_buf[...], wo_s_ref[l], bo_s_ref[l])
            x = lnorm(x + a, ln1g_ref[l], ln1b_ref[l])

            # ---- cross-attention over the encoded context ----
            q_all = mm(x, wq_c_ref[l], bq_c_ref[l])                        # (BL, D)
            kv = mm(mem2d, wkv_c_ref[l], bkv_c_ref[l])                     # (S*Tc, 2D)
            for b in range(S):
                rq = b * L
                rk = b * Tc
                for h in range(nhead):
                    c = h * dh
                    attn_buf[rq:rq + L, c:c + dh] = attend(
                        q_all[rq:rq + L, c:c + dh],
                        kv[rk:rk + Tc, c:c + dh],
                        kv[rk:rk + Tc, D + c:D + c + dh],
                        mem_m)
            a = mm(attn_buf[...], wo_c_ref[l], bo_c_ref[l])
            x = lnorm(x + a, ln2g_ref[l], ln2b_ref[l])

            # ---- feed-forward (ReLU) + residual + LN ----
            h1 = jnp.maximum(mm(x, w1_ref[l], b1_ref[l]), 0.0)
            y = mm(h1, w2_ref[l], b2_ref[l])
            x = lnorm(x + y, ln3g_ref[l], ln3b_ref[l])

        o_ref[...] = x

    def run_decoder(x2d, pos2d, mem2d, params):
        ops = (x2d, pos2d, mem2d, tgt_mask, mem_mask,
               params['w_in'], params['b_in'],
               params['wqkv'], params['bqkv'], params['wo_s'], params['bo_s'],
               params['wq_c'], params['bq_c'], params['wkv_c'], params['bkv_c'],
               params['wo_c'], params['bo_c'],
               params['w1'], params['b1'], params['w2'], params['b2'],
               params['ln1_g'], params['ln1_b'], params['ln2_g'], params['ln2_b'],
               params['ln3_g'], params['ln3_b'])
        # single-step grid: every array is one whole block resident in VMEM
        in_specs = [pl.BlockSpec(jnp.shape(o), lambda i, nd=jnp.ndim(o): (0,) * nd)
                    for o in ops]
        return pl.pallas_call(
            decoder_kernel,
            grid=(1,),
            in_specs=in_specs,
            out_specs=pl.BlockSpec((BL, D), lambda i: (0, 0)),
            out_shape=jax.ShapeDtypeStruct((BL, D), jnp.float32),
            scratch_shapes=[pltpu.VMEM((BL, D), jnp.float32)],
            compiler_params=pltpu.CompilerParams(
                dimension_semantics=("arbitrary",)),
        )(*ops)

    @jax.jit
    def forward(params, context_enc, pre_motion_scene_norm, scene_orig, z):
        # repeat_interleave along the batch/sample axis (matches torch semantics)
        context = jnp.repeat(context_enc.astype(jnp.float32), S, axis=1)        # (Tc, S, D)
        pre = jnp.repeat(pre_motion_scene_norm.astype(jnp.float32), S, axis=1)  # (Tp, A*S, 2)

        # batch-major 2D slabs for the kernel (features on the lane axis)
        mem2d = jnp.transpose(context, (1, 0, 2)).reshape(S * Tc, D)
        pos = jnp.repeat(params['pe'][0:F], A, axis=0)                          # (L, 1, D)
        pos2d = jnp.broadcast_to(jnp.transpose(pos, (1, 0, 2)), (S, L, D)).reshape(S * L, D)

        dec_in = pre[-1].reshape(A, S, mdim)                                    # (A, S, 2)
        z_in = z.reshape(A, S, nz)                                              # (A, S, nz)
        # fixed-length AR buffer; future blocks start as zeros (masked by the AR mask)
        dec_in_z = jnp.zeros((L, S, in_dim), jnp.float32)
        dec_in_z = dec_in_z.at[0:A].set(jnp.concatenate([dec_in, z_in], axis=-1))

        last_pre = pre[-1:]                                                     # (1, A*S, 2)
        seq_out = None
        for i in range(F):
            x2d = jnp.transpose(dec_in_z, (1, 0, 2)).reshape(S * L, in_dim)
            out2d = run_decoder(x2d, pos2d, mem2d, params)                      # (S*L, D)
            tf_out = jnp.transpose(out2d.reshape(S, L, D), (1, 0, 2))           # (L, S, D)
            # out_fc (forecast_dim = 2) deliberately kept in XLA (lane-sparse store)
            seq = (jnp.dot(tf_out.reshape(-1, D), params['out_fc_w'])
                   + params['out_fc_b']).reshape(L, S, fdim)
            # pred_type='scene_norm', sn_out_type='norm', sn_out_heading=False
            norm_motion = seq.reshape(F, A * S, fdim)
            seq = (norm_motion + last_pre).reshape(L, S, fdim)
            seq_out = seq
            if i < F - 1:                                                       # ar_detach=True
                out_in = jax.lax.stop_gradient(seq[i * A:(i + 1) * A])          # (A, S, 2)
                dec_in_z = dec_in_z.at[(i + 1) * A:(i + 2) * A].set(
                    jnp.concatenate([out_in, z_in], axis=-1))

        seq_out_flat = seq_out.reshape(F, A * S, fdim)                          # (F, A*S, 2)
        dec_motion = seq_out_flat + scene_orig                                  # scene_norm
        dec_motion = jnp.transpose(dec_motion, (1, 0, 2)).reshape(A, S, F, fdim)
        return dec_motion, seq_out_flat

    return forward


def future_decoder_forward(params, data, cfg, z, sample_num):
    """Mirrors FutureDecoder.forward(mode='infer', autoregress=True, z=z)."""
    fwd = build_forward(cfg, sample_num, np.asarray(data['agent_mask']))
    return fwd(params, data['context_enc'], data['pre_motion_scene_norm'],
               data['scene_orig'], z)


# ----------------------------------------------------------------------------
# Deterministic parameter construction + packing for the fused kernel
# ----------------------------------------------------------------------------

def init_params(key, cfg):
    D, ff, nz = cfg['model_dim'], cfg['ff_dim'], cfg['nz']
    in_dim = cfg['motion_dim'] + nz
    keys = iter(jax.random.split(key, 256))

    def lin(k, fan_in, fan_out):
        w = jax.random.normal(k, (fan_in, fan_out), jnp.float32) * (1.0 / math.sqrt(fan_in))
        return w, jnp.zeros((fan_out,), jnp.float32)

    params = {}
    params['input_fc_w'], params['input_fc_b'] = lin(next(keys), in_dim, D)
    params['out_fc_w'], params['out_fc_b'] = lin(next(keys), D, cfg['forecast_dim'])
    params['pe'] = build_pos_enc(200, D)

    layers = []
    for _ in range(cfg['nlayer']):
        p = {}
        for attn_name in ('self_attn', 'cross_attn'):
            ap = {}
            ap['Wq'], ap['bq'] = lin(next(keys), D, D)
            ap['Wk'], ap['bk'] = lin(next(keys), D, D)
            ap['Wv'], ap['bv'] = lin(next(keys), D, D)
            ap['Wo'], ap['bo'] = lin(next(keys), D, D)
            p[attn_name] = ap
        p['W1'], p['b1'] = lin(next(keys), D, ff)
        p['W2'], p['b2'] = lin(next(keys), ff, D)
        for n in ('ln1', 'ln2', 'ln3'):
            p[f'{n}_g'] = jnp.ones((D,), jnp.float32)
            p[f'{n}_b'] = jnp.zeros((D,), jnp.float32)
        layers.append(p)
    params['layers'] = layers
    return params


def pack_params(raw, cfg):
    """Stack per-layer weights, fuse QKV, and fold the 1/sqrt(dh) scale into Wq/bq."""
    D, nhead = cfg['model_dim'], cfg['nhead']
    scale = 1.0 / math.sqrt(D // nhead)
    layers = raw['layers']

    def stack(fn):
        return jnp.stack([fn(p) for p in layers], axis=0)

    packed = {
        'w_in': raw['input_fc_w'],
        'b_in': raw['input_fc_b'].reshape(1, -1),
        'out_fc_w': raw['out_fc_w'],
        'out_fc_b': raw['out_fc_b'],
        'pe': raw['pe'],
        'wqkv': stack(lambda p: jnp.concatenate(
            [p['self_attn']['Wq'] * scale, p['self_attn']['Wk'], p['self_attn']['Wv']], axis=1)),
        'bqkv': stack(lambda p: jnp.concatenate(
            [p['self_attn']['bq'] * scale, p['self_attn']['bk'],
             p['self_attn']['bv']]).reshape(1, -1)),
        'wo_s': stack(lambda p: p['self_attn']['Wo']),
        'bo_s': stack(lambda p: p['self_attn']['bo'].reshape(1, -1)),
        'wq_c': stack(lambda p: p['cross_attn']['Wq'] * scale),
        'bq_c': stack(lambda p: (p['cross_attn']['bq'] * scale).reshape(1, -1)),
        'wkv_c': stack(lambda p: jnp.concatenate(
            [p['cross_attn']['Wk'], p['cross_attn']['Wv']], axis=1)),
        'bkv_c': stack(lambda p: jnp.concatenate(
            [p['cross_attn']['bk'], p['cross_attn']['bv']]).reshape(1, -1)),
        'wo_c': stack(lambda p: p['cross_attn']['Wo']),
        'bo_c': stack(lambda p: p['cross_attn']['bo'].reshape(1, -1)),
        'w1': stack(lambda p: p['W1']),
        'b1': stack(lambda p: p['b1'].reshape(1, -1)),
        'w2': stack(lambda p: p['W2']),
        'b2': stack(lambda p: p['b2'].reshape(1, -1)),
    }
    for n in ('ln1', 'ln2', 'ln3'):
        packed[f'{n}_g'] = stack(lambda p, n=n: p[f'{n}_g'].reshape(1, -1))
        packed[f'{n}_b'] = stack(lambda p, n=n: p[f'{n}_b'].reshape(1, -1))
    return packed


# ----------------------------------------------------------------------------
# Main
# ----------------------------------------------------------------------------

if __name__ == "__main__":
    cfg = dict(
        agent_num=2, model_dim=32, ff_dim=64, nhead=4, nlayer=2,
        motion_dim=2, forecast_dim=2, nz=8, past_frames=4, future_frames=3,
    )
    sample_num = 2
    A = cfg['agent_num']

    key = jax.random.PRNGKey(0)
    kp, kc, km, ks, kz = jax.random.split(key, 5)

    raw_params = init_params(kp, cfg)
    params = pack_params(raw_params, cfg)

    data = {
        # context_enc: (past_frames*agent_num, 1, model_dim)
        'context_enc': jax.random.normal(kc, (cfg['past_frames'] * A, 1, cfg['model_dim']),
                                         jnp.float32),
        # pre_motion_scene_norm: (past_frames, agent_num, motion_dim)
        'pre_motion_scene_norm': jax.random.normal(km, (cfg['past_frames'], A,
                                                        cfg['motion_dim']), jnp.float32),
        'scene_orig': jax.random.normal(ks, (cfg['motion_dim'],), jnp.float32),
        'agent_mask': np.zeros((A, A), dtype=np.float32),
    }
    z = jax.random.normal(kz, (A * sample_num, cfg['nz']), jnp.float32)

    dec_motion, seq_out = future_decoder_forward(params, data, cfg, z, sample_num)
    dec_motion = jax.block_until_ready(dec_motion)
    seq_out = jax.block_until_ready(seq_out)

    assert dec_motion.shape == (A, sample_num, cfg['future_frames'], cfg['forecast_dim'])
    assert seq_out.shape == (cfg['future_frames'], A * sample_num, cfg['forecast_dim'])
    assert bool(jnp.all(jnp.isfinite(dec_motion)))
    print("KERNEL_OK")
</pallas_src>

<mosaic_0001>
module attributes {stable_mosaic.version = 11 : i64} {
  func.func @decoder_kernel(%arg0: i32, %arg1: memref<12x10xf32, #tpu.memory_space<vmem>>, %arg2: memref<12x32xf32, #tpu.memory_space<vmem>>, %arg3: memref<16x32xf32, #tpu.memory_space<vmem>>, %arg4: memref<6x6xf32, #tpu.memory_space<vmem>>, %arg5: memref<6x8xf32, #tpu.memory_space<vmem>>, %arg6: memref<10x32xf32, #tpu.memory_space<vmem>>, %arg7: memref<1x32xf32, #tpu.memory_space<vmem>>, %arg8: memref<2x32x96xf32, #tpu.memory_space<vmem>>, %arg9: memref<2x1x96xf32, #tpu.memory_space<vmem>>, %arg10: memref<2x32x32xf32, #tpu.memory_space<vmem>>, %arg11: memref<2x1x32xf32, #tpu.memory_space<vmem>>, %arg12: memref<2x32x32xf32, #tpu.memory_space<vmem>>, %arg13: memref<2x1x32xf32, #tpu.memory_space<vmem>>, %arg14: memref<2x32x64xf32, #tpu.memory_space<vmem>>, %arg15: memref<2x1x64xf32, #tpu.memory_space<vmem>>, %arg16: memref<2x32x32xf32, #tpu.memory_space<vmem>>, %arg17: memref<2x1x32xf32, #tpu.memory_space<vmem>>, %arg18: memref<2x32x64xf32, #tpu.memory_space<vmem>>, %arg19: memref<2x1x64xf32, #tpu.memory_space<vmem>>, %arg20: memref<2x64x32xf32, #tpu.memory_space<vmem>>, %arg21: memref<2x1x32xf32, #tpu.memory_space<vmem>>, %arg22: memref<2x1x32xf32, #tpu.memory_space<vmem>>, %arg23: memref<2x1x32xf32, #tpu.memory_space<vmem>>, %arg24: memref<2x1x32xf32, #tpu.memory_space<vmem>>, %arg25: memref<2x1x32xf32, #tpu.memory_space<vmem>>, %arg26: memref<2x1x32xf32, #tpu.memory_space<vmem>>, %arg27: memref<2x1x32xf32, #tpu.memory_space<vmem>>, %arg28: memref<12x32xf32, #tpu.memory_space<vmem>>, %arg29: memref<12x32xf32, #tpu.memory_space<vmem>>) attributes {dimension_semantics = [#tpu.dimension_semantics<arbitrary>], iteration_bounds = array<i64: 1>, scalar_prefetch = 0 : i64, scratch_operands = 1 : i64, tpu.core_type = #tpu.core_type<tc>, window_params = [{pipeline_mode = #tpu.pipeline_mode<synchronous>, transform_indices = @transform_0, window_bounds = array<i64: 12, 10>}, {pipeline_mode = #tpu.pipeline_mode<synchronous>, transform_indices = @transform_1, window_bounds = array<i64: 12, 32>}, {pipeline_mode = #tpu.pipeline_mode<synchronous>, transform_indices = @transform_2, window_bounds = array<i64: 16, 32>}, {pipeline_mode = #tpu.pipeline_mode<synchronous>, transform_indices = @transform_3, window_bounds = array<i64: 6, 6>}, {pipeline_mode = #tpu.pipeline_mode<synchronous>, transform_indices = @transform_4, window_bounds = array<i64: 6, 8>}, {pipeline_mode = #tpu.pipeline_mode<synchronous>, transform_indices = @transform_5, window_bounds = array<i64: 10, 32>}, {pipeline_mode = #tpu.pipeline_mode<synchronous>, transform_indices = @transform_6, window_bounds = array<i64: 1, 32>}, {pipeline_mode = #tpu.pipeline_mode<synchronous>, transform_indices = @transform_7, window_bounds = array<i64: 2, 32, 96>}, {pipeline_mode = #tpu.pipeline_mode<synchronous>, transform_indices = @transform_8, window_bounds = array<i64: 2, 1, 96>}, {pipeline_mode = #tpu.pipeline_mode<synchronous>, transform_indices = @transform_9, window_bounds = array<i64: 2, 32, 32>}, {pipeline_mode = #tpu.pipeline_mode<synchronous>, transform_indices = @transform_10, window_bounds = array<i64: 2, 1, 32>}, {pipeline_mode = #tpu.pipeline_mode<synchronous>, transform_indices = @transform_11, window_bounds = array<i64: 2, 32, 32>}, {pipeline_mode = #tpu.pipeline_mode<synchronous>, transform_indices = @transform_12, window_bounds = array<i64: 2, 1, 32>}, {pipeline_mode = #tpu.pipeline_mode<synchronous>, transform_indices = @transform_13, window_bounds = array<i64: 2, 32, 64>}, {pipeline_mode = #tpu.pipeline_mode<synchronous>, transform_indices = @transform_14, window_bounds = array<i64: 2, 1, 64>}, {pipeline_mode = #tpu.pipeline_mode<synchronous>, transform_indices = @transform_15, window_bounds = array<i64: 2, 32, 32>}, {pipeline_mode = #tpu.pipeline_mode<synchronous>, transform_indices = @transform_16, window_bounds = array<i64: 2, 1, 32>}, {pipeline_mode = #tpu.pipeline_mode<synchronous>, transform_indices = @transform_17, window_bounds = array<i64: 2, 32, 64>}, {pipeline_mode = #tpu.pipeline_mode<synchronous>, transform_indices = @transform_18, window_bounds = array<i64: 2, 1, 64>}, {pipeline_mode = #tpu.pipeline_mode<synchronous>, transform_indices = @transform_19, window_bounds = array<i64: 2, 64, 32>}, {pipeline_mode = #tpu.pipeline_mode<synchronous>, transform_indices = @transform_20, window_bounds = array<i64: 2, 1, 32>}, {pipeline_mode = #tpu.pipeline_mode<synchronous>, transform_indices = @transform_21, window_bounds = array<i64: 2, 1, 32>}, {pipeline_mode = #tpu.pipeline_mode<synchronous>, transform_indices = @transform_22, window_bounds = array<i64: 2, 1, 32>}, {pipeline_mode = #tpu.pipeline_mode<synchronous>, transform_indices = @transform_23, window_bounds = array<i64: 2, 1, 32>}, {pipeline_mode = #tpu.pipeline_mode<synchronous>, transform_indices = @transform_24, window_bounds = array<i64: 2, 1, 32>}, {pipeline_mode = #tpu.pipeline_mode<synchronous>, transform_indices = @transform_25, window_bounds = array<i64: 2, 1, 32>}, {pipeline_mode = #tpu.pipeline_mode<synchronous>, transform_indices = @transform_26, window_bounds = array<i64: 2, 1, 32>}, {pipeline_mode = #tpu.pipeline_mode<synchronous>, transform_indices = @transform_27, window_bounds = array<i64: 12, 32>}]} {
    %c0 = arith.constant 0 : index
    %c0_0 = arith.constant 0 : index
    %0 = vector.load %arg4[%c0, %c0_0] : memref<6x6xf32, #tpu.memory_space<vmem>>, vector<6x6xf32>
    %c0_1 = arith.constant 0 : index
    %c0_2 = arith.constant 0 : index
    %1 = vector.load %arg5[%c0_1, %c0_2] : memref<6x8xf32, #tpu.memory_space<vmem>>, vector<6x8xf32>
    %c0_3 = arith.constant 0 : index
    %c0_4 = arith.constant 0 : index
    %2 = vector.load %arg3[%c0_3, %c0_4] : memref<16x32xf32, #tpu.memory_space<vmem>>, vector<16x32xf32>
    %c0_5 = arith.constant 0 : index
    %c0_6 = arith.constant 0 : index
    %3 = vector.load %arg1[%c0_5, %c0_6] : memref<12x10xf32, #tpu.memory_space<vmem>>, vector<12x10xf32>
    %c0_7 = arith.constant 0 : index
    %c0_8 = arith.constant 0 : index
    %4 = vector.load %arg6[%c0_7, %c0_8] : memref<10x32xf32, #tpu.memory_space<vmem>>, vector<10x32xf32>
    %c0_9 = arith.constant 0 : index
    %c0_10 = arith.constant 0 : index
    %5 = vector.load %arg7[%c0_9, %c0_10] : memref<1x32xf32, #tpu.memory_space<vmem>>, vector<1x32xf32>
    %6 = arith.truncf %3 : vector<12x10xf32> to vector<12x10xbf16>
    %7 = arith.truncf %4 : vector<10x32xf32> to vector<10x32xbf16>
    %cst = arith.constant dense<0.000000e+00> : vector<12x32xf32>
    %8 = tpu.matmul %6, %7, %cst {dimension_numbers = #tpu.dot_dimension_numbers<[1], [0], [0], [1], [0, 0, 1, 1], [], []>} : vector<12x10xbf16>, vector<10x32xbf16>, vector<12x32xf32> -> vector<12x32xf32>
    %9 = vector.broadcast %5 : vector<1x32xf32> to vector<12x32xf32>
    %10 = arith.addf %8, %9 : vector<12x32xf32>
    %c0_11 = arith.constant 0 : index
    %c0_12 = arith.constant 0 : index
    %11 = vector.load %arg2[%c0_11, %c0_12] : memref<12x32xf32, #tpu.memory_space<vmem>>, vector<12x32xf32>
    %12 = arith.addf %10, %11 : vector<12x32xf32>
    %c0_13 = arith.constant 0 : index
    %c0_14 = arith.constant 0 : index
    %c0_15 = arith.constant 0 : index
    %13 = vector.load %arg8[%c0_13, %c0_14, %c0_15] : memref<2x32x96xf32, #tpu.memory_space<vmem>>, vector<1x32x96xf32>
    %14 = vector.shape_cast %13 : vector<1x32x96xf32> to vector<32x96xf32>
    %c0_16 = arith.constant 0 : index
    %c0_17 = arith.constant 0 : index
    %c0_18 = arith.constant 0 : index
    %15 = vector.load %arg9[%c0_16, %c0_17, %c0_18] : memref<2x1x96xf32, #tpu.memory_space<vmem>>, vector<1x1x96xf32>
    %16 = vector.shape_cast %15 : vector<1x1x96xf32> to vector<1x96xf32>
    %17 = arith.truncf %12 : vector<12x32xf32> to vector<12x32xbf16>
    %18 = arith.truncf %14 : vector<32x96xf32> to vector<32x96xbf16>
    %cst_19 = arith.constant dense<0.000000e+00> : vector<12x96xf32>
    %19 = tpu.matmul %17, %18, %cst_19 {dimension_numbers = #tpu.dot_dimension_numbers<[1], [0], [0], [1], [0, 0, 1, 1], [], []>} : vector<12x32xbf16>, vector<32x96xbf16>, vector<12x96xf32> -> vector<12x96xf32>
    %20 = vector.broadcast %16 : vector<1x96xf32> to vector<12x96xf32>
    %21 = arith.addf %19, %20 : vector<12x96xf32>
    %22 = vector.extract_strided_slice %21 {offsets = [0, 0], sizes = [6, 8], strides = [1, 1]} : vector<12x96xf32> to vector<6x8xf32>
    %23 = vector.extract_strided_slice %21 {offsets = [0, 32], sizes = [6, 8], strides = [1, 1]} : vector<12x96xf32> to vector<6x8xf32>
    %24 = vector.extract_strided_slice %21 {offsets = [0, 64], sizes = [6, 8], strides = [1, 1]} : vector<12x96xf32> to vector<6x8xf32>
    %25 = arith.truncf %22 : vector<6x8xf32> to vector<6x8xbf16>
    %26 = arith.truncf %23 : vector<6x8xf32> to vector<6x8xbf16>
    %cst_20 = arith.constant dense<0.000000e+00> : vector<6x6xf32>
    %27 = tpu.matmul %25, %26, %cst_20 {dimension_numbers = #tpu.dot_dimension_numbers<[1], [1], [0], [0], [0, 0, 1, 0], [], []>} : vector<6x8xbf16>, vector<6x8xbf16>, vector<6x6xf32> -> vector<6x6xf32>
    %28 = arith.addf %27, %0 : vector<6x6xf32>
    %cst_21 = arith.constant dense<0xFF800000> : vector<6xf32>
    %29 = vector.multi_reduction <maximumf>, %28, %cst_21 [1] : vector<6x6xf32> to vector<6xf32>
    %30 = vector.shape_cast %29 : vector<6xf32> to vector<6x1xf32>
    %cst_22 = arith.constant -1.000000e+30 : f32
    %31 = vector.broadcast %cst_22 : f32 to vector<6x1xf32>
    %32 = arith.maximumf %30, %31 : vector<6x1xf32>
    %33 = vector.broadcast %32 : vector<6x1xf32> to vector<6x6xf32>
    %34 = arith.subf %28, %33 : vector<6x6xf32>
    %35 = math.exp %34 : vector<6x6xf32>
    %cst_23 = arith.constant dense<0.000000e+00> : vector<6xf32>
    %36 = vector.multi_reduction <add>, %35, %cst_23 [1] : vector<6x6xf32> to vector<6xf32>
    %37 = vector.shape_cast %36 : vector<6xf32> to vector<6x1xf32>
    %cst_24 = arith.constant 0.000000e+00 : f32
    %38 = vector.broadcast %cst_24 : f32 to vector<6x1xf32>
    %39 = arith.cmpf oeq, %37, %38 : vector<6x1xf32>
    %cst_25 = arith.constant 1.000000e+00 : f32
    %40 = vector.broadcast %cst_25 : f32 to vector<6x1xf32>
    %41 = arith.select %39, %40, %37 : vector<6x1xi1>, vector<6x1xf32>
    %42 = vector.broadcast %41 : vector<6x1xf32> to vector<6x6xf32>
    %43 = arith.divf %35, %42 : vector<6x6xf32>
    %44 = arith.truncf %43 : vector<6x6xf32> to vector<6x6xbf16>
    %45 = arith.truncf %24 : vector<6x8xf32> to vector<6x8xbf16>
    %cst_26 = arith.constant dense<0.000000e+00> : vector<6x8xf32>
    %46 = tpu.matmul %44, %45, %cst_26 {dimension_numbers = #tpu.dot_dimension_numbers<[1], [0], [0], [1], [0, 0, 1, 1], [], []>} : vector<6x6xbf16>, vector<6x8xbf16>, vector<6x8xf32> -> vector<6x8xf32>
    %c0_27 = arith.constant 0 : index
    %c0_28 = arith.constant 0 : index
    %47 = vector.load %arg29[%c0_27, %c0_28] : memref<12x32xf32, #tpu.memory_space<vmem>>, vector<6x8xf32>
    tpu.vector_store %arg29[%c0_27, %c0_28], %46 {strides = array<i32>} : memref<12x32xf32, #tpu.memory_space<vmem>>, vector<6x8xf32>,
    %48 = vector.extract_strided_slice %21 {offsets = [0, 8], sizes = [6, 8], strides = [1, 1]} : vector<12x96xf32> to vector<6x8xf32>
    %49 = vector.extract_strided_slice %21 {offsets = [0, 40], sizes = [6, 8], strides = [1, 1]} : vector<12x96xf32> to vector<6x8xf32>
    %50 = vector.extract_strided_slice %21 {offsets = [0, 72], sizes = [6, 8], strides = [1, 1]} : vector<12x96xf32> to vector<6x8xf32>
    %51 = arith.truncf %48 : vector<6x8xf32> to vector<6x8xbf16>
    %52 = arith.truncf %49 : vector<6x8xf32> to vector<6x8xbf16>
    %cst_29 = arith.constant dense<0.000000e+00> : vector<6x6xf32>
    %53 = tpu.matmul %51, %52, %cst_29 {dimension_numbers = #tpu.dot_dimension_numbers<[1], [1], [0], [0], [0, 0, 1, 0], [], []>} : vector<6x8xbf16>, vector<6x8xbf16>, vector<6x6xf32> -> vector<6x6xf32>
    %54 = arith.addf %53, %0 : vector<6x6xf32>
    %cst_30 = arith.constant dense<0xFF800000> : vector<6xf32>
    %55 = vector.multi_reduction <maximumf>, %54, %cst_30 [1] : vector<6x6xf32> to vector<6xf32>
    %56 = vector.shape_cast %55 : vector<6xf32> to vector<6x1xf32>
    %cst_31 = arith.constant -1.000000e+30 : f32
    %57 = vector.broadcast %cst_31 : f32 to vector<6x1xf32>
    %58 = arith.maximumf %56, %57 : vector<6x1xf32>
    %59 = vector.broadcast %58 : vector<6x1xf32> to vector<6x6xf32>
    %60 = arith.subf %54, %59 : vector<6x6xf32>
    %61 = math.exp %60 : vector<6x6xf32>
    %cst_32 = arith.constant dense<0.000000e+00> : vector<6xf32>
    %62 = vector.multi_reduction <add>, %61, %cst_32 [1] : vector<6x6xf32> to vector<6xf32>
    %63 = vector.shape_cast %62 : vector<6xf32> to vector<6x1xf32>
    %cst_33 = arith.constant 0.000000e+00 : f32
    %64 = vector.broadcast %cst_33 : f32 to vector<6x1xf32>
    %65 = arith.cmpf oeq, %63, %64 : vector<6x1xf32>
    %cst_34 = arith.constant 1.000000e+00 : f32
    %66 = vector.broadcast %cst_34 : f32 to vector<6x1xf32>
    %67 = arith.select %65, %66, %63 : vector<6x1xi1>, vector<6x1xf32>
    %68 = vector.broadcast %67 : vector<6x1xf32> to vector<6x6xf32>
    %69 = arith.divf %61, %68 : vector<6x6xf32>
    %70 = arith.truncf %69 : vector<6x6xf32> to vector<6x6xbf16>
    %71 = arith.truncf %50 : vector<6x8xf32> to vector<6x8xbf16>
    %cst_35 = arith.constant dense<0.000000e+00> : vector<6x8xf32>
    %72 = tpu.matmul %70, %71, %cst_35 {dimension_numbers = #tpu.dot_dimension_numbers<[1], [0], [0], [1], [0, 0, 1, 1], [], []>} : vector<6x6xbf16>, vector<6x8xbf16>, vector<6x8xf32> -> vector<6x8xf32>
    %c0_36 = arith.constant 0 : index
    %c8 = arith.constant 8 : index
    %73 = vector.load %arg29[%c0_36, %c8] : memref<12x32xf32, #tpu.memory_space<vmem>>, vector<6x8xf32>
    tpu.vector_store %arg29[%c0_36, %c8], %72 {strides = array<i32>} : memref<12x32xf32, #tpu.memory_space<vmem>>, vector<6x8xf32>,
    %74 = vector.extract_strided_slice %21 {offsets = [0, 16], sizes = [6, 8], strides = [1, 1]} : vector<12x96xf32> to vector<6x8xf32>
    %75 = vector.extract_strided_slice %21 {offsets = [0, 48], sizes = [6, 8], strides = [1, 1]} : vector<12x96xf32> to vector<6x8xf32>
    %76 = vector.extract_strided_slice %21 {offsets = [0, 80], sizes = [6, 8], strides = [1, 1]} : vector<12x96xf32> to vector<6x8xf32>
    %77 = arith.truncf %74 : vector<6x8xf32> to vector<6x8xbf16>
    %78 = arith.truncf %75 : vector<6x8xf32> to vector<6x8xbf16>
    %cst_37 = arith.constant dense<0.000000e+00> : vector<6x6xf32>
    %79 = tpu.matmul %77, %78, %cst_37 {dimension_numbers = #tpu.dot_dimension_numbers<[1], [1], [0], [0], [0, 0, 1, 0], [], []>} : vector<6x8xbf16>, vector<6x8xbf16>, vector<6x6xf32> -> vector<6x6xf32>
    %80 = arith.addf %79, %0 : vector<6x6xf32>
    %cst_38 = arith.constant dense<0xFF800000> : vector<6xf32>
    %81 = vector.multi_reduction <maximumf>, %80, %cst_38 [1] : vector<6x6xf32> to vector<6xf32>
    %82 = vector.shape_cast %81 : vector<6xf32> to vector<6x1xf32>
    %cst_39 = arith.constant -1.000000e+30 : f32
    %83 = vector.broadcast %cst_39 : f32 to vector<6x1xf32>
    %84 = arith.maximumf %82, %83 : vector<6x1xf32>
    %85 = vector.broadcast %84 : vector<6x1xf32> to vector<6x6xf32>
    %86 = arith.subf %80, %85 : vector<6x6xf32>
    %87 = math.exp %86 : vector<6x6xf32>
    %cst_40 = arith.constant dense<0.000000e+00> : vector<6xf32>
    %88 = vector.multi_reduction <add>, %87, %cst_40 [1] : vector<6x6xf32> to vector<6xf32>
    %89 = vector.shape_cast %88 : vector<6xf32> to vector<6x1xf32>
    %cst_41 = arith.constant 0.000000e+00 : f32
    %90 = vector.broadcast %cst_41 : f32 to vector<6x1xf32>
    %91 = arith.cmpf oeq, %89, %90 : vector<6x1xf32>
    %cst_42 = arith.constant 1.000000e+00 : f32
    %92 = vector.broadcast %cst_42 : f32 to vector<6x1xf32>
    %93 = arith.select %91, %92, %89 : vector<6x1xi1>, vector<6x1xf32>
    %94 = vector.broadcast %93 : vector<6x1xf32> to vector<6x6xf32>
    %95 = arith.divf %87, %94 : vector<6x6xf32>
    %96 = arith.truncf %95 : vector<6x6xf32> to vector<6x6xbf16>
    %97 = arith.truncf %76 : vector<6x8xf32> to vector<6x8xbf16>
    %cst_43 = arith.constant dense<0.000000e+00> : vector<6x8xf32>
    %98 = tpu.matmul %96, %97, %cst_43 {dimension_numbers = #tpu.dot_dimension_numbers<[1], [0], [0], [1], [0, 0, 1, 1], [], []>} : vector<6x6xbf16>, vector<6x8xbf16>, vector<6x8xf32> -> vector<6x8xf32>
    %c0_44 = arith.constant 0 : index
    %c16 = arith.constant 16 : index
    %99 = vector.load %arg29[%c0_44, %c16] : memref<12x32xf32, #tpu.memory_space<vmem>>, vector<6x8xf32>
    tpu.vector_store %arg29[%c0_44, %c16], %98 {strides = array<i32>} : memref<12x32xf32, #tpu.memory_space<vmem>>, vector<6x8xf32>,
    %100 = vector.extract_strided_slice %21 {offsets = [0, 24], sizes = [6, 8], strides = [1, 1]} : vector<12x96xf32> to vector<6x8xf32>
    %101 = vector.extract_strided_slice %21 {offsets = [0, 56], sizes = [6, 8], strides = [1, 1]} : vector<12x96xf32> to vector<6x8xf32>
    %102 = vector.extract_strided_slice %21 {offsets = [0, 88], sizes = [6, 8], strides = [1, 1]} : vector<12x96xf32> to vector<6x8xf32>
    %103 = arith.truncf %100 : vector<6x8xf32> to vector<6x8xbf16>
    %104 = arith.truncf %101 : vector<6x8xf32> to vector<6x8xbf16>
    %cst_45 = arith.constant dense<0.000000e+00> : vector<6x6xf32>
    %105 = tpu.matmul %103, %104, %cst_45 {dimension_numbers = #tpu.dot_dimension_numbers<[1], [1], [0], [0], [0, 0, 1, 0], [], []>} : vector<6x8xbf16>, vector<6x8xbf16>, vector<6x6xf32> -> vector<6x6xf32>
    %106 = arith.addf %105, %0 : vector<6x6xf32>
    %cst_46 = arith.constant dense<0xFF800000> : vector<6xf32>
    %107 = vector.multi_reduction <maximumf>, %106, %cst_46 [1] : vector<6x6xf32> to vector<6xf32>
    %108 = vector.shape_cast %107 : vector<6xf32> to vector<6x1xf32>
    %cst_47 = arith.constant -1.000000e+30 : f32
    %109 = vector.broadcast %cst_47 : f32 to vector<6x1xf32>
    %110 = arith.maximumf %108, %109 : vector<6x1xf32>
    %111 = vector.broadcast %110 : vector<6x1xf32> to vector<6x6xf32>
    %112 = arith.subf %106, %111 : vector<6x6xf32>
    %113 = math.exp %112 : vector<6x6xf32>
    %cst_48 = arith.constant dense<0.000000e+00> : vector<6xf32>
    %114 = vector.multi_reduction <add>, %113, %cst_48 [1] : vector<6x6xf32> to vector<6xf32>
    %115 = vector.shape_cast %114 : vector<6xf32> to vector<6x1xf32>
    %cst_49 = arith.constant 0.000000e+00 : f32
    %116 = vector.broadcast %cst_49 : f32 to vector<6x1xf32>
    %117 = arith.cmpf oeq, %115, %116 : vector<6x1xf32>
    %cst_50 = arith.constant 1.000000e+00 : f32
    %118 = vector.broadcast %cst_50 : f32 to vector<6x1xf32>
    %119 = arith.select %117, %118, %115 : vector<6x1xi1>, vector<6x1xf32>
    %120 = vector.broadcast %119 : vector<6x1xf32> to vector<6x6xf32>
    %121 = arith.divf %113, %120 : vector<6x6xf32>
    %122 = arith.truncf %121 : vector<6x6xf32> to vector<6x6xbf16>
    %123 = arith.truncf %102 : vector<6x8xf32> to vector<6x8xbf16>
    %cst_51 = arith.constant dense<0.000000e+00> : vector<6x8xf32>
    %124 = tpu.matmul %122, %123, %cst_51 {dimension_numbers = #tpu.dot_dimension_numbers<[1], [0], [0], [1], [0, 0, 1, 1], [], []>} : vector<6x6xbf16>, vector<6x8xbf16>, vector<6x8xf32> -> vector<6x8xf32>
    %c0_52 = arith.constant 0 : index
    %c24 = arith.constant 24 : index
    %125 = vector.load %arg29[%c0_52, %c24] : memref<12x32xf32, #tpu.memory_space<vmem>>, vector<6x8xf32>
    tpu.vector_store %arg29[%c0_52, %c24], %124 {strides = array<i32>} : memref<12x32xf32, #tpu.memory_space<vmem>>, vector<6x8xf32>,
    %126 = vector.extract_strided_slice %21 {offsets = [6, 0], sizes = [6, 8], strides = [1, 1]} : vector<12x96xf32> to vector<6x8xf32>
    %127 = vector.extract_strided_slice %21 {offsets = [6, 32], sizes = [6, 8], strides = [1, 1]} : vector<12x96xf32> to vector<6x8xf32>
    %128 = vector.extract_strided_slice %21 {offsets = [6, 64], sizes = [6, 8], strides = [1, 1]} : vector<12x96xf32> to vector<6x8xf32>
    %129 = arith.truncf %126 : vector<6x8xf32> to vector<6x8xbf16>
    %130 = arith.truncf %127 : vector<6x8xf32> to vector<6x8xbf16>
    %cst_53 = arith.constant dense<0.000000e+00> : vector<6x6xf32>
    %131 = tpu.matmul %129, %130, %cst_53 {dimension_numbers = #tpu.dot_dimension_numbers<[1], [1], [0], [0], [0, 0, 1, 0], [], []>} : vector<6x8xbf16>, vector<6x8xbf16>, vector<6x6xf32> -> vector<6x6xf32>
    %132 = arith.addf %131, %0 : vector<6x6xf32>
    %cst_54 = arith.constant dense<0xFF800000> : vector<6xf32>
    %133 = vector.multi_reduction <maximumf>, %132, %cst_54 [1] : vector<6x6xf32> to vector<6xf32>
    %134 = vector.shape_cast %133 : vector<6xf32> to vector<6x1xf32>
    %cst_55 = arith.constant -1.000000e+30 : f32
    %135 = vector.broadcast %cst_55 : f32 to vector<6x1xf32>
    %136 = arith.maximumf %134, %135 : vector<6x1xf32>
    %137 = vector.broadcast %136 : vector<6x1xf32> to vector<6x6xf32>
    %138 = arith.subf %132, %137 : vector<6x6xf32>
    %139 = math.exp %138 : vector<6x6xf32>
    %cst_56 = arith.constant dense<0.000000e+00> : vector<6xf32>
    %140 = vector.multi_reduction <add>, %139, %cst_56 [1] : vector<6x6xf32> to vector<6xf32>
    %141 = vector.shape_cast %140 : vector<6xf32> to vector<6x1xf32>
    %cst_57 = arith.constant 0.000000e+00 : f32
    %142 = vector.broadcast %cst_57 : f32 to vector<6x1xf32>
    %143 = arith.cmpf oeq, %141, %142 : vector<6x1xf32>
    %cst_58 = arith.constant 1.000000e+00 : f32
    %144 = vector.broadcast %cst_58 : f32 to vector<6x1xf32>
    %145 = arith.select %143, %144, %141 : vector<6x1xi1>, vector<6x1xf32>
    %146 = vector.broadcast %145 : vector<6x1xf32> to vector<6x6xf32>
    %147 = arith.divf %139, %146 : vector<6x6xf32>
    %148 = arith.truncf %147 : vector<6x6xf32> to vector<6x6xbf16>
    %149 = arith.truncf %128 : vector<6x8xf32> to vector<6x8xbf16>
    %cst_59 = arith.constant dense<0.000000e+00> : vector<6x8xf32>
    %150 = tpu.matmul %148, %149, %cst_59 {dimension_numbers = #tpu.dot_dimension_numbers<[1], [0], [0], [1], [0, 0, 1, 1], [], []>} : vector<6x6xbf16>, vector<6x8xbf16>, vector<6x8xf32> -> vector<6x8xf32>
    %c6 = arith.constant 6 : index
    %c0_60 = arith.constant 0 : index
    %151 = vector.load %arg29[%c6, %c0_60] : memref<12x32xf32, #tpu.memory_space<vmem>>, vector<6x8xf32>
    tpu.vector_store %arg29[%c6, %c0_60], %150 {strides = array<i32>} : memref<12x32xf32, #tpu.memory_space<vmem>>, vector<6x8xf32>,
    %152 = vector.extract_strided_slice %21 {offsets = [6, 8], sizes = [6, 8], strides = [1, 1]} : vector<12x96xf32> to vector<6x8xf32>
    %153 = vector.extract_strided_slice %21 {offsets = [6, 40], sizes = [6, 8], strides = [1, 1]} : vector<12x96xf32> to vector<6x8xf32>
    %154 = vector.extract_strided_slice %21 {offsets = [6, 72], sizes = [6, 8], strides = [1, 1]} : vector<12x96xf32> to vector<6x8xf32>
    %155 = arith.truncf %152 : vector<6x8xf32> to vector<6x8xbf16>
    %156 = arith.truncf %153 : vector<6x8xf32> to vector<6x8xbf16>
    %cst_61 = arith.constant dense<0.000000e+00> : vector<6x6xf32>
    %157 = tpu.matmul %155, %156, %cst_61 {dimension_numbers = #tpu.dot_dimension_numbers<[1], [1], [0], [0], [0, 0, 1, 0], [], []>} : vector<6x8xbf16>, vector<6x8xbf16>, vector<6x6xf32> -> vector<6x6xf32>
    %158 = arith.addf %157, %0 : vector<6x6xf32>
    %cst_62 = arith.constant dense<0xFF800000> : vector<6xf32>
    %159 = vector.multi_reduction <maximumf>, %158, %cst_62 [1] : vector<6x6xf32> to vector<6xf32>
    %160 = vector.shape_cast %159 : vector<6xf32> to vector<6x1xf32>
    %cst_63 = arith.constant -1.000000e+30 : f32
    %161 = vector.broadcast %cst_63 : f32 to vector<6x1xf32>
    %162 = arith.maximumf %160, %161 : vector<6x1xf32>
    %163 = vector.broadcast %162 : vector<6x1xf32> to vector<6x6xf32>
    %164 = arith.subf %158, %163 : vector<6x6xf32>
    %165 = math.exp %164 : vector<6x6xf32>
    %cst_64 = arith.constant dense<0.000000e+00> : vector<6xf32>
    %166 = vector.multi_reduction <add>, %165, %cst_64 [1] : vector<6x6xf32> to vector<6xf32>
    %167 = vector.shape_cast %166 : vector<6xf32> to vector<6x1xf32>
    %cst_65 = arith.constant 0.000000e+00 : f32
    %168 = vector.broadcast %cst_65 : f32 to vector<6x1xf32>
    %169 = arith.cmpf oeq, %167, %168 : vector<6x1xf32>
    %cst_66 = arith.constant 1.000000e+00 : f32
    %170 = vector.broadcast %cst_66 : f32 to vector<6x1xf32>
    %171 = arith.select %169, %170, %167 : vector<6x1xi1>, vector<6x1xf32>
    %172 = vector.broadcast %171 : vector<6x1xf32> to vector<6x6xf32>
    %173 = arith.divf %165, %172 : vector<6x6xf32>
    %174 = arith.truncf %173 : vector<6x6xf32> to vector<6x6xbf16>
    %175 = arith.truncf %154 : vector<6x8xf32> to vector<6x8xbf16>
    %cst_67 = arith.constant dense<0.000000e+00> : vector<6x8xf32>
    %176 = tpu.matmul %174, %175, %cst_67 {dimension_numbers = #tpu.dot_dimension_numbers<[1], [0], [0], [1], [0, 0, 1, 1], [], []>} : vector<6x6xbf16>, vector<6x8xbf16>, vector<6x8xf32> -> vector<6x8xf32>
    %c6_68 = arith.constant 6 : index
    %c8_69 = arith.constant 8 : index
    %177 = vector.load %arg29[%c6_68, %c8_69] : memref<12x32xf32, #tpu.memory_space<vmem>>, vector<6x8xf32>
    tpu.vector_store %arg29[%c6_68, %c8_69], %176 {strides = array<i32>} : memref<12x32xf32, #tpu.memory_space<vmem>>, vector<6x8xf32>,
    %178 = vector.extract_strided_slice %21 {offsets = [6, 16], sizes = [6, 8], strides = [1, 1]} : vector<12x96xf32> to vector<6x8xf32>
    %179 = vector.extract_strided_slice %21 {offsets = [6, 48], sizes = [6, 8], strides = [1, 1]} : vector<12x96xf32> to vector<6x8xf32>
    %180 = vector.extract_strided_slice %21 {offsets = [6, 80], sizes = [6, 8], strides = [1, 1]} : vector<12x96xf32> to vector<6x8xf32>
    %181 = arith.truncf %178 : vector<6x8xf32> to vector<6x8xbf16>
    %182 = arith.truncf %179 : vector<6x8xf32> to vector<6x8xbf16>
    %cst_70 = arith.constant dense<0.000000e+00> : vector<6x6xf32>
    %183 = tpu.matmul %181, %182, %cst_70 {dimension_numbers = #tpu.dot_dimension_numbers<[1], [1], [0], [0], [0, 0, 1, 0], [], []>} : vector<6x8xbf16>, vector<6x8xbf16>, vector<6x6xf32> -> vector<6x6xf32>
    %184 = arith.addf %183, %0 : vector<6x6xf32>
    %cst_71 = arith.constant dense<0xFF800000> : vector<6xf32>
    %185 = vector.multi_reduction <maximumf>, %184, %cst_71 [1] : vector<6x6xf32> to vector<6xf32>
    %186 = vector.shape_cast %185 : vector<6xf32> to vector<6x1xf32>
    %cst_72 = arith.constant -1.000000e+30 : f32
    %187 = vector.broadcast %cst_72 : f32 to vector<6x1xf32>
    %188 = arith.maximumf %186, %187 : vector<6x1xf32>
    %189 = vector.broadcast %188 : vector<6x1xf32> to vector<6x6xf32>
    %190 = arith.subf %184, %189 : vector<6x6xf32>
    %191 = math.exp %190 : vector<6x6xf32>
    %cst_73 = arith.constant dense<0.000000e+00> : vector<6xf32>
    %192 = vector.multi_reduction <add>, %191, %cst_73 [1] : vector<6x6xf32> to vector<6xf32>
    %193 = vector.shape_cast %192 : vector<6xf32> to vector<6x1xf32>
    %cst_74 = arith.constant 0.000000e+00 : f32
    %194 = vector.broadcast %cst_74 : f32 to vector<6x1xf32>
    %195 = arith.cmpf oeq, %193, %194 : vector<6x1xf32>
    %cst_75 = arith.constant 1.000000e+00 : f32
    %196 = vector.broadcast %cst_75 : f32 to vector<6x1xf32>
    %197 = arith.select %195, %196, %193 : vector<6x1xi1>, vector<6x1xf32>
    %198 = vector.broadcast %197 : vector<6x1xf32> to vector<6x6xf32>
    %199 = arith.divf %191, %198 : vector<6x6xf32>
    %200 = arith.truncf %199 : vector<6x6xf32> to vector<6x6xbf16>
    %201 = arith.truncf %180 : vector<6x8xf32> to vector<6x8xbf16>
    %cst_76 = arith.constant dense<0.000000e+00> : vector<6x8xf32>
    %202 = tpu.matmul %200, %201, %cst_76 {dimension_numbers = #tpu.dot_dimension_numbers<[1], [0], [0], [1], [0, 0, 1, 1], [], []>} : vector<6x6xbf16>, vector<6x8xbf16>, vector<6x8xf32> -> vector<6x8xf32>
    %c6_77 = arith.constant 6 : index
    %c16_78 = arith.constant 16 : index
    %203 = vector.load %arg29[%c6_77, %c16_78] : memref<12x32xf32, #tpu.memory_space<vmem>>, vector<6x8xf32>
    tpu.vector_store %arg29[%c6_77, %c16_78], %202 {strides = array<i32>} : memref<12x32xf32, #tpu.memory_space<vmem>>, vector<6x8xf32>,
    %204 = vector.extract_strided_slice %21 {offsets = [6, 24], sizes = [6, 8], strides = [1, 1]} : vector<12x96xf32> to vector<6x8xf32>
    %205 = vector.extract_strided_slice %21 {offsets = [6, 56], sizes = [6, 8], strides = [1, 1]} : vector<12x96xf32> to vector<6x8xf32>
    %206 = vector.extract_strided_slice %21 {offsets = [6, 88], sizes = [6, 8], strides = [1, 1]} : vector<12x96xf32> to vector<6x8xf32>
    %207 = arith.truncf %204 : vector<6x8xf32> to vector<6x8xbf16>
    %208 = arith.truncf %205 : vector<6x8xf32> to vector<6x8xbf16>
    %cst_79 = arith.constant dense<0.000000e+00> : vector<6x6xf32>
    %209 = tpu.matmul %207, %208, %cst_79 {dimension_numbers = #tpu.dot_dimension_numbers<[1], [1], [0], [0], [0, 0, 1, 0], [], []>} : vector<6x8xbf16>, vector<6x8xbf16>, vector<6x6xf32> -> vector<6x6xf32>
    %210 = arith.addf %209, %0 : vector<6x6xf32>
    %cst_80 = arith.constant dense<0xFF800000> : vector<6xf32>
    %211 = vector.multi_reduction <maximumf>, %210, %cst_80 [1] : vector<6x6xf32> to vector<6xf32>
    %212 = vector.shape_cast %211 : vector<6xf32> to vector<6x1xf32>
    %cst_81 = arith.constant -1.000000e+30 : f32
    %213 = vector.broadcast %cst_81 : f32 to vector<6x1xf32>
    %214 = arith.maximumf %212, %213 : vector<6x1xf32>
    %215 = vector.broadcast %214 : vector<6x1xf32> to vector<6x6xf32>
    %216 = arith.subf %210, %215 : vector<6x6xf32>
    %217 = math.exp %216 : vector<6x6xf32>
    %cst_82 = arith.constant dense<0.000000e+00> : vector<6xf32>
    %218 = vector.multi_reduction <add>, %217, %cst_82 [1] : vector<6x6xf32> to vector<6xf32>
    %219 = vector.shape_cast %218 : vector<6xf32> to vector<6x1xf32>
    %cst_83 = arith.constant 0.000000e+00 : f32
    %220 = vector.broadcast %cst_83 : f32 to vector<6x1xf32>
    %221 = arith.cmpf oeq, %219, %220 : vector<6x1xf32>
    %cst_84 = arith.constant 1.000000e+00 : f32
    %222 = vector.broadcast %cst_84 : f32 to vector<6x1xf32>
    %223 = arith.select %221, %222, %219 : vector<6x1xi1>, vector<6x1xf32>
    %224 = vector.broadcast %223 : vector<6x1xf32> to vector<6x6xf32>
    %225 = arith.divf %217, %224 : vector<6x6xf32>
    %226 = arith.truncf %225 : vector<6x6xf32> to vector<6x6xbf16>
    %227 = arith.truncf %206 : vector<6x8xf32> to vector<6x8xbf16>
    %cst_85 = arith.constant dense<0.000000e+00> : vector<6x8xf32>
    %228 = tpu.matmul %226, %227, %cst_85 {dimension_numbers = #tpu.dot_dimension_numbers<[1], [0], [0], [1], [0, 0, 1, 1], [], []>} : vector<6x6xbf16>, vector<6x8xbf16>, vector<6x8xf32> -> vector<6x8xf32>
    %c6_86 = arith.constant 6 : index
    %c24_87 = arith.constant 24 : index
    %229 = vector.load %arg29[%c6_86, %c24_87] : memref<12x32xf32, #tpu.memory_space<vmem>>, vector<6x8xf32>
    tpu.vector_store %arg29[%c6_86, %c24_87], %228 {strides = array<i32>} : memref<12x32xf32, #tpu.memory_space<vmem>>, vector<6x8xf32>,
    %c0_88 = arith.constant 0 : index
    %c0_89 = arith.constant 0 : index
    %230 = vector.load %arg29[%c0_88, %c0_89] : memref<12x32xf32, #tpu.memory_space<vmem>>, vector<12x32xf32>
    %c0_90 = arith.constant 0 : index
    %c0_91 = arith.constant 0 : index
    %c0_92 = arith.constant 0 : index
    %231 = vector.load %arg10[%c0_90, %c0_91, %c0_92] : memref<2x32x32xf32, #tpu.memory_space<vmem>>, vector<1x32x32xf32>
    %232 = vector.shape_cast %231 : vector<1x32x32xf32> to vector<32x32xf32>
    %c0_93 = arith.constant 0 : index
    %c0_94 = arith.constant 0 : index
    %c0_95 = arith.constant 0 : index
    %233 = vector.load %arg11[%c0_93, %c0_94, %c0_95] : memref<2x1x32xf32, #tpu.memory_space<vmem>>, vector<1x1x32xf32>
    %234 = vector.shape_cast %233 : vector<1x1x32xf32> to vector<1x32xf32>
    %235 = arith.truncf %230 : vector<12x32xf32> to vector<12x32xbf16>
    %236 = arith.truncf %232 : vector<32x32xf32> to vector<32x32xbf16>
    %cst_96 = arith.constant dense<0.000000e+00> : vector<12x32xf32>
    %237 = tpu.matmul %235, %236, %cst_96 {dimension_numbers = #tpu.dot_dimension_numbers<[1], [0], [0], [1], [0, 0, 1, 1], [], []>} : vector<12x32xbf16>, vector<32x32xbf16>, vector<12x32xf32> -> vector<12x32xf32>
    %238 = vector.broadcast %234 : vector<1x32xf32> to vector<12x32xf32>
    %239 = arith.addf %237, %238 : vector<12x32xf32>
    %240 = arith.addf %12, %239 : vector<12x32xf32>
    %c0_97 = arith.constant 0 : index
    %c0_98 = arith.constant 0 : index
    %c0_99 = arith.constant 0 : index
    %241 = vector.load %arg22[%c0_97, %c0_98, %c0_99] : memref<2x1x32xf32, #tpu.memory_space<vmem>>, vector<1x1x32xf32>
    %242 = vector.shape_cast %241 : vector<1x1x32xf32> to vector<1x32xf32>
    %c0_100 = arith.constant 0 : index
    %c0_101 = arith.constant 0 : index
    %c0_102 = arith.constant 0 : index
    %243 = vector.load %arg23[%c0_100, %c0_101, %c0_102] : memref<2x1x32xf32, #tpu.memory_space<vmem>>, vector<1x1x32xf32>
    %244 = vector.shape_cast %243 : vector<1x1x32xf32> to vector<1x32xf32>
    %cst_103 = arith.constant dense<0.000000e+00> : vector<12xf32>
    %245 = vector.multi_reduction <add>, %240, %cst_103 [1] : vector<12x32xf32> to vector<12xf32>
    %246 = vector.shape_cast %245 : vector<12xf32> to vector<12x1xf32>
    %cst_104 = arith.constant 3.200000e+01 : f32
    %247 = vector.broadcast %cst_104 : f32 to vector<12x1xf32>
    %248 = arith.divf %246, %247 : vector<12x1xf32>
    %249 = vector.broadcast %248 : vector<12x1xf32> to vector<12x32xf32>
    %250 = arith.subf %240, %249 : vector<12x32xf32>
    %251 = arith.mulf %250, %250 : vector<12x32xf32>
    %cst_105 = arith.constant dense<0.000000e+00> : vector<12xf32>
    %252 = vector.multi_reduction <add>, %251, %cst_105 [1] : vector<12x32xf32> to vector<12xf32>
    %253 = vector.shape_cast %252 : vector<12xf32> to vector<12x1xf32>
    %cst_106 = arith.constant 3.200000e+01 : f32
    %254 = vector.broadcast %cst_106 : f32 to vector<12x1xf32>
    %255 = arith.divf %253, %254 : vector<12x1xf32>
    %cst_107 = arith.constant 9.99999974E-6 : f32
    %256 = vector.broadcast %cst_107 : f32 to vector<12x1xf32>
    %257 = arith.addf %255, %256 : vector<12x1xf32>
    %258 = math.rsqrt %257 : vector<12x1xf32>
    %259 = vector.broadcast %258 : vector<12x1xf32> to vector<12x32xf32>
    %260 = arith.mulf %250, %259 : vector<12x32xf32>
    %261 = vector.broadcast %242 : vector<1x32xf32> to vector<12x32xf32>
    %262 = arith.mulf %260, %261 : vector<12x32xf32>
    %263 = vector.broadcast %244 : vector<1x32xf32> to vector<12x32xf32>
    %264 = arith.addf %262, %263 : vector<12x32xf32>
    %c0_108 = arith.constant 0 : index
    %c0_109 = arith.constant 0 : index
    %c0_110 = arith.constant 0 : index
    %265 = vector.load %arg12[%c0_108, %c0_109, %c0_110] : memref<2x32x32xf32, #tpu.memory_space<vmem>>, vector<1x32x32xf32>
    %266 = vector.shape_cast %265 : vector<1x32x32xf32> to vector<32x32xf32>
    %c0_111 = arith.constant 0 : index
    %c0_112 = arith.constant 0 : index
    %c0_113 = arith.constant 0 : index
    %267 = vector.load %arg13[%c0_111, %c0_112, %c0_113] : memref<2x1x32xf32, #tpu.memory_space<vmem>>, vector<1x1x32xf32>
    %268 = vector.shape_cast %267 : vector<1x1x32xf32> to vector<1x32xf32>
    %269 = arith.truncf %264 : vector<12x32xf32> to vector<12x32xbf16>
    %270 = arith.truncf %266 : vector<32x32xf32> to vector<32x32xbf16>
    %cst_114 = arith.constant dense<0.000000e+00> : vector<12x32xf32>
    %271 = tpu.matmul %269, %270, %cst_114 {dimension_numbers = #tpu.dot_dimension_numbers<[1], [0], [0], [1], [0, 0, 1, 1], [], []>} : vector<12x32xbf16>, vector<32x32xbf16>, vector<12x32xf32> -> vector<12x32xf32>
    %272 = vector.broadcast %268 : vector<1x32xf32> to vector<12x32xf32>
    %273 = arith.addf %271, %272 : vector<12x32xf32>
    %c0_115 = arith.constant 0 : index
    %c0_116 = arith.constant 0 : index
    %c0_117 = arith.constant 0 : index
    %274 = vector.load %arg14[%c0_115, %c0_116, %c0_117] : memref<2x32x64xf32, #tpu.memory_space<vmem>>, vector<1x32x64xf32>
    %275 = vector.shape_cast %274 : vector<1x32x64xf32> to vector<32x64xf32>
    %c0_118 = arith.constant 0 : index
    %c0_119 = arith.constant 0 : index
    %c0_120 = arith.constant 0 : index
    %276 = vector.load %arg15[%c0_118, %c0_119, %c0_120] : memref<2x1x64xf32, #tpu.memory_space<vmem>>, vector<1x1x64xf32>
    %277 = vector.shape_cast %276 : vector<1x1x64xf32> to vector<1x64xf32>
    %278 = arith.truncf %2 : vector<16x32xf32> to vector<16x32xbf16>
    %279 = arith.truncf %275 : vector<32x64xf32> to vector<32x64xbf16>
    %cst_121 = arith.constant dense<0.000000e+00> : vector<16x64xf32>
    %280 = tpu.matmul %278, %279, %cst_121 {dimension_numbers = #tpu.dot_dimension_numbers<[1], [0], [0], [1], [0, 0, 1, 1], [], []>} : vector<16x32xbf16>, vector<32x64xbf16>, vector<16x64xf32> -> vector<16x64xf32>
    %281 = vector.broadcast %277 : vector<1x64xf32> to vector<16x64xf32>
    %282 = arith.addf %280, %281 : vector<16x64xf32>
    %283 = vector.extract_strided_slice %273 {offsets = [0, 0], sizes = [6, 8], strides = [1, 1]} : vector<12x32xf32> to vector<6x8xf32>
    %284 = vector.extract_strided_slice %282 {offsets = [0, 0], sizes = [8, 8], strides = [1, 1]} : vector<16x64xf32> to vector<8x8xf32>
    %285 = vector.extract_strided_slice %282 {offsets = [0, 32], sizes = [8, 8], strides = [1, 1]} : vector<16x64xf32> to vector<8x8xf32>
    %286 = arith.truncf %283 : vector<6x8xf32> to vector<6x8xbf16>
    %287 = arith.truncf %284 : vector<8x8xf32> to vector<8x8xbf16>
    %cst_122 = arith.constant dense<0.000000e+00> : vector<6x8xf32>
    %288 = tpu.matmul %286, %287, %cst_122 {dimension_numbers = #tpu.dot_dimension_numbers<[1], [1], [0], [0], [0, 0, 1, 0], [], []>} : vector<6x8xbf16>, vector<8x8xbf16>, vector<6x8xf32> -> vector<6x8xf32>
    %289 = arith.addf %288, %1 : vector<6x8xf32>
    %cst_123 = arith.constant dense<0xFF800000> : vector<6xf32>
    %290 = vector.multi_reduction <maximumf>, %289, %cst_123 [1] : vector<6x8xf32> to vector<6xf32>
    %291 = vector.shape_cast %290 : vector<6xf32> to vector<6x1xf32>
    %cst_124 = arith.constant -1.000000e+30 : f32
    %292 = vector.broadcast %cst_124 : f32 to vector<6x1xf32>
    %293 = arith.maximumf %291, %292 : vector<6x1xf32>
    %294 = vector.broadcast %293 : vector<6x1xf32> to vector<6x8xf32>
    %295 = arith.subf %289, %294 : vector<6x8xf32>
    %296 = math.exp %295 : vector<6x8xf32>
    %cst_125 = arith.constant dense<0.000000e+00> : vector<6xf32>
    %297 = vector.multi_reduction <add>, %296, %cst_125 [1] : vector<6x8xf32> to vector<6xf32>
    %298 = vector.shape_cast %297 : vector<6xf32> to vector<6x1xf32>
    %cst_126 = arith.constant 0.000000e+00 : f32
    %299 = vector.broadcast %cst_126 : f32 to vector<6x1xf32>
    %300 = arith.cmpf oeq, %298, %299 : vector<6x1xf32>
    %cst_127 = arith.constant 1.000000e+00 : f32
    %301 = vector.broadcast %cst_127 : f32 to vector<6x1xf32>
    %302 = arith.select %300, %301, %298 : vector<6x1xi1>, vector<6x1xf32>
    %303 = vector.broadcast %302 : vector<6x1xf32> to vector<6x8xf32>
    %304 = arith.divf %296, %303 : vector<6x8xf32>
    %305 = arith.truncf %304 : vector<6x8xf32> to vector<6x8xbf16>
    %306 = arith.truncf %285 : vector<8x8xf32> to vector<8x8xbf16>
    %cst_128 = arith.constant dense<0.000000e+00> : vector<6x8xf32>
    %307 = tpu.matmul %305, %306, %cst_128 {dimension_numbers = #tpu.dot_dimension_numbers<[1], [0], [0], [1], [0, 0, 1, 1], [], []>} : vector<6x8xbf16>, vector<8x8xbf16>, vector<6x8xf32> -> vector<6x8xf32>
    %c0_129 = arith.constant 0 : index
    %c0_130 = arith.constant 0 : index
    %308 = vector.load %arg29[%c0_129, %c0_130] : memref<12x32xf32, #tpu.memory_space<vmem>>, vector<6x8xf32>
    tpu.vector_store %arg29[%c0_129, %c0_130], %307 {strides = array<i32>} : memref<12x32xf32, #tpu.memory_space<vmem>>, vector<6x8xf32>,
    %309 = vector.extract_strided_slice %273 {offsets = [0, 8], sizes = [6, 8], strides = [1, 1]} : vector<12x32xf32> to vector<6x8xf32>
    %310 = vector.extract_strided_slice %282 {offsets = [0, 8], sizes = [8, 8], strides = [1, 1]} : vector<16x64xf32> to vector<8x8xf32>
    %311 = vector.extract_strided_slice %282 {offsets = [0, 40], sizes = [8, 8], strides = [1, 1]} : vector<16x64xf32> to vector<8x8xf32>
    %312 = arith.truncf %309 : vector<6x8xf32> to vector<6x8xbf16>
    %313 = arith.truncf %310 : vector<8x8xf32> to vector<8x8xbf16>
    %cst_131 = arith.constant dense<0.000000e+00> : vector<6x8xf32>
    %314 = tpu.matmul %312, %313, %cst_131 {dimension_numbers = #tpu.dot_dimension_numbers<[1], [1], [0], [0], [0, 0, 1, 0], [], []>} : vector<6x8xbf16>, vector<8x8xbf16>, vector<6x8xf32> -> vector<6x8xf32>
    %315 = arith.addf %314, %1 : vector<6x8xf32>
    %cst_132 = arith.constant dense<0xFF800000> : vector<6xf32>
    %316 = vector.multi_reduction <maximumf>, %315, %cst_132 [1] : vector<6x8xf32> to vector<6xf32>
    %317 = vector.shape_cast %316 : vector<6xf32> to vector<6x1xf32>
    %cst_133 = arith.constant -1.000000e+30 : f32
    %318 = vector.broadcast %cst_133 : f32 to vector<6x1xf32>
    %319 = arith.maximumf %317, %318 : vector<6x1xf32>
    %320 = vector.broadcast %319 : vector<6x1xf32> to vector<6x8xf32>
    %321 = arith.subf %315, %320 : vector<6x8xf32>
    %322 = math.exp %321 : vector<6x8xf32>
    %cst_134 = arith.constant dense<0.000000e+00> : vector<6xf32>
    %323 = vector.multi_reduction <add>, %322, %cst_134 [1] : vector<6x8xf32> to vector<6xf32>
    %324 = vector.shape_cast %323 : vector<6xf32> to vector<6x1xf32>
    %cst_135 = arith.constant 0.000000e+00 : f32
    %325 = vector.broadcast %cst_135 : f32 to vector<6x1xf32>
    %326 = arith.cmpf oeq, %324, %325 : vector<6x1xf32>
    %cst_136 = arith.constant 1.000000e+00 : f32
    %327 = vector.broadcast %cst_136 : f32 to vector<6x1xf32>
    %328 = arith.select %326, %327, %324 : vector<6x1xi1>, vector<6x1xf32>
    %329 = vector.broadcast %328 : vector<6x1xf32> to vector<6x8xf32>
    %330 = arith.divf %322, %329 : vector<6x8xf32>
    %331 = arith.truncf %330 : vector<6x8xf32> to vector<6x8xbf16>
    %332 = arith.truncf %311 : vector<8x8xf32> to vector<8x8xbf16>
    %cst_137 = arith.constant dense<0.000000e+00> : vector<6x8xf32>
    %333 = tpu.matmul %331, %332, %cst_137 {dimension_numbers = #tpu.dot_dimension_numbers<[1], [0], [0], [1], [0, 0, 1, 1], [], []>} : vector<6x8xbf16>, vector<8x8xbf16>, vector<6x8xf32> -> vector<6x8xf32>
    %c0_138 = arith.constant 0 : index
    %c8_139 = arith.constant 8 : index
    %334 = vector.load %arg29[%c0_138, %c8_139] : memref<12x32xf32, #tpu.memory_space<vmem>>, vector<6x8xf32>
    tpu.vector_store %arg29[%c0_138, %c8_139], %333 {strides = array<i32>} : memref<12x32xf32, #tpu.memory_space<vmem>>, vector<6x8xf32>,
    %335 = vector.extract_strided_slice %273 {offsets = [0, 16], sizes = [6, 8], strides = [1, 1]} : vector<12x32xf32> to vector<6x8xf32>
    %336 = vector.extract_strided_slice %282 {offsets = [0, 16], sizes = [8, 8], strides = [1, 1]} : vector<16x64xf32> to vector<8x8xf32>
    %337 = vector.extract_strided_slice %282 {offsets = [0, 48], sizes = [8, 8], strides = [1, 1]} : vector<16x64xf32> to vector<8x8xf32>
    %338 = arith.truncf %335 : vector<6x8xf32> to vector<6x8xbf16>
    %339 = arith.truncf %336 : vector<8x8xf32> to vector<8x8xbf16>
    %cst_140 = arith.constant dense<0.000000e+00> : vector<6x8xf32>
    %340 = tpu.matmul %338, %339, %cst_140 {dimension_numbers = #tpu.dot_dimension_numbers<[1], [1], [0], [0], [0, 0, 1, 0], [], []>} : vector<6x8xbf16>, vector<8x8xbf16>, vector<6x8xf32> -> vector<6x8xf32>
    %341 = arith.addf %340, %1 : vector<6x8xf32>
    %cst_141 = arith.constant dense<0xFF800000> : vector<6xf32>
    %342 = vector.multi_reduction <maximumf>, %341, %cst_141 [1] : vector<6x8xf32> to vector<6xf32>
    %343 = vector.shape_cast %342 : vector<6xf32> to vector<6x1xf32>
    %cst_142 = arith.constant -1.000000e+30 : f32
    %344 = vector.broadcast %cst_142 : f32 to vector<6x1xf32>
    %345 = arith.maximumf %343, %344 : vector<6x1xf32>
    %346 = vector.broadcast %345 : vector<6x1xf32> to vector<6x8xf32>
    %347 = arith.subf %341, %346 : vector<6x8xf32>
    %348 = math.exp %347 : vector<6x8xf32>
    %cst_143 = arith.constant dense<0.000000e+00> : vector<6xf32>
    %349 = vector.multi_reduction <add>, %348, %cst_143 [1] : vector<6x8xf32> to vector<6xf32>
    %350 = vector.shape_cast %349 : vector<6xf32> to vector<6x1xf32>
    %cst_144 = arith.constant 0.000000e+00 : f32
    %351 = vector.broadcast %cst_144 : f32 to vector<6x1xf32>
    %352 = arith.cmpf oeq, %350, %351 : vector<6x1xf32>
    %cst_145 = arith.constant 1.000000e+00 : f32
    %353 = vector.broadcast %cst_145 : f32 to vector<6x1xf32>
    %354 = arith.select %352, %353, %350 : vector<6x1xi1>, vector<6x1xf32>
    %355 = vector.broadcast %354 : vector<6x1xf32> to vector<6x8xf32>
    %356 = arith.divf %348, %355 : vector<6x8xf32>
    %357 = arith.truncf %356 : vector<6x8xf32> to vector<6x8xbf16>
    %358 = arith.truncf %337 : vector<8x8xf32> to vector<8x8xbf16>
    %cst_146 = arith.constant dense<0.000000e+00> : vector<6x8xf32>
    %359 = tpu.matmul %357, %358, %cst_146 {dimension_numbers = #tpu.dot_dimension_numbers<[1], [0], [0], [1], [0, 0, 1, 1], [], []>} : vector<6x8xbf16>, vector<8x8xbf16>, vector<6x8xf32> -> vector<6x8xf32>
    %c0_147 = arith.constant 0 : index
    %c16_148 = arith.constant 16 : index
    %360 = vector.load %arg29[%c0_147, %c16_148] : memref<12x32xf32, #tpu.memory_space<vmem>>, vector<6x8xf32>
    tpu.vector_store %arg29[%c0_147, %c16_148], %359 {strides = array<i32>} : memref<12x32xf32, #tpu.memory_space<vmem>>, vector<6x8xf32>,
    %361 = vector.extract_strided_slice %273 {offsets = [0, 24], sizes = [6, 8], strides = [1, 1]} : vector<12x32xf32> to vector<6x8xf32>
    %362 = vector.extract_strided_slice %282 {offsets = [0, 24], sizes = [8, 8], strides = [1, 1]} : vector<16x64xf32> to vector<8x8xf32>
    %363 = vector.extract_strided_slice %282 {offsets = [0, 56], sizes = [8, 8], strides = [1, 1]} : vector<16x64xf32> to vector<8x8xf32>
    %364 = arith.truncf %361 : vector<6x8xf32> to vector<6x8xbf16>
    %365 = arith.truncf %362 : vector<8x8xf32> to vector<8x8xbf16>
    %cst_149 = arith.constant dense<0.000000e+00> : vector<6x8xf32>
    %366 = tpu.matmul %364, %365, %cst_149 {dimension_numbers = #tpu.dot_dimension_numbers<[1], [1], [0], [0], [0, 0, 1, 0], [], []>} : vector<6x8xbf16>, vector<8x8xbf16>, vector<6x8xf32> -> vector<6x8xf32>
    %367 = arith.addf %366, %1 : vector<6x8xf32>
    %cst_150 = arith.constant dense<0xFF800000> : vector<6xf32>
    %368 = vector.multi_reduction <maximumf>, %367, %cst_150 [1] : vector<6x8xf32> to vector<6xf32>
    %369 = vector.shape_cast %368 : vector<6xf32> to vector<6x1xf32>
    %cst_151 = arith.constant -1.000000e+30 : f32
    %370 = vector.broadcast %cst_151 : f32 to vector<6x1xf32>
    %371 = arith.maximumf %369, %370 : vector<6x1xf32>
    %372 = vector.broadcast %371 : vector<6x1xf32> to vector<6x8xf32>
    %373 = arith.subf %367, %372 : vector<6x8xf32>
    %374 = math.exp %373 : vector<6x8xf32>
    %cst_152 = arith.constant dense<0.000000e+00> : vector<6xf32>
    %375 = vector.multi_reduction <add>, %374, %cst_152 [1] : vector<6x8xf32> to vector<6xf32>
    %376 = vector.shape_cast %375 : vector<6xf32> to vector<6x1xf32>
    %cst_153 = arith.constant 0.000000e+00 : f32
    %377 = vector.broadcast %cst_153 : f32 to vector<6x1xf32>
    %378 = arith.cmpf oeq, %376, %377 : vector<6x1xf32>
    %cst_154 = arith.constant 1.000000e+00 : f32
    %379 = vector.broadcast %cst_154 : f32 to vector<6x1xf32>
    %380 = arith.select %378, %379, %376 : vector<6x1xi1>, vector<6x1xf32>
    %381 = vector.broadcast %380 : vector<6x1xf32> to vector<6x8xf32>
    %382 = arith.divf %374, %381 : vector<6x8xf32>
    %383 = arith.truncf %382 : vector<6x8xf32> to vector<6x8xbf16>
    %384 = arith.truncf %363 : vector<8x8xf32> to vector<8x8xbf16>
    %cst_155 = arith.constant dense<0.000000e+00> : vector<6x8xf32>
    %385 = tpu.matmul %383, %384, %cst_155 {dimension_numbers = #tpu.dot_dimension_numbers<[1], [0], [0], [1], [0, 0, 1, 1], [], []>} : vector<6x8xbf16>, vector<8x8xbf16>, vector<6x8xf32> -> vector<6x8xf32>
    %c0_156 = arith.constant 0 : index
    %c24_157 = arith.constant 24 : index
    %386 = vector.load %arg29[%c0_156, %c24_157] : memref<12x32xf32, #tpu.memory_space<vmem>>, vector<6x8xf32>
    tpu.vector_store %arg29[%c0_156, %c24_157], %385 {strides = array<i32>} : memref<12x32xf32, #tpu.memory_space<vmem>>, vector<6x8xf32>,
    %387 = vector.extract_strided_slice %273 {offsets = [6, 0], sizes = [6, 8], strides = [1, 1]} : vector<12x32xf32> to vector<6x8xf32>
    %388 = vector.extract_strided_slice %282 {offsets = [8, 0], sizes = [8, 8], strides = [1, 1]} : vector<16x64xf32> to vector<8x8xf32>
    %389 = vector.extract_strided_slice %282 {offsets = [8, 32], sizes = [8, 8], strides = [1, 1]} : vector<16x64xf32> to vector<8x8xf32>
    %390 = arith.truncf %387 : vector<6x8xf32> to vector<6x8xbf16>
    %391 = arith.truncf %388 : vector<8x8xf32> to vector<8x8xbf16>
    %cst_158 = arith.constant dense<0.000000e+00> : vector<6x8xf32>
    %392 = tpu.matmul %390, %391, %cst_158 {dimension_numbers = #tpu.dot_dimension_numbers<[1], [1], [0], [0], [0, 0, 1, 0], [], []>} : vector<6x8xbf16>, vector<8x8xbf16>, vector<6x8xf32> -> vector<6x8xf32>
    %393 = arith.addf %392, %1 : vector<6x8xf32>
    %cst_159 = arith.constant dense<0xFF800000> : vector<6xf32>
    %394 = vector.multi_reduction <maximumf>, %393, %cst_159 [1] : vector<6x8xf32> to vector<6xf32>
    %395 = vector.shape_cast %394 : vector<6xf32> to vector<6x1xf32>
    %cst_160 = arith.constant -1.000000e+30 : f32
    %396 = vector.broadcast %cst_160 : f32 to vector<6x1xf32>
    %397 = arith.maximumf %395, %396 : vector<6x1xf32>
    %398 = vector.broadcast %397 : vector<6x1xf32> to vector<6x8xf32>
    %399 = arith.subf %393, %398 : vector<6x8xf32>
    %400 = math.exp %399 : vector<6x8xf32>
    %cst_161 = arith.constant dense<0.000000e+00> : vector<6xf32>
    %401 = vector.multi_reduction <add>, %400, %cst_161 [1] : vector<6x8xf32> to vector<6xf32>
    %402 = vector.shape_cast %401 : vector<6xf32> to vector<6x1xf32>
    %cst_162 = arith.constant 0.000000e+00 : f32
    %403 = vector.broadcast %cst_162 : f32 to vector<6x1xf32>
    %404 = arith.cmpf oeq, %402, %403 : vector<6x1xf32>
    %cst_163 = arith.constant 1.000000e+00 : f32
    %405 = vector.broadcast %cst_163 : f32 to vector<6x1xf32>
    %406 = arith.select %404, %405, %402 : vector<6x1xi1>, vector<6x1xf32>
    %407 = vector.broadcast %406 : vector<6x1xf32> to vector<6x8xf32>
    %408 = arith.divf %400, %407 : vector<6x8xf32>
    %409 = arith.truncf %408 : vector<6x8xf32> to vector<6x8xbf16>
    %410 = arith.truncf %389 : vector<8x8xf32> to vector<8x8xbf16>
    %cst_164 = arith.constant dense<0.000000e+00> : vector<6x8xf32>
    %411 = tpu.matmul %409, %410, %cst_164 {dimension_numbers = #tpu.dot_dimension_numbers<[1], [0], [0], [1], [0, 0, 1, 1], [], []>} : vector<6x8xbf16>, vector<8x8xbf16>, vector<6x8xf32> -> vector<6x8xf32>
    %c6_165 = arith.constant 6 : index
    %c0_166 = arith.constant 0 : index
    %412 = vector.load %arg29[%c6_165, %c0_166] : memref<12x32xf32, #tpu.memory_space<vmem>>, vector<6x8xf32>
    tpu.vector_store %arg29[%c6_165, %c0_166], %411 {strides = array<i32>} : memref<12x32xf32, #tpu.memory_space<vmem>>, vector<6x8xf32>,
    %413 = vector.extract_strided_slice %273 {offsets = [6, 8], sizes = [6, 8], strides = [1, 1]} : vector<12x32xf32> to vector<6x8xf32>
    %414 = vector.extract_strided_slice %282 {offsets = [8, 8], sizes = [8, 8], strides = [1, 1]} : vector<16x64xf32> to vector<8x8xf32>
    %415 = vector.extract_strided_slice %282 {offsets = [8, 40], sizes = [8, 8], strides = [1, 1]} : vector<16x64xf32> to vector<8x8xf32>
    %416 = arith.truncf %413 : vector<6x8xf32> to vector<6x8xbf16>
    %417 = arith.truncf %414 : vector<8x8xf32> to vector<8x8xbf16>
    %cst_167 = arith.constant dense<0.000000e+00> : vector<6x8xf32>
    %418 = tpu.matmul %416, %417, %cst_167 {dimension_numbers = #tpu.dot_dimension_numbers<[1], [1], [0], [0], [0, 0, 1, 0], [], []>} : vector<6x8xbf16>, vector<8x8xbf16>, vector<6x8xf32> -> vector<6x8xf32>
    %419 = arith.addf %418, %1 : vector<6x8xf32>
    %cst_168 = arith.constant dense<0xFF800000> : vector<6xf32>
    %420 = vector.multi_reduction <maximumf>, %419, %cst_168 [1] : vector<6x8xf32> to vector<6xf32>
    %421 = vector.shape_cast %420 : vector<6xf32> to vector<6x1xf32>
    %cst_169 = arith.constant -1.000000e+30 : f32
    %422 = vector.broadcast %cst_169 : f32 to vector<6x1xf32>
    %423 = arith.maximumf %421, %422 : vector<6x1xf32>
    %424 = vector.broadcast %423 : vector<6x1xf32> to vector<6x8xf32>
    %425 = arith.subf %419, %424 : vector<6x8xf32>
    %426 = math.exp %425 : vector<6x8xf32>
    %cst_170 = arith.constant dense<0.000000e+00> : vector<6xf32>
    %427 = vector.multi_reduction <add>, %426, %cst_170 [1] : vector<6x8xf32> to vector<6xf32>
    %428 = vector.shape_cast %427 : vector<6xf32> to vector<6x1xf32>
    %cst_171 = arith.constant 0.000000e+00 : f32
    %429 = vector.broadcast %cst_171 : f32 to vector<6x1xf32>
    %430 = arith.cmpf oeq, %428, %429 : vector<6x1xf32>
    %cst_172 = arith.constant 1.000000e+00 : f32
    %431 = vector.broadcast %cst_172 : f32 to vector<6x1xf32>
    %432 = arith.select %430, %431, %428 : vector<6x1xi1>, vector<6x1xf32>
    %433 = vector.broadcast %432 : vector<6x1xf32> to vector<6x8xf32>
    %434 = arith.divf %426, %433 : vector<6x8xf32>
    %435 = arith.truncf %434 : vector<6x8xf32> to vector<6x8xbf16>
    %436 = arith.truncf %415 : vector<8x8xf32> to vector<8x8xbf16>
    %cst_173 = arith.constant dense<0.000000e+00> : vector<6x8xf32>
    %437 = tpu.matmul %435, %436, %cst_173 {dimension_numbers = #tpu.dot_dimension_numbers<[1], [0], [0], [1], [0, 0, 1, 1], [], []>} : vector<6x8xbf16>, vector<8x8xbf16>, vector<6x8xf32> -> vector<6x8xf32>
    %c6_174 = arith.constant 6 : index
    %c8_175 = arith.constant 8 : index
    %438 = vector.load %arg29[%c6_174, %c8_175] : memref<12x32xf32, #tpu.memory_space<vmem>>, vector<6x8xf32>
    tpu.vector_store %arg29[%c6_174, %c8_175], %437 {strides = array<i32>} : memref<12x32xf32, #tpu.memory_space<vmem>>, vector<6x8xf32>,
    %439 = vector.extract_strided_slice %273 {offsets = [6, 16], sizes = [6, 8], strides = [1, 1]} : vector<12x32xf32> to vector<6x8xf32>
    %440 = vector.extract_strided_slice %282 {offsets = [8, 16], sizes = [8, 8], strides = [1, 1]} : vector<16x64xf32> to vector<8x8xf32>
    %441 = vector.extract_strided_slice %282 {offsets = [8, 48], sizes = [8, 8], strides = [1, 1]} : vector<16x64xf32> to vector<8x8xf32>
    %442 = arith.truncf %439 : vector<6x8xf32> to vector<6x8xbf16>
    %443 = arith.truncf %440 : vector<8x8xf32> to vector<8x8xbf16>
    %cst_176 = arith.constant dense<0.000000e+00> : vector<6x8xf32>
    %444 = tpu.matmul %442, %443, %cst_176 {dimension_numbers = #tpu.dot_dimension_numbers<[1], [1], [0], [0], [0, 0, 1, 0], [], []>} : vector<6x8xbf16>, vector<8x8xbf16>, vector<6x8xf32> -> vector<6x8xf32>
    %445 = arith.addf %444, %1 : vector<6x8xf32>
    %cst_177 = arith.constant dense<0xFF800000> : vector<6xf32>
    %446 = vector.multi_reduction <maximumf>, %445, %cst_177 [1] : vector<6x8xf32> to vector<6xf32>
    %447 = vector.shape_cast %446 : vector<6xf32> to vector<6x1xf32>
    %cst_178 = arith.constant -1.000000e+30 : f32
    %448 = vector.broadcast %cst_178 : f32 to vector<6x1xf32>
    %449 = arith.maximumf %447, %448 : vector<6x1xf32>
    %450 = vector.broadcast %449 : vector<6x1xf32> to vector<6x8xf32>
    %451 = arith.subf %445, %450 : vector<6x8xf32>
    %452 = math.exp %451 : vector<6x8xf32>
    %cst_179 = arith.constant dense<0.000000e+00> : vector<6xf32>
    %453 = vector.multi_reduction <add>, %452, %cst_179 [1] : vector<6x8xf32> to vector<6xf32>
    %454 = vector.shape_cast %453 : vector<6xf32> to vector<6x1xf32>
    %cst_180 = arith.constant 0.000000e+00 : f32
    %455 = vector.broadcast %cst_180 : f32 to vector<6x1xf32>
    %456 = arith.cmpf oeq, %454, %455 : vector<6x1xf32>
    %cst_181 = arith.constant 1.000000e+00 : f32
    %457 = vector.broadcast %cst_181 : f32 to vector<6x1xf32>
    %458 = arith.select %456, %457, %454 : vector<6x1xi1>, vector<6x1xf32>
    %459 = vector.broadcast %458 : vector<6x1xf32> to vector<6x8xf32>
    %460 = arith.divf %452, %459 : vector<6x8xf32>
    %461 = arith.truncf %460 : vector<6x8xf32> to vector<6x8xbf16>
    %462 = arith.truncf %441 : vector<8x8xf32> to vector<8x8xbf16>
    %cst_182 = arith.constant dense<0.000000e+00> : vector<6x8xf32>
    %463 = tpu.matmul %461, %462, %cst_182 {dimension_numbers = #tpu.dot_dimension_numbers<[1], [0], [0], [1], [0, 0, 1, 1], [], []>} : vector<6x8xbf16>, vector<8x8xbf16>, vector<6x8xf32> -> vector<6x8xf32>
    %c6_183 = arith.constant 6 : index
    %c16_184 = arith.constant 16 : index
    %464 = vector.load %arg29[%c6_183, %c16_184] : memref<12x32xf32, #tpu.memory_space<vmem>>, vector<6x8xf32>
    tpu.vector_store %arg29[%c6_183, %c16_184], %463 {strides = array<i32>} : memref<12x32xf32, #tpu.memory_space<vmem>>, vector<6x8xf32>,
    %465 = vector.extract_strided_slice %273 {offsets = [6, 24], sizes = [6, 8], strides = [1, 1]} : vector<12x32xf32> to vector<6x8xf32>
    %466 = vector.extract_strided_slice %282 {offsets = [8, 24], sizes = [8, 8], strides = [1, 1]} : vector<16x64xf32> to vector<8x8xf32>
    %467 = vector.extract_strided_slice %282 {offsets = [8, 56], sizes = [8, 8], strides = [1, 1]} : vector<16x64xf32> to vector<8x8xf32>
    %468 = arith.truncf %465 : vector<6x8xf32> to vector<6x8xbf16>
    %469 = arith.truncf %466 : vector<8x8xf32> to vector<8x8xbf16>
    %cst_185 = arith.constant dense<0.000000e+00> : vector<6x8xf32>
    %470 = tpu.matmul %468, %469, %cst_185 {dimension_numbers = #tpu.dot_dimension_numbers<[1], [1], [0], [0], [0, 0, 1, 0], [], []>} : vector<6x8xbf16>, vector<8x8xbf16>, vector<6x8xf32> -> vector<6x8xf32>
    %471 = arith.addf %470, %1 : vector<6x8xf32>
    %cst_186 = arith.constant dense<0xFF800000> : vector<6xf32>
    %472 = vector.multi_reduction <maximumf>, %471, %cst_186 [1] : vector<6x8xf32> to vector<6xf32>
    %473 = vector.shape_cast %472 : vector<6xf32> to vector<6x1xf32>
    %cst_187 = arith.constant -1.000000e+30 : f32
    %474 = vector.broadcast %cst_187 : f32 to vector<6x1xf32>
    %475 = arith.maximumf %473, %474 : vector<6x1xf32>
    %476 = vector.broadcast %475 : vector<6x1xf32> to vector<6x8xf32>
    %477 = arith.subf %471, %476 : vector<6x8xf32>
    %478 = math.exp %477 : vector<6x8xf32>
    %cst_188 = arith.constant dense<0.000000e+00> : vector<6xf32>
    %479 = vector.multi_reduction <add>, %478, %cst_188 [1] : vector<6x8xf32> to vector<6xf32>
    %480 = vector.shape_cast %479 : vector<6xf32> to vector<6x1xf32>
    %cst_189 = arith.constant 0.000000e+00 : f32
    %481 = vector.broadcast %cst_189 : f32 to vector<6x1xf32>
    %482 = arith.cmpf oeq, %480, %481 : vector<6x1xf32>
    %cst_190 = arith.constant 1.000000e+00 : f32
    %483 = vector.broadcast %cst_190 : f32 to vector<6x1xf32>
    %484 = arith.select %482, %483, %480 : vector<6x1xi1>, vector<6x1xf32>
    %485 = vector.broadcast %484 : vector<6x1xf32> to vector<6x8xf32>
    %486 = arith.divf %478, %485 : vector<6x8xf32>
    %487 = arith.truncf %486 : vector<6x8xf32> to vector<6x8xbf16>
    %488 = arith.truncf %467 : vector<8x8xf32> to vector<8x8xbf16>
    %cst_191 = arith.constant dense<0.000000e+00> : vector<6x8xf32>
    %489 = tpu.matmul %487, %488, %cst_191 {dimension_numbers = #tpu.dot_dimension_numbers<[1], [0], [0], [1], [0, 0, 1, 1], [], []>} : vector<6x8xbf16>, vector<8x8xbf16>, vector<6x8xf32> -> vector<6x8xf32>
    %c6_192 = arith.constant 6 : index
    %c24_193 = arith.constant 24 : index
    %490 = vector.load %arg29[%c6_192, %c24_193] : memref<12x32xf32, #tpu.memory_space<vmem>>, vector<6x8xf32>
    tpu.vector_store %arg29[%c6_192, %c24_193], %489 {strides = array<i32>} : memref<12x32xf32, #tpu.memory_space<vmem>>, vector<6x8xf32>,
    %c0_194 = arith.constant 0 : index
    %c0_195 = arith.constant 0 : index
    %491 = vector.load %arg29[%c0_194, %c0_195] : memref<12x32xf32, #tpu.memory_space<vmem>>, vector<12x32xf32>
    %c0_196 = arith.constant 0 : index
    %c0_197 = arith.constant 0 : index
    %c0_198 = arith.constant 0 : index
    %492 = vector.load %arg16[%c0_196, %c0_197, %c0_198] : memref<2x32x32xf32, #tpu.memory_space<vmem>>, vector<1x32x32xf32>
    %493 = vector.shape_cast %492 : vector<1x32x32xf32> to vector<32x32xf32>
    %c0_199 = arith.constant 0 : index
    %c0_200 = arith.constant 0 : index
    %c0_201 = arith.constant 0 : index
    %494 = vector.load %arg17[%c0_199, %c0_200, %c0_201] : memref<2x1x32xf32, #tpu.memory_space<vmem>>, vector<1x1x32xf32>
    %495 = vector.shape_cast %494 : vector<1x1x32xf32> to vector<1x32xf32>
    %496 = arith.truncf %491 : vector<12x32xf32> to vector<12x32xbf16>
    %497 = arith.truncf %493 : vector<32x32xf32> to vector<32x32xbf16>
    %cst_202 = arith.constant dense<0.000000e+00> : vector<12x32xf32>
    %498 = tpu.matmul %496, %497, %cst_202 {dimension_numbers = #tpu.dot_dimension_numbers<[1], [0], [0], [1], [0, 0, 1, 1], [], []>} : vector<12x32xbf16>, vector<32x32xbf16>, vector<12x32xf32> -> vector<12x32xf32>
    %499 = vector.broadcast %495 : vector<1x32xf32> to vector<12x32xf32>
    %500 = arith.addf %498, %499 : vector<12x32xf32>
    %501 = arith.addf %264, %500 : vector<12x32xf32>
    %c0_203 = arith.constant 0 : index
    %c0_204 = arith.constant 0 : index
    %c0_205 = arith.constant 0 : index
    %502 = vector.load %arg24[%c0_203, %c0_204, %c0_205] : memref<2x1x32xf32, #tpu.memory_space<vmem>>, vector<1x1x32xf32>
    %503 = vector.shape_cast %502 : vector<1x1x32xf32> to vector<1x32xf32>
    %c0_206 = arith.constant 0 : index
    %c0_207 = arith.constant 0 : index
    %c0_208 = arith.constant 0 : index
    %504 = vector.load %arg25[%c0_206, %c0_207, %c0_208] : memref<2x1x32xf32, #tpu.memory_space<vmem>>, vector<1x1x32xf32>
    %505 = vector.shape_cast %504 : vector<1x1x32xf32> to vector<1x32xf32>
    %cst_209 = arith.constant dense<0.000000e+00> : vector<12xf32>
    %506 = vector.multi_reduction <add>, %501, %cst_209 [1] : vector<12x32xf32> to vector<12xf32>
    %507 = vector.shape_cast %506 : vector<12xf32> to vector<12x1xf32>
    %cst_210 = arith.constant 3.200000e+01 : f32
    %508 = vector.broadcast %cst_210 : f32 to vector<12x1xf32>
    %509 = arith.divf %507, %508 : vector<12x1xf32>
    %510 = vector.broadcast %509 : vector<12x1xf32> to vector<12x32xf32>
    %511 = arith.subf %501, %510 : vector<12x32xf32>
    %512 = arith.mulf %511, %511 : vector<12x32xf32>
    %cst_211 = arith.constant dense<0.000000e+00> : vector<12xf32>
    %513 = vector.multi_reduction <add>, %512, %cst_211 [1] : vector<12x32xf32> to vector<12xf32>
    %514 = vector.shape_cast %513 : vector<12xf32> to vector<12x1xf32>
    %cst_212 = arith.constant 3.200000e+01 : f32
    %515 = vector.broadcast %cst_212 : f32 to vector<12x1xf32>
    %516 = arith.divf %514, %515 : vector<12x1xf32>
    %cst_213 = arith.constant 9.99999974E-6 : f32
    %517 = vector.broadcast %cst_213 : f32 to vector<12x1xf32>
    %518 = arith.addf %516, %517 : vector<12x1xf32>
    %519 = math.rsqrt %518 : vector<12x1xf32>
    %520 = vector.broadcast %519 : vector<12x1xf32> to vector<12x32xf32>
    %521 = arith.mulf %511, %520 : vector<12x32xf32>
    %522 = vector.broadcast %503 : vector<1x32xf32> to vector<12x32xf32>
    %523 = arith.mulf %521, %522 : vector<12x32xf32>
    %524 = vector.broadcast %505 : vector<1x32xf32> to vector<12x32xf32>
    %525 = arith.addf %523, %524 : vector<12x32xf32>
    %c0_214 = arith.constant 0 : index
    %c0_215 = arith.constant 0 : index
    %c0_216 = arith.constant 0 : index
    %526 = vector.load %arg18[%c0_214, %c0_215, %c0_216] : memref<2x32x64xf32, #tpu.memory_space<vmem>>, vector<1x32x64xf32>
    %527 = vector.shape_cast %526 : vector<1x32x64xf32> to vector<32x64xf32>
    %c0_217 = arith.constant 0 : index
    %c0_218 = arith.constant 0 : index
    %c0_219 = arith.constant 0 : index
    %528 = vector.load %arg19[%c0_217, %c0_218, %c0_219] : memref<2x1x64xf32, #tpu.memory_space<vmem>>, vector<1x1x64xf32>
    %529 = vector.shape_cast %528 : vector<1x1x64xf32> to vector<1x64xf32>
    %530 = arith.truncf %525 : vector<12x32xf32> to vector<12x32xbf16>
    %531 = arith.truncf %527 : vector<32x64xf32> to vector<32x64xbf16>
    %cst_220 = arith.constant dense<0.000000e+00> : vector<12x64xf32>
    %532 = tpu.matmul %530, %531, %cst_220 {dimension_numbers = #tpu.dot_dimension_numbers<[1], [0], [0], [1], [0, 0, 1, 1], [], []>} : vector<12x32xbf16>, vector<32x64xbf16>, vector<12x64xf32> -> vector<12x64xf32>
    %533 = vector.broadcast %529 : vector<1x64xf32> to vector<12x64xf32>
    %534 = arith.addf %532, %533 : vector<12x64xf32>
    %cst_221 = arith.constant 0.000000e+00 : f32
    %535 = vector.broadcast %cst_221 : f32 to vector<12x64xf32>
    %536 = arith.maximumf %534, %535 : vector<12x64xf32>
    %c0_222 = arith.constant 0 : index
    %c0_223 = arith.constant 0 : index
    %c0_224 = arith.constant 0 : index
    %537 = vector.load %arg20[%c0_222, %c0_223, %c0_224] : memref<2x64x32xf32, #tpu.memory_space<vmem>>, vector<1x64x32xf32>
    %538 = vector.shape_cast %537 : vector<1x64x32xf32> to vector<64x32xf32>
    %c0_225 = arith.constant 0 : index
    %c0_226 = arith.constant 0 : index
    %c0_227 = arith.constant 0 : index
    %539 = vector.load %arg21[%c0_225, %c0_226, %c0_227] : memref<2x1x32xf32, #tpu.memory_space<vmem>>, vector<1x1x32xf32>
    %540 = vector.shape_cast %539 : vector<1x1x32xf32> to vector<1x32xf32>
    %541 = arith.truncf %536 : vector<12x64xf32> to vector<12x64xbf16>
    %542 = arith.truncf %538 : vector<64x32xf32> to vector<64x32xbf16>
    %cst_228 = arith.constant dense<0.000000e+00> : vector<12x32xf32>
    %543 = tpu.matmul %541, %542, %cst_228 {dimension_numbers = #tpu.dot_dimension_numbers<[1], [0], [0], [1], [0, 0, 1, 1], [], []>} : vector<12x64xbf16>, vector<64x32xbf16>, vector<12x32xf32> -> vector<12x32xf32>
    %544 = vector.broadcast %540 : vector<1x32xf32> to vector<12x32xf32>
    %545 = arith.addf %543, %544 : vector<12x32xf32>
    %546 = arith.addf %525, %545 : vector<12x32xf32>
    %c0_229 = arith.constant 0 : index
    %c0_230 = arith.constant 0 : index
    %c0_231 = arith.constant 0 : index
    %547 = vector.load %arg26[%c0_229, %c0_230, %c0_231] : memref<2x1x32xf32, #tpu.memory_space<vmem>>, vector<1x1x32xf32>
    %548 = vector.shape_cast %547 : vector<1x1x32xf32> to vector<1x32xf32>
    %c0_232 = arith.constant 0 : index
    %c0_233 = arith.constant 0 : index
    %c0_234 = arith.constant 0 : index
    %549 = vector.load %arg27[%c0_232, %c0_233, %c0_234] : memref<2x1x32xf32, #tpu.memory_space<vmem>>, vector<1x1x32xf32>
    %550 = vector.shape_cast %549 : vector<1x1x32xf32> to vector<1x32xf32>
    %cst_235 = arith.constant dense<0.000000e+00> : vector<12xf32>
    %551 = vector.multi_reduction <add>, %546, %cst_235 [1] : vector<12x32xf32> to vector<12xf32>
    %552 = vector.shape_cast %551 : vector<12xf32> to vector<12x1xf32>
    %cst_236 = arith.constant 3.200000e+01 : f32
    %553 = vector.broadcast %cst_236 : f32 to vector<12x1xf32>
    %554 = arith.divf %552, %553 : vector<12x1xf32>
    %555 = vector.broadcast %554 : vector<12x1xf32> to vector<12x32xf32>
    %556 = arith.subf %546, %555 : vector<12x32xf32>
    %557 = arith.mulf %556, %556 : vector<12x32xf32>
    %cst_237 = arith.constant dense<0.000000e+00> : vector<12xf32>
    %558 = vector.multi_reduction <add>, %557, %cst_237 [1] : vector<12x32xf32> to vector<12xf32>
    %559 = vector.shape_cast %558 : vector<12xf32> to vector<12x1xf32>
    %cst_238 = arith.constant 3.200000e+01 : f32
    %560 = vector.broadcast %cst_238 : f32 to vector<12x1xf32>
    %561 = arith.divf %559, %560 : vector<12x1xf32>
    %cst_239 = arith.constant 9.99999974E-6 : f32
    %562 = vector.broadcast %cst_239 : f32 to vector<12x1xf32>
    %563 = arith.addf %561, %562 : vector<12x1xf32>
    %564 = math.rsqrt %563 : vector<12x1xf32>
    %565 = vector.broadcast %564 : vector<12x1xf32> to vector<12x32xf32>
    %566 = arith.mulf %556, %565 : vector<12x32xf32>
    %567 = vector.broadcast %548 : vector<1x32xf32> to vector<12x32xf32>
    %568 = arith.mulf %566, %567 : vector<12x32xf32>
    %569 = vector.broadcast %550 : vector<1x32xf32> to vector<12x32xf32>
    %570 = arith.addf %568, %569 : vector<12x32xf32>
    %c1 = arith.constant 1 : index
    %c0_240 = arith.constant 0 : index
    %c0_241 = arith.constant 0 : index
    %571 = vector.load %arg8[%c1, %c0_240, %c0_241] : memref<2x32x96xf32, #tpu.memory_space<vmem>>, vector<1x32x96xf32>
    %572 = vector.shape_cast %571 : vector<1x32x96xf32> to vector<32x96xf32>
    %c1_242 = arith.constant 1 : index
    %c0_243 = arith.constant 0 : index
    %c0_244 = arith.constant 0 : index
    %573 = vector.load %arg9[%c1_242, %c0_243, %c0_244] : memref<2x1x96xf32, #tpu.memory_space<vmem>>, vector<1x1x96xf32>
    %574 = vector.shape_cast %573 : vector<1x1x96xf32> to vector<1x96xf32>
    %575 = arith.truncf %570 : vector<12x32xf32> to vector<12x32xbf16>
    %576 = arith.truncf %572 : vector<32x96xf32> to vector<32x96xbf16>
    %cst_245 = arith.constant dense<0.000000e+00> : vector<12x96xf32>
    %577 = tpu.matmul %575, %576, %cst_245 {dimension_numbers = #tpu.dot_dimension_numbers<[1], [0], [0], [1], [0, 0, 1, 1], [], []>} : vector<12x32xbf16>, vector<32x96xbf16>, vector<12x96xf32> -> vector<12x96xf32>
    %578 = vector.broadcast %574 : vector<1x96xf32> to vector<12x96xf32>
    %579 = arith.addf %577, %578 : vector<12x96xf32>
    %580 = vector.extract_strided_slice %579 {offsets = [0, 0], sizes = [6, 8], strides = [1, 1]} : vector<12x96xf32> to vector<6x8xf32>
    %581 = vector.extract_strided_slice %579 {offsets = [0, 32], sizes = [6, 8], strides = [1, 1]} : vector<12x96xf32> to vector<6x8xf32>
    %582 = vector.extract_strided_slice %579 {offsets = [0, 64], sizes = [6, 8], strides = [1, 1]} : vector<12x96xf32> to vector<6x8xf32>
    %583 = arith.truncf %580 : vector<6x8xf32> to vector<6x8xbf16>
    %584 = arith.truncf %581 : vector<6x8xf32> to vector<6x8xbf16>
    %cst_246 = arith.constant dense<0.000000e+00> : vector<6x6xf32>
    %585 = tpu.matmul %583, %584, %cst_246 {dimension_numbers = #tpu.dot_dimension_numbers<[1], [1], [0], [0], [0, 0, 1, 0], [], []>} : vector<6x8xbf16>, vector<6x8xbf16>, vector<6x6xf32> -> vector<6x6xf32>
    %586 = arith.addf %585, %0 : vector<6x6xf32>
    %cst_247 = arith.constant dense<0xFF800000> : vector<6xf32>
    %587 = vector.multi_reduction <maximumf>, %586, %cst_247 [1] : vector<6x6xf32> to vector<6xf32>
    %588 = vector.shape_cast %587 : vector<6xf32> to vector<6x1xf32>
    %cst_248 = arith.constant -1.000000e+30 : f32
    %589 = vector.broadcast %cst_248 : f32 to vector<6x1xf32>
    %590 = arith.maximumf %588, %589 : vector<6x1xf32>
    %591 = vector.broadcast %590 : vector<6x1xf32> to vector<6x6xf32>
    %592 = arith.subf %586, %591 : vector<6x6xf32>
    %593 = math.exp %592 : vector<6x6xf32>
    %cst_249 = arith.constant dense<0.000000e+00> : vector<6xf32>
    %594 = vector.multi_reduction <add>, %593, %cst_249 [1] : vector<6x6xf32> to vector<6xf32>
    %595 = vector.shape_cast %594 : vector<6xf32> to vector<6x1xf32>
    %cst_250 = arith.constant 0.000000e+00 : f32
    %596 = vector.broadcast %cst_250 : f32 to vector<6x1xf32>
    %597 = arith.cmpf oeq, %595, %596 : vector<6x1xf32>
    %cst_251 = arith.constant 1.000000e+00 : f32
    %598 = vector.broadcast %cst_251 : f32 to vector<6x1xf32>
    %599 = arith.select %597, %598, %595 : vector<6x1xi1>, vector<6x1xf32>
    %600 = vector.broadcast %599 : vector<6x1xf32> to vector<6x6xf32>
    %601 = arith.divf %593, %600 : vector<6x6xf32>
    %602 = arith.truncf %601 : vector<6x6xf32> to vector<6x6xbf16>
    %603 = arith.truncf %582 : vector<6x8xf32> to vector<6x8xbf16>
    %cst_252 = arith.constant dense<0.000000e+00> : vector<6x8xf32>
    %604 = tpu.matmul %602, %603, %cst_252 {dimension_numbers = #tpu.dot_dimension_numbers<[1], [0], [0], [1], [0, 0, 1, 1], [], []>} : vector<6x6xbf16>, vector<6x8xbf16>, vector<6x8xf32> -> vector<6x8xf32>
    %c0_253 = arith.constant 0 : index
    %c0_254 = arith.constant 0 : index
    %605 = vector.load %arg29[%c0_253, %c0_254] : memref<12x32xf32, #tpu.memory_space<vmem>>, vector<6x8xf32>
    tpu.vector_store %arg29[%c0_253, %c0_254], %604 {strides = array<i32>} : memref<12x32xf32, #tpu.memory_space<vmem>>, vector<6x8xf32>,
    %606 = vector.extract_strided_slice %579 {offsets = [0, 8], sizes = [6, 8], strides = [1, 1]} : vector<12x96xf32> to vector<6x8xf32>
    %607 = vector.extract_strided_slice %579 {offsets = [0, 40], sizes = [6, 8], strides = [1, 1]} : vector<12x96xf32> to vector<6x8xf32>
    %608 = vector.extract_strided_slice %579 {offsets = [0, 72], sizes = [6, 8], strides = [1, 1]} : vector<12x96xf32> to vector<6x8xf32>
    %609 = arith.truncf %606 : vector<6x8xf32> to vector<6x8xbf16>
    %610 = arith.truncf %607 : vector<6x8xf32> to vector<6x8xbf16>
    %cst_255 = arith.constant dense<0.000000e+00> : vector<6x6xf32>
    %611 = tpu.matmul %609, %610, %cst_255 {dimension_numbers = #tpu.dot_dimension_numbers<[1], [1], [0], [0], [0, 0, 1, 0], [], []>} : vector<6x8xbf16>, vector<6x8xbf16>, vector<6x6xf32> -> vector<6x6xf32>
    %612 = arith.addf %611, %0 : vector<6x6xf32>
    %cst_256 = arith.constant dense<0xFF800000> : vector<6xf32>
    %613 = vector.multi_reduction <maximumf>, %612, %cst_256 [1] : vector<6x6xf32> to vector<6xf32>
    %614 = vector.shape_cast %613 : vector<6xf32> to vector<6x1xf32>
    %cst_257 = arith.constant -1.000000e+30 : f32
    %615 = vector.broadcast %cst_257 : f32 to vector<6x1xf32>
    %616 = arith.maximumf %614, %615 : vector<6x1xf32>
    %617 = vector.broadcast %616 : vector<6x1xf32> to vector<6x6xf32>
    %618 = arith.subf %612, %617 : vector<6x6xf32>
    %619 = math.exp %618 : vector<6x6xf32>
    %cst_258 = arith.constant dense<0.000000e+00> : vector<6xf32>
    %620 = vector.multi_reduction <add>, %619, %cst_258 [1] : vector<6x6xf32> to vector<6xf32>
    %621 = vector.shape_cast %620 : vector<6xf32> to vector<6x1xf32>
    %cst_259 = arith.constant 0.000000e+00 : f32
    %622 = vector.broadcast %cst_259 : f32 to vector<6x1xf32>
    %623 = arith.cmpf oeq, %621, %622 : vector<6x1xf32>
    %cst_260 = arith.constant 1.000000e+00 : f32
    %624 = vector.broadcast %cst_260 : f32 to vector<6x1xf32>
    %625 = arith.select %623, %624, %621 : vector<6x1xi1>, vector<6x1xf32>
    %626 = vector.broadcast %625 : vector<6x1xf32> to vector<6x6xf32>
    %627 = arith.divf %619, %626 : vector<6x6xf32>
    %628 = arith.truncf %627 : vector<6x6xf32> to vector<6x6xbf16>
    %629 = arith.truncf %608 : vector<6x8xf32> to vector<6x8xbf16>
    %cst_261 = arith.constant dense<0.000000e+00> : vector<6x8xf32>
    %630 = tpu.matmul %628, %629, %cst_261 {dimension_numbers = #tpu.dot_dimension_numbers<[1], [0], [0], [1], [0, 0, 1, 1], [], []>} : vector<6x6xbf16>, vector<6x8xbf16>, vector<6x8xf32> -> vector<6x8xf32>
    %c0_262 = arith.constant 0 : index
    %c8_263 = arith.constant 8 : index
    %631 = vector.load %arg29[%c0_262, %c8_263] : memref<12x32xf32, #tpu.memory_space<vmem>>, vector<6x8xf32>
    tpu.vector_store %arg29[%c0_262, %c8_263], %630 {strides = array<i32>} : memref<12x32xf32, #tpu.memory_space<vmem>>, vector<6x8xf32>,
    %632 = vector.extract_strided_slice %579 {offsets = [0, 16], sizes = [6, 8], strides = [1, 1]} : vector<12x96xf32> to vector<6x8xf32>
    %633 = vector.extract_strided_slice %579 {offsets = [0, 48], sizes = [6, 8], strides = [1, 1]} : vector<12x96xf32> to vector<6x8xf32>
    %634 = vector.extract_strided_slice %579 {offsets = [0, 80], sizes = [6, 8], strides = [1, 1]} : vector<12x96xf32> to vector<6x8xf32>
    %635 = arith.truncf %632 : vector<6x8xf32> to vector<6x8xbf16>
    %636 = arith.truncf %633 : vector<6x8xf32> to vector<6x8xbf16>
    %cst_264 = arith.constant dense<0.000000e+00> : vector<6x6xf32>
    %637 = tpu.matmul %635, %636, %cst_264 {dimension_numbers = #tpu.dot_dimension_numbers<[1], [1], [0], [0], [0, 0, 1, 0], [], []>} : vector<6x8xbf16>, vector<6x8xbf16>, vector<6x6xf32> -> vector<6x6xf32>
    %638 = arith.addf %637, %0 : vector<6x6xf32>
    %cst_265 = arith.constant dense<0xFF800000> : vector<6xf32>
    %639 = vector.multi_reduction <maximumf>, %638, %cst_265 [1] : vector<6x6xf32> to vector<6xf32>
    %640 = vector.shape_cast %639 : vector<6xf32> to vector<6x1xf32>
    %cst_266 = arith.constant -1.000000e+30 : f32
    %641 = vector.broadcast %cst_266 : f32 to vector<6x1xf32>
    %642 = arith.maximumf %640, %641 : vector<6x1xf32>
    %643 = vector.broadcast %642 : vector<6x1xf32> to vector<6x6xf32>
    %644 = arith.subf %638, %643 : vector<6x6xf32>
    %645 = math.exp %644 : vector<6x6xf32>
    %cst_267 = arith.constant dense<0.000000e+00> : vector<6xf32>
    %646 = vector.multi_reduction <add>, %645, %cst_267 [1] : vector<6x6xf32> to vector<6xf32>
    %647 = vector.shape_cast %646 : vector<6xf32> to vector<6x1xf32>
    %cst_268 = arith.constant 0.000000e+00 : f32
    %648 = vector.broadcast %cst_268 : f32 to vector<6x1xf32>
    %649 = arith.cmpf oeq, %647, %648 : vector<6x1xf32>
    %cst_269 = arith.constant 1.000000e+00 : f32
    %650 = vector.broadcast %cst_269 : f32 to vector<6x1xf32>
    %651 = arith.select %649, %650, %647 : vector<6x1xi1>, vector<6x1xf32>
    %652 = vector.broadcast %651 : vector<6x1xf32> to vector<6x6xf32>
    %653 = arith.divf %645, %652 : vector<6x6xf32>
    %654 = arith.truncf %653 : vector<6x6xf32> to vector<6x6xbf16>
    %655 = arith.truncf %634 : vector<6x8xf32> to vector<6x8xbf16>
    %cst_270 = arith.constant dense<0.000000e+00> : vector<6x8xf32>
    %656 = tpu.matmul %654, %655, %cst_270 {dimension_numbers = #tpu.dot_dimension_numbers<[1], [0], [0], [1], [0, 0, 1, 1], [], []>} : vector<6x6xbf16>, vector<6x8xbf16>, vector<6x8xf32> -> vector<6x8xf32>
    %c0_271 = arith.constant 0 : index
    %c16_272 = arith.constant 16 : index
    %657 = vector.load %arg29[%c0_271, %c16_272] : memref<12x32xf32, #tpu.memory_space<vmem>>, vector<6x8xf32>
    tpu.vector_store %arg29[%c0_271, %c16_272], %656 {strides = array<i32>} : memref<12x32xf32, #tpu.memory_space<vmem>>, vector<6x8xf32>,
    %658 = vector.extract_strided_slice %579 {offsets = [0, 24], sizes = [6, 8], strides = [1, 1]} : vector<12x96xf32> to vector<6x8xf32>
    %659 = vector.extract_strided_slice %579 {offsets = [0, 56], sizes = [6, 8], strides = [1, 1]} : vector<12x96xf32> to vector<6x8xf32>
    %660 = vector.extract_strided_slice %579 {offsets = [0, 88], sizes = [6, 8], strides = [1, 1]} : vector<12x96xf32> to vector<6x8xf32>
    %661 = arith.truncf %658 : vector<6x8xf32> to vector<6x8xbf16>
    %662 = arith.truncf %659 : vector<6x8xf32> to vector<6x8xbf16>
    %cst_273 = arith.constant dense<0.000000e+00> : vector<6x6xf32>
    %663 = tpu.matmul %661, %662, %cst_273 {dimension_numbers = #tpu.dot_dimension_numbers<[1], [1], [0], [0], [0, 0, 1, 0], [], []>} : vector<6x8xbf16>, vector<6x8xbf16>, vector<6x6xf32> -> vector<6x6xf32>
    %664 = arith.addf %663, %0 : vector<6x6xf32>
    %cst_274 = arith.constant dense<0xFF800000> : vector<6xf32>
    %665 = vector.multi_reduction <maximumf>, %664, %cst_274 [1] : vector<6x6xf32> to vector<6xf32>
    %666 = vector.shape_cast %665 : vector<6xf32> to vector<6x1xf32>
    %cst_275 = arith.constant -1.000000e+30 : f32
    %667 = vector.broadcast %cst_275 : f32 to vector<6x1xf32>
    %668 = arith.maximumf %666, %667 : vector<6x1xf32>
    %669 = vector.broadcast %668 : vector<6x1xf32> to vector<6x6xf32>
    %670 = arith.subf %664, %669 : vector<6x6xf32>
    %671 = math.exp %670 : vector<6x6xf32>
    %cst_276 = arith.constant dense<0.000000e+00> : vector<6xf32>
    %672 = vector.multi_reduction <add>, %671, %cst_276 [1] : vector<6x6xf32> to vector<6xf32>
    %673 = vector.shape_cast %672 : vector<6xf32> to vector<6x1xf32>
    %cst_277 = arith.constant 0.000000e+00 : f32
    %674 = vector.broadcast %cst_277 : f32 to vector<6x1xf32>
    %675 = arith.cmpf oeq, %673, %674 : vector<6x1xf32>
    %cst_278 = arith.constant 1.000000e+00 : f32
    %676 = vector.broadcast %cst_278 : f32 to vector<6x1xf32>
    %677 = arith.select %675, %676, %673 : vector<6x1xi1>, vector<6x1xf32>
    %678 = vector.broadcast %677 : vector<6x1xf32> to vector<6x6xf32>
    %679 = arith.divf %671, %678 : vector<6x6xf32>
    %680 = arith.truncf %679 : vector<6x6xf32> to vector<6x6xbf16>
    %681 = arith.truncf %660 : vector<6x8xf32> to vector<6x8xbf16>
    %cst_279 = arith.constant dense<0.000000e+00> : vector<6x8xf32>
    %682 = tpu.matmul %680, %681, %cst_279 {dimension_numbers = #tpu.dot_dimension_numbers<[1], [0], [0], [1], [0, 0, 1, 1], [], []>} : vector<6x6xbf16>, vector<6x8xbf16>, vector<6x8xf32> -> vector<6x8xf32>
    %c0_280 = arith.constant 0 : index
    %c24_281 = arith.constant 24 : index
    %683 = vector.load %arg29[%c0_280, %c24_281] : memref<12x32xf32, #tpu.memory_space<vmem>>, vector<6x8xf32>
    tpu.vector_store %arg29[%c0_280, %c24_281], %682 {strides = array<i32>} : memref<12x32xf32, #tpu.memory_space<vmem>>, vector<6x8xf32>,
    %684 = vector.extract_strided_slice %579 {offsets = [6, 0], sizes = [6, 8], strides = [1, 1]} : vector<12x96xf32> to vector<6x8xf32>
    %685 = vector.extract_strided_slice %579 {offsets = [6, 32], sizes = [6, 8], strides = [1, 1]} : vector<12x96xf32> to vector<6x8xf32>
    %686 = vector.extract_strided_slice %579 {offsets = [6, 64], sizes = [6, 8], strides = [1, 1]} : vector<12x96xf32> to vector<6x8xf32>
    %687 = arith.truncf %684 : vector<6x8xf32> to vector<6x8xbf16>
    %688 = arith.truncf %685 : vector<6x8xf32> to vector<6x8xbf16>
    %cst_282 = arith.constant dense<0.000000e+00> : vector<6x6xf32>
    %689 = tpu.matmul %687, %688, %cst_282 {dimension_numbers = #tpu.dot_dimension_numbers<[1], [1], [0], [0], [0, 0, 1, 0], [], []>} : vector<6x8xbf16>, vector<6x8xbf16>, vector<6x6xf32> -> vector<6x6xf32>
    %690 = arith.addf %689, %0 : vector<6x6xf32>
    %cst_283 = arith.constant dense<0xFF800000> : vector<6xf32>
    %691 = vector.multi_reduction <maximumf>, %690, %cst_283 [1] : vector<6x6xf32> to vector<6xf32>
    %692 = vector.shape_cast %691 : vector<6xf32> to vector<6x1xf32>
    %cst_284 = arith.constant -1.000000e+30 : f32
    %693 = vector.broadcast %cst_284 : f32 to vector<6x1xf32>
    %694 = arith.maximumf %692, %693 : vector<6x1xf32>
    %695 = vector.broadcast %694 : vector<6x1xf32> to vector<6x6xf32>
    %696 = arith.subf %690, %695 : vector<6x6xf32>
    %697 = math.exp %696 : vector<6x6xf32>
    %cst_285 = arith.constant dense<0.000000e+00> : vector<6xf32>
    %698 = vector.multi_reduction <add>, %697, %cst_285 [1] : vector<6x6xf32> to vector<6xf32>
    %699 = vector.shape_cast %698 : vector<6xf32> to vector<6x1xf32>
    %cst_286 = arith.constant 0.000000e+00 : f32
    %700 = vector.broadcast %cst_286 : f32 to vector<6x1xf32>
    %701 = arith.cmpf oeq, %699, %700 : vector<6x1xf32>
    %cst_287 = arith.constant 1.000000e+00 : f32
    %702 = vector.broadcast %cst_287 : f32 to vector<6x1xf32>
    %703 = arith.select %701, %702, %699 : vector<6x1xi1>, vector<6x1xf32>
    %704 = vector.broadcast %703 : vector<6x1xf32> to vector<6x6xf32>
    %705 = arith.divf %697, %704 : vector<6x6xf32>
    %706 = arith.truncf %705 : vector<6x6xf32> to vector<6x6xbf16>
    %707 = arith.truncf %686 : vector<6x8xf32> to vector<6x8xbf16>
    %cst_288 = arith.constant dense<0.000000e+00> : vector<6x8xf32>
    %708 = tpu.matmul %706, %707, %cst_288 {dimension_numbers = #tpu.dot_dimension_numbers<[1], [0], [0], [1], [0, 0, 1, 1], [], []>} : vector<6x6xbf16>, vector<6x8xbf16>, vector<6x8xf32> -> vector<6x8xf32>
    %c6_289 = arith.constant 6 : index
    %c0_290 = arith.constant 0 : index
    %709 = vector.load %arg29[%c6_289, %c0_290] : memref<12x32xf32, #tpu.memory_space<vmem>>, vector<6x8xf32>
    tpu.vector_store %arg29[%c6_289, %c0_290], %708 {strides = array<i32>} : memref<12x32xf32, #tpu.memory_space<vmem>>, vector<6x8xf32>,
    %710 = vector.extract_strided_slice %579 {offsets = [6, 8], sizes = [6, 8], strides = [1, 1]} : vector<12x96xf32> to vector<6x8xf32>
    %711 = vector.extract_strided_slice %579 {offsets = [6, 40], sizes = [6, 8], strides = [1, 1]} : vector<12x96xf32> to vector<6x8xf32>
    %712 = vector.extract_strided_slice %579 {offsets = [6, 72], sizes = [6, 8], strides = [1, 1]} : vector<12x96xf32> to vector<6x8xf32>
    %713 = arith.truncf %710 : vector<6x8xf32> to vector<6x8xbf16>
    %714 = arith.truncf %711 : vector<6x8xf32> to vector<6x8xbf16>
    %cst_291 = arith.constant dense<0.000000e+00> : vector<6x6xf32>
    %715 = tpu.matmul %713, %714, %cst_291 {dimension_numbers = #tpu.dot_dimension_numbers<[1], [1], [0], [0], [0, 0, 1, 0], [], []>} : vector<6x8xbf16>, vector<6x8xbf16>, vector<6x6xf32> -> vector<6x6xf32>
    %716 = arith.addf %715, %0 : vector<6x6xf32>
    %cst_292 = arith.constant dense<0xFF800000> : vector<6xf32>
    %717 = vector.multi_reduction <maximumf>, %716, %cst_292 [1] : vector<6x6xf32> to vector<6xf32>
    %718 = vector.shape_cast %717 : vector<6xf32> to vector<6x1xf32>
    %cst_293 = arith.constant -1.000000e+30 : f32
    %719 = vector.broadcast %cst_293 : f32 to vector<6x1xf32>
    %720 = arith.maximumf %718, %719 : vector<6x1xf32>
    %721 = vector.broadcast %720 : vector<6x1xf32> to vector<6x6xf32>
    %722 = arith.subf %716, %721 : vector<6x6xf32>
    %723 = math.exp %722 : vector<6x6xf32>
    %cst_294 = arith.constant dense<0.000000e+00> : vector<6xf32>
    %724 = vector.multi_reduction <add>, %723, %cst_294 [1] : vector<6x6xf32> to vector<6xf32>
    %725 = vector.shape_cast %724 : vector<6xf32> to vector<6x1xf32>
    %cst_295 = arith.constant 0.000000e+00 : f32
    %726 = vector.broadcast %cst_295 : f32 to vector<6x1xf32>
    %727 = arith.cmpf oeq, %725, %726 : vector<6x1xf32>
    %cst_296 = arith.constant 1.000000e+00 : f32
    %728 = vector.broadcast %cst_296 : f32 to vector<6x1xf32>
    %729 = arith.select %727, %728, %725 : vector<6x1xi1>, vector<6x1xf32>
    %730 = vector.broadcast %729 : vector<6x1xf32> to vector<6x6xf32>
    %731 = arith.divf %723, %730 : vector<6x6xf32>
    %732 = arith.truncf %731 : vector<6x6xf32> to vector<6x6xbf16>
    %733 = arith.truncf %712 : vector<6x8xf32> to vector<6x8xbf16>
    %cst_297 = arith.constant dense<0.000000e+00> : vector<6x8xf32>
    %734 = tpu.matmul %732, %733, %cst_297 {dimension_numbers = #tpu.dot_dimension_numbers<[1], [0], [0], [1], [0, 0, 1, 1], [], []>} : vector<6x6xbf16>, vector<6x8xbf16>, vector<6x8xf32> -> vector<6x8xf32>
    %c6_298 = arith.constant 6 : index
    %c8_299 = arith.constant 8 : index
    %735 = vector.load %arg29[%c6_298, %c8_299] : memref<12x32xf32, #tpu.memory_space<vmem>>, vector<6x8xf32>
    tpu.vector_store %arg29[%c6_298, %c8_299], %734 {strides = array<i32>} : memref<12x32xf32, #tpu.memory_space<vmem>>, vector<6x8xf32>,
    %736 = vector.extract_strided_slice %579 {offsets = [6, 16], sizes = [6, 8], strides = [1, 1]} : vector<12x96xf32> to vector<6x8xf32>
    %737 = vector.extract_strided_slice %579 {offsets = [6, 48], sizes = [6, 8], strides = [1, 1]} : vector<12x96xf32> to vector<6x8xf32>
    %738 = vector.extract_strided_slice %579 {offsets = [6, 80], sizes = [6, 8], strides = [1, 1]} : vector<12x96xf32> to vector<6x8xf32>
    %739 = arith.truncf %736 : vector<6x8xf32> to vector<6x8xbf16>
    %740 = arith.truncf %737 : vector<6x8xf32> to vector<6x8xbf16>
    %cst_300 = arith.constant dense<0.000000e+00> : vector<6x6xf32>
    %741 = tpu.matmul %739, %740, %cst_300 {dimension_numbers = #tpu.dot_dimension_numbers<[1], [1], [0], [0], [0, 0, 1, 0], [], []>} : vector<6x8xbf16>, vector<6x8xbf16>, vector<6x6xf32> -> vector<6x6xf32>
    %742 = arith.addf %741, %0 : vector<6x6xf32>
    %cst_301 = arith.constant dense<0xFF800000> : vector<6xf32>
    %743 = vector.multi_reduction <maximumf>, %742, %cst_301 [1] : vector<6x6xf32> to vector<6xf32>
    %744 = vector.shape_cast %743 : vector<6xf32> to vector<6x1xf32>
    %cst_302 = arith.constant -1.000000e+30 : f32
    %745 = vector.broadcast %cst_302 : f32 to vector<6x1xf32>
    %746 = arith.maximumf %744, %745 : vector<6x1xf32>
    %747 = vector.broadcast %746 : vector<6x1xf32> to vector<6x6xf32>
    %748 = arith.subf %742, %747 : vector<6x6xf32>
    %749 = math.exp %748 : vector<6x6xf32>
    %cst_303 = arith.constant dense<0.000000e+00> : vector<6xf32>
    %750 = vector.multi_reduction <add>, %749, %cst_303 [1] : vector<6x6xf32> to vector<6xf32>
    %751 = vector.shape_cast %750 : vector<6xf32> to vector<6x1xf32>
    %cst_304 = arith.constant 0.000000e+00 : f32
    %752 = vector.broadcast %cst_304 : f32 to vector<6x1xf32>
    %753 = arith.cmpf oeq, %751, %752 : vector<6x1xf32>
    %cst_305 = arith.constant 1.000000e+00 : f32
    %754 = vector.broadcast %cst_305 : f32 to vector<6x1xf32>
    %755 = arith.select %753, %754, %751 : vector<6x1xi1>, vector<6x1xf32>
    %756 = vector.broadcast %755 : vector<6x1xf32> to vector<6x6xf32>
    %757 = arith.divf %749, %756 : vector<6x6xf32>
    %758 = arith.truncf %757 : vector<6x6xf32> to vector<6x6xbf16>
    %759 = arith.truncf %738 : vector<6x8xf32> to vector<6x8xbf16>
    %cst_306 = arith.constant dense<0.000000e+00> : vector<6x8xf32>
    %760 = tpu.matmul %758, %759, %cst_306 {dimension_numbers = #tpu.dot_dimension_numbers<[1], [0], [0], [1], [0, 0, 1, 1], [], []>} : vector<6x6xbf16>, vector<6x8xbf16>, vector<6x8xf32> -> vector<6x8xf32>
    %c6_307 = arith.constant 6 : index
    %c16_308 = arith.constant 16 : index
    %761 = vector.load %arg29[%c6_307, %c16_308] : memref<12x32xf32, #tpu.memory_space<vmem>>, vector<6x8xf32>
    tpu.vector_store %arg29[%c6_307, %c16_308], %760 {strides = array<i32>} : memref<12x32xf32, #tpu.memory_space<vmem>>, vector<6x8xf32>,
    %762 = vector.extract_strided_slice %579 {offsets = [6, 24], sizes = [6, 8], strides = [1, 1]} : vector<12x96xf32> to vector<6x8xf32>
    %763 = vector.extract_strided_slice %579 {offsets = [6, 56], sizes = [6, 8], strides = [1, 1]} : vector<12x96xf32> to vector<6x8xf32>
    %764 = vector.extract_strided_slice %579 {offsets = [6, 88], sizes = [6, 8], strides = [1, 1]} : vector<12x96xf32> to vector<6x8xf32>
    %765 = arith.truncf %762 : vector<6x8xf32> to vector<6x8xbf16>
    %766 = arith.truncf %763 : vector<6x8xf32> to vector<6x8xbf16>
    %cst_309 = arith.constant dense<0.000000e+00> : vector<6x6xf32>
    %767 = tpu.matmul %765, %766, %cst_309 {dimension_numbers = #tpu.dot_dimension_numbers<[1], [1], [0], [0], [0, 0, 1, 0], [], []>} : vector<6x8xbf16>, vector<6x8xbf16>, vector<6x6xf32> -> vector<6x6xf32>
    %768 = arith.addf %767, %0 : vector<6x6xf32>
    %cst_310 = arith.constant dense<0xFF800000> : vector<6xf32>
    %769 = vector.multi_reduction <maximumf>, %768, %cst_310 [1] : vector<6x6xf32> to vector<6xf32>
    %770 = vector.shape_cast %769 : vector<6xf32> to vector<6x1xf32>
    %cst_311 = arith.constant -1.000000e+30 : f32
    %771 = vector.broadcast %cst_311 : f32 to vector<6x1xf32>
    %772 = arith.maximumf %770, %771 : vector<6x1xf32>
    %773 = vector.broadcast %772 : vector<6x1xf32> to vector<6x6xf32>
    %774 = arith.subf %768, %773 : vector<6x6xf32>
    %775 = math.exp %774 : vector<6x6xf32>
    %cst_312 = arith.constant dense<0.000000e+00> : vector<6xf32>
    %776 = vector.multi_reduction <add>, %775, %cst_312 [1] : vector<6x6xf32> to vector<6xf32>
    %777 = vector.shape_cast %776 : vector<6xf32> to vector<6x1xf32>
    %cst_313 = arith.constant 0.000000e+00 : f32
    %778 = vector.broadcast %cst_313 : f32 to vector<6x1xf32>
    %779 = arith.cmpf oeq, %777, %778 : vector<6x1xf32>
    %cst_314 = arith.constant 1.000000e+00 : f32
    %780 = vector.broadcast %cst_314 : f32 to vector<6x1xf32>
    %781 = arith.select %779, %780, %777 : vector<6x1xi1>, vector<6x1xf32>
    %782 = vector.broadcast %781 : vector<6x1xf32> to vector<6x6xf32>
    %783 = arith.divf %775, %782 : vector<6x6xf32>
    %784 = arith.truncf %783 : vector<6x6xf32> to vector<6x6xbf16>
    %785 = arith.truncf %764 : vector<6x8xf32> to vector<6x8xbf16>
    %cst_315 = arith.constant dense<0.000000e+00> : vector<6x8xf32>
    %786 = tpu.matmul %784, %785, %cst_315 {dimension_numbers = #tpu.dot_dimension_numbers<[1], [0], [0], [1], [0, 0, 1, 1], [], []>} : vector<6x6xbf16>, vector<6x8xbf16>, vector<6x8xf32> -> vector<6x8xf32>
    %c6_316 = arith.constant 6 : index
    %c24_317 = arith.constant 24 : index
    %787 = vector.load %arg29[%c6_316, %c24_317] : memref<12x32xf32, #tpu.memory_space<vmem>>, vector<6x8xf32>
    tpu.vector_store %arg29[%c6_316, %c24_317], %786 {strides = array<i32>} : memref<12x32xf32, #tpu.memory_space<vmem>>, vector<6x8xf32>,
    %c0_318 = arith.constant 0 : index
    %c0_319 = arith.constant 0 : index
    %788 = vector.load %arg29[%c0_318, %c0_319] : memref<12x32xf32, #tpu.memory_space<vmem>>, vector<12x32xf32>
    %c1_320 = arith.constant 1 : index
    %c0_321 = arith.constant 0 : index
    %c0_322 = arith.constant 0 : index
    %789 = vector.load %arg10[%c1_320, %c0_321, %c0_322] : memref<2x32x32xf32, #tpu.memory_space<vmem>>, vector<1x32x32xf32>
    %790 = vector.shape_cast %789 : vector<1x32x32xf32> to vector<32x32xf32>
    %c1_323 = arith.constant 1 : index
    %c0_324 = arith.constant 0 : index
    %c0_325 = arith.constant 0 : index
    %791 = vector.load %arg11[%c1_323, %c0_324, %c0_325] : memref<2x1x32xf32, #tpu.memory_space<vmem>>, vector<1x1x32xf32>
    %792 = vector.shape_cast %791 : vector<1x1x32xf32> to vector<1x32xf32>
    %793 = arith.truncf %788 : vector<12x32xf32> to vector<12x32xbf16>
    %794 = arith.truncf %790 : vector<32x32xf32> to vector<32x32xbf16>
    %cst_326 = arith.constant dense<0.000000e+00> : vector<12x32xf32>
    %795 = tpu.matmul %793, %794, %cst_326 {dimension_numbers = #tpu.dot_dimension_numbers<[1], [0], [0], [1], [0, 0, 1, 1], [], []>} : vector<12x32xbf16>, vector<32x32xbf16>, vector<12x32xf32> -> vector<12x32xf32>
    %796 = vector.broadcast %792 : vector<1x32xf32> to vector<12x32xf32>
    %797 = arith.addf %795, %796 : vector<12x32xf32>
    %798 = arith.addf %570, %797 : vector<12x32xf32>
    %c1_327 = arith.constant 1 : index
    %c0_328 = arith.constant 0 : index
    %c0_329 = arith.constant 0 : index
    %799 = vector.load %arg22[%c1_327, %c0_328, %c0_329] : memref<2x1x32xf32, #tpu.memory_space<vmem>>, vector<1x1x32xf32>
    %800 = vector.shape_cast %799 : vector<1x1x32xf32> to vector<1x32xf32>
    %c1_330 = arith.constant 1 : index
    %c0_331 = arith.constant 0 : index
    %c0_332 = arith.constant 0 : index
    %801 = vector.load %arg23[%c1_330, %c0_331, %c0_332] : memref<2x1x32xf32, #tpu.memory_space<vmem>>, vector<1x1x32xf32>
    %802 = vector.shape_cast %801 : vector<1x1x32xf32> to vector<1x32xf32>
    %cst_333 = arith.constant dense<0.000000e+00> : vector<12xf32>
    %803 = vector.multi_reduction <add>, %798, %cst_333 [1] : vector<12x32xf32> to vector<12xf32>
    %804 = vector.shape_cast %803 : vector<12xf32> to vector<12x1xf32>
    %cst_334 = arith.constant 3.200000e+01 : f32
    %805 = vector.broadcast %cst_334 : f32 to vector<12x1xf32>
    %806 = arith.divf %804, %805 : vector<12x1xf32>
    %807 = vector.broadcast %806 : vector<12x1xf32> to vector<12x32xf32>
    %808 = arith.subf %798, %807 : vector<12x32xf32>
    %809 = arith.mulf %808, %808 : vector<12x32xf32>
    %cst_335 = arith.constant dense<0.000000e+00> : vector<12xf32>
    %810 = vector.multi_reduction <add>, %809, %cst_335 [1] : vector<12x32xf32> to vector<12xf32>
    %811 = vector.shape_cast %810 : vector<12xf32> to vector<12x1xf32>
    %cst_336 = arith.constant 3.200000e+01 : f32
    %812 = vector.broadcast %cst_336 : f32 to vector<12x1xf32>
    %813 = arith.divf %811, %812 : vector<12x1xf32>
    %cst_337 = arith.constant 9.99999974E-6 : f32
    %814 = vector.broadcast %cst_337 : f32 to vector<12x1xf32>
    %815 = arith.addf %813, %814 : vector<12x1xf32>
    %816 = math.rsqrt %815 : vector<12x1xf32>
    %817 = vector.broadcast %816 : vector<12x1xf32> to vector<12x32xf32>
    %818 = arith.mulf %808, %817 : vector<12x32xf32>
    %819 = vector.broadcast %800 : vector<1x32xf32> to vector<12x32xf32>
    %820 = arith.mulf %818, %819 : vector<12x32xf32>
    %821 = vector.broadcast %802 : vector<1x32xf32> to vector<12x32xf32>
    %822 = arith.addf %820, %821 : vector<12x32xf32>
    %c1_338 = arith.constant 1 : index
    %c0_339 = arith.constant 0 : index
    %c0_340 = arith.constant 0 : index
    %823 = vector.load %arg12[%c1_338, %c0_339, %c0_340] : memref<2x32x32xf32, #tpu.memory_space<vmem>>, vector<1x32x32xf32>
    %824 = vector.shape_cast %823 : vector<1x32x32xf32> to vector<32x32xf32>
    %c1_341 = arith.constant 1 : index
    %c0_342 = arith.constant 0 : index
    %c0_343 = arith.constant 0 : index
    %825 = vector.load %arg13[%c1_341, %c0_342, %c0_343] : memref<2x1x32xf32, #tpu.memory_space<vmem>>, vector<1x1x32xf32>
    %826 = vector.shape_cast %825 : vector<1x1x32xf32> to vector<1x32xf32>
    %827 = arith.truncf %822 : vector<12x32xf32> to vector<12x32xbf16>
    %828 = arith.truncf %824 : vector<32x32xf32> to vector<32x32xbf16>
    %cst_344 = arith.constant dense<0.000000e+00> : vector<12x32xf32>
    %829 = tpu.matmul %827, %828, %cst_344 {dimension_numbers = #tpu.dot_dimension_numbers<[1], [0], [0], [1], [0, 0, 1, 1], [], []>} : vector<12x32xbf16>, vector<32x32xbf16>, vector<12x32xf32> -> vector<12x32xf32>
    %830 = vector.broadcast %826 : vector<1x32xf32> to vector<12x32xf32>
    %831 = arith.addf %829, %830 : vector<12x32xf32>
    %c1_345 = arith.constant 1 : index
    %c0_346 = arith.constant 0 : index
    %c0_347 = arith.constant 0 : index
    %832 = vector.load %arg14[%c1_345, %c0_346, %c0_347] : memref<2x32x64xf32, #tpu.memory_space<vmem>>, vector<1x32x64xf32>
    %833 = vector.shape_cast %832 : vector<1x32x64xf32> to vector<32x64xf32>
    %c1_348 = arith.constant 1 : index
    %c0_349 = arith.constant 0 : index
    %c0_350 = arith.constant 0 : index
    %834 = vector.load %arg15[%c1_348, %c0_349, %c0_350] : memref<2x1x64xf32, #tpu.memory_space<vmem>>, vector<1x1x64xf32>
    %835 = vector.shape_cast %834 : vector<1x1x64xf32> to vector<1x64xf32>
    %836 = arith.truncf %2 : vector<16x32xf32> to vector<16x32xbf16>
    %837 = arith.truncf %833 : vector<32x64xf32> to vector<32x64xbf16>
    %cst_351 = arith.constant dense<0.000000e+00> : vector<16x64xf32>
    %838 = tpu.matmul %836, %837, %cst_351 {dimension_numbers = #tpu.dot_dimension_numbers<[1], [0], [0], [1], [0, 0, 1, 1], [], []>} : vector<16x32xbf16>, vector<32x64xbf16>, vector<16x64xf32> -> vector<16x64xf32>
    %839 = vector.broadcast %835 : vector<1x64xf32> to vector<16x64xf32>
    %840 = arith.addf %838, %839 : vector<16x64xf32>
    %841 = vector.extract_strided_slice %831 {offsets = [0, 0], sizes = [6, 8], strides = [1, 1]} : vector<12x32xf32> to vector<6x8xf32>
    %842 = vector.extract_strided_slice %840 {offsets = [0, 0], sizes = [8, 8], strides = [1, 1]} : vector<16x64xf32> to vector<8x8xf32>
    %843 = vector.extract_strided_slice %840 {offsets = [0, 32], sizes = [8, 8], strides = [1, 1]} : vector<16x64xf32> to vector<8x8xf32>
    %844 = arith.truncf %841 : vector<6x8xf32> to vector<6x8xbf16>
    %845 = arith.truncf %842 : vector<8x8xf32> to vector<8x8xbf16>
    %cst_352 = arith.constant dense<0.000000e+00> : vector<6x8xf32>
    %846 = tpu.matmul %844, %845, %cst_352 {dimension_numbers = #tpu.dot_dimension_numbers<[1], [1], [0], [0], [0, 0, 1, 0], [], []>} : vector<6x8xbf16>, vector<8x8xbf16>, vector<6x8xf32> -> vector<6x8xf32>
    %847 = arith.addf %846, %1 : vector<6x8xf32>
    %cst_353 = arith.constant dense<0xFF800000> : vector<6xf32>
    %848 = vector.multi_reduction <maximumf>, %847, %cst_353 [1] : vector<6x8xf32> to vector<6xf32>
    %849 = vector.shape_cast %848 : vector<6xf32> to vector<6x1xf32>
    %cst_354 = arith.constant -1.000000e+30 : f32
    %850 = vector.broadcast %cst_354 : f32 to vector<6x1xf32>
    %851 = arith.maximumf %849, %850 : vector<6x1xf32>
    %852 = vector.broadcast %851 : vector<6x1xf32> to vector<6x8xf32>
    %853 = arith.subf %847, %852 : vector<6x8xf32>
    %854 = math.exp %853 : vector<6x8xf32>
    %cst_355 = arith.constant dense<0.000000e+00> : vector<6xf32>
    %855 = vector.multi_reduction <add>, %854, %cst_355 [1] : vector<6x8xf32> to vector<6xf32>
    %856 = vector.shape_cast %855 : vector<6xf32> to vector<6x1xf32>
    %cst_356 = arith.constant 0.000000e+00 : f32
    %857 = vector.broadcast %cst_356 : f32 to vector<6x1xf32>
    %858 = arith.cmpf oeq, %856, %857 : vector<6x1xf32>
    %cst_357 = arith.constant 1.000000e+00 : f32
    %859 = vector.broadcast %cst_357 : f32 to vector<6x1xf32>
    %860 = arith.select %858, %859, %856 : vector<6x1xi1>, vector<6x1xf32>
    %861 = vector.broadcast %860 : vector<6x1xf32> to vector<6x8xf32>
    %862 = arith.divf %854, %861 : vector<6x8xf32>
    %863 = arith.truncf %862 : vector<6x8xf32> to vector<6x8xbf16>
    %864 = arith.truncf %843 : vector<8x8xf32> to vector<8x8xbf16>
    %cst_358 = arith.constant dense<0.000000e+00> : vector<6x8xf32>
    %865 = tpu.matmul %863, %864, %cst_358 {dimension_numbers = #tpu.dot_dimension_numbers<[1], [0], [0], [1], [0, 0, 1, 1], [], []>} : vector<6x8xbf16>, vector<8x8xbf16>, vector<6x8xf32> -> vector<6x8xf32>
    %c0_359 = arith.constant 0 : index
    %c0_360 = arith.constant 0 : index
    %866 = vector.load %arg29[%c0_359, %c0_360] : memref<12x32xf32, #tpu.memory_space<vmem>>, vector<6x8xf32>
    tpu.vector_store %arg29[%c0_359, %c0_360], %865 {strides = array<i32>} : memref<12x32xf32, #tpu.memory_space<vmem>>, vector<6x8xf32>,
    %867 = vector.extract_strided_slice %831 {offsets = [0, 8], sizes = [6, 8], strides = [1, 1]} : vector<12x32xf32> to vector<6x8xf32>
    %868 = vector.extract_strided_slice %840 {offsets = [0, 8], sizes = [8, 8], strides = [1, 1]} : vector<16x64xf32> to vector<8x8xf32>
    %869 = vector.extract_strided_slice %840 {offsets = [0, 40], sizes = [8, 8], strides = [1, 1]} : vector<16x64xf32> to vector<8x8xf32>
    %870 = arith.truncf %867 : vector<6x8xf32> to vector<6x8xbf16>
    %871 = arith.truncf %868 : vector<8x8xf32> to vector<8x8xbf16>
    %cst_361 = arith.constant dense<0.000000e+00> : vector<6x8xf32>
    %872 = tpu.matmul %870, %871, %cst_361 {dimension_numbers = #tpu.dot_dimension_numbers<[1], [1], [0], [0], [0, 0, 1, 0], [], []>} : vector<6x8xbf16>, vector<8x8xbf16>, vector<6x8xf32> -> vector<6x8xf32>
    %873 = arith.addf %872, %1 : vector<6x8xf32>
    %cst_362 = arith.constant dense<0xFF800000> : vector<6xf32>
    %874 = vector.multi_reduction <maximumf>, %873, %cst_362 [1] : vector<6x8xf32> to vector<6xf32>
    %875 = vector.shape_cast %874 : vector<6xf32> to vector<6x1xf32>
    %cst_363 = arith.constant -1.000000e+30 : f32
    %876 = vector.broadcast %cst_363 : f32 to vector<6x1xf32>
    %877 = arith.maximumf %875, %876 : vector<6x1xf32>
    %878 = vector.broadcast %877 : vector<6x1xf32> to vector<6x8xf32>
    %879 = arith.subf %873, %878 : vector<6x8xf32>
    %880 = math.exp %879 : vector<6x8xf32>
    %cst_364 = arith.constant dense<0.000000e+00> : vector<6xf32>
    %881 = vector.multi_reduction <add>, %880, %cst_364 [1] : vector<6x8xf32> to vector<6xf32>
    %882 = vector.shape_cast %881 : vector<6xf32> to vector<6x1xf32>
    %cst_365 = arith.constant 0.000000e+00 : f32
    %883 = vector.broadcast %cst_365 : f32 to vector<6x1xf32>
    %884 = arith.cmpf oeq, %882, %883 : vector<6x1xf32>
    %cst_366 = arith.constant 1.000000e+00 : f32
    %885 = vector.broadcast %cst_366 : f32 to vector<6x1xf32>
    %886 = arith.select %884, %885, %882 : vector<6x1xi1>, vector<6x1xf32>
    %887 = vector.broadcast %886 : vector<6x1xf32> to vector<6x8xf32>
    %888 = arith.divf %880, %887 : vector<6x8xf32>
    %889 = arith.truncf %888 : vector<6x8xf32> to vector<6x8xbf16>
    %890 = arith.truncf %869 : vector<8x8xf32> to vector<8x8xbf16>
    %cst_367 = arith.constant dense<0.000000e+00> : vector<6x8xf32>
    %891 = tpu.matmul %889, %890, %cst_367 {dimension_numbers = #tpu.dot_dimension_numbers<[1], [0], [0], [1], [0, 0, 1, 1], [], []>} : vector<6x8xbf16>, vector<8x8xbf16>, vector<6x8xf32> -> vector<6x8xf32>
    %c0_368 = arith.constant 0 : index
    %c8_369 = arith.constant 8 : index
    %892 = vector.load %arg29[%c0_368, %c8_369] : memref<12x32xf32, #tpu.memory_space<vmem>>, vector<6x8xf32>
    tpu.vector_store %arg29[%c0_368, %c8_369], %891 {strides = array<i32>} : memref<12x32xf32, #tpu.memory_space<vmem>>, vector<6x8xf32>,
    %893 = vector.extract_strided_slice %831 {offsets = [0, 16], sizes = [6, 8], strides = [1, 1]} : vector<12x32xf32> to vector<6x8xf32>
    %894 = vector.extract_strided_slice %840 {offsets = [0, 16], sizes = [8, 8], strides = [1, 1]} : vector<16x64xf32> to vector<8x8xf32>
    %895 = vector.extract_strided_slice %840 {offsets = [0, 48], sizes = [8, 8], strides = [1, 1]} : vector<16x64xf32> to vector<8x8xf32>
    %896 = arith.truncf %893 : vector<6x8xf32> to vector<6x8xbf16>
    %897 = arith.truncf %894 : vector<8x8xf32> to vector<8x8xbf16>
    %cst_370 = arith.constant dense<0.000000e+00> : vector<6x8xf32>
    %898 = tpu.matmul %896, %897, %cst_370 {dimension_numbers = #tpu.dot_dimension_numbers<[1], [1], [0], [0], [0, 0, 1, 0], [], []>} : vector<6x8xbf16>, vector<8x8xbf16>, vector<6x8xf32> -> vector<6x8xf32>
    %899 = arith.addf %898, %1 : vector<6x8xf32>
    %cst_371 = arith.constant dense<0xFF800000> : vector<6xf32>
    %900 = vector.multi_reduction <maximumf>, %899, %cst_371 [1] : vector<6x8xf32> to vector<6xf32>
    %901 = vector.shape_cast %900 : vector<6xf32> to vector<6x1xf32>
    %cst_372 = arith.constant -1.000000e+30 : f32
    %902 = vector.broadcast %cst_372 : f32 to vector<6x1xf32>
    %903 = arith.maximumf %901, %902 : vector<6x1xf32>
    %904 = vector.broadcast %903 : vector<6x1xf32> to vector<6x8xf32>
    %905 = arith.subf %899, %904 : vector<6x8xf32>
    %906 = math.exp %905 : vector<6x8xf32>
    %cst_373 = arith.constant dense<0.000000e+00> : vector<6xf32>
    %907 = vector.multi_reduction <add>, %906, %cst_373 [1] : vector<6x8xf32> to vector<6xf32>
    %908 = vector.shape_cast %907 : vector<6xf32> to vector<6x1xf32>
    %cst_374 = arith.constant 0.000000e+00 : f32
    %909 = vector.broadcast %cst_374 : f32 to vector<6x1xf32>
    %910 = arith.cmpf oeq, %908, %909 : vector<6x1xf32>
    %cst_375 = arith.constant 1.000000e+00 : f32
    %911 = vector.broadcast %cst_375 : f32 to vector<6x1xf32>
    %912 = arith.select %910, %911, %908 : vector<6x1xi1>, vector<6x1xf32>
    %913 = vector.broadcast %912 : vector<6x1xf32> to vector<6x8xf32>
    %914 = arith.divf %906, %913 : vector<6x8xf32>
    %915 = arith.truncf %914 : vector<6x8xf32> to vector<6x8xbf16>
    %916 = arith.truncf %895 : vector<8x8xf32> to vector<8x8xbf16>
    %cst_376 = arith.constant dense<0.000000e+00> : vector<6x8xf32>
    %917 = tpu.matmul %915, %916, %cst_376 {dimension_numbers = #tpu.dot_dimension_numbers<[1], [0], [0], [1], [0, 0, 1, 1], [], []>} : vector<6x8xbf16>, vector<8x8xbf16>, vector<6x8xf32> -> vector<6x8xf32>
    %c0_377 = arith.constant 0 : index
    %c16_378 = arith.constant 16 : index
    %918 = vector.load %arg29[%c0_377, %c16_378] : memref<12x32xf32, #tpu.memory_space<vmem>>, vector<6x8xf32>
    tpu.vector_store %arg29[%c0_377, %c16_378], %917 {strides = array<i32>} : memref<12x32xf32, #tpu.memory_space<vmem>>, vector<6x8xf32>,
    %919 = vector.extract_strided_slice %831 {offsets = [0, 24], sizes = [6, 8], strides = [1, 1]} : vector<12x32xf32> to vector<6x8xf32>
    %920 = vector.extract_strided_slice %840 {offsets = [0, 24], sizes = [8, 8], strides = [1, 1]} : vector<16x64xf32> to vector<8x8xf32>
    %921 = vector.extract_strided_slice %840 {offsets = [0, 56], sizes = [8, 8], strides = [1, 1]} : vector<16x64xf32> to vector<8x8xf32>
    %922 = arith.truncf %919 : vector<6x8xf32> to vector<6x8xbf16>
    %923 = arith.truncf %920 : vector<8x8xf32> to vector<8x8xbf16>
    %cst_379 = arith.constant dense<0.000000e+00> : vector<6x8xf32>
    %924 = tpu.matmul %922, %923, %cst_379 {dimension_numbers = #tpu.dot_dimension_numbers<[1], [1], [0], [0], [0, 0, 1, 0], [], []>} : vector<6x8xbf16>, vector<8x8xbf16>, vector<6x8xf32> -> vector<6x8xf32>
    %925 = arith.addf %924, %1 : vector<6x8xf32>
    %cst_380 = arith.constant dense<0xFF800000> : vector<6xf32>
    %926 = vector.multi_reduction <maximumf>, %925, %cst_380 [1] : vector<6x8xf32> to vector<6xf32>
    %927 = vector.shape_cast %926 : vector<6xf32> to vector<6x1xf32>
    %cst_381 = arith.constant -1.000000e+30 : f32
    %928 = vector.broadcast %cst_381 : f32 to vector<6x1xf32>
    %929 = arith.maximumf %927, %928 : vector<6x1xf32>
    %930 = vector.broadcast %929 : vector<6x1xf32> to vector<6x8xf32>
    %931 = arith.subf %925, %930 : vector<6x8xf32>
    %932 = math.exp %931 : vector<6x8xf32>
    %cst_382 = arith.constant dense<0.000000e+00> : vector<6xf32>
    %933 = vector.multi_reduction <add>, %932, %cst_382 [1] : vector<6x8xf32> to vector<6xf32>
    %934 = vector.shape_cast %933 : vector<6xf32> to vector<6x1xf32>
    %cst_383 = arith.constant 0.000000e+00 : f32
    %935 = vector.broadcast %cst_383 : f32 to vector<6x1xf32>
    %936 = arith.cmpf oeq, %934, %935 : vector<6x1xf32>
    %cst_384 = arith.constant 1.000000e+00 : f32
    %937 = vector.broadcast %cst_384 : f32 to vector<6x1xf32>
    %938 = arith.select %936, %937, %934 : vector<6x1xi1>, vector<6x1xf32>
    %939 = vector.broadcast %938 : vector<6x1xf32> to vector<6x8xf32>
    %940 = arith.divf %932, %939 : vector<6x8xf32>
    %941 = arith.truncf %940 : vector<6x8xf32> to vector<6x8xbf16>
    %942 = arith.truncf %921 : vector<8x8xf32> to vector<8x8xbf16>
    %cst_385 = arith.constant dense<0.000000e+00> : vector<6x8xf32>
    %943 = tpu.matmul %941, %942, %cst_385 {dimension_numbers = #tpu.dot_dimension_numbers<[1], [0], [0], [1], [0, 0, 1, 1], [], []>} : vector<6x8xbf16>, vector<8x8xbf16>, vector<6x8xf32> -> vector<6x8xf32>
    %c0_386 = arith.constant 0 : index
    %c24_387 = arith.constant 24 : index
    %944 = vector.load %arg29[%c0_386, %c24_387] : memref<12x32xf32, #tpu.memory_space<vmem>>, vector<6x8xf32>
    tpu.vector_store %arg29[%c0_386, %c24_387], %943 {strides = array<i32>} : memref<12x32xf32, #tpu.memory_space<vmem>>, vector<6x8xf32>,
    %945 = vector.extract_strided_slice %831 {offsets = [6, 0], sizes = [6, 8], strides = [1, 1]} : vector<12x32xf32> to vector<6x8xf32>
    %946 = vector.extract_strided_slice %840 {offsets = [8, 0], sizes = [8, 8], strides = [1, 1]} : vector<16x64xf32> to vector<8x8xf32>
    %947 = vector.extract_strided_slice %840 {offsets = [8, 32], sizes = [8, 8], strides = [1, 1]} : vector<16x64xf32> to vector<8x8xf32>
    %948 = arith.truncf %945 : vector<6x8xf32> to vector<6x8xbf16>
    %949 = arith.truncf %946 : vector<8x8xf32> to vector<8x8xbf16>
    %cst_388 = arith.constant dense<0.000000e+00> : vector<6x8xf32>
    %950 = tpu.matmul %948, %949, %cst_388 {dimension_numbers = #tpu.dot_dimension_numbers<[1], [1], [0], [0], [0, 0, 1, 0], [], []>} : vector<6x8xbf16>, vector<8x8xbf16>, vector<6x8xf32> -> vector<6x8xf32>
    %951 = arith.addf %950, %1 : vector<6x8xf32>
    %cst_389 = arith.constant dense<0xFF800000> : vector<6xf32>
    %952 = vector.multi_reduction <maximumf>, %951, %cst_389 [1] : vector<6x8xf32> to vector<6xf32>
    %953 = vector.shape_cast %952 : vector<6xf32> to vector<6x1xf32>
    %cst_390 = arith.constant -1.000000e+30 : f32
    %954 = vector.broadcast %cst_390 : f32 to vector<6x1xf32>
    %955 = arith.maximumf %953, %954 : vector<6x1xf32>
    %956 = vector.broadcast %955 : vector<6x1xf32> to vector<6x8xf32>
    %957 = arith.subf %951, %956 : vector<6x8xf32>
    %958 = math.exp %957 : vector<6x8xf32>
    %cst_391 = arith.constant dense<0.000000e+00> : vector<6xf32>
    %959 = vector.multi_reduction <add>, %958, %cst_391 [1] : vector<6x8xf32> to vector<6xf32>
    %960 = vector.shape_cast %959 : vector<6xf32> to vector<6x1xf32>
    %cst_392 = arith.constant 0.000000e+00 : f32
    %961 = vector.broadcast %cst_392 : f32 to vector<6x1xf32>
    %962 = arith.cmpf oeq, %960, %961 : vector<6x1xf32>
    %cst_393 = arith.constant 1.000000e+00 : f32
    %963 = vector.broadcast %cst_393 : f32 to vector<6x1xf32>
    %964 = arith.select %962, %963, %960 : vector<6x1xi1>, vector<6x1xf32>
    %965 = vector.broadcast %964 : vector<6x1xf32> to vector<6x8xf32>
    %966 = arith.divf %958, %965 : vector<6x8xf32>
    %967 = arith.truncf %966 : vector<6x8xf32> to vector<6x8xbf16>
    %968 = arith.truncf %947 : vector<8x8xf32> to vector<8x8xbf16>
    %cst_394 = arith.constant dense<0.000000e+00> : vector<6x8xf32>
    %969 = tpu.matmul %967, %968, %cst_394 {dimension_numbers = #tpu.dot_dimension_numbers<[1], [0], [0], [1], [0, 0, 1, 1], [], []>} : vector<6x8xbf16>, vector<8x8xbf16>, vector<6x8xf32> -> vector<6x8xf32>
    %c6_395 = arith.constant 6 : index
    %c0_396 = arith.constant 0 : index
    %970 = vector.load %arg29[%c6_395, %c0_396] : memref<12x32xf32, #tpu.memory_space<vmem>>, vector<6x8xf32>
    tpu.vector_store %arg29[%c6_395, %c0_396], %969 {strides = array<i32>} : memref<12x32xf32, #tpu.memory_space<vmem>>, vector<6x8xf32>,
    %971 = vector.extract_strided_slice %831 {offsets = [6, 8], sizes = [6, 8], strides = [1, 1]} : vector<12x32xf32> to vector<6x8xf32>
    %972 = vector.extract_strided_slice %840 {offsets = [8, 8], sizes = [8, 8], strides = [1, 1]} : vector<16x64xf32> to vector<8x8xf32>
    %973 = vector.extract_strided_slice %840 {offsets = [8, 40], sizes = [8, 8], strides = [1, 1]} : vector<16x64xf32> to vector<8x8xf32>
    %974 = arith.truncf %971 : vector<6x8xf32> to vector<6x8xbf16>
    %975 = arith.truncf %972 : vector<8x8xf32> to vector<8x8xbf16>
    %cst_397 = arith.constant dense<0.000000e+00> : vector<6x8xf32>
    %976 = tpu.matmul %974, %975, %cst_397 {dimension_numbers = #tpu.dot_dimension_numbers<[1], [1], [0], [0], [0, 0, 1, 0], [], []>} : vector<6x8xbf16>, vector<8x8xbf16>, vector<6x8xf32> -> vector<6x8xf32>
    %977 = arith.addf %976, %1 : vector<6x8xf32>
    %cst_398 = arith.constant dense<0xFF800000> : vector<6xf32>
    %978 = vector.multi_reduction <maximumf>, %977, %cst_398 [1] : vector<6x8xf32> to vector<6xf32>
    %979 = vector.shape_cast %978 : vector<6xf32> to vector<6x1xf32>
    %cst_399 = arith.constant -1.000000e+30 : f32
    %980 = vector.broadcast %cst_399 : f32 to vector<6x1xf32>
    %981 = arith.maximumf %979, %980 : vector<6x1xf32>
    %982 = vector.broadcast %981 : vector<6x1xf32> to vector<6x8xf32>
    %983 = arith.subf %977, %982 : vector<6x8xf32>
    %984 = math.exp %983 : vector<6x8xf32>
    %cst_400 = arith.constant dense<0.000000e+00> : vector<6xf32>
    %985 = vector.multi_reduction <add>, %984, %cst_400 [1] : vector<6x8xf32> to vector<6xf32>
    %986 = vector.shape_cast %985 : vector<6xf32> to vector<6x1xf32>
    %cst_401 = arith.constant 0.000000e+00 : f32
    %987 = vector.broadcast %cst_401 : f32 to vector<6x1xf32>
    %988 = arith.cmpf oeq, %986, %987 : vector<6x1xf32>
    %cst_402 = arith.constant 1.000000e+00 : f32
    %989 = vector.broadcast %cst_402 : f32 to vector<6x1xf32>
    %990 = arith.select %988, %989, %986 : vector<6x1xi1>, vector<6x1xf32>
    %991 = vector.broadcast %990 : vector<6x1xf32> to vector<6x8xf32>
    %992 = arith.divf %984, %991 : vector<6x8xf32>
    %993 = arith.truncf %992 : vector<6x8xf32> to vector<6x8xbf16>
    %994 = arith.truncf %973 : vector<8x8xf32> to vector<8x8xbf16>
    %cst_403 = arith.constant dense<0.000000e+00> : vector<6x8xf32>
    %995 = tpu.matmul %993, %994, %cst_403 {dimension_numbers = #tpu.dot_dimension_numbers<[1], [0], [0], [1], [0, 0, 1, 1], [], []>} : vector<6x8xbf16>, vector<8x8xbf16>, vector<6x8xf32> -> vector<6x8xf32>
    %c6_404 = arith.constant 6 : index
    %c8_405 = arith.constant 8 : index
    %996 = vector.load %arg29[%c6_404, %c8_405] : memref<12x32xf32, #tpu.memory_space<vmem>>, vector<6x8xf32>
    tpu.vector_store %arg29[%c6_404, %c8_405], %995 {strides = array<i32>} : memref<12x32xf32, #tpu.memory_space<vmem>>, vector<6x8xf32>,
    %997 = vector.extract_strided_slice %831 {offsets = [6, 16], sizes = [6, 8], strides = [1, 1]} : vector<12x32xf32> to vector<6x8xf32>
    %998 = vector.extract_strided_slice %840 {offsets = [8, 16], sizes = [8, 8], strides = [1, 1]} : vector<16x64xf32> to vector<8x8xf32>
    %999 = vector.extract_strided_slice %840 {offsets = [8, 48], sizes = [8, 8], strides = [1, 1]} : vector<16x64xf32> to vector<8x8xf32>
    %1000 = arith.truncf %997 : vector<6x8xf32> to vector<6x8xbf16>
    %1001 = arith.truncf %998 : vector<8x8xf32> to vector<8x8xbf16>
    %cst_406 = arith.constant dense<0.000000e+00> : vector<6x8xf32>
    %1002 = tpu.matmul %1000, %1001, %cst_406 {dimension_numbers = #tpu.dot_dimension_numbers<[1], [1], [0], [0], [0, 0, 1, 0], [], []>} : vector<6x8xbf16>, vector<8x8xbf16>, vector<6x8xf32> -> vector<6x8xf32>
    %1003 = arith.addf %1002, %1 : vector<6x8xf32>
    %cst_407 = arith.constant dense<0xFF800000> : vector<6xf32>
    %1004 = vector.multi_reduction <maximumf>, %1003, %cst_407 [1] : vector<6x8xf32> to vector<6xf32>
    %1005 = vector.shape_cast %1004 : vector<6xf32> to vector<6x1xf32>
    %cst_408 = arith.constant -1.000000e+30 : f32
    %1006 = vector.broadcast %cst_408 : f32 to vector<6x1xf32>
    %1007 = arith.maximumf %1005, %1006 : vector<6x1xf32>
    %1008 = vector.broadcast %1007 : vector<6x1xf32> to vector<6x8xf32>
    %1009 = arith.subf %1003, %1008 : vector<6x8xf32>
    %1010 = math.exp %1009 : vector<6x8xf32>
    %cst_409 = arith.constant dense<0.000000e+00> : vector<6xf32>
    %1011 = vector.multi_reduction <add>, %1010, %cst_409 [1] : vector<6x8xf32> to vector<6xf32>
    %1012 = vector.shape_cast %1011 : vector<6xf32> to vector<6x1xf32>
    %cst_410 = arith.constant 0.000000e+00 : f32
    %1013 = vector.broadcast %cst_410 : f32 to vector<6x1xf32>
    %1014 = arith.cmpf oeq, %1012, %1013 : vector<6x1xf32>
    %cst_411 = arith.constant 1.000000e+00 : f32
    %1015 = vector.broadcast %cst_411 : f32 to vector<6x1xf32>
    %1016 = arith.select %1014, %1015, %1012 : vector<6x1xi1>, vector<6x1xf32>
    %1017 = vector.broadcast %1016 : vector<6x1xf32> to vector<6x8xf32>
    %1018 = arith.divf %1010, %1017 : vector<6x8xf32>
    %1019 = arith.truncf %1018 : vector<6x8xf32> to vector<6x8xbf16>
    %1020 = arith.truncf %999 : vector<8x8xf32> to vector<8x8xbf16>
    %cst_412 = arith.constant dense<0.000000e+00> : vector<6x8xf32>
    %1021 = tpu.matmul %1019, %1020, %cst_412 {dimension_numbers = #tpu.dot_dimension_numbers<[1], [0], [0], [1], [0, 0, 1, 1], [], []>} : vector<6x8xbf16>, vector<8x8xbf16>, vector<6x8xf32> -> vector<6x8xf32>
    %c6_413 = arith.constant 6 : index
    %c16_414 = arith.constant 16 : index
    %1022 = vector.load %arg29[%c6_413, %c16_414] : memref<12x32xf32, #tpu.memory_space<vmem>>, vector<6x8xf32>
    tpu.vector_store %arg29[%c6_413, %c16_414], %1021 {strides = array<i32>} : memref<12x32xf32, #tpu.memory_space<vmem>>, vector<6x8xf32>,
    %1023 = vector.extract_strided_slice %831 {offsets = [6, 24], sizes = [6, 8], strides = [1, 1]} : vector<12x32xf32> to vector<6x8xf32>
    %1024 = vector.extract_strided_slice %840 {offsets = [8, 24], sizes = [8, 8], strides = [1, 1]} : vector<16x64xf32> to vector<8x8xf32>
    %1025 = vector.extract_strided_slice %840 {offsets = [8, 56], sizes = [8, 8], strides = [1, 1]} : vector<16x64xf32> to vector<8x8xf32>
    %1026 = arith.truncf %1023 : vector<6x8xf32> to vector<6x8xbf16>
    %1027 = arith.truncf %1024 : vector<8x8xf32> to vector<8x8xbf16>
    %cst_415 = arith.constant dense<0.000000e+00> : vector<6x8xf32>
    %1028 = tpu.matmul %1026, %1027, %cst_415 {dimension_numbers = #tpu.dot_dimension_numbers<[1], [1], [0], [0], [0, 0, 1, 0], [], []>} : vector<6x8xbf16>, vector<8x8xbf16>, vector<6x8xf32> -> vector<6x8xf32>
    %1029 = arith.addf %1028, %1 : vector<6x8xf32>
    %cst_416 = arith.constant dense<0xFF800000> : vector<6xf32>
    %1030 = vector.multi_reduction <maximumf>, %1029, %cst_416 [1] : vector<6x8xf32> to vector<6xf32>
    %1031 = vector.shape_cast %1030 : vector<6xf32> to vector<6x1xf32>
    %cst_417 = arith.constant -1.000000e+30 : f32
    %1032 = vector.broadcast %cst_417 : f32 to vector<6x1xf32>
    %1033 = arith.maximumf %1031, %1032 : vector<6x1xf32>
    %1034 = vector.broadcast %1033 : vector<6x1xf32> to vector<6x8xf32>
    %1035 = arith.subf %1029, %1034 : vector<6x8xf32>
    %1036 = math.exp %1035 : vector<6x8xf32>
    %cst_418 = arith.constant dense<0.000000e+00> : vector<6xf32>
    %1037 = vector.multi_reduction <add>, %1036, %cst_418 [1] : vector<6x8xf32> to vector<6xf32>
    %1038 = vector.shape_cast %1037 : vector<6xf32> to vector<6x1xf32>
    %cst_419 = arith.constant 0.000000e+00 : f32
    %1039 = vector.broadcast %cst_419 : f32 to vector<6x1xf32>
    %1040 = arith.cmpf oeq, %1038, %1039 : vector<6x1xf32>
    %cst_420 = arith.constant 1.000000e+00 : f32
    %1041 = vector.broadcast %cst_420 : f32 to vector<6x1xf32>
    %1042 = arith.select %1040, %1041, %1038 : vector<6x1xi1>, vector<6x1xf32>
    %1043 = vector.broadcast %1042 : vector<6x1xf32> to vector<6x8xf32>
    %1044 = arith.divf %1036, %1043 : vector<6x8xf32>
    %1045 = arith.truncf %1044 : vector<6x8xf32> to vector<6x8xbf16>
    %1046 = arith.truncf %1025 : vector<8x8xf32> to vector<8x8xbf16>
    %cst_421 = arith.constant dense<0.000000e+00> : vector<6x8xf32>
    %1047 = tpu.matmul %1045, %1046, %cst_421 {dimension_numbers = #tpu.dot_dimension_numbers<[1], [0], [0], [1], [0, 0, 1, 1], [], []>} : vector<6x8xbf16>, vector<8x8xbf16>, vector<6x8xf32> -> vector<6x8xf32>
    %c6_422 = arith.constant 6 : index
    %c24_423 = arith.constant 24 : index
    %1048 = vector.load %arg29[%c6_422, %c24_423] : memref<12x32xf32, #tpu.memory_space<vmem>>, vector<6x8xf32>
    tpu.vector_store %arg29[%c6_422, %c24_423], %1047 {strides = array<i32>} : memref<12x32xf32, #tpu.memory_space<vmem>>, vector<6x8xf32>,
    %c0_424 = arith.constant 0 : index
    %c0_425 = arith.constant 0 : index
    %1049 = vector.load %arg29[%c0_424, %c0_425] : memref<12x32xf32, #tpu.memory_space<vmem>>, vector<12x32xf32>
    %c1_426 = arith.constant 1 : index
    %c0_427 = arith.constant 0 : index
    %c0_428 = arith.constant 0 : index
    %1050 = vector.load %arg16[%c1_426, %c0_427, %c0_428] : memref<2x32x32xf32, #tpu.memory_space<vmem>>, vector<1x32x32xf32>
    %1051 = vector.shape_cast %1050 : vector<1x32x32xf32> to vector<32x32xf32>
    %c1_429 = arith.constant 1 : index
    %c0_430 = arith.constant 0 : index
    %c0_431 = arith.constant 0 : index
    %1052 = vector.load %arg17[%c1_429, %c0_430, %c0_431] : memref<2x1x32xf32, #tpu.memory_space<vmem>>, vector<1x1x32xf32>
    %1053 = vector.shape_cast %1052 : vector<1x1x32xf32> to vector<1x32xf32>
    %1054 = arith.truncf %1049 : vector<12x32xf32> to vector<12x32xbf16>
    %1055 = arith.truncf %1051 : vector<32x32xf32> to vector<32x32xbf16>
    %cst_432 = arith.constant dense<0.000000e+00> : vector<12x32xf32>
    %1056 = tpu.matmul %1054, %1055, %cst_432 {dimension_numbers = #tpu.dot_dimension_numbers<[1], [0], [0], [1], [0, 0, 1, 1], [], []>} : vector<12x32xbf16>, vector<32x32xbf16>, vector<12x32xf32> -> vector<12x32xf32>
    %1057 = vector.broadcast %1053 : vector<1x32xf32> to vector<12x32xf32>
    %1058 = arith.addf %1056, %1057 : vector<12x32xf32>
    %1059 = arith.addf %822, %1058 : vector<12x32xf32>
    %c1_433 = arith.constant 1 : index
    %c0_434 = arith.constant 0 : index
    %c0_435 = arith.constant 0 : index
    %1060 = vector.load %arg24[%c1_433, %c0_434, %c0_435] : memref<2x1x32xf32, #tpu.memory_space<vmem>>, vector<1x1x32xf32>
    %1061 = vector.shape_cast %1060 : vector<1x1x32xf32> to vector<1x32xf32>
    %c1_436 = arith.constant 1 : index
    %c0_437 = arith.constant 0 : index
    %c0_438 = arith.constant 0 : index
    %1062 = vector.load %arg25[%c1_436, %c0_437, %c0_438] : memref<2x1x32xf32, #tpu.memory_space<vmem>>, vector<1x1x32xf32>
    %1063 = vector.shape_cast %1062 : vector<1x1x32xf32> to vector<1x32xf32>
    %cst_439 = arith.constant dense<0.000000e+00> : vector<12xf32>
    %1064 = vector.multi_reduction <add>, %1059, %cst_439 [1] : vector<12x32xf32> to vector<12xf32>
    %1065 = vector.shape_cast %1064 : vector<12xf32> to vector<12x1xf32>
    %cst_440 = arith.constant 3.200000e+01 : f32
    %1066 = vector.broadcast %cst_440 : f32 to vector<12x1xf32>
    %1067 = arith.divf %1065, %1066 : vector<12x1xf32>
    %1068 = vector.broadcast %1067 : vector<12x1xf32> to vector<12x32xf32>
    %1069 = arith.subf %1059, %1068 : vector<12x32xf32>
    %1070 = arith.mulf %1069, %1069 : vector<12x32xf32>
    %cst_441 = arith.constant dense<0.000000e+00> : vector<12xf32>
    %1071 = vector.multi_reduction <add>, %1070, %cst_441 [1] : vector<12x32xf32> to vector<12xf32>
    %1072 = vector.shape_cast %1071 : vector<12xf32> to vector<12x1xf32>
    %cst_442 = arith.constant 3.200000e+01 : f32
    %1073 = vector.broadcast %cst_442 : f32 to vector<12x1xf32>
    %1074 = arith.divf %1072, %1073 : vector<12x1xf32>
    %cst_443 = arith.constant 9.99999974E-6 : f32
    %1075 = vector.broadcast %cst_443 : f32 to vector<12x1xf32>
    %1076 = arith.addf %1074, %1075 : vector<12x1xf32>
    %1077 = math.rsqrt %1076 : vector<12x1xf32>
    %1078 = vector.broadcast %1077 : vector<12x1xf32> to vector<12x32xf32>
    %1079 = arith.mulf %1069, %1078 : vector<12x32xf32>
    %1080 = vector.broadcast %1061 : vector<1x32xf32> to vector<12x32xf32>
    %1081 = arith.mulf %1079, %1080 : vector<12x32xf32>
    %1082 = vector.broadcast %1063 : vector<1x32xf32> to vector<12x32xf32>
    %1083 = arith.addf %1081, %1082 : vector<12x32xf32>
    %c1_444 = arith.constant 1 : index
    %c0_445 = arith.constant 0 : index
    %c0_446 = arith.constant 0 : index
    %1084 = vector.load %arg18[%c1_444, %c0_445, %c0_446] : memref<2x32x64xf32, #tpu.memory_space<vmem>>, vector<1x32x64xf32>
    %1085 = vector.shape_cast %1084 : vector<1x32x64xf32> to vector<32x64xf32>
    %c1_447 = arith.constant 1 : index
    %c0_448 = arith.constant 0 : index
    %c0_449 = arith.constant 0 : index
    %1086 = vector.load %arg19[%c1_447, %c0_448, %c0_449] : memref<2x1x64xf32, #tpu.memory_space<vmem>>, vector<1x1x64xf32>
    %1087 = vector.shape_cast %1086 : vector<1x1x64xf32> to vector<1x64xf32>
    %1088 = arith.truncf %1083 : vector<12x32xf32> to vector<12x32xbf16>
    %1089 = arith.truncf %1085 : vector<32x64xf32> to vector<32x64xbf16>
    %cst_450 = arith.constant dense<0.000000e+00> : vector<12x64xf32>
    %1090 = tpu.matmul %1088, %1089, %cst_450 {dimension_numbers = #tpu.dot_dimension_numbers<[1], [0], [0], [1], [0, 0, 1, 1], [], []>} : vector<12x32xbf16>, vector<32x64xbf16>, vector<12x64xf32> -> vector<12x64xf32>
    %1091 = vector.broadcast %1087 : vector<1x64xf32> to vector<12x64xf32>
    %1092 = arith.addf %1090, %1091 : vector<12x64xf32>
    %cst_451 = arith.constant 0.000000e+00 : f32
    %1093 = vector.broadcast %cst_451 : f32 to vector<12x64xf32>
    %1094 = arith.maximumf %1092, %1093 : vector<12x64xf32>
    %c1_452 = arith.constant 1 : index
    %c0_453 = arith.constant 0 : index
    %c0_454 = arith.constant 0 : index
    %1095 = vector.load %arg20[%c1_452, %c0_453, %c0_454] : memref<2x64x32xf32, #tpu.memory_space<vmem>>, vector<1x64x32xf32>
    %1096 = vector.shape_cast %1095 : vector<1x64x32xf32> to vector<64x32xf32>
    %c1_455 = arith.constant 1 : index
    %c0_456 = arith.constant 0 : index
    %c0_457 = arith.constant 0 : index
    %1097 = vector.load %arg21[%c1_455, %c0_456, %c0_457] : memref<2x1x32xf32, #tpu.memory_space<vmem>>, vector<1x1x32xf32>
    %1098 = vector.shape_cast %1097 : vector<1x1x32xf32> to vector<1x32xf32>
    %1099 = arith.truncf %1094 : vector<12x64xf32> to vector<12x64xbf16>
    %1100 = arith.truncf %1096 : vector<64x32xf32> to vector<64x32xbf16>
    %cst_458 = arith.constant dense<0.000000e+00> : vector<12x32xf32>
    %1101 = tpu.matmul %1099, %1100, %cst_458 {dimension_numbers = #tpu.dot_dimension_numbers<[1], [0], [0], [1], [0, 0, 1, 1], [], []>} : vector<12x64xbf16>, vector<64x32xbf16>, vector<12x32xf32> -> vector<12x32xf32>
    %1102 = vector.broadcast %1098 : vector<1x32xf32> to vector<12x32xf32>
    %1103 = arith.addf %1101, %1102 : vector<12x32xf32>
    %1104 = arith.addf %1083, %1103 : vector<12x32xf32>
    %c1_459 = arith.constant 1 : index
    %c0_460 = arith.constant 0 : index
    %c0_461 = arith.constant 0 : index
    %1105 = vector.load %arg26[%c1_459, %c0_460, %c0_461] : memref<2x1x32xf32, #tpu.memory_space<vmem>>, vector<1x1x32xf32>
    %1106 = vector.shape_cast %1105 : vector<1x1x32xf32> to vector<1x32xf32>
    %c1_462 = arith.constant 1 : index
    %c0_463 = arith.constant 0 : index
    %c0_464 = arith.constant 0 : index
    %1107 = vector.load %arg27[%c1_462, %c0_463, %c0_464] : memref<2x1x32xf32, #tpu.memory_space<vmem>>, vector<1x1x32xf32>
    %1108 = vector.shape_cast %1107 : vector<1x1x32xf32> to vector<1x32xf32>
    %cst_465 = arith.constant dense<0.000000e+00> : vector<12xf32>
    %1109 = vector.multi_reduction <add>, %1104, %cst_465 [1] : vector<12x32xf32> to vector<12xf32>
    %1110 = vector.shape_cast %1109 : vector<12xf32> to vector<12x1xf32>
    %cst_466 = arith.constant 3.200000e+01 : f32
    %1111 = vector.broadcast %cst_466 : f32 to vector<12x1xf32>
    %1112 = arith.divf %1110, %1111 : vector<12x1xf32>
    %1113 = vector.broadcast %1112 : vector<12x1xf32> to vector<12x32xf32>
    %1114 = arith.subf %1104, %1113 : vector<12x32xf32>
    %1115 = arith.mulf %1114, %1114 : vector<12x32xf32>
    %cst_467 = arith.constant dense<0.000000e+00> : vector<12xf32>
    %1116 = vector.multi_reduction <add>, %1115, %cst_467 [1] : vector<12x32xf32> to vector<12xf32>
    %1117 = vector.shape_cast %1116 : vector<12xf32> to vector<12x1xf32>
    %cst_468 = arith.constant 3.200000e+01 : f32
    %1118 = vector.broadcast %cst_468 : f32 to vector<12x1xf32>
    %1119 = arith.divf %1117, %1118 : vector<12x1xf32>
    %cst_469 = arith.constant 9.99999974E-6 : f32
    %1120 = vector.broadcast %cst_469 : f32 to vector<12x1xf32>
    %1121 = arith.addf %1119, %1120 : vector<12x1xf32>
    %1122 = math.rsqrt %1121 : vector<12x1xf32>
    %1123 = vector.broadcast %1122 : vector<12x1xf32> to vector<12x32xf32>
    %1124 = arith.mulf %1114, %1123 : vector<12x32xf32>
    %1125 = vector.broadcast %1106 : vector<1x32xf32> to vector<12x32xf32>
    %1126 = arith.mulf %1124, %1125 : vector<12x32xf32>
    %1127 = vector.broadcast %1108 : vector<1x32xf32> to vector<12x32xf32>
    %1128 = arith.addf %1126, %1127 : vector<12x32xf32>
    %c0_470 = arith.constant 0 : index
    %c0_471 = arith.constant 0 : index
    %1129 = vector.load %arg28[%c0_470, %c0_471] : memref<12x32xf32, #tpu.memory_space<vmem>>, vector<12x32xf32>
    tpu.vector_store %arg28[%c0_470, %c0_471], %1128 {strides = array<i32>} : memref<12x32xf32, #tpu.memory_space<vmem>>, vector<12x32xf32>,
    return
  }
  func.func @transform_0(%arg0: i32) -> (i32, i32) {
    %c0_i32 = arith.constant 0 : i32
    %c0_i32_0 = arith.constant 0 : i32
    %c0_i32_1 = arith.constant 0 : i32
    return %c0_i32, %c0_i32_0 : i32, i32
  }
  func.func @transform_1(%arg0: i32) -> (i32, i32) {
    %c0_i32 = arith.constant 0 : i32
    %c0_i32_0 = arith.constant 0 : i32
    %c0_i32_1 = arith.constant 0 : i32
    return %c0_i32, %c0_i32_0 : i32, i32
  }
  func.func @transform_2(%arg0: i32) -> (i32, i32) {
    %c0_i32 = arith.constant 0 : i32
    %c0_i32_0 = arith.constant 0 : i32
    %c0_i32_1 = arith.constant 0 : i32
    return %c0_i32, %c0_i32_0 : i32, i32
  }
  func.func @transform_3(%arg0: i32) -> (i32, i32) {
    %c0_i32 = arith.constant 0 : i32
    %c0_i32_0 = arith.constant 0 : i32
    %c0_i32_1 = arith.constant 0 : i32
    return %c0_i32, %c0_i32_0 : i32, i32
  }
  func.func @transform_4(%arg0: i32) -> (i32, i32) {
    %c0_i32 = arith.constant 0 : i32
    %c0_i32_0 = arith.constant 0 : i32
    %c0_i32_1 = arith.constant 0 : i32
    return %c0_i32, %c0_i32_0 : i32, i32
  }
  func.func @transform_5(%arg0: i32) -> (i32, i32) {
    %c0_i32 = arith.constant 0 : i32
    %c0_i32_0 = arith.constant 0 : i32
    %c0_i32_1 = arith.constant 0 : i32
    return %c0_i32, %c0_i32_0 : i32, i32
  }
  func.func @transform_6(%arg0: i32) -> (i32, i32) {
    %c0_i32 = arith.constant 0 : i32
    %c0_i32_0 = arith.constant 0 : i32
    %c0_i32_1 = arith.constant 0 : i32
    return %c0_i32, %c0_i32_0 : i32, i32
  }
  func.func @transform_7(%arg0: i32) -> (i32, i32, i32) {
    %c0_i32 = arith.constant 0 : i32
    %c0_i32_0 = arith.constant 0 : i32
    %c0_i32_1 = arith.constant 0 : i32
    %c0_i32_2 = arith.constant 0 : i32
    return %c0_i32, %c0_i32_0, %c0_i32_1 : i32, i32, i32
  }
  func.func @transform_8(%arg0: i32) -> (i32, i32, i32) {
    %c0_i32 = arith.constant 0 : i32
    %c0_i32_0 = arith.constant 0 : i32
    %c0_i32_1 = arith.constant 0 : i32
    %c0_i32_2 = arith.constant 0 : i32
    return %c0_i32, %c0_i32_0, %c0_i32_1 : i32, i32, i32
  }
  func.func @transform_9(%arg0: i32) -> (i32, i32, i32) {
    %c0_i32 = arith.constant 0 : i32
    %c0_i32_0 = arith.constant 0 : i32
    %c0_i32_1 = arith.constant 0 : i32
    %c0_i32_2 = arith.constant 0 : i32
    return %c0_i32, %c0_i32_0, %c0_i32_1 : i32, i32, i32
  }
  func.func @transform_10(%arg0: i32) -> (i32, i32, i32) {
    %c0_i32 = arith.constant 0 : i32
    %c0_i32_0 = arith.constant 0 : i32
    %c0_i32_1 = arith.constant 0 : i32
    %c0_i32_2 = arith.constant 0 : i32
    return %c0_i32, %c0_i32_0, %c0_i32_1 : i32, i32, i32
  }
  func.func @transform_11(%arg0: i32) -> (i32, i32, i32) {
    %c0_i32 = arith.constant 0 : i32
    %c0_i32_0 = arith.constant 0 : i32
    %c0_i32_1 = arith.constant 0 : i32
    %c0_i32_2 = arith.constant 0 : i32
    return %c0_i32, %c0_i32_0, %c0_i32_1 : i32, i32, i32
  }
  func.func @transform_12(%arg0: i32) -> (i32, i32, i32) {
    %c0_i32 = arith.constant 0 : i32
    %c0_i32_0 = arith.constant 0 : i32
    %c0_i32_1 = arith.constant 0 : i32
    %c0_i32_2 = arith.constant 0 : i32
    return %c0_i32, %c0_i32_0, %c0_i32_1 : i32, i32, i32
  }
  func.func @transform_13(%arg0: i32) -> (i32, i32, i32) {
    %c0_i32 = arith.constant 0 : i32
    %c0_i32_0 = arith.constant 0 : i32
    %c0_i32_1 = arith.constant 0 : i32
    %c0_i32_2 = arith.constant 0 : i32
    return %c0_i32, %c0_i32_0, %c0_i32_1 : i32, i32, i32
  }
  func.func @transform_14(%arg0: i32) -> (i32, i32, i32) {
    %c0_i32 = arith.constant 0 : i32
    %c0_i32_0 = arith.constant 0 : i32
    %c0_i32_1 = arith.constant 0 : i32
    %c0_i32_2 = arith.constant 0 : i32
    return %c0_i32, %c0_i32_0, %c0_i32_1 : i32, i32, i32
  }
  func.func @transform_15(%arg0: i32) -> (i32, i32, i32) {
    %c0_i32 = arith.constant 0 : i32
    %c0_i32_0 = arith.constant 0 : i32
    %c0_i32_1 = arith.constant 0 : i32
    %c0_i32_2 = arith.constant 0 : i32
    return %c0_i32, %c0_i32_0, %c0_i32_1 : i32, i32, i32
  }
  func.func @transform_16(%arg0: i32) -> (i32, i32, i32) {
    %c0_i32 = arith.constant 0 : i32
    %c0_i32_0 = arith.constant 0 : i32
    %c0_i32_1 = arith.constant 0 : i32
    %c0_i32_2 = arith.constant 0 : i32
    return %c0_i32, %c0_i32_0, %c0_i32_1 : i32, i32, i32
  }
  func.func @transform_17(%arg0: i32) -> (i32, i32, i32) {
    %c0_i32 = arith.constant 0 : i32
    %c0_i32_0 = arith.constant 0 : i32
    %c0_i32_1 = arith.constant 0 : i32
    %c0_i32_2 = arith.constant 0 : i32
    return %c0_i32, %c0_i32_0, %c0_i32_1 : i32, i32, i32
  }
  func.func @transform_18(%arg0: i32) -> (i32, i32, i32) {
    %c0_i32 = arith.constant 0 : i32
    %c0_i32_0 = arith.constant 0 : i32
    %c0_i32_1 = arith.constant 0 : i32
    %c0_i32_2 = arith.constant 0 : i32
    return %c0_i32, %c0_i32_0, %c0_i32_1 : i32, i32, i32
  }
  func.func @transform_19(%arg0: i32) -> (i32, i32, i32) {
    %c0_i32 = arith.constant 0 : i32
    %c0_i32_0 = arith.constant 0 : i32
    %c0_i32_1 = arith.constant 0 : i32
    %c0_i32_2 = arith.constant 0 : i32
    return %c0_i32, %c0_i32_0, %c0_i32_1 : i32, i32, i32
  }
  func.func @transform_20(%arg0: i32) -> (i32, i32, i32) {
    %c0_i32 = arith.constant 0 : i32
    %c0_i32_0 = arith.constant 0 : i32
    %c0_i32_1 = arith.constant 0 : i32
    %c0_i32_2 = arith.constant 0 : i32
    return %c0_i32, %c0_i32_0, %c0_i32_1 : i32, i32, i32
  }
  func.func @transform_21(%arg0: i32) -> (i32, i32, i32) {
    %c0_i32 = arith.constant 0 : i32
    %c0_i32_0 = arith.constant 0 : i32
    %c0_i32_1 = arith.constant 0 : i32
    %c0_i32_2 = arith.constant 0 : i32
    return %c0_i32, %c0_i32_0, %c0_i32_1 : i32, i32, i32
  }
  func.func @transform_22(%arg0: i32) -> (i32, i32, i32) {
    %c0_i32 = arith.constant 0 : i32
    %c0_i32_0 = arith.constant 0 : i32
    %c0_i32_1 = arith.constant 0 : i32
    %c0_i32_2 = arith.constant 0 : i32
    return %c0_i32, %c0_i32_0, %c0_i32_1 : i32, i32, i32
  }
  func.func @transform_23(%arg0: i32) -> (i32, i32, i32) {
    %c0_i32 = arith.constant 0 : i32
    %c0_i32_0 = arith.constant 0 : i32
    %c0_i32_1 = arith.constant 0 : i32
    %c0_i32_2 = arith.constant 0 : i32
    return %c0_i32, %c0_i32_0, %c0_i32_1 : i32, i32, i32
  }
  func.func @transform_24(%arg0: i32) -> (i32, i32, i32) {
    %c0_i32 = arith.constant 0 : i32
    %c0_i32_0 = arith.constant 0 : i32
    %c0_i32_1 = arith.constant 0 : i32
    %c0_i32_2 = arith.constant 0 : i32
    return %c0_i32, %c0_i32_0, %c0_i32_1 : i32, i32, i32
  }
  func.func @transform_25(%arg0: i32) -> (i32, i32, i32) {
    %c0_i32 = arith.constant 0 : i32
    %c0_i32_0 = arith.constant 0 : i32
    %c0_i32_1 = arith.constant 0 : i32
    %c0_i32_2 = arith.constant 0 : i32
    return %c0_i32, %c0_i32_0, %c0_i32_1 : i32, i32, i32
  }
  func.func @transform_26(%arg0: i32) -> (i32, i32, i32) {
    %c0_i32 = arith.constant 0 : i32
    %c0_i32_0 = arith.constant 0 : i32
    %c0_i32_1 = arith.constant 0 : i32
    %c0_i32_2 = arith.constant 0 : i32
    return %c0_i32, %c0_i32_0, %c0_i32_1 : i32, i32, i32
  }
  func.func @transform_27(%arg0: i32) -> (i32, i32) {
    %c0_i32 = arith.constant 0 : i32
    %c0_i32_0 = arith.constant 0 : i32
    %c0_i32_1 = arith.constant 0 : i32
    return %c0_i32, %c0_i32_0 : i32, i32
  }
}

</mosaic_0001>

<bundles_post_ra>
// kernel: forward.3
= control target key start
LH: loop header
LB: loop body
LE: loop exit
PB: predicated region body
PF: predicated region fallthrough
CT: control target
= control target key end

     0   :  { %vm105_vm0 = vcmask 1044480   ;;  %vm101_vm1 = vcmask 80896   ;;  %vm138_vm2 = vcmask 261120   ;;  %s4956_s30 = smov 96   ;;  %vm160_vm3 = vcmask 64512   ;;  %s4905_s5 = inlined_call_operand.vmem [shape: f32[10,32], index: 5, kind: input, shape index: {}]   ;;  %s4906_s0 = inlined_call_operand.vmem [shape: f32[12,10], index: 0, kind: input, shape index: {}]   ;;  %s4907_s6 = inlined_call_operand.vmem [shape: f32[1,32], index: 6, kind: input, shape index: {}]   ;;  %s4908_s8 = inlined_call_operand.vmem [shape: f32[2,1,96], index: 8, kind: input, shape index: {}]   ;;  %s4909_s7 = inlined_call_operand.vmem [shape: f32[2,32,96], index: 7, kind: input, shape index: {}]   ;;  %s4910_s1 = inlined_call_operand.vmem [shape: f32[12,32], index: 1, kind: input, shape index: {}]   ;;  %s4911_s3 = inlined_call_operand.vmem [shape: f32[6,6], index: 3, kind: input, shape index: {}]   ;;  %s4912_s10 = inlined_call_operand.vmem [shape: f32[2,1,32], index: 10, kind: input, shape index: {}]   ;;  %s4913_s9 = inlined_call_operand.vmem [shape: f32[2,32,32], index: 9, kind: input, shape index: {}]   ;;  %s4914_s21 = inlined_call_operand.vmem [shape: f32[2,1,32], index: 21, kind: input, shape index: {}]   ;;  %s4915_s13 = inlined_call_operand.vmem [shape: f32[2,32,64], index: 13, kind: input, shape index: {}]   ;;  %s4916_s2 = inlined_call_operand.vmem [shape: f32[16,32], index: 2, kind: input, shape index: {}]   ;;  %s4917_s22 = inlined_call_operand.vmem [shape: f32[2,1,32], index: 22, kind: input, shape index: {}]   ;;  %s4918_s14 = inlined_call_operand.vmem [shape: f32[2,1,64], index: 14, kind: input, shape index: {}]   ;;  %s4919_s12 = inlined_call_operand.vmem [shape: f32[2,1,32], index: 12, kind: input, shape index: {}]   ;;  %s4920_s11 = inlined_call_operand.vmem [shape: f32[2,32,32], index: 11, kind: input, shape index: {}]   ;;  %s4921_s4 = inlined_call_operand.vmem [shape: f32[6,8], index: 4, kind: input, shape index: {}]   ;;  %s4922_s16 = inlined_call_operand.vmem [shape: f32[2,1,32], index: 16, kind: input, shape index: {}]   ;;  %s4923_s15 = inlined_call_operand.vmem [shape: f32[2,32,32], index: 15, kind: input, shape index: {}]   ;;  %s4924_s23 = inlined_call_operand.vmem [shape: f32[2,1,32], index: 23, kind: input, shape index: {}]   ;;  %s4925_s24 = inlined_call_operand.vmem [shape: f32[2,1,32], index: 24, kind: input, shape index: {}]   ;;  %s4926_s18 = inlined_call_operand.vmem [shape: f32[2,1,64], index: 18, kind: input, shape index: {}]   ;;  %s4927_s17 = inlined_call_operand.vmem [shape: f32[2,32,64], index: 17, kind: input, shape index: {}]   ;;  %s4928_s20 = inlined_call_operand.vmem [shape: f32[2,1,32], index: 20, kind: input, shape index: {}]   ;;  %s4929_s19 = inlined_call_operand.vmem [shape: f32[2,64,32], index: 19, kind: input, shape index: {}]   ;;  %s4930_s25 = inlined_call_operand.vmem [shape: f32[2,1,32], index: 25, kind: input, shape index: {}]   ;;  %s4931_s26 = inlined_call_operand.vmem [shape: f32[2,1,32], index: 26, kind: input, shape index: {}]   ;;  %s4932_s27 = inlined_call_operand.vmem [shape: f32[12,32], index: 27, kind: output, shape index: {}]  }
   0x1   :  { %4988 = sst [smem:[#allocation3_spill]] %s4905_s5  ;;  %vm4975_vm4 = vcmask 46080   ;;  %vm4974_vm5 = vcmask 1042432   ;;  %vm4973_vm11 = vcmask 48128  }
   0x2   :  { %4989 = sst [smem:[#allocation4_spill]] %s4906_s0 }
   0x3   :  { %4990 = sst [smem:[#allocation5_spill]] %s4907_s6  ;;  %s4946_s6 = smov 48  }
   0x4   :  { %4991 = sst [smem:[#allocation6_spill]] %s4908_s8  ;;  %s4944_s8 = smov 56  }
   0x5   :  { %4992 = sst [smem:[#allocation7_spill]] %s4909_s7  ;;  %s4952_s7 = smov 72  }
   0x6   :  { %4993 = sst [smem:[#allocation8_spill]] %s4910_s1  ;;  %s4962_s1 = smov 80  }
   0x7   :  { %4994 = sst [smem:[#allocation9_spill]] %s4911_s3  ;;  %s4950_s3 = smov 64  }
   0x8   :  { %4995 = sst [smem:[#allocation10_spill]] %s4912_s10 }
   0x9   :  { %4996 = sst [smem:[#allocation11_spill]] %s4913_s9 }
   0xa   :  { %4997 = sst [smem:[#allocation12_spill]] %s4914_s21  ;;  %s4970_s21 = smov 112  }
   0xb   :  { %4998 = sst [smem:[#allocation13_spill]] %s4915_s13  ;;  %s4948_s13 = smov 40  }
   0xc   :  { %4999 = sst [smem:[#allocation14_spill]] %s4916_s2 }
   0xd   :  { %5000 = sst [smem:[#allocation15_spill]] %s4917_s22 }
   0xe   :  { %5001 = sst [smem:[#allocation16_spill]] %s4918_s14 }
   0xf   :  { %5002 = sst [smem:[#allocation17_spill]] %s4919_s12 }
  0x10   :  { %5003 = sst [smem:[#allocation18_spill]] %s4920_s11 }
  0x11   :  { %5004 = sst [smem:[#allocation19_spill]] %s4921_s4 }
  0x12   :  { %5005 = sst [smem:[#allocation20_spill]] %s4924_s23 }
  0x13   :  { %5006 = sst [smem:[#allocation21_spill]] %s4925_s24 }
  0x14   :  { %5007 = sst [smem:[#allocation22_spill]] %s4932_s27  ;;  %s5022_s27 = smov 120  }
  0x15   :  { %s5008_s9 = sld [smem:[#allocation3_spill]] }
  0x16   :  { %s5009_s0 = sld [smem:[#allocation4_spill]] }
  0x17   :  { %s5010_s5 = sld [smem:[#allocation7_spill]] }
  0x18   :  { %s5011_s28 = sld [smem:[#allocation5_spill]] }
  0x19   :  { %s5012_s29 = sld [smem:[#allocation8_spill]] }
  0x1a   :  { %s5013_s10 = sld [smem:[#allocation6_spill]] }
  0x1b   :  { %v93_v0 = vld [vmem:[%s5008_s9] sm:$0xff]  ;;  %v94_v1 = vld [vmem:[%s5008_s9 + $0x8] sm:$0x3]  ;;  %s4968_s9 = smov 120   ;;  %s5014_s2 = sld [smem:[#allocation9_spill]] }
  0x1c   :  { %v91_v2 = vld [vmem:[%s5009_s0] sm:$0xff]  ;;  %v97_v3 = vpack.c.bf16 %v94_v1, %v93_v0  ;;  %v92_v4 = vld [vmem:[%s5009_s0 + $0x8] sm:$0xf]  ;;  %s4966_s0 = smov 104  }
  0x1d   :  { %v96_v6 = vpack.c.bf16 %v92_v4, %v91_v2  ;;  %v129_v7 = vld [vmem:[%s5010_s5 + $0x10] sm:$0xff]  ;;  %v130_v8 = vld [vmem:[%s5010_s5 + $0x18] sm:$0xff]  ;;  %v127_v10 = vld [vmem:[%s5010_s5] sm:$0xff] }
  0x1e   :  { %v107_v5 = vsel %vm105_vm0, %v97_v3, 0  ;;  %v134_v9 = vpack.c.bf16 %v130_v8, %v129_v7  ;;  %v128_v11 = vld [vmem:[%s5010_s5 + $0x8] sm:$0xff]  ;;  %v3507_v14 = vld [vmem:[%s5011_s28] ss:$0 sm:$0xff]  ;;  %s4964_s28 = smov 88  }
  0x1f   :  { %116 = vmatpush.bf16.msra.mxu0 %v107_v5  ;;  %v133_v12 = vpack.c.bf16 %v128_v11, %v127_v10  ;;  %v123_v16 = vld [vmem:[%s5012_s29] sm:$0xff]  ;;  %v124_v18 = vld [vmem:[%s5012_s29 + $0x8] sm:$0xf]  ;;  %s4960_s29 = smov 16  }
  0x20   :  { %148 = vmatpush.bf16.msra.mxu1 %v134_v9  ;;  %v3508_v23 = vld [vmem:[%s5013_s10] ss:$0 sm:$0xff] }
  0x21   :  { %v87_v53 = vld [vmem:[%s5014_s2] sm:$0x3f] }
  0x22   :  { %3368 = vmatmul.msk.bf16.vlgmr.msra.gmra.mxu0 %vm101_vm1, %v96_v6 }
  0x24   :  { %149 = vmatpush.bf16.msra.mxu1 %v133_v12 }
  0x9f   :  { %v118_v13 = vpop.f32.mrf.mxu0 }
  0xa0   :  { %v119_v15 = vadd.f32 %v3507_v14, %v118_v13 }
  0xa2   :  { %v3878_v20 = vadd.f32 %v123_v16, %v119_v15 }
  0xa7   :  { %v120_v17 = vpop.f32.mrf.mxu0 }
  0xa8   :  { %v121_v19 = vadd.f32 %v3507_v14, %v120_v17 }
  0xaa   :  { %v3880_v21 = vadd.f32 %v124_v18, %v121_v19 }
  0xac   :  { %v132_v22 = vpack.c.bf16 %v3880_v21, %v3878_v20 }
  0xae   :  { %3369 = vmatmul.msk.bf16.vlgmr.msra.gmra.mxu1 %vm138_vm2, %v132_v22 }
 0x12b   :  { %v151_v24 = vpop.f32.mrf.mxu1 }
 0x12c   :  { %v152_v25 = vadd.f32 %v3508_v23, %v151_v24 }
 0x12e   :  { %v3888_v26 = vpack.c.bf16 %v152_v25, %v152_v25 }
 0x130   :  { %392 = vrot.lane.b32.xlu2 %v3888_v26, %s4952_s7  ;;  %234 = vrot.lane.b32.xlu1 %v3888_v26, %s4968_s9 }
 0x131   :  { %158 = vrot.lane.b32.xlu0 %v3888_v26, %s4956_s30 }
 0x133   :  { %v153_v27 = vpop.f32.mrf.mxu1 }
 0x134   :  { %v154_v28 = vadd.f32 %v3508_v23, %v153_v27 }
 0x136   :  { %v468_v29 = vpack.c.bf16 %v154_v28, %v152_v25 }
 0x138   :  { %312 = vrot.lane.b32.xlu2 %v3888_v26, %s4970_s21  ;;  %314 = vrot.lane.b32.xlu1 %v3888_v26, %s4962_s1  ;;  %v3902_v30 = vrot.slane %v468_v29, 3 }
 0x139   :  { %236 = vrot.lane.b32.xlu0 %v3888_v26, %s4964_s28 }
 0x140   :  { %544 = vrot.lane.b32.xlu2 %v3902_v30, %s4964_s28  ;;  %471 = vrot.lane.b32.xlu1 %v3902_v30, %s4956_s30  ;;  %s5018_s28 = sld [smem:[#allocation10_spill]]  ;;  %s5028_s30 = smov 72  }
 0x141   :  { %390 = vrot.lane.b32.xlu0 %v3888_v26, %s4966_s0 }
 0x148   :  { %698 = vrot.lane.b32.xlu2 %v3902_v30, %s4952_s7  ;;  %621 = vrot.lane.b32.xlu1 %v3902_v30, %s4962_s1  ;;  %s5017_s7 = sld [smem:[#allocation11_spill]]  ;;  %s5031_s1 = smov 8  }
 0x149   :  { %542 = vrot.lane.b32.xlu0 %v3902_v30, %s4968_s9  ;;  %s5023_s9 = smov 104  }
 0x150   :  { %696 = vrot.lane.b32.xlu1 %v3902_v30, %s4966_s0  ;;  %s5025_s0 = smov 88  }
 0x151   :  { %619 = vrot.lane.b32.xlu0 %v3902_v30, %s4970_s21  ;;  %s5033_s21 = smov 24  }
 0x18a   :  { %v393_v31 = vpop.permute.xlu2 %392 }
 0x18b   :  { %v398_v40 = vsel %vm160_vm3, %v393_v31, 0 }
 0x192   :  { %v313_v35 = vpop.permute.xlu2 %312 }
 0x19a   :  { %v545_v41 = vpop.permute.xlu2 %544 }
 0x19b   :  { %v550_v44 = vsel %vm160_vm3, %v545_v41, 0 }
 0x1a2   :  { %v235_v32 = vpop.permute.xlu1 %234  ;;  %v699_v48 = vpop.permute.xlu2 %698 }
 0x1a3   :  { %v159_v33 = vpop.permute.xlu0 %158  ;;  %v704_v49 = vsel %vm160_vm3, %v699_v48, 0 }
 0x1a4   :  { %v165_v34 = vsel %vm160_vm3, %v159_v33, 0 }
 0x1a5   :  { %174 = vmatpush.bf16.xpose.msra.mxu2 %v165_v34 }
 0x1aa   :  { %v315_v36 = vpop.permute.xlu1 %314 }
 0x1ab   :  { %v237_v37 = vpop.permute.xlu0 %236  ;;  %v320_v38 = vsel %vm160_vm3, %v315_v36, 0 }
 0x1ac   :  { %3370 = vmatmul.msk.bf16.vlgmr.msra.gmra.mxu2 %vm160_vm3, %v3888_v26  ;;  %v242_v39 = vsel %vm160_vm3, %v237_v37, 0  ;;  %329 = vmatpush.bf16.xpose.msrb.mxu1 %v320_v38 }
 0x1ad   :  { %251 = vmatpush.bf16.xpose.msrb.mxu0 %v242_v39 }
 0x1b2   :  { %v472_v42 = vpop.permute.xlu1 %471 }
 0x1b3   :  { %v477_v43 = vsel %vm160_vm3, %v472_v42, 0  ;;  %3374 = vmatmul.msk.bf16.vlgmr.msrb.gmra.mxu1 %vm160_vm3, %v313_v35  ;;  %v391_v47 = vpop.permute.xlu0 %390 }
 0x1b4   :  { %3372 = vmatmul.msk.bf16.vlgmr.msrb.gmra.mxu0 %vm160_vm3, %v235_v32  ;;  %486 = vmatpush.bf16.xpose.msra.mxu1 %v477_v43 }
 0x1b5   :  { %407 = vmatpush.bf16.xpose.msra.mxu0 %v398_v40 }
 0x1ba   :  { %v622_v45 = vpop.permute.xlu1 %621 }
 0x1bb   :  { %v627_v46 = vsel %vm160_vm3, %v622_v45, 0  ;;  %v543_v50 = vpop.permute.xlu0 %542 }
 0x1bc   :  { %636 = vmatpush.bf16.xpose.msrb.mxu1 %v627_v46 }
 0x1bd   :  { %559 = vmatpush.bf16.xpose.msrb.mxu0 %v550_v44 }
 0x1c2   :  { %v697_v52 = vpop.permute.xlu1 %696 }
 0x1c3   :  { %3378 = vmatmul.msk.bf16.vlgmr.msra.gmra.mxu1 %vm160_vm3, %v3902_v30  ;;  %v620_v51 = vpop.permute.xlu0 %619 }
 0x1c4   :  { %3376 = vmatmul.msk.bf16.vlgmr.msra.gmra.mxu0 %vm160_vm3, %v391_v47 }
 0x1c5   :  { %713 = vmatpush.bf16.xpose.msra.mxu0 %v704_v49 }
 0x1d3   :  { %3382 = vmatmul.msk.bf16.vlgmr.msrb.gmra.mxu1 %vm160_vm3, %v620_v51 }
 0x1d4   :  { %3380 = vmatmul.msk.bf16.vlgmr.msrb.gmra.mxu0 %vm160_vm3, %v543_v50 }
 0x1e4   :  { %3384 = vmatmul.msk.bf16.vlgmr.msra.gmra.mxu0 %vm160_vm3, %v697_v52 }
 0x22f   :  { %v176_v54 = vpop.f32.mrf.mxu2 }
 0x230   :  { %v3941_v55 = vadd.f32 %v176_v54, %v87_v53  ;;  %v331_v56 = vpop.f32.mrf.mxu1 }
 0x231   :  { %v253_v57 = vpop.f32.mrf.mxu0  ;;  %v332_v58 = vadd.f32 %v331_v56, %v87_v53 }
 0x232   :  { %v254_v59 = vadd.f32 %v253_v57, %v87_v53  ;;  %v181_v60 = vsel %vm4975_vm4, %v3941_v55, -inf }
 0x233   :  { %182 = vmax.xlane.f32.xlu2 %v181_v60  ;;  %v335_v61 = vsel %vm4975_vm4, %v332_v58, -inf }
 0x234   :  { %336 = vmax.xlane.f32.xlu1 %v335_v61  ;;  %v257_v62 = vsel %vm4975_vm4, %v254_v59, -inf }
 0x235   :  { %258 = vmax.xlane.f32.xlu0 %v257_v62 }
 0x237   :  { %v178_v63 = vpop.f32.mrf.mxu2 }
 0x238   :  { %v333_v0 = vpop.f32.mrf.mxu1 }
 0x239   :  { %v255_v1 = vpop.f32.mrf.mxu0 }
 0x240   :  { %v488_v2 = vpop.f32.mrf.mxu1 }
 0x241   :  { %v409_v3 = vpop.f32.mrf.mxu0  ;;  %v489_v18 = vadd.f32 %v488_v2, %v87_v53 }
 0x242   :  { %v3947_v4 = vadd.f32 %v409_v3, %v87_v53 }
 0x243   :  { %v492_v19 = vsel %vm4975_vm4, %v489_v18, -inf }
 0x244   :  { %v413_v5 = vsel %vm4975_vm4, %v3947_v4, -inf }
 0x245   :  { %414 = vmax.xlane.f32.xlu2 %v413_v5 }
 0x248   :  { %v490_v6 = vpop.f32.mrf.mxu1 }
 0x249   :  { %v411_v7 = vpop.f32.mrf.mxu0 }
 0x250   :  { %v638_v8 = vpop.f32.mrf.mxu1 }
 0x251   :  { %v561_v9 = vpop.f32.mrf.mxu0  ;;  %v3959_v22 = vadd.f32 %v638_v8, %v87_v53 }
 0x252   :  { %v3951_v10 = vadd.f32 %v561_v9, %v87_v53 }
 0x253   :  { %v642_v23 = vsel %vm4975_vm4, %v3959_v22, -inf }
 0x254   :  { %v565_v11 = vsel %vm4975_vm4, %v3951_v10, -inf }
 0x255   :  { %566 = vmax.xlane.f32.xlu0 %v565_v11 }
 0x258   :  { %v640_v12 = vpop.f32.mrf.mxu1 }
 0x259   :  { %v563_v13 = vpop.f32.mrf.mxu0 }
 0x25d   :  { %209 = vrot.lane.b32.xlu2 %v3888_v26, %s4950_s3 }
 0x261   :  { %v715_v14 = vpop.f32.mrf.mxu0 }
 0x262   :  { %v716_v15 = vadd.f32 %v715_v14, %v87_v53 }
 0x264   :  { %v719_v16 = vsel %vm4975_vm4, %v716_v15, -inf }
 0x265   :  { %720 = vmax.xlane.f32.xlu0 %v719_v16 }
 0x269   :  { %v717_v17 = vpop.f32.mrf.mxu0 }
 0x286   :  { %493 = vmax.xlane.f32.xlu2 %v492_v19 }
 0x28e   :  { %643 = vmax.xlane.f32.xlu2 %v642_v23 }
 0x2a6   :  { %363 = vrot.lane.b32.xlu2 %v3888_v26, %s4946_s6  ;;  %v183_v34 = vpop.xlane.xlu2 %182 }
 0x2a7   :  { %v337_v24 = vpop.xlane.xlu1 %336  ;;  %v184_v47 = vmax.f32 %v183_v34, -1e+30 }
 0x2a8   :  { %v338_v25 = vmax.f32 %v337_v24, -1e+30  ;;  %v259_v27 = vpop.xlane.xlu0 %258 }
 0x2a9   :  { %v260_v28 = vmax.f32 %v259_v27, -1e+30  ;;  %v185_v50 = vsub.f32 %v3941_v55, %v184_v47 }
 0x2aa   :  { %v339_v29 = vsub.f32 %v332_v58, %v338_v25 }
 0x2ab   :  { %v261_v31 = vsub.f32 %v254_v59, %v260_v28  ;;  %v186_v51 = vmul.f32 1.442695, %v185_v50 }
 0x2ac   :  { %v340_v32 = vmul.f32 1.442695, %v339_v29 }
 0x2ad   :  { %v262_v33 = vmul.f32 1.442695, %v261_v31 }
 0x2ae   :  { %3534 = vpow2.f32 %v340_v32 }
 0x2af   :  { %3536 = vpow2.f32 %v262_v33 }
 0x2b4   :  { %v3965_v35 = vpop.eup %3534 }
 0x2b5   :  { %v3967_v36 = vpop.eup %3536  ;;  %v342_v37 = vsel %vm4975_vm4, %v3965_v35, 0.0 }
 0x2b6   :  { %343 = vadd.xlane.f32.xlu0 %v342_v37  ;;  %v264_v38 = vsel %vm4975_vm4, %v3967_v36, 0.0 }
 0x2b7   :  { %265 = vadd.xlane.f32.xlu1 %v264_v38 }
 0x2b8   :  { %v415_v39 = vpop.xlane.xlu2 %414 }
 0x2b9   :  { %v416_v52 = vmax.f32 %v415_v39, -1e+30 }
 0x2bb   :  { %v417_v53 = vsub.f32 %v3947_v4, %v416_v52 }
 0x2c0   :  { %v210_v40 = vpop.permute.xlu2 %209 }
 0x2c1   :  { %v217_v41 = vsel %vm4974_vm5, %v210_v40, 0 }
 0x2c2   :  { %226 = vmatpush.bf16.msra.mxu3 %v217_v41 }
 0x2c8   :  { %v567_v42 = vpop.xlane.xlu0 %566 }
 0x2c9   :  { %v568_v59 = vmax.f32 %v567_v42, -1e+30 }
 0x2ca   :  { %285 = vrot.lane.b32.xlu0 %v3888_v26, %s4944_s8 }
 0x2cb   :  { %v569_v62 = vsub.f32 %v3951_v10, %v568_v59 }
 0x2cd   :  { %v570_v2 = vmul.f32 1.442695, %v569_v62 }
 0x2d0   :  { %441 = vrot.lane.b32.xlu1 %v3888_v26, %s4948_s13  ;;  %v418_v26 = vmul.f32 1.442695, %v417_v53 }
 0x2d8   :  { %v721_v43 = vpop.xlane.xlu0 %720 }
 0x2d9   :  { %v722_v44 = vmax.f32 %v721_v43, -1e+30 }
 0x2db   :  { %v723_v45 = vsub.f32 %v716_v15, %v722_v44 }
 0x2dd   :  { %v724_v46 = vmul.f32 1.442695, %v723_v45 }
 0x2df   :  { %3538 = vpow2.f32 %v724_v46 }
 0x2e0   :  { %3540 = vpow2.f32 %v186_v51 }
 0x2e1   :  { %3542 = vpow2.f32 %v418_v26 }
 0x2e5   :  { %v3978_v48 = vpop.eup %3538 }
 0x2e6   :  { %v726_v49 = vsel %vm4975_vm4, %v3978_v48, 0.0  ;;  %v3984_v54 = vpop.eup %3540 }
 0x2e7   :  { %727 = vadd.xlane.f32.xlu2 %v726_v49  ;;  %v188_v57 = vsel %vm4975_vm4, %v3984_v54, 0.0  ;;  %v3988_v61 = vpop.eup %3542 }
 0x2e8   :  { %v420_v0 = vsel %vm4975_vm4, %v3988_v61, 0.0 }
 0x2f9   :  { %v494_v56 = vpop.xlane.xlu2 %493 }
 0x2fa   :  { %v495_v58 = vmax.f32 %v494_v56, -1e+30  ;;  %189 = vadd.xlane.f32.xlu1 %v188_v57 }
 0x2fc   :  { %v496_v60 = vsub.f32 %v489_v18, %v495_v58 }
 0x2fe   :  { %v497_v55 = vmul.f32 1.442695, %v496_v60 }
 0x300   :  { %3544 = vpow2.f32 %v497_v55 }
 0x301   :  { %v644_v63 = vpop.xlane.xlu2 %643  ;;  %3546 = vpow2.f32 %v570_v2 }
 0x302   :  { %v645_v1 = vmax.f32 %v644_v63, -1e+30  ;;  %421 = vadd.xlane.f32.xlu1 %v420_v0 }
 0x304   :  { %v646_v3 = vsub.f32 %v3959_v22, %v645_v1 }
 0x306   :  { %v3994_v4 = vpop.eup %3544  ;;  %v647_v5 = vmul.f32 1.442695, %v646_v3 }
 0x307   :  { %v499_v7 = vsel %vm4975_vm4, %v3994_v4, 0.0  ;;  %v3999_v9 = vpop.eup %3546 }
 0x308   :  { %3548 = vpow2.f32 %v647_v5  ;;  %v572_v12 = vsel %vm4975_vm4, %v3999_v9, 0.0 }
 0x309   :  { %v364_v6 = vpop.permute.xlu2 %363 }
 0x30a   :  { %500 = vadd.xlane.f32.xlu1 %v499_v7  ;;  %v369_v8 = vsel %vm4974_vm5, %v364_v6, 0 }
 0x30b   :  { %378 = vmatpush.bf16.msrb.mxu2 %v369_v8 }
 0x30e   :  { %v4001_v10 = vpop.eup %3548 }
 0x30f   :  { %v649_v11 = vsel %vm4975_vm4, %v4001_v10, 0.0 }
 0x310   :  { %650 = vadd.xlane.f32.xlu0 %v649_v11 }
 0x312   :  { %573 = vadd.xlane.f32.xlu1 %v572_v12 }
 0x324   :  { %747 = vrot.lane.b32.xlu0 %v3902_v30, %s4948_s13  ;;  %s5026_s13 = smov 80  }
 0x329   :  { %v344_v13 = vpop.xlane.xlu0 %343 }
 0x32a   :  { %vm345_vm6 = vcmp.eq.f32.partialorder %v344_v13, 0.0  ;;  %v266_v33 = vpop.xlane.xlu1 %265 }
 0x32b   :  { %v346_v14 = vsel %vm345_vm6, 1.0, %v344_v13  ;;  %520 = vrot.lane.b32.xlu1 %v3902_v30, %s4950_s3  ;;  %vm267_vm12 = vcmp.eq.f32.partialorder %v266_v33, 0.0  ;;  %s5020_s3 = sld [smem:[#allocation14_spill]] }
 0x32c   :  { %3550 = vrcp.f32 %v346_v14  ;;  %v358_v18 = vand.u32 2147483648, %v346_v14  ;;  %v356_v22 = vand.u32 2147483647, %v346_v14  ;;  %vm352_vm8 = vweird.f32 %v346_v14 }
 0x32d   :  { %v268_v38 = vsel %vm267_vm12, 1.0, %v266_v33 }
 0x32e   :  { %v359_v24 = vor.u32 1.1754944e-38, %v358_v18  ;;  %vm357_vm10 = vcmp.eq.f32.partialorder %v356_v22, 8.507059e+37  ;;  %v280_v1 = vand.u32 2147483648, %v268_v38  ;;  %v278_v3 = vand.u32 2147483647, %v268_v38 }
 0x330   :  { %v281_v11 = vor.u32 1.1754944e-38, %v280_v1 }
 0x332   :  { %v3551_v15 = vpop.eup %3550 }
 0x333   :  { %v348_v16 = vmul.f32 %v3551_v15, %v346_v14  ;;  %593 = vrot.lane.b32.xlu1 %v3902_v30, %s4944_s8  ;;  %vm353_vm7 = vweird.f32 %v3551_v15  ;;  %s4954_s8 = smov 8  }
 0x334   :  { %vm354_vm9 = vmor %vm352_vm8, %vm353_vm7 }
 0x335   :  { %v349_v17 = vsub.f32 1.0, %v348_v16 }
 0x337   :  { %v350_v19 = vmul.f32 %v3551_v15, %v349_v17 }
 0x339   :  { %v351_v23 = vadd.f32 %v3551_v15, %v350_v19 }
 0x33b   :  { %670 = vrot.lane.b32.xlu1 %v3902_v30, %s4946_s6  ;;  %v355_v25 = vsel %vm354_vm9, %v3551_v15, %v351_v23  ;;  %s4958_s6 = smov 24  }
 0x33c   :  { %v286_v27 = vpop.permute.xlu0 %285  ;;  %v360_v28 = vsel %vm357_vm10, %v359_v24, %v355_v25  ;;  %vm274_vm10 = vweird.f32 %v268_v38 }
 0x33d   :  { %v291_v29 = vsel %vm4974_vm5, %v286_v27, 0  ;;  %v361_v31 = vmul.f32 %v3965_v35, %v360_v28 }
 0x33e   :  { %300 = vmatpush.bf16.msrb.mxu3 %v291_v29 }
 0x33f   :  { %v362_v32 = vpack.c.bf16 %v361_v31, %v361_v31 }
 0x341   :  { %3375 = vmatmul.msk.bf16.vlgmr.msrb.gmra.mxu2 %vm4973_vm11, %v362_v32 }
 0x342   :  { %v442_v34 = vpop.permute.xlu1 %441 }
 0x343   :  { %v447_v63 = vsel %vm4974_vm5, %v442_v34, 0 }
 0x35a   :  { %v728_v32 = vpop.xlane.xlu2 %727 }
 0x36d   :  { %v190_v37 = vpop.xlane.xlu1 %189 }
 0x36e   :  { %vm191_vm13 = vcmp.eq.f32.partialorder %v190_v37, 0.0 }
 0x36f   :  { %v192_v39 = vsel %vm191_vm13, 1.0, %v190_v37 }
 0x370   :  { %3552 = vrcp.f32 %v192_v39  ;;  %v204_v45 = vand.u32 2147483648, %v192_v39  ;;  %v202_v46 = vand.u32 2147483647, %v192_v39  ;;  %vm198_vm0 = vweird.f32 %v192_v39 }
 0x371   :  { %3554 = vrcp.f32 %v268_v38 }
 0x372   :  { %v205_v26 = vor.u32 1.1754944e-38, %v204_v45  ;;  %vm203_vm7 = vcmp.eq.f32.partialorder %v202_v46, 8.507059e+37 }
 0x375   :  { %v422_v30 = vpop.xlane.xlu1 %421 }
 0x376   :  { %v3553_v40 = vpop.eup %3552  ;;  %vm423_vm14 = vcmp.eq.f32.partialorder %v422_v30, 0.0 }
 0x377   :  { %v3555_v41 = vpop.eup %3554  ;;  %v194_v42 = vmul.f32 %v3553_v40, %v192_v39  ;;  %vm199_vm15 = vweird.f32 %v3553_v40  ;;  %v4018_v51 = vsel %vm423_vm14, 1.0, %v422_v30  ;;  %vm279_vm14 = vcmp.eq.f32.partialorder %v278_v3, 8.507059e+37 }
 0x378   :  { %v270_v35 = vmul.f32 %v3555_v41, %v268_v38  ;;  %vm200_vm6 = vmor %vm198_vm0, %vm199_vm15  ;;  %vm275_vm8 = vweird.f32 %v3555_v41  ;;  %v436_v29 = vand.u32 2147483648, %v4018_v51  ;;  %v434_v33 = vand.u32 2147483647, %v4018_v51 }
 0x379   :  { %v195_v43 = vsub.f32 1.0, %v194_v42  ;;  %vm276_vm12 = vmor %vm274_vm10, %vm275_vm8  ;;  %vm729_vm10 = vcmp.eq.f32.partialorder %v728_v32, 0.0 }
 0x37a   :  { %v271_v50 = vsub.f32 1.0, %v270_v35  ;;  %v437_v30 = vor.u32 1.1754944e-38, %v436_v29 }
 0x37b   :  { %v196_v44 = vmul.f32 %v3553_v40, %v195_v43  ;;  %v730_v43 = vsel %vm729_vm10, 1.0, %v728_v32 }
 0x37c   :  { %v272_v57 = vmul.f32 %v3555_v41, %v271_v50  ;;  %vm736_vm10 = vweird.f32 %v730_v43 }
 0x37d   :  { %v501_v47 = vpop.xlane.xlu1 %500  ;;  %v197_v49 = vadd.f32 %v3553_v40, %v196_v44 }
 0x37e   :  { %vm502_vm1 = vcmp.eq.f32.partialorder %v501_v47, 0.0  ;;  %v273_v62 = vadd.f32 %v3555_v41, %v272_v57 }
 0x37f   :  { %v503_v52 = vsel %vm502_vm1, 1.0, %v501_v47  ;;  %v201_v53 = vsel %vm200_vm6, %v3553_v40, %v197_v49 }
 0x380   :  { %3556 = vrcp.f32 %v503_v52  ;;  %v206_v56 = vsel %vm203_vm7, %v205_v26, %v201_v53  ;;  %v277_v8 = vsel %vm276_vm12, %v3555_v41, %v273_v62  ;;  %v515_v22 = vand.u32 2147483648, %v503_v52  ;;  %v3509_v26 = vld [vmem:[%s5018_s28] ss:$0 sm:$0xff]  ;;  %s5024_s28 = sld [smem:[#allocation12_spill]] }
 0x381   :  { %3558 = vrcp.f32 %v4018_v51  ;;  %v207_v58 = vmul.f32 %v3984_v54, %v206_v56  ;;  %v282_v12 = vsel %vm279_vm14, %v281_v11, %v277_v8  ;;  %vm509_vm0 = vweird.f32 %v503_v52 }
 0x382   :  { %v283_v16 = vmul.f32 %v3967_v36, %v282_v12  ;;  %v513_v23 = vand.u32 2147483647, %v503_v52  ;;  %v516_v31 = vor.u32 1.1754944e-38, %v515_v22  ;;  %vm430_vm7 = vweird.f32 %v4018_v51 }
 0x383   :  { %v651_v59 = vpop.xlane.xlu0 %650  ;;  %v208_v60 = vpack.c.bf16 %v207_v58, %v207_v58  ;;  %vm435_vm12 = vcmp.eq.f32.partialorder %v434_v33, 8.507059e+37 }
 0x384   :  { %vm652_vm9 = vcmp.eq.f32.partialorder %v651_v59, 0.0  ;;  %v284_v24 = vpack.c.bf16 %v283_v16, %v283_v16  ;;  %vm514_vm8 = vcmp.eq.f32.partialorder %v513_v23, 8.507059e+37  ;;  %v742_v16 = vand.u32 2147483648, %v730_v43 }
 0x385   :  { %3371 = vmatmul.msk.bf16.vlgmr.msra.gmra.mxu3 %vm4973_vm11, %v208_v60  ;;  %v574_v5 = vpop.xlane.xlu1 %573  ;;  %v4025_v7 = vsel %vm652_vm9, 1.0, %v651_v59 }
 0x386   :  { %v3557_v55 = vpop.eup %3556  ;;  %456 = vmatpush.bf16.msra.mxu3 %v447_v63  ;;  %vm575_vm13 = vcmp.eq.f32.partialorder %v574_v5, 0.0  ;;  %3560 = vrcp.f32 %v4025_v7  ;;  %vm659_vm14 = vweird.f32 %v4025_v7 }
 0x387   :  { %v3559_v0 = vpop.eup %3558  ;;  %v505_v2 = vmul.f32 %v3557_v55, %v503_v52  ;;  %v4028_v15 = vsel %vm575_vm13, 1.0, %v574_v5  ;;  %vm510_vm15 = vweird.f32 %v3557_v55 }
 0x388   :  { %v426_v54 = vmul.f32 %v3559_v0, %v4018_v51  ;;  %3562 = vrcp.f32 %v4028_v15  ;;  %vm511_vm1 = vmor %vm509_vm0, %vm510_vm15  ;;  %vm431_vm6 = vweird.f32 %v3559_v0  ;;  %v663_v51 = vand.u32 2147483647, %v4025_v7 }
 0x389   :  { %v506_v6 = vsub.f32 1.0, %v505_v2  ;;  %vm432_vm9 = vmor %vm430_vm7, %vm431_vm6  ;;  %3564 = vrcp.f32 %v730_v43  ;;  %vm582_vm6 = vweird.f32 %v4028_v15  ;;  %v586_v63 = vand.u32 2147483647, %v4028_v15 }
 0x38a   :  { %v427_v13 = vsub.f32 1.0, %v426_v54 }
 0x38b   :  { %v507_v14 = vmul.f32 %v3557_v55, %v506_v6 }
 0x38c   :  { %v428_v17 = vmul.f32 %v3559_v0, %v427_v13  ;;  %v4032_v19 = vpop.eup %3560 }
 0x38d   :  { %v508_v18 = vadd.f32 %v3557_v55, %v507_v14  ;;  %v655_v28 = vmul.f32 %v4032_v19, %v4025_v7  ;;  %vm660_vm13 = vweird.f32 %v4032_v19 }
 0x38e   :  { %v429_v25 = vadd.f32 %v3559_v0, %v428_v17  ;;  %v3563_v36 = vpop.eup %3562  ;;  %vm4051_vm15 = vmor %vm659_vm14, %vm660_vm13  ;;  %vm232_vm14 = vcmask 62464  }
 0x38f   :  { %v512_v27 = vsel %vm511_vm1, %v3557_v55, %v508_v18  ;;  %v656_v38 = vsub.f32 1.0, %v655_v28  ;;  %v578_v39 = vmul.f32 %v3563_v36, %v4028_v15  ;;  %vm583_vm0 = vweird.f32 %v3563_v36  ;;  %v3565_v59 = vpop.eup %3564 }
 0x390   :  { %v517_v34 = vsel %vm514_vm8, %v516_v31, %v512_v27  ;;  %v433_v37 = vsel %vm432_vm9, %v3559_v0, %v429_v25  ;;  %v588_v55 = vand.u32 2147483648, %v4028_v15  ;;  %vm664_vm1 = vcmp.eq.f32.partialorder %v663_v51, 8.507059e+37  ;;  %vm584_vm7 = vmor %vm582_vm6, %vm583_vm0 }
 0x391   :  { %v518_v40 = vmul.f32 %v3994_v4, %v517_v34  ;;  %v438_v41 = vsel %vm435_vm12, %v437_v30, %v433_v37  ;;  %v657_v35 = vmul.f32 %v4032_v19, %v656_v38  ;;  %v579_v44 = vsub.f32 1.0, %v578_v39 }
 0x392   :  { %v439_v47 = vmul.f32 %v3988_v61, %v438_v41  ;;  %v665_v4 = vand.u32 2147483648, %v4025_v7  ;;  %v732_v1 = vmul.f32 %v3565_v59, %v730_v43  ;;  %v589_v3 = vor.u32 1.1754944e-38, %v588_v55 }
 0x393   :  { %v519_v46 = vpack.c.bf16 %v518_v40, %v518_v40  ;;  %v658_v49 = vadd.f32 %v4032_v19, %v657_v35  ;;  %v580_v50 = vmul.f32 %v3563_v36, %v579_v44  ;;  %vm587_vm8 = vcmp.eq.f32.partialorder %v586_v63, 8.507059e+37  ;;  %v775_v44 = vld [vmem:[%s5017_s7] sm:$0xff] }
 0x394   :  { %v440_v53 = vpack.c.bf16 %v439_v47, %v439_v47  ;;  %v666_v60 = vor.u32 1.1754944e-38, %v665_v4  ;;  %v733_v7 = vsub.f32 1.0, %v732_v1  ;;  %vm737_vm9 = vweird.f32 %v3565_v59 }
 0x395   :  { %3373 = vmatmul.msk.bf16.vlgmr.msrb.gmra.mxu3 %vm4973_vm11, %v284_v24  ;;  %v662_v56 = vsel %vm4051_vm15, %v4032_v19, %v658_v49  ;;  %v581_v57 = vadd.f32 %v3563_v36, %v580_v50  ;;  %vm738_vm12 = vmor %vm736_vm10, %vm737_vm9  ;;  %v743_v18 = vor.u32 1.1754944e-38, %v742_v16  ;;  %vm310_vm15 = vcmask 128064  }
 0x396   :  { %v748_v52 = vpop.permute.xlu0 %747  ;;  %v667_v0 = vsel %vm664_vm1, %v666_v60, %v662_v56  ;;  %v734_v13 = vmul.f32 %v3565_v59, %v733_v7  ;;  %vm388_vm0 = vcmask 193664   ;;  %vm466_vm1 = vcmask 259264   ;;  %v89_v7 = vld [vmem:[%s5020_s3] sm:$0xff] }
 0x397   :  { %v753_v62 = vsel %vm4974_vm5, %v748_v52, 0  ;;  %v585_v2 = vsel %vm584_vm7, %v3563_v36, %v581_v57  ;;  %v668_v5 = vmul.f32 %v4001_v10, %v667_v0  ;;  %v740_v10 = vand.u32 2147483647, %v730_v43  ;;  %v778_v43 = vld [vmem:[%s5017_s7 + $0x18] sm:$0xff] }
 0x398   :  { %v590_v54 = vsel %vm587_vm8, %v589_v3, %v585_v2  ;;  %v735_v15 = vadd.f32 %v3565_v59, %v734_v13  ;;  %vm4976_vm6 = vcmask 257024   ;;  %v3704_v63 = vmov 32.0  }
 0x399   :  { %v669_v11 = vpack.c.bf16 %v668_v5, %v668_v5  ;;  %v591_v12 = vmul.f32 %v3999_v9, %v590_v54  ;;  %vm741_vm13 = vcmp.eq.f32.partialorder %v740_v10, 8.507059e+37  ;;  %3566 = vrcp.f32 %v3704_v63  ;;  %v3511_v63 = vld [vmem:[%s4917_s22] ss:$0 sm:$0xff]  ;;  %s5051_s22 = smov 56  }
 0x39a   :  { %v739_v17 = vsel %vm738_vm12, %v3565_v59, %v735_v15 }
 0x39b   :  { %v592_v14 = vpack.c.bf16 %v591_v12, %v591_v12  ;;  %v744_v19 = vsel %vm741_vm13, %v743_v18, %v739_v17 }
 0x39c   :  { %v745_v22 = vmul.f32 %v3978_v48, %v744_v19 }
 0x39d   :  { %v521_v42 = vpop.permute.xlu1 %520 }
 0x39e   :  { %v526_v45 = vsel %vm4974_vm5, %v521_v42, 0  ;;  %v746_v9 = vpack.c.bf16 %v745_v22, %v745_v22  ;;  %v777_v42 = vld [vmem:[%s5017_s7 + $0x10] sm:$0xff] }
 0x39f   :  { %535 = vmatpush.bf16.msra.mxu2 %v526_v45  ;;  %v782_v35 = vpack.c.bf16 %v778_v43, %v777_v42  ;;  %v776_v45 = vld [vmem:[%s5017_s7 + $0x8] sm:$0xff]  ;;  %v3567_v0 = vpop.eup %3566 }
 0x3a0   :  { %v781_v47 = vpack.c.bf16 %v776_v45, %v775_v44  ;;  %v815_v1 = vmul.f32 32.0, %v3567_v0  ;;  %vm819_vm7 = vweird.f32 %v3567_v0 }
 0x3a1   :  { %795 = vmatpush.bf16.msra.mxu1 %v782_v35 }
 0x3a2   :  { %3379 = vmatmul.msk.bf16.vlgmr.msra.gmra.mxu2 %vm4973_vm11, %v519_v46  ;;  %v816_v54 = vsub.f32 1.0, %v815_v1 }
 0x3a5   :  { %v594_v61 = vpop.permute.xlu1 %593  ;;  %3377 = vmatmul.msk.bf16.vlgmr.msra.gmra.mxu3 %vm4973_vm11, %v440_v53  ;;  %796 = vmatpush.bf16.msra.mxu1 %v781_v47 }
 0x3a6   :  { %v599_v58 = vsel %vm4974_vm5, %v594_v61, 0 }
 0x3a7   :  { %608 = vmatpush.bf16.msrb.mxu3 %v599_v58 }
 0x3ab   :  { %762 = vmatpush.bf16.msra.mxu3 %v753_v62 }
 0x3ad   :  { %v671_v6 = vpop.permute.xlu1 %670 }
 0x3ae   :  { %v676_v8 = vsel %vm4974_vm5, %v671_v6, 0 }
 0x3af   :  { %685 = vmatpush.bf16.msrb.mxu2 %v676_v8  ;;  %v90_v8 = vld [vmem:[%s5020_s3 + $0x8] sm:$0xff]  ;;  %s5032_s3 = smov 16  }
 0x3b0   :  { %v4123_v12 = vpack.c.bf16 %v90_v8, %v89_v7 }
 0x3b2   :  { %3383 = vmatmul.msk.bf16.vlgmr.msrb.gmra.mxu2 %vm4973_vm11, %v669_v11  ;;  %v817_v11 = vmul.f32 %v3567_v0, %v816_v54 }
 0x3b4   :  { %v818_v13 = vadd.f32 %v3567_v0, %v817_v11 }
 0x3b5   :  { %3381 = vmatmul.msk.bf16.vlgmr.msrb.gmra.mxu3 %vm4973_vm11, %v592_v14 }
 0x3b6   :  { %v4127_v14 = vsel %vm819_vm7, %v3567_v0, %v818_v13 }
 0x3c4   :  { %v380_v23 = vpop.f32.mrf.mxu2 }
 0x3c5   :  { %385 = vrot.lane.b32.xlu1 %v380_v23, %s4960_s29  ;;  %3385 = vmatmul.msk.bf16.vlgmr.msra.gmra.mxu3 %vm4973_vm11, %v746_v9 }
 0x3cc   :  { %v382_v24 = vpop.f32.mrf.mxu2 }
 0x408   :  { %v228_v25 = vpop.f32.mrf.mxu3 }
 0x409   :  { %233 = vst.msk [vmem:[#allocation2] sm:$0x3f] %vm232_vm14, %v228_v25  ;;  %v871_v25 = vld [vmem:[%s4920_s11 + $0x10] sm:$0xff] }
 0x410   :  { %v230_v27 = vpop.f32.mrf.mxu3 }
 0x411   :  { %v872_v27 = vld [vmem:[%s4920_s11 + $0x18] sm:$0xff] }
 0x418   :  { %v302_v28 = vpop.f32.mrf.mxu3 }
 0x419   :  { %307 = vrot.lane.b32.xlu2 %v302_v28, %s4954_s8  ;;  %v876_v28 = vpack.c.bf16 %v872_v27, %v871_v25 }
 0x41b   :  { %889 = vmatpush.bf16.msra.mxu2 %v876_v28 }
 0x420   :  { %v304_v36 = vpop.f32.mrf.mxu3 }
 0x425   :  { %v537_v29 = vpop.f32.mrf.mxu2 }
 0x426   :  { %541 = vst.msk [vmem:[#allocation2 + $0x6] sm:$0x3f] %vm232_vm14, %v537_v29 }
 0x428   :  { %v458_v48 = vpop.f32.mrf.mxu3 }
 0x429   :  { %463 = vrot.lane.b32.xlu0 %v458_v48, %s4958_s6  ;;  %v869_v48 = vld [vmem:[%s4920_s11] sm:$0xff] }
 0x42d   :  { %v539_v31 = vpop.f32.mrf.mxu2 }
 0x42e   :  { %v870_v31 = vld [vmem:[%s4920_s11 + $0x8] sm:$0xff] }
 0x430   :  { %v460_v32 = vpop.f32.mrf.mxu3 }
 0x431   :  { %v875_v32 = vpack.c.bf16 %v870_v31, %v869_v48  ;;  %v88_v31 = vld [vmem:[%s4921_s4] sm:$0x3f]  ;;  %s5076_s4 = sld [smem:[#allocation16_spill]] }
 0x433   :  { %890 = vmatpush.bf16.msra.mxu2 %v875_v32 }
 0x435   :  { %v687_v33 = vpop.f32.mrf.mxu2 }
 0x437   :  { %v386_v41 = vpop.permute.xlu1 %385 }
 0x438   :  { %v610_v34 = vpop.f32.mrf.mxu3 }
 0x439   :  { %615 = vrot.lane.b32.xlu1 %v610_v34, %s4954_s8  ;;  %s5019_s8 = sld [smem:[#allocation13_spill]]  ;;  %v3512_v34 = vld [vmem:[%s4918_s14] ss:$0 sm:$0xff]  ;;  %s5050_s14 = smov 48  }
 0x43d   :  { %v689_v37 = vpop.f32.mrf.mxu2 }
 0x43f   :  { %v899_v2 = vld [vmem:[%s5019_s8 + $0x10] sm:$0xff]  ;;  %v897_v3 = vld [vmem:[%s5019_s8] sm:$0xff]  ;;  %v898_v5 = vld [vmem:[%s5019_s8 + $0x8] sm:$0xff] }
 0x440   :  { %v612_v38 = vpop.f32.mrf.mxu3  ;;  %v903_v6 = vpack.c.bf16 %v898_v5, %v897_v3  ;;  %v3513_v5 = vld [vmem:[%s4919_s12] ss:$0 sm:$0xff]  ;;  %s5048_s12 = smov 40  }
 0x441   :  { %692 = vrot.lane.b32.xlu1 %v687_v33, %s4960_s29  ;;  %s5027_s29 = smov 96  }
 0x448   :  { %v764_v39 = vpop.f32.mrf.mxu3 }
 0x449   :  { %769 = vrot.lane.b32.xlu2 %v764_v39, %s4958_s6  ;;  %s5021_s6 = smov 112  }
 0x450   :  { %v766_v30 = vpop.f32.mrf.mxu3 }
 0x473   :  { %v308_v40 = vpop.permute.xlu2 %307 }
 0x474   :  { %311 = vst.msk [vmem:[#allocation2] sm:$0x3f] %vm310_vm15, %v308_v40 }
 0x475   :  { %389 = vst.msk [vmem:[#allocation2] sm:$0x3f] %vm388_vm0, %v386_v41 }
 0x49b   :  { %v464_v46 = vpop.permute.xlu0 %463 }
 0x49c   :  { %467 = vst.msk [vmem:[#allocation2] sm:$0x3f] %vm466_vm1, %v464_v46 }
 0x4a3   :  { %v770_v4 = vpop.permute.xlu2 %769 }
 0x4ab   :  { %v616_v49 = vpop.permute.xlu1 %615 }
 0x4ac   :  { %618 = vst.msk [vmem:[#allocation2 + $0x6] sm:$0x3f] %vm310_vm15, %v616_v49 }
 0x4b3   :  { %v693_v50 = vpop.permute.xlu1 %692 }
 0x4b4   :  { %695 = vst.msk [vmem:[#allocation2 + $0x6] sm:$0x3f] %vm388_vm0, %v693_v50 }
 0x4b5   :  { %772 = vst.msk [vmem:[#allocation2 + $0x6] sm:$0x3f] %vm466_vm1, %v770_v4 }
 0x4bc   :  { %v773_v51 = vld [vmem:[#allocation2] sm:$0xff]  ;;  %v774_v52 = vld [vmem:[#allocation2 + $0x8] sm:$0xf] }
 0x4bd   :  { %v780_v53 = vpack.c.bf16 %v774_v52, %v773_v51 }
 0x4bf   :  { %3386 = vmatmul.msk.bf16.vlgmr.msra.gmra.mxu1 %vm138_vm2, %v780_v53 }
 0x53c   :  { %v798_v61 = vpop.f32.mrf.mxu1 }
 0x53d   :  { %v799_v56 = vadd.f32 %v3509_v26, %v798_v61 }
 0x53f   :  { %v803_v57 = vadd.f32 %v799_v56, %v3878_v20  ;;  %v900_v20 = vld [vmem:[%s5019_s8 + $0x18] sm:$0xff] }
 0x541   :  { %v807_v58 = vsel %vm138_vm2, %v803_v57, 0.0 }
 0x542   :  { %808 = vadd.xlane.f32.xlu1 %v807_v58 }
 0x544   :  { %v800_v59 = vpop.f32.mrf.mxu1 }
 0x545   :  { %v801_v60 = vadd.f32 %v3509_v26, %v800_v59 }
 0x547   :  { %v804_v55 = vadd.f32 %v801_v60, %v3880_v21  ;;  %v904_v21 = vpack.c.bf16 %v900_v20, %v899_v2 }
 0x549   :  { %v811_v62 = vsel %vm4976_vm6, %v804_v55, 0.0  ;;  %917 = vmatpush.bf16.msrb.mxu0 %v904_v21 }
 0x54a   :  { %812 = vadd.xlane.f32.xlu0 %v811_v62 }
 0x54d   :  { %918 = vmatpush.bf16.msrb.mxu0 %v903_v6 }
 0x550   :  { %3388 = vmatmul.msk.bf16.vlgmr.msrb.gmra.mxu0 %vm138_vm2, %v4123_v12 }
 0x5b5   :  { %v809_v15 = vpop.xlane.xlu1 %808 }
 0x5b6   :  { %v821_v16 = vmul.f32 %v4127_v14, %v809_v15 }
 0x5b8   :  { %v823_v10 = vsub.f32 %v803_v57, %v821_v16  ;;  %v3510_v57 = vld [vmem:[%s5024_s28] ss:$0 sm:$0xff] }
 0x5ba   :  { %v825_v17 = vmul.f32 %v823_v10, %v823_v10 }
 0x5bc   :  { %v827_v18 = vsel %vm138_vm2, %v825_v17, 0.0 }
 0x5bd   :  { %v813_v19 = vpop.xlane.xlu0 %812  ;;  %828 = vadd.xlane.f32.xlu2 %v827_v18 }
 0x5be   :  { %v822_v22 = vmul.f32 %v4127_v14, %v813_v19 }
 0x5c0   :  { %v824_v23 = vsub.f32 %v804_v55, %v822_v22 }
 0x5c2   :  { %v826_v9 = vmul.f32 %v824_v23, %v824_v23 }
 0x5c4   :  { %v830_v24 = vsel %vm4976_vm6, %v826_v9, 0.0 }
 0x5c5   :  { %831 = vadd.xlane.f32.xlu1 %v830_v24 }
 0x5cd   :  { %v920_v37 = vpop.f32.mrf.mxu0 }
 0x5ce   :  { %v921_v30 = vadd.f32 %v3512_v34, %v920_v37 }
 0x5d0   :  { %v4150_v42 = vpack.c.bf16 %v921_v30, %v921_v30 }
 0x5d2   :  { %1001 = vrot.lane.b32.xlu0 %v4150_v42, %s5022_s27  ;;  %v931_v35 = vsel %vm160_vm3, %v4150_v42, 0 }
 0x5d3   :  { %940 = vmatpush.bf16.xpose.msrb.mxu3 %v931_v35 }
 0x5d5   :  { %v922_v45 = vpop.f32.mrf.mxu0 }
 0x5d6   :  { %v923_v47 = vadd.f32 %v3512_v34, %v922_v45 }
 0x5d8   :  { %v4158_v50 = vpack.c.bf16 %v923_v47, %v923_v47 }
 0x5da   :  { %1155 = vrot.lane.b32.xlu0 %v4150_v42, %s5023_s9  ;;  %v1238_v13 = vsel %vm160_vm3, %v4158_v50, 0 }
 0x5de   :  { %1078 = vrot.lane.b32.xlu1 %v4150_v42, %s5021_s6 }
 0x5e6   :  { %1306 = vrot.lane.b32.xlu1 %v4158_v50, %s5022_s27 }
 0x5ee   :  { %1460 = vrot.lane.b32.xlu1 %v4158_v50, %s5023_s9 }
 0x630   :  { %v829_v36 = vpop.xlane.xlu2 %828 }
 0x631   :  { %v833_v29 = vmul.f32 %v829_v36, %v4127_v14 }
 0x633   :  { %v835_v33 = vadd.f32 1e-05, %v833_v29 }
 0x635   :  { %3568 = vrsqrt.f32 %v835_v33  ;;  %vm843_vm9 = vweird.f32 %v835_v33 }
 0x638   :  { %v832_v38 = vpop.xlane.xlu1 %831 }
 0x639   :  { %v834_v39 = vmul.f32 %v832_v38, %v4127_v14 }
 0x63b   :  { %v3569_v40 = vpop.eup %3568  ;;  %v836_v41 = vadd.f32 1e-05, %v834_v39 }
 0x63c   :  { %v838_v43 = vmul.f32 %v3569_v40, %v835_v33  ;;  %vm844_vm8 = vweird.f32 %v3569_v40 }
 0x63d   :  { %3570 = vrsqrt.f32 %v836_v41  ;;  %vm845_vm10 = vmor %vm843_vm9, %vm844_vm8  ;;  %vm853_vm13 = vweird.f32 %v836_v41  ;;  %vm980_vm8 = vcmask 1043456  }
 0x63e   :  { %v839_v44 = vmul.f32 %v3569_v40, %v838_v43 }
 0x640   :  { %v840_v46 = vmul.f32 0.5, %v839_v44 }
 0x642   :  { %v841_v49 = vsub.f32 1.5, %v840_v46 }
 0x643   :  { %v3571_v4 = vpop.eup %3570 }
 0x644   :  { %v842_v51 = vmul.f32 %v3569_v40, %v841_v49  ;;  %v848_v52 = vmul.f32 %v3571_v4, %v836_v41  ;;  %vm854_vm12 = vweird.f32 %v3571_v4  ;;  %v1002_v54 = vpop.permute.xlu0 %1001 }
 0x645   :  { %vm855_vm7 = vmor %vm853_vm13, %vm854_vm12  ;;  %v1007_v6 = vsel %vm160_vm3, %v1002_v54, 0 }
 0x646   :  { %v849_v53 = vmul.f32 %v3571_v4, %v848_v52  ;;  %v846_v26 = vsel %vm845_vm10, %v3569_v40, %v842_v51  ;;  %1016 = vmatpush.bf16.xpose.msrb.mxu2 %v1007_v6 }
 0x647   :  { %v857_v58 = vmul.f32 %v846_v26, %v823_v10 }
 0x648   :  { %v850_v61 = vmul.f32 0.5, %v849_v53 }
 0x649   :  { %v862_v55 = vmul.f32 %v3510_v57, %v857_v58 }
 0x64a   :  { %v851_v56 = vsub.f32 1.5, %v850_v61 }
 0x64b   :  { %v4172_v1 = vadd.f32 %v3511_v63, %v862_v55 }
 0x64c   :  { %v852_v59 = vmul.f32 %v3571_v4, %v851_v56  ;;  %v1156_v18 = vpop.permute.xlu0 %1155 }
 0x64d   :  { %v1161_v19 = vsel %vm160_vm3, %v1156_v18, 0 }
 0x64e   :  { %v856_v60 = vsel %vm855_vm7, %v3571_v4, %v852_v59 }
 0x64f   :  { %v858_v62 = vmul.f32 %v856_v60, %v824_v23 }
 0x650   :  { %v1079_v3 = vpop.permute.xlu1 %1078 }
 0x651   :  { %v863_v0 = vmul.f32 %v3510_v57, %v858_v62  ;;  %v1084_v21 = vsel %vm160_vm3, %v1079_v3, 0 }
 0x652   :  { %1093 = vmatpush.bf16.xpose.msra.mxu3 %v1084_v21 }
 0x653   :  { %v4174_v2 = vadd.f32 %v3511_v63, %v863_v0 }
 0x655   :  { %v874_v20 = vpack.c.bf16 %v4174_v2, %v4172_v1 }
 0x657   :  { %3387 = vmatmul.msk.bf16.vlgmr.msra.gmra.mxu2 %vm138_vm2, %v874_v20 }
 0x658   :  { %1170 = vmatpush.bf16.xpose.msra.mxu2 %v1161_v19  ;;  %v1307_v22 = vpop.permute.xlu1 %1306 }
 0x659   :  { %v1312_v23 = vsel %vm160_vm3, %v1307_v22, 0 }
 0x660   :  { %v1461_v25 = vpop.permute.xlu1 %1460 }
 0x661   :  { %v1466_v27 = vsel %vm160_vm3, %v1461_v25, 0 }
 0x6da   :  { %v892_v7 = vpop.f32.mrf.mxu2 }
 0x6db   :  { %v893_v8 = vadd.f32 %v3513_v5, %v892_v7 }
 0x6dd   :  { %v925_v11 = vpack.c.bf16 %v893_v8, %v893_v8 }
 0x6df   :  { %1076 = vrot.lane.b32.xlu0 %v925_v11, %s5021_s6  ;;  %999 = vrot.lane.b32.xlu2 %v925_v11, %s5022_s27 }
 0x6e0   :  { %3389 = vmatmul.msk.bf16.vlgmr.msrb.gmra.mxu3 %vm160_vm3, %v925_v11 }
 0x6e1   :  { %1247 = vmatpush.bf16.xpose.msrb.mxu3 %v1238_v13 }
 0x6e2   :  { %v894_v15 = vpop.f32.mrf.mxu2 }
 0x6e3   :  { %v895_v16 = vadd.f32 %v3513_v5, %v894_v15 }
 0x6e5   :  { %v1230_v10 = vpack.c.bf16 %v895_v16, %v893_v8 }
 0x6e7   :  { %v1233_v17 = vrot.slane %v1230_v10, 3  ;;  %1153 = vrot.lane.b32.xlu2 %v925_v11, %s5023_s9 }
 0x6e9   :  { %1304 = vrot.lane.b32.xlu0 %v1233_v17, %s5022_s27 }
 0x6ef   :  { %1383 = vrot.lane.b32.xlu2 %v4158_v50, %s5021_s6 }
 0x6f1   :  { %1381 = vrot.lane.b32.xlu0 %v1233_v17, %s5021_s6 }
 0x6f7   :  { %1458 = vrot.lane.b32.xlu2 %v1233_v17, %s5023_s9 }
 0x739   :  { %v1000_v9 = vpop.permute.xlu2 %999 }
 0x73a   :  { %3391 = vmatmul.msk.bf16.vlgmr.msrb.gmra.mxu2 %vm160_vm3, %v1000_v9 }
 0x73b   :  { %1321 = vmatpush.bf16.xpose.msrb.mxu2 %v1312_v23 }
 0x741   :  { %v1154_v24 = vpop.permute.xlu2 %1153 }
 0x749   :  { %v1384_v28 = vpop.permute.xlu2 %1383 }
 0x74a   :  { %3395 = vmatmul.msk.bf16.vlgmr.msra.gmra.mxu2 %vm160_vm3, %v1154_v24  ;;  %v1389_v29 = vsel %vm160_vm3, %v1384_v28, 0 }
 0x74b   :  { %1475 = vmatpush.bf16.xpose.msra.mxu2 %v1466_v27 }
 0x751   :  { %v1077_v36 = vpop.permute.xlu0 %1076  ;;  %v1459_v37 = vpop.permute.xlu2 %1458 }
 0x752   :  { %3393 = vmatmul.msk.bf16.vlgmr.msra.gmra.mxu3 %vm160_vm3, %v1077_v36 }
 0x753   :  { %1398 = vmatpush.bf16.xpose.msra.mxu3 %v1389_v29 }
 0x75b   :  { %v1305_v48 = vpop.permute.xlu0 %1304 }
 0x75c   :  { %3399 = vmatmul.msk.bf16.vlgmr.msrb.gmra.mxu2 %vm160_vm3, %v1305_v48 }
 0x762   :  { %3397 = vmatmul.msk.bf16.vlgmr.msrb.gmra.mxu3 %vm160_vm3, %v1233_v17 }
 0x763   :  { %v942_v32 = vpop.f32.mrf.mxu3  ;;  %v1382_v39 = vpop.permute.xlu0 %1381 }
 0x764   :  { %v943_v33 = vadd.f32 %v942_v32, %v88_v31 }
 0x766   :  { %v946_v34 = vsel %vm232_vm14, %v943_v33, -inf }
 0x767   :  { %947 = vmax.xlane.f32.xlu1 %v946_v34 }
 0x76b   :  { %v944_v38 = vpop.f32.mrf.mxu3 }
 0x76c   :  { %3403 = vmatmul.msk.bf16.vlgmr.msra.gmra.mxu2 %vm160_vm3, %v1459_v37 }
 0x772   :  { %3401 = vmatmul.msk.bf16.vlgmr.msra.gmra.mxu3 %vm160_vm3, %v1382_v39 }
 0x7bd   :  { %v1018_v30 = vpop.f32.mrf.mxu2 }
 0x7be   :  { %v1019_v40 = vadd.f32 %v1018_v30, %v88_v31 }
 0x7c0   :  { %v1022_v41 = vsel %vm232_vm14, %v1019_v40, -inf }
 0x7c1   :  { %1023 = vmax.xlane.f32.xlu0 %v1022_v41 }
 0x7c5   :  { %v1020_v43 = vpop.f32.mrf.mxu2 }
 0x7cd   :  { %v1172_v35 = vpop.f32.mrf.mxu2 }
 0x7ce   :  { %v1173_v44 = vadd.f32 %v1172_v35, %v88_v31 }
 0x7d0   :  { %v1176_v45 = vsel %vm232_vm14, %v1173_v44, -inf }
 0x7d1   :  { %1177 = vmax.xlane.f32.xlu1 %v1176_v45 }
 0x7d5   :  { %v1095_v46 = vpop.f32.mrf.mxu3  ;;  %v1174_v47 = vpop.f32.mrf.mxu2 }
 0x7d6   :  { %v1096_v49 = vadd.f32 %v1095_v46, %v88_v31 }
 0x7d8   :  { %v1099_v4 = vsel %vm232_vm14, %v1096_v49, -inf }
 0x7d9   :  { %1100 = vmax.xlane.f32.xlu2 %v1099_v4 }
 0x7da   :  { %v948_v51 = vpop.xlane.xlu1 %947 }
 0x7db   :  { %v949_v52 = vmax.f32 %v948_v51, -1e+30 }
 0x7dd   :  { %v950_v53 = vsub.f32 %v943_v33, %v949_v52  ;;  %v1097_v26 = vpop.f32.mrf.mxu3 }
 0x7df   :  { %v951_v61 = vmul.f32 1.442695, %v950_v53  ;;  %v1323_v56 = vpop.f32.mrf.mxu2 }
 0x7e0   :  { %v1324_v63 = vadd.f32 %v1323_v56, %v88_v31 }
 0x7e1   :  { %3572 = vpow2.f32 %v951_v61 }
 0x7e2   :  { %v1327_v21 = vsel %vm232_vm14, %v1324_v63, -inf }
 0x7e5   :  { %v1249_v57 = vpop.f32.mrf.mxu3 }
 0x7e6   :  { %v1250_v58 = vadd.f32 %v1249_v57, %v88_v31 }
 0x7e7   :  { %v4213_v59 = vpop.eup %3572  ;;  %v1325_v60 = vpop.f32.mrf.mxu2 }
 0x7e8   :  { %v953_v55 = vsel %vm232_vm14, %v4213_v59, 0.0  ;;  %v1253_v62 = vsel %vm232_vm14, %v1250_v58, -inf }
 0x7e9   :  { %954 = vadd.xlane.f32.xlu2 %v953_v55  ;;  %1254 = vmax.xlane.f32.xlu0 %v1253_v62 }
 0x7ed   :  { %v1251_v0 = vpop.f32.mrf.mxu3 }
 0x7ef   :  { %v1477_v20 = vpop.f32.mrf.mxu2 }
 0x7f0   :  { %v4218_v3 = vadd.f32 %v1477_v20, %v88_v31 }
 0x7f1   :  { %1328 = vmax.xlane.f32.xlu2 %v1327_v21 }
 0x7f2   :  { %v1481_v5 = vsel %vm232_vm14, %v4218_v3, -inf }
 0x7f3   :  { %1482 = vmax.xlane.f32.xlu0 %v1481_v5 }
 0x7f5   :  { %v1400_v54 = vpop.f32.mrf.mxu3 }
 0x7f6   :  { %v1401_v6 = vadd.f32 %v1400_v54, %v88_v31 }
 0x7f7   :  { %v1479_v7 = vpop.f32.mrf.mxu2 }
 0x7f8   :  { %v1404_v8 = vsel %vm232_vm14, %v1401_v6, -inf }
 0x7f9   :  { %1405 = vmax.xlane.f32.xlu1 %v1404_v8 }
 0x7fd   :  { %v1402_v11 = vpop.f32.mrf.mxu3 }
 0x807   :  { %1050 = vrot.lane.b32.xlu0 %v4150_v42, %s5025_s0 }
 0x809   :  { %1127 = vrot.lane.b32.xlu2 %v4150_v42, %s5026_s13 }
 0x834   :  { %v1024_v13 = vpop.xlane.xlu0 %1023 }
 0x835   :  { %v1025_v15 = vmax.f32 %v1024_v13, -1e+30 }
 0x837   :  { %v1026_v16 = vsub.f32 %v1019_v40, %v1025_v15 }
 0x839   :  { %v1027_v10 = vmul.f32 1.442695, %v1026_v16 }
 0x83b   :  { %3574 = vpow2.f32 %v1027_v10 }
 0x841   :  { %v4228_v17 = vpop.eup %3574 }
 0x842   :  { %v1029_v18 = vsel %vm232_vm14, %v4228_v17, 0.0 }
 0x843   :  { %1030 = vadd.xlane.f32.xlu1 %v1029_v18 }
 0x844   :  { %v1178_v19 = vpop.xlane.xlu1 %1177 }
 0x845   :  { %v1179_v22 = vmax.f32 %v1178_v19, -1e+30 }
 0x847   :  { %v1180_v23 = vsub.f32 %v1173_v44, %v1179_v22 }
 0x849   :  { %v1181_v9 = vmul.f32 1.442695, %v1180_v23 }
 0x84b   :  { %3576 = vpow2.f32 %v1181_v9 }
 0x84c   :  { %v1101_v24 = vpop.xlane.xlu2 %1100 }
 0x84d   :  { %v1102_v25 = vmax.f32 %v1101_v24, -1e+30 }
 0x84f   :  { %v1103_v27 = vsub.f32 %v1096_v49, %v1102_v25 }
 0x851   :  { %v4232_v28 = vpop.eup %3576  ;;  %v1104_v36 = vmul.f32 1.442695, %v1103_v27 }
 0x852   :  { %v1183_v29 = vsel %vm232_vm14, %v4232_v28, 0.0 }
 0x853   :  { %3578 = vpow2.f32 %v1104_v36  ;;  %1184 = vadd.xlane.f32.xlu2 %v1183_v29 }
 0x859   :  { %v4236_v48 = vpop.eup %3578 }
 0x85a   :  { %v1106_v31 = vsel %vm232_vm14, %v4236_v48, 0.0 }
 0x85b   :  { %1107 = vadd.xlane.f32.xlu0 %v1106_v31 }
 0x85c   :  { %v955_v32 = vpop.xlane.xlu2 %954  ;;  %975 = vrot.lane.b32.xlu1 %v4150_v42, %s5027_s29  ;;  %v1255_v33 = vpop.xlane.xlu0 %1254 }
 0x85d   :  { %v1256_v34 = vmax.f32 %v1255_v33, -1e+30  ;;  %vm956_vm9 = vcmp.eq.f32.partialorder %v955_v32, 0.0 }
 0x85e   :  { %v957_v55 = vsel %vm956_vm9, 1.0, %v955_v32 }
 0x85f   :  { %v1257_v37 = vsub.f32 %v1250_v58, %v1256_v34  ;;  %v969_v13 = vand.u32 2147483648, %v957_v55  ;;  %vm963_vm7 = vweird.f32 %v957_v55  ;;  %v967_v16 = vand.u32 2147483647, %v957_v55 }
 0x861   :  { %v1258_v38 = vmul.f32 1.442695, %v1257_v37  ;;  %v970_v9 = vor.u32 1.1754944e-38, %v969_v13  ;;  %vm968_vm6 = vcmp.eq.f32.partialorder %v967_v16, 8.507059e+37 }
 0x863   :  { %3580 = vpow2.f32 %v1258_v38 }
 0x864   :  { %v1329_v39 = vpop.xlane.xlu2 %1328 }
 0x865   :  { %v1330_v30 = vmax.f32 %v1329_v39, -1e+30 }
 0x866   :  { %v1483_v47 = vpop.xlane.xlu0 %1482 }
 0x867   :  { %v1331_v40 = vsub.f32 %v1324_v63, %v1330_v30  ;;  %v1484_v61 = vmax.f32 %v1483_v47, -1e+30 }
 0x869   :  { %v1332_v41 = vmul.f32 1.442695, %v1331_v40  ;;  %v4242_v43 = vpop.eup %3580  ;;  %v1485_v56 = vsub.f32 %v4218_v3, %v1484_v61 }
 0x86a   :  { %v1260_v35 = vsel %vm232_vm14, %v4242_v43, 0.0 }
 0x86b   :  { %3582 = vpow2.f32 %v1332_v41  ;;  %1261 = vadd.xlane.f32.xlu2 %v1260_v35  ;;  %v1486_v57 = vmul.f32 1.442695, %v1485_v56 }
 0x86c   :  { %v1406_v44 = vpop.xlane.xlu1 %1405  ;;  %v1128_v21 = vpop.permute.xlu2 %1127 }
 0x86d   :  { %v1407_v45 = vmax.f32 %v1406_v44, -1e+30  ;;  %v1133_v39 = vsel %vm980_vm8, %v1128_v21, 0 }
 0x86f   :  { %1204 = vrot.lane.b32.xlu0 %v4150_v42, %s5028_s30  ;;  %v1408_v4 = vsub.f32 %v1401_v6, %v1407_v45 }
 0x871   :  { %v4248_v46 = vpop.eup %3582  ;;  %v1409_v51 = vmul.f32 1.442695, %v1408_v4 }
 0x872   :  { %v1334_v49 = vsel %vm232_vm14, %v4248_v46, 0.0 }
 0x873   :  { %1335 = vadd.xlane.f32.xlu2 %v1334_v49  ;;  %3584 = vpow2.f32 %v1409_v51 }
 0x874   :  { %3586 = vpow2.f32 %v1486_v57 }
 0x875   :  { %3588 = vrcp.f32 %v957_v55 }
 0x879   :  { %v1051_v52 = vpop.permute.xlu0 %1050  ;;  %v4253_v26 = vpop.eup %3584 }
 0x87a   :  { %v1056_v53 = vsel %vm980_vm8, %v1051_v52, 0  ;;  %v1411_v42 = vsel %vm232_vm14, %v4253_v26, 0.0  ;;  %v4262_v58 = vpop.eup %3586 }
 0x87b   :  { %1065 = vmatpush.bf16.msra.mxu0 %v1056_v53  ;;  %v1488_v60 = vsel %vm232_vm14, %v4262_v58, 0.0  ;;  %v3589_v62 = vpop.eup %3588 }
 0x87c   :  { %v959_v0 = vmul.f32 %v3589_v62, %v957_v55  ;;  %vm964_vm12 = vweird.f32 %v3589_v62 }
 0x87d   :  { %vm4270_vm9 = vmor %vm963_vm7, %vm964_vm12 }
 0x87e   :  { %v960_v3 = vsub.f32 1.0, %v959_v0 }
 0x880   :  { %v961_v54 = vmul.f32 %v3589_v62, %v960_v3 }
 0x882   :  { %v962_v8 = vadd.f32 %v3589_v62, %v961_v54 }
 0x884   :  { %v966_v22 = vsel %vm4270_vm9, %v3589_v62, %v962_v8 }
 0x885   :  { %v971_v36 = vsel %vm968_vm6, %v970_v9, %v966_v22 }
 0x886   :  { %1412 = vadd.xlane.f32.xlu1 %v1411_v42  ;;  %v972_v32 = vmul.f32 %v4213_v59, %v971_v36 }
 0x888   :  { %v973_v41 = vpack.c.bf16 %v972_v32, %v972_v32 }
 0x88b   :  { %1282 = vrot.lane.b32.xlu2 %v4158_v50, %s5027_s29 }
 0x893   :  { %1355 = vrot.lane.b32.xlu2 %v4158_v50, %s5025_s0 }
 0x899   :  { %1489 = vadd.xlane.f32.xlu0 %v1488_v60 }
 0x89b   :  { %1432 = vrot.lane.b32.xlu2 %v4158_v50, %s5026_s13 }
 0x89f   :  { %1509 = vrot.lane.b32.xlu1 %v4158_v50, %s5028_s30 }
 0x8b6   :  { %v1031_v63 = vpop.xlane.xlu1 %1030 }
 0x8b7   :  { %vm1032_vm10 = vcmp.eq.f32.partialorder %v1031_v63, 0.0 }
 0x8b8   :  { %v1033_v20 = vsel %vm1032_vm10, 1.0, %v1031_v63 }
 0x8b9   :  { %3590 = vrcp.f32 %v1033_v20  ;;  %v1045_v11 = vand.u32 2147483648, %v1033_v20  ;;  %v1043_v15 = vand.u32 2147483647, %v1033_v20  ;;  %vm1039_vm10 = vweird.f32 %v1033_v20 }
 0x8bb   :  { %v1046_v23 = vor.u32 1.1754944e-38, %v1045_v11  ;;  %vm1044_vm4 = vcmp.eq.f32.partialorder %v1043_v15, 8.507059e+37 }
 0x8bf   :  { %v3591_v5 = vpop.eup %3590 }
 0x8c0   :  { %v1035_v6 = vmul.f32 %v3591_v5, %v1033_v20  ;;  %vm1040_vm13 = vweird.f32 %v3591_v5 }
 0x8c1   :  { %vm1041_vm11 = vmor %vm1039_vm10, %vm1040_vm13 }
 0x8c2   :  { %v1036_v7 = vsub.f32 1.0, %v1035_v6 }
 0x8c4   :  { %v1037_v50 = vmul.f32 %v3591_v5, %v1036_v7 }
 0x8c6   :  { %v1038_v18 = vadd.f32 %v3591_v5, %v1037_v50  ;;  %v1185_v19 = vpop.xlane.xlu2 %1184 }
 0x8c7   :  { %vm1186_vm5 = vcmp.eq.f32.partialorder %v1185_v19, 0.0 }
 0x8c8   :  { %v1042_v24 = vsel %vm1041_vm11, %v3591_v5, %v1038_v18  ;;  %v1187_v25 = vsel %vm1186_vm5, 1.0, %v1185_v19 }
 0x8c9   :  { %v1047_v27 = vsel %vm1044_vm4, %v1046_v23, %v1042_v24  ;;  %3592 = vrcp.f32 %v1187_v25  ;;  %v1199_v45 = vand.u32 2147483648, %v1187_v25  ;;  %vm1193_vm5 = vweird.f32 %v1187_v25 }
 0x8ca   :  { %v1048_v29 = vmul.f32 %v4228_v17, %v1047_v27  ;;  %v1197_v49 = vand.u32 2147483647, %v1187_v25 }
 0x8cb   :  { %v1200_v53 = vor.u32 1.1754944e-38, %v1199_v45 }
 0x8cc   :  { %v1049_v31 = vpack.c.bf16 %v1048_v29, %v1048_v29  ;;  %vm1198_vm13 = vcmp.eq.f32.partialorder %v1197_v49, 8.507059e+37 }
 0x8ce   :  { %v1108_v33 = vpop.xlane.xlu0 %1107  ;;  %3392 = vmatmul.msk.bf16.vlgmr.msra.gmra.mxu0 %vm160_vm3, %v1049_v31  ;;  %v976_v34 = vpop.permute.xlu1 %975 }
 0x8cf   :  { %v3593_v37 = vpop.eup %3592  ;;  %vm1109_vm12 = vcmp.eq.f32.partialorder %v1108_v33, 0.0  ;;  %v982_v38 = vsel %vm980_vm8, %v976_v34, 0 }
 0x8d0   :  { %v1189_v30 = vmul.f32 %v3593_v37, %v1187_v25  ;;  %v1110_v40 = vsel %vm1109_vm12, 1.0, %v1108_v33  ;;  %991 = vmatpush.bf16.msrb.mxu1 %v982_v38  ;;  %vm1194_vm4 = vweird.f32 %v3593_v37 }
 0x8d1   :  { %3594 = vrcp.f32 %v1110_v40  ;;  %vm1195_vm11 = vmor %vm1193_vm5, %vm1194_vm4  ;;  %v1122_v52 = vand.u32 2147483648, %v1110_v40  ;;  %v1120_v42 = vand.u32 2147483647, %v1110_v40  ;;  %vm1116_vm7 = vweird.f32 %v1110_v40 }
 0x8d2   :  { %v1190_v17 = vsub.f32 1.0, %v1189_v30 }
 0x8d3   :  { %3390 = vmatmul.msk.bf16.vlgmr.msrb.gmra.mxu1 %vm160_vm3, %v973_v41  ;;  %v1123_v60 = vor.u32 1.1754944e-38, %v1122_v52  ;;  %vm1121_vm10 = vcmp.eq.f32.partialorder %v1120_v42, 8.507059e+37 }
 0x8d4   :  { %1142 = vmatpush.bf16.msra.mxu1 %v1133_v39  ;;  %v1191_v59 = vmul.f32 %v3593_v37, %v1190_v17 }
 0x8d6   :  { %v1192_v44 = vadd.f32 %v3593_v37, %v1191_v59 }
 0x8d7   :  { %v3595_v35 = vpop.eup %3594 }
 0x8d8   :  { %v1112_v47 = vmul.f32 %v3595_v35, %v1110_v40  ;;  %v1196_v51 = vsel %vm1195_vm11, %v3593_v37, %v1192_v44  ;;  %vm1117_vm6 = vweird.f32 %v3595_v35 }
 0x8d9   :  { %v1201_v56 = vsel %vm1198_vm13, %v1200_v53, %v1196_v51  ;;  %vm1118_vm9 = vmor %vm1116_vm7, %vm1117_vm6 }
 0x8da   :  { %v1113_v4 = vsub.f32 1.0, %v1112_v47  ;;  %v1202_v63 = vmul.f32 %v4232_v28, %v1201_v56 }
 0x8dc   :  { %v1114_v61 = vmul.f32 %v3595_v35, %v1113_v4  ;;  %v1203_v6 = vpack.c.bf16 %v1202_v63, %v1202_v63 }
 0x8de   :  { %v1115_v57 = vadd.f32 %v3595_v35, %v1114_v61  ;;  %v1262_v55 = vpop.xlane.xlu2 %1261 }
 0x8df   :  { %vm1263_vm12 = vcmp.eq.f32.partialorder %v1262_v55, 0.0 }
 0x8e0   :  { %v1119_v62 = vsel %vm1118_vm9, %v3595_v35, %v1115_v57  ;;  %v1264_v20 = vsel %vm1263_vm12, 1.0, %v1262_v55 }
 0x8e1   :  { %v1124_v0 = vsel %vm1121_vm10, %v1123_v60, %v1119_v62  ;;  %v1205_v3 = vpop.permute.xlu0 %1204  ;;  %3596 = vrcp.f32 %v1264_v20  ;;  %v1276_v50 = vand.u32 2147483648, %v1264_v20  ;;  %vm1270_vm11 = vweird.f32 %v1264_v20 }
 0x8e2   :  { %v1125_v21 = vmul.f32 %v4236_v48, %v1124_v0  ;;  %v1210_v5 = vsel %vm980_vm8, %v1205_v3, 0  ;;  %v1274_v48 = vand.u32 2147483647, %v1264_v20 }
 0x8e3   :  { %1219 = vmatpush.bf16.msrb.mxu0 %v1210_v5  ;;  %v1277_v19 = vor.u32 1.1754944e-38, %v1276_v50 }
 0x8e4   :  { %v1126_v54 = vpack.c.bf16 %v1125_v21, %v1125_v21  ;;  %vm1275_vm13 = vcmp.eq.f32.partialorder %v1274_v48, 8.507059e+37 }
 0x8e6   :  { %3394 = vmatmul.msk.bf16.vlgmr.msra.gmra.mxu1 %vm160_vm3, %v1126_v54  ;;  %v1336_v7 = vpop.xlane.xlu2 %1335  ;;  %3396 = vmatmul.msk.bf16.vlgmr.msrb.gmra.mxu0 %vm160_vm3, %v1203_v6 }
 0x8e7   :  { %v3597_v8 = vpop.eup %3596  ;;  %vm1337_vm4 = vcmp.eq.f32.partialorder %v1336_v7, 0.0 }
 0x8e8   :  { %v1266_v11 = vmul.f32 %v3597_v8, %v1264_v20  ;;  %v1338_v28 = vsel %vm1337_vm4, 1.0, %v1336_v7  ;;  %vm1271_vm5 = vweird.f32 %v3597_v8 }
 0x8e9   :  { %3598 = vrcp.f32 %v1338_v28  ;;  %vm1272_vm6 = vmor %vm1270_vm11, %vm1271_vm5  ;;  %v1350_v36 = vand.u32 2147483648, %v1338_v28  ;;  %v1348_v31 = vand.u32 2147483647, %v1338_v28  ;;  %vm1344_vm9 = vweird.f32 %v1338_v28 }
 0x8ea   :  { %v1267_v13 = vsub.f32 1.0, %v1266_v11 }
 0x8eb   :  { %v1351_v37 = vor.u32 1.1754944e-38, %v1350_v36  ;;  %vm1349_vm12 = vcmp.eq.f32.partialorder %v1348_v31, 8.507059e+37 }
 0x8ec   :  { %v1268_v15 = vmul.f32 %v3597_v8, %v1267_v13 }
 0x8ee   :  { %v1269_v16 = vadd.f32 %v3597_v8, %v1268_v15  ;;  %v1283_v10 = vpop.permute.xlu2 %1282 }
 0x8ef   :  { %v3599_v18 = vpop.eup %3598  ;;  %v1288_v22 = vsel %vm980_vm8, %v1283_v10, 0 }
 0x8f0   :  { %v1273_v23 = vsel %vm1272_vm6, %v3597_v8, %v1269_v16  ;;  %v1340_v9 = vmul.f32 %v3599_v18, %v1338_v28  ;;  %1297 = vmatpush.bf16.msrb.mxu1 %v1288_v22  ;;  %vm1345_vm7 = vweird.f32 %v3599_v18 }
 0x8f1   :  { %v1278_v24 = vsel %vm1275_vm13, %v1277_v19, %v1273_v23  ;;  %vm1346_vm10 = vmor %vm1344_vm9, %vm1345_vm7 }
 0x8f2   :  { %v1279_v25 = vmul.f32 %v4242_v43, %v1278_v24  ;;  %v1341_v27 = vsub.f32 1.0, %v1340_v9 }
 0x8f4   :  { %v1342_v29 = vmul.f32 %v3599_v18, %v1341_v27  ;;  %v1280_v32 = vpack.c.bf16 %v1279_v25, %v1279_v25 }
 0x8f6   :  { %v1343_v33 = vadd.f32 %v3599_v18, %v1342_v29  ;;  %v1356_v34 = vpop.permute.xlu2 %1355  ;;  %3398 = vmatmul.msk.bf16.vlgmr.msrb.gmra.mxu1 %vm160_vm3, %v1280_v32  ;;  %v1539_v32 = vld [vmem:[%s4923_s15 + $0x10] sm:$0xff] }
 0x8f7   :  { %v1361_v38 = vsel %vm980_vm8, %v1356_v34, 0 }
 0x8f8   :  { %v1347_v39 = vsel %vm1346_vm10, %v3599_v18, %v1343_v33  ;;  %1370 = vmatpush.bf16.msra.mxu0 %v1361_v38  ;;  %v1540_v33 = vld [vmem:[%s4923_s15 + $0x18] sm:$0xff]  ;;  %v1538_v38 = vld [vmem:[%s4923_s15 + $0x8] sm:$0xff] }
 0x8f9   :  { %v1413_v30 = vpop.xlane.xlu1 %1412  ;;  %v1352_v43 = vsel %vm1349_vm12, %v1351_v37, %v1347_v39  ;;  %v1544_v34 = vpack.c.bf16 %v1540_v33, %v1539_v32  ;;  %v1537_v37 = vld [vmem:[%s4923_s15] sm:$0xff] }
 0x8fa   :  { %vm1414_vm4 = vcmp.eq.f32.partialorder %v1413_v30, 0.0  ;;  %v1353_v40 = vmul.f32 %v4248_v46, %v1352_v43  ;;  %v1543_v39 = vpack.c.bf16 %v1538_v38, %v1537_v37  ;;  %v1659_v38 = vld [vmem:[%s4929_s19 + $0x30] sm:$0xff] }
 0x8fb   :  { %v1415_v41 = vsel %vm1414_vm4, 1.0, %v1413_v30  ;;  %1557 = vmatpush.bf16.msrb.mxu3 %v1544_v34 }
 0x8fc   :  { %3600 = vrcp.f32 %v1415_v41  ;;  %v1354_v17 = vpack.c.bf16 %v1353_v40, %v1353_v40  ;;  %v1427_v49 = vand.u32 2147483648, %v1415_v41  ;;  %v1425_v51 = vand.u32 2147483647, %v1415_v41 }
 0x8fd   :  { %vm1421_vm11 = vweird.f32 %v1415_v41 }
 0x8fe   :  { %v1433_v59 = vpop.permute.xlu2 %1432  ;;  %3400 = vmatmul.msk.bf16.vlgmr.msra.gmra.mxu0 %vm160_vm3, %v1354_v17  ;;  %v1428_v46 = vor.u32 1.1754944e-38, %v1427_v49  ;;  %vm1426_vm13 = vcmp.eq.f32.partialorder %v1425_v51, 8.507059e+37 }
 0x8ff   :  { %v1438_v35 = vsel %vm980_vm8, %v1433_v59, 0  ;;  %1558 = vmatpush.bf16.msrb.mxu3 %v1543_v39  ;;  %v1660_v39 = vld [vmem:[%s4929_s19 + $0x38] sm:$0xff] }
 0x900   :  { %1447 = vmatpush.bf16.msra.mxu1 %v1438_v35  ;;  %v3514_v35 = vld [vmem:[%s4922_s16] ss:$0 sm:$0xff] }
 0x902   :  { %v3601_v44 = vpop.eup %3600 }
 0x903   :  { %v1417_v45 = vmul.f32 %v3601_v44, %v1415_v41  ;;  %vm1422_vm5 = vweird.f32 %v3601_v44 }
 0x904   :  { %vm1423_vm6 = vmor %vm1421_vm11, %vm1422_vm5  ;;  %vm5034_vm5 = vcmask 257024  }
 0x905   :  { %v1418_v47 = vsub.f32 1.0, %v1417_v45  ;;  %vm5035_vm11 = vmmov %vm5034_vm5 }
 0x907   :  { %v1419_v4 = vmul.f32 %v3601_v44, %v1418_v47 }
 0x909   :  { %v1420_v52 = vadd.f32 %v3601_v44, %v1419_v4 }
 0x90b   :  { %v1424_v53 = vsel %vm1423_vm6, %v3601_v44, %v1420_v52 }
 0x90c   :  { %v1429_v61 = vsel %vm1426_vm13, %v1428_v46, %v1424_v53  ;;  %v1490_v42 = vpop.xlane.xlu0 %1489 }
 0x90d   :  { %v1430_v56 = vmul.f32 %v4253_v26, %v1429_v61  ;;  %vm1491_vm7 = vcmp.eq.f32.partialorder %v1490_v42, 0.0 }
 0x90e   :  { %v1492_v57 = vsel %vm1491_vm7, 1.0, %v1490_v42 }
 0x90f   :  { %3602 = vrcp.f32 %v1492_v57  ;;  %v1431_v60 = vpack.c.bf16 %v1430_v56, %v1430_v56  ;;  %v1504_v3 = vand.u32 2147483648, %v1492_v57  ;;  %v1502_v5 = vand.u32 2147483647, %v1492_v57 }
 0x910   :  { %vm1498_vm10 = vweird.f32 %v1492_v57 }
 0x911   :  { %v1510_v55 = vpop.permute.xlu1 %1509  ;;  %3402 = vmatmul.msk.bf16.vlgmr.msra.gmra.mxu1 %vm160_vm3, %v1431_v60  ;;  %v1505_v26 = vor.u32 1.1754944e-38, %v1504_v3  ;;  %vm1503_vm4 = vcmp.eq.f32.partialorder %v1502_v5, 8.507059e+37 }
 0x912   :  { %v1515_v62 = vsel %vm980_vm8, %v1510_v55, 0 }
 0x913   :  { %1524 = vmatpush.bf16.msrb.mxu0 %v1515_v62 }
 0x915   :  { %v3603_v63 = vpop.eup %3602 }
 0x916   :  { %v1494_v0 = vmul.f32 %v3603_v63, %v1492_v57  ;;  %vm1499_vm9 = vweird.f32 %v3603_v63 }
 0x917   :  { %vm1500_vm12 = vmor %vm1498_vm10, %vm1499_vm9 }
 0x918   :  { %v1495_v20 = vsub.f32 1.0, %v1494_v0  ;;  %v1626_v0 = vld [vmem:[%s4927_s17 + $0x18] sm:$0xff] }
 0x91a   :  { %v1496_v21 = vmul.f32 %v3603_v63, %v1495_v20 }
 0x91c   :  { %v1497_v54 = vadd.f32 %v3603_v63, %v1496_v21 }
 0x91e   :  { %v1501_v6 = vsel %vm1500_vm12, %v3603_v63, %v1497_v54  ;;  %v1623_v54 = vld [vmem:[%s4927_s17] sm:$0xff] }
 0x91f   :  { %v1506_v7 = vsel %vm1503_vm4, %v1505_v26, %v1501_v6  ;;  %v1624_v26 = vld [vmem:[%s4927_s17 + $0x8] sm:$0xff]  ;;  %vm4987_vm4 = vcmask 523264  }
 0x920   :  { %v1507_v8 = vmul.f32 %v4262_v58, %v1506_v7  ;;  %v1629_v6 = vpack.c.bf16 %v1624_v26, %v1623_v54 }
 0x922   :  { %v1508_v11 = vpack.c.bf16 %v1507_v8, %v1507_v8 }
 0x924   :  { %3404 = vmatmul.msk.bf16.vlgmr.msrb.gmra.mxu0 %vm160_vm3, %v1508_v11 }
 0x94b   :  { %v1067_v28 = vpop.f32.mrf.mxu0 }
 0x94c   :  { %1072 = vrot.lane.b32.xlu2 %v1067_v28, %s5031_s1 }
 0x950   :  { %v993_v13 = vpop.f32.mrf.mxu1 }
 0x951   :  { %997 = vst.msk [vmem:[#allocation2] sm:$0x3f] %vm232_vm14, %v993_v13 }
 0x953   :  { %v1069_v50 = vpop.f32.mrf.mxu0 }
 0x958   :  { %v995_v15 = vpop.f32.mrf.mxu1 }
 0x963   :  { %v1144_v48 = vpop.f32.mrf.mxu1  ;;  %v1221_v16 = vpop.f32.mrf.mxu0 }
 0x964   :  { %1149 = vrot.lane.b32.xlu2 %v1144_v48, %s5032_s3  ;;  %1226 = vrot.lane.b32.xlu1 %v1221_v16, %s5033_s21 }
 0x96b   :  { %v1146_v10 = vpop.f32.mrf.mxu1  ;;  %v1223_v18 = vpop.f32.mrf.mxu0 }
 0x973   :  { %v1299_v58 = vpop.f32.mrf.mxu1 }
 0x974   :  { %1303 = vst.msk [vmem:[#allocation2 + $0x6] sm:$0x3f] %vm232_vm14, %v1299_v58 }
 0x97b   :  { %v1301_v19 = vpop.f32.mrf.mxu1  ;;  %v1372_v22 = vpop.f32.mrf.mxu0 }
 0x97c   :  { %1377 = vrot.lane.b32.xlu0 %v1372_v22, %s5031_s1 }
 0x983   :  { %v1374_v23 = vpop.f32.mrf.mxu0 }
 0x98e   :  { %v1449_v9 = vpop.f32.mrf.mxu1 }
 0x98f   :  { %1454 = vrot.lane.b32.xlu2 %v1449_v9, %s5032_s3  ;;  %v3515_v9 = vld [vmem:[%s4924_s23] ss:$0 sm:$0xff]  ;;  %s5083_s23 = sld [smem:[#allocation20_spill]] }
 0x996   :  { %v1451_v24 = vpop.f32.mrf.mxu1 }
 0x9a1   :  { %v1526_v25 = vpop.f32.mrf.mxu0 }
 0x9a2   :  { %1531 = vrot.lane.b32.xlu2 %v1526_v25, %s5033_s21 }
 0x9a6   :  { %v1073_v27 = vpop.permute.xlu2 %1072 }
 0x9a7   :  { %1075 = vst.msk [vmem:[#allocation2] sm:$0x3f] %vm310_vm15, %v1073_v27 }
 0x9a9   :  { %v1528_v36 = vpop.f32.mrf.mxu0 }
 0x9aa   :  { %v3516_v36 = vld [vmem:[%s4925_s24] ss:$0 sm:$0xff]  ;;  %s5070_s24 = sld [smem:[#allocation11_spill]] }
 0x9be   :  { %v1150_v29 = vpop.permute.xlu2 %1149 }
 0x9bf   :  { %1152 = vst.msk [vmem:[#allocation2] sm:$0x3f] %vm388_vm0, %v1150_v29 }
 0x9d6   :  { %v1227_v31 = vpop.permute.xlu1 %1226 }
 0x9d7   :  { %1229 = vst.msk [vmem:[#allocation2] sm:$0x3f] %vm466_vm1, %v1227_v31 }
 0x9e9   :  { %v1455_v43 = vpop.permute.xlu2 %1454 }
 0x9ee   :  { %v1378_v30 = vpop.permute.xlu0 %1377 }
 0x9ef   :  { %1380 = vst.msk [vmem:[#allocation2 + $0x6] sm:$0x3f] %vm310_vm15, %v1378_v30  ;;  %v1666_v30 = vpack.c.bf16 %v1660_v39, %v1659_v38  ;;  %v3519_v39 = vld [vmem:[%s4930_s25] ss:$0 sm:$0xff] }
 0x9f0   :  { %1457 = vst.msk [vmem:[#allocation2 + $0x6] sm:$0x3f] %vm388_vm0, %v1455_v43  ;;  %v1657_v43 = vld [vmem:[%s4929_s19 + $0x20] sm:$0xff] }
 0x9f1   :  { %1678 = vmatpush.bf16.msrb.mxu2 %v1666_v30 }
 0x9fc   :  { %v1532_v40 = vpop.permute.xlu2 %1531 }
 0x9fd   :  { %1534 = vst.msk [vmem:[#allocation2 + $0x6] sm:$0x3f] %vm466_vm1, %v1532_v40  ;;  %v1658_v40 = vld [vmem:[%s4929_s19 + $0x28] sm:$0xff] }
 0xa04   :  { %v1535_v41 = vld [vmem:[#allocation2] sm:$0xff]  ;;  %v1536_v17 = vld [vmem:[#allocation2 + $0x8] sm:$0xf] }
 0xa05   :  { %v1542_v59 = vpack.c.bf16 %v1536_v17, %v1535_v41  ;;  %v1665_v41 = vpack.c.bf16 %v1658_v40, %v1657_v43  ;;  %v1655_v17 = vld [vmem:[%s4929_s19 + $0x10] sm:$0xff] }
 0xa07   :  { %3405 = vmatmul.msk.bf16.vlgmr.msrb.gmra.mxu3 %vm138_vm2, %v1542_v59  ;;  %1679 = vmatpush.bf16.msrb.mxu2 %v1665_v41  ;;  %v1656_v59 = vld [vmem:[%s4929_s19 + $0x18] sm:$0xff]  ;;  %v3520_v41 = vld [vmem:[%s4931_s26] ss:$0 sm:$0xff] }
 0xa8a   :  { %v1560_v44 = vpop.f32.mrf.mxu3 }
 0xa8b   :  { %v1561_v45 = vadd.f32 %v3514_v35, %v1560_v44  ;;  %v1653_v44 = vld [vmem:[%s4929_s19] sm:$0xff] }
 0xa8d   :  { %v1565_v47 = vadd.f32 %v1561_v45, %v4172_v1  ;;  %v1654_v45 = vld [vmem:[%s4929_s19 + $0x8] sm:$0xff] }
 0xa8f   :  { %v1569_v49 = vsel %vm138_vm2, %v1565_v47, 0.0 }
 0xa90   :  { %1570 = vadd.xlane.f32.xlu0 %v1569_v49 }
 0xa92   :  { %v1562_v4 = vpop.f32.mrf.mxu3 }
 0xa93   :  { %v1563_v51 = vadd.f32 %v3514_v35, %v1562_v4  ;;  %v1664_v35 = vpack.c.bf16 %v1656_v59, %v1655_v17  ;;  %v3517_v4 = vld [vmem:[%s4926_s18] ss:$0 sm:$0xff] }
 0xa95   :  { %v1566_v52 = vadd.f32 %v1563_v51, %v4174_v2  ;;  %v1625_v2 = vld [vmem:[%s4927_s17 + $0x10] sm:$0xff]  ;;  %1680 = vmatpush.bf16.msrb.mxu2 %v1664_v35 }
 0xa96   :  { %v1630_v3 = vpack.c.bf16 %v1626_v0, %v1625_v2 }
 0xa97   :  { %v1572_v46 = vsel %vm5034_vm5, %v1566_v52, 0.0 }
 0xa98   :  { %1573 = vadd.xlane.f32.xlu1 %v1572_v46  ;;  %1643 = vmatpush.bf16.msrb.mxu1 %v1630_v3 }
 0xa9c   :  { %1644 = vmatpush.bf16.msrb.mxu1 %v1629_v6 }
 0xb03   :  { %v1571_v53 = vpop.xlane.xlu0 %1570 }
 0xb04   :  { %v1575_v61 = vmul.f32 %v1571_v53, %v4127_v14 }
 0xb06   :  { %v1577_v42 = vsub.f32 %v1565_v47, %v1575_v61  ;;  %v1663_v47 = vpack.c.bf16 %v1654_v45, %v1653_v44 }
 0xb08   :  { %v1579_v56 = vmul.f32 %v1577_v42, %v1577_v42  ;;  %1681 = vmatpush.bf16.msrb.mxu2 %v1663_v47 }
 0xb0a   :  { %v1581_v57 = vsel %vm138_vm2, %v1579_v56, 0.0  ;;  %v3518_v56 = vld [vmem:[%s4928_s20] ss:$0 sm:$0xff] }
 0xb0b   :  { %v1574_v60 = vpop.xlane.xlu1 %1573  ;;  %1582 = vadd.xlane.f32.xlu2 %v1581_v57 }
 0xb0c   :  { %v1576_v1 = vmul.f32 %v1574_v60, %v4127_v14 }
 0xb0e   :  { %v1578_v55 = vsub.f32 %v1566_v52, %v1576_v1 }
 0xb10   :  { %v1580_v62 = vmul.f32 %v1578_v55, %v1578_v55 }
 0xb12   :  { %v1584_v63 = vsel %vm5035_vm11, %v1580_v62, 0.0  ;;  %vm5036_vm11 = vmmov %vm5034_vm5 }
 0xb13   :  { %1585 = vadd.xlane.f32.xlu0 %v1584_v63 }
 0xb7e   :  { %v1583_v20 = vpop.xlane.xlu2 %1582 }
 0xb7f   :  { %v1587_v21 = vmul.f32 %v1583_v20, %v4127_v14 }
 0xb81   :  { %v1589_v5 = vadd.f32 1e-05, %v1587_v21 }
 0xb83   :  { %3604 = vrsqrt.f32 %v1589_v5  ;;  %vm1597_vm13 = vweird.f32 %v1589_v5 }
 0xb86   :  { %v1586_v7 = vpop.xlane.xlu0 %1585 }
 0xb87   :  { %v1588_v8 = vmul.f32 %v1586_v7, %v4127_v14 }
 0xb89   :  { %v3605_v11 = vpop.eup %3604  ;;  %v1590_v28 = vadd.f32 1e-05, %v1588_v8 }
 0xb8a   :  { %v1592_v13 = vmul.f32 %v3605_v11, %v1589_v5  ;;  %vm1598_vm6 = vweird.f32 %v3605_v11 }
 0xb8b   :  { %3606 = vrsqrt.f32 %v1590_v28  ;;  %vm1599_vm7 = vmor %vm1597_vm13, %vm1598_vm6  ;;  %vm1607_vm10 = vweird.f32 %v1590_v28 }
 0xb8c   :  { %v1593_v50 = vmul.f32 %v3605_v11, %v1592_v13  ;;  %v3411_v13 = vld [vmem:[%s5010_s5 + $0x38] sm:$0xff] }
 0xb8e   :  { %v1594_v15 = vmul.f32 0.5, %v1593_v50 }
 0xb90   :  { %v1595_v48 = vsub.f32 1.5, %v1594_v15 }
 0xb91   :  { %v3607_v16 = vpop.eup %3606 }
 0xb92   :  { %v1596_v10 = vmul.f32 %v3605_v11, %v1595_v48  ;;  %v1602_v18 = vmul.f32 %v3607_v16, %v1590_v28  ;;  %vm1608_vm9 = vweird.f32 %v3607_v16  ;;  %v3410_v28 = vld [vmem:[%s5010_s5 + $0x30] sm:$0xff] }
 0xb93   :  { %vm1609_vm12 = vmor %vm1607_vm10, %vm1608_vm9  ;;  %v1755_v15 = vpack.c.bf16 %v3411_v13, %v3410_v28 }
 0xb94   :  { %v1603_v58 = vmul.f32 %v3607_v16, %v1602_v18  ;;  %v1600_v19 = vsel %vm1599_vm7, %v3605_v11, %v1596_v10  ;;  %v3408_v10 = vld [vmem:[%s5010_s5 + $0x20] sm:$0xff]  ;;  %v3409_v18 = vld [vmem:[%s5010_s5 + $0x28] sm:$0xff]  ;;  %s5073_s5 = sld [smem:[#allocation13_spill]] }
 0xb95   :  { %v1611_v24 = vmul.f32 %v1600_v19, %v1577_v42  ;;  %1768 = vmatpush.bf16.msra.mxu0 %v1755_v15 }
 0xb96   :  { %v1604_v22 = vmul.f32 0.5, %v1603_v58  ;;  %v1754_v58 = vpack.c.bf16 %v3409_v18, %v3408_v10 }
 0xb97   :  { %v1616_v29 = vmul.f32 %v3515_v9, %v1611_v24 }
 0xb98   :  { %v1605_v23 = vsub.f32 1.5, %v1604_v22 }
 0xb99   :  { %v1621_v33 = vadd.f32 %v3516_v36, %v1616_v29  ;;  %1769 = vmatpush.bf16.msra.mxu0 %v1754_v58 }
 0xb9a   :  { %v1606_v25 = vmul.f32 %v3607_v16, %v1605_v23 }
 0xb9c   :  { %v1610_v27 = vsel %vm1609_vm12, %v3607_v16, %v1606_v25 }
 0xb9d   :  { %v1612_v31 = vmul.f32 %v1610_v27, %v1578_v55 }
 0xb9f   :  { %v1617_v32 = vmul.f32 %v3515_v9, %v1612_v31 }
 0xba1   :  { %v1622_v34 = vadd.f32 %v3516_v36, %v1617_v32 }
 0xba3   :  { %v1628_v37 = vpack.c.bf16 %v1622_v34, %v1621_v33 }
 0xba5   :  { %3406 = vmatmul.msk.bf16.vlgmr.msrb.gmra.mxu1 %vm138_vm2, %v1628_v37 }
 0xc22   :  { %v1646_v49 = vpop.f32.mrf.mxu1 }
 0xc23   :  { %v1647_v51 = vadd.f32 %v3517_v4, %v1646_v49  ;;  %v3521_v49 = vld [vmem:[%s5013_s10 + $0x1] ss:$0 sm:$0xff] }
 0xc25   :  { %v1651_v53 = vmax.f32 %v1647_v51, 0.0 }
 0xc2a   :  { %v1648_v52 = vpop.f32.mrf.mxu1 }
 0xc2b   :  { %v1649_v46 = vadd.f32 %v3517_v4, %v1648_v52 }
 0xc2d   :  { %v1652_v61 = vmax.f32 %v1649_v46, 0.0 }
 0xc2f   :  { %v1662_v42 = vpack.c.bf16 %v1652_v61, %v1651_v53 }
 0xc31   :  { %3407 = vmatmul.msk.bf16.vlgmr.msrb.gmra.mxu2 %vm4987_vm4, %v1662_v42 }
 0xcb4   :  { %v1683_v57 = vpop.f32.mrf.mxu2 }
 0xcb5   :  { %v1684_v60 = vadd.f32 %v3518_v56, %v1683_v57 }
 0xcb7   :  { %v1688_v1 = vadd.f32 %v1684_v60, %v1621_v33 }
 0xcb9   :  { %v1692_v55 = vsel %vm138_vm2, %v1688_v1, 0.0 }
 0xcba   :  { %1693 = vadd.xlane.f32.xlu2 %v1692_v55 }
 0xcbc   :  { %v1685_v62 = vpop.f32.mrf.mxu2 }
 0xcbd   :  { %v1686_v63 = vadd.f32 %v3518_v56, %v1685_v62 }
 0xcbf   :  { %v1689_v2 = vadd.f32 %v1686_v63, %v1622_v34 }
 0xcc1   :  { %v1695_v0 = vsel %vm5034_vm5, %v1689_v2, 0.0  ;;  %vm5037_vm5 = vcmask 46080  }
 0xcc2   :  { %1696 = vadd.xlane.f32.xlu1 %v1695_v0 }
 0xd2d   :  { %v1694_v20 = vpop.xlane.xlu2 %1693 }
 0xd2e   :  { %v1698_v3 = vmul.f32 %v1694_v20, %v4127_v14 }
 0xd30   :  { %v1700_v21 = vsub.f32 %v1688_v1, %v1698_v3 }
 0xd32   :  { %v1702_v5 = vmul.f32 %v1700_v21, %v1700_v21 }
 0xd34   :  { %v1704_v54 = vsel %vm138_vm2, %v1702_v5, 0.0 }
 0xd35   :  { %v1697_v26 = vpop.xlane.xlu1 %1696  ;;  %1705 = vadd.xlane.f32.xlu0 %v1704_v54 }
 0xd36   :  { %v1699_v6 = vmul.f32 %v1697_v26, %v4127_v14 }
 0xd38   :  { %v1701_v7 = vsub.f32 %v1689_v2, %v1699_v6 }
 0xd3a   :  { %v1703_v8 = vmul.f32 %v1701_v7, %v1701_v7 }
 0xd3c   :  { %v1707_v11 = vsel %vm5036_vm11, %v1703_v8, 0.0  ;;  %vm5038_vm11 = vmmov %vm5037_vm5 }
 0xd3d   :  { %1708 = vadd.xlane.f32.xlu2 %v1707_v11 }
 0xda8   :  { %v1706_v50 = vpop.xlane.xlu0 %1705 }
 0xda9   :  { %v1710_v48 = vmul.f32 %v1706_v50, %v4127_v14 }
 0xdab   :  { %v1712_v16 = vadd.f32 1e-05, %v1710_v48 }
 0xdad   :  { %3608 = vrsqrt.f32 %v1712_v16  ;;  %vm1720_vm13 = vweird.f32 %v1712_v16 }
 0xdb0   :  { %v1709_v19 = vpop.xlane.xlu2 %1708 }
 0xdb1   :  { %v1711_v22 = vmul.f32 %v1709_v19, %v4127_v14 }
 0xdb3   :  { %v3609_v23 = vpop.eup %3608  ;;  %v1713_v9 = vadd.f32 1e-05, %v1711_v22 }
 0xdb4   :  { %v1715_v24 = vmul.f32 %v3609_v23, %v1712_v16  ;;  %vm1721_vm6 = vweird.f32 %v3609_v23  ;;  %v3688_v16 = vld [vmem:[%s5014_s2] sm:$0x3f]  ;;  %s5043_s2 = smov 64  }
 0xdb5   :  { %3610 = vrsqrt.f32 %v1713_v9  ;;  %vm1722_vm7 = vmor %vm1720_vm13, %vm1721_vm6  ;;  %vm1730_vm10 = vweird.f32 %v1713_v9 }
 0xdb6   :  { %v1716_v25 = vmul.f32 %v3609_v23, %v1715_v24  ;;  %vm5039_vm6 = vmmov %vm5037_vm5 }
 0xdb7   :  { %vm5040_vm13 = vmmov %vm5037_vm5 }
 0xdb8   :  { %v1717_v27 = vmul.f32 0.5, %v1716_v25 }
 0xdba   :  { %v1718_v36 = vsub.f32 1.5, %v1717_v27 }
 0xdbb   :  { %v3611_v29 = vpop.eup %3610 }
 0xdbc   :  { %v1719_v31 = vmul.f32 %v3609_v23, %v1718_v36  ;;  %v1725_v32 = vmul.f32 %v3611_v29, %v1713_v9  ;;  %vm1731_vm9 = vweird.f32 %v3611_v29 }
 0xdbd   :  { %vm1732_vm12 = vmor %vm1730_vm10, %vm1731_vm9 }
 0xdbe   :  { %v1726_v33 = vmul.f32 %v3611_v29, %v1725_v32  ;;  %v1723_v34 = vsel %vm1722_vm7, %v3609_v23, %v1719_v31  ;;  %vm5041_vm7 = vmmov %vm5037_vm5 }
 0xdbf   :  { %v1734_v30 = vmul.f32 %v1723_v34, %v1700_v21  ;;  %vm5042_vm9 = vmmov %vm5037_vm5 }
 0xdc0   :  { %v1727_v37 = vmul.f32 0.5, %v1726_v33  ;;  %vm5044_vm10 = vmmov %vm5037_vm5 }
 0xdc1   :  { %v1739_v17 = vmul.f32 %v3519_v39, %v1734_v30 }
 0xdc2   :  { %v1728_v38 = vsub.f32 1.5, %v1727_v37 }
 0xdc3   :  { %v4415_v44 = vadd.f32 %v3520_v41, %v1739_v17 }
 0xdc4   :  { %v1729_v43 = vmul.f32 %v3611_v29, %v1728_v38 }
 0xdc6   :  { %v1733_v40 = vsel %vm1732_vm12, %v3611_v29, %v1729_v43  ;;  %vm5045_vm12 = vmmov %vm5037_vm5 }
 0xdc7   :  { %v1735_v59 = vmul.f32 %v1733_v40, %v1701_v7 }
 0xdc9   :  { %v1740_v35 = vmul.f32 %v3519_v39, %v1735_v59 }
 0xdcb   :  { %v4417_v45 = vadd.f32 %v3520_v41, %v1740_v35 }
 0xdcd   :  { %v1753_v47 = vpack.c.bf16 %v4417_v45, %v4415_v44 }
 0xdcf   :  { %3413 = vmatmul.msk.bf16.vlgmr.msra.gmra.mxu0 %vm138_vm2, %v1753_v47 }
 0xe4c   :  { %v1771_v4 = vpop.f32.mrf.mxu0 }
 0xe4d   :  { %v1772_v51 = vadd.f32 %v3521_v49, %v1771_v4 }
 0xe4f   :  { %v4425_v52 = vpack.c.bf16 %v1772_v51, %v1772_v51 }
 0xe51   :  { %1849 = vrot.lane.b32.xlu2 %v4425_v52, %s5022_s27  ;;  %1851 = vrot.lane.b32.xlu0 %v4425_v52, %s5025_s0 }
 0xe52   :  { %1778 = vrot.lane.b32.xlu1 %v4425_v52, %s5027_s29 }
 0xe54   :  { %v1773_v46 = vpop.f32.mrf.mxu0 }
 0xe55   :  { %v1774_v53 = vadd.f32 %v3521_v49, %v1773_v46 }
 0xe57   :  { %v2080_v61 = vpack.c.bf16 %v1774_v53, %v1772_v51 }
 0xe59   :  { %2003 = vrot.lane.b32.xlu2 %v4425_v52, %s5023_s9  ;;  %1928 = vrot.lane.b32.xlu0 %v4425_v52, %s5026_s13  ;;  %v4439_v42 = vrot.slane %v2080_v61, 3 }
 0xe5a   :  { %2005 = vrot.lane.b32.xlu1 %v4425_v52, %s5028_s30 }
 0xe61   :  { %2154 = vrot.lane.b32.xlu2 %v4439_v42, %s5022_s27  ;;  %1926 = vrot.lane.b32.xlu0 %v4425_v52, %s5021_s6 }
 0xe62   :  { %2083 = vrot.lane.b32.xlu1 %v4439_v42, %s5027_s29 }
 0xe69   :  { %2231 = vrot.lane.b32.xlu2 %v4439_v42, %s5021_s6  ;;  %2156 = vrot.lane.b32.xlu0 %v4439_v42, %s5025_s0 }
 0xe6a   :  { %2233 = vrot.lane.b32.xlu1 %v4439_v42, %s5026_s13 }
 0xe71   :  { %2310 = vrot.lane.b32.xlu0 %v4439_v42, %s5028_s30 }
 0xe72   :  { %2308 = vrot.lane.b32.xlu1 %v4439_v42, %s5023_s9 }
 0xeab   :  { %v1850_v55 = vpop.permute.xlu2 %1849 }
 0xeb3   :  { %v2004_v5 = vpop.permute.xlu2 %2003 }
 0xebb   :  { %v2155_v28 = vpop.permute.xlu2 %2154 }
 0xec3   :  { %v1852_v56 = vpop.permute.xlu0 %1851  ;;  %v2232_v50 = vpop.permute.xlu2 %2231 }
 0xec4   :  { %v1857_v57 = vsel %vm160_vm3, %v1852_v56, 0  ;;  %v1779_v60 = vpop.permute.xlu1 %1778 }
 0xec5   :  { %v1784_v1 = vsel %vm160_vm3, %v1779_v60, 0  ;;  %1866 = vmatpush.bf16.xpose.msra.mxu2 %v1857_v57 }
 0xec6   :  { %1793 = vmatpush.bf16.xpose.msra.mxu3 %v1784_v1 }
 0xecb   :  { %v1929_v62 = vpop.permute.xlu0 %1928 }
 0xecc   :  { %v1934_v63 = vsel %vm160_vm3, %v1929_v62, 0  ;;  %v2006_v2 = vpop.permute.xlu1 %2005  ;;  %3416 = vmatmul.msk.bf16.vlgmr.msra.gmra.mxu2 %vm160_vm3, %v1850_v55 }
 0xecd   :  { %v2011_v0 = vsel %vm160_vm3, %v2006_v2, 0  ;;  %3414 = vmatmul.msk.bf16.vlgmr.msra.gmra.mxu3 %vm160_vm3, %v4425_v52 }
 0xece   :  { %1943 = vmatpush.bf16.xpose.msrb.mxu3 %v1934_v63  ;;  %2020 = vmatpush.bf16.xpose.msrb.mxu2 %v2011_v0 }
 0xed3   :  { %v1927_v20 = vpop.permute.xlu0 %1926 }
 0xed4   :  { %v2084_v3 = vpop.permute.xlu1 %2083 }
 0xed5   :  { %v2089_v21 = vsel %vm160_vm3, %v2084_v3, 0 }
 0xed6   :  { %2098 = vmatpush.bf16.xpose.msra.mxu3 %v2089_v21 }
 0xedb   :  { %v2157_v54 = vpop.permute.xlu0 %2156 }
 0xedc   :  { %v2162_v26 = vsel %vm160_vm3, %v2157_v54, 0  ;;  %v2234_v6 = vpop.permute.xlu1 %2233  ;;  %3420 = vmatmul.msk.bf16.vlgmr.msrb.gmra.mxu2 %vm160_vm3, %v2004_v5 }
 0xedd   :  { %v2239_v7 = vsel %vm160_vm3, %v2234_v6, 0  ;;  %3418 = vmatmul.msk.bf16.vlgmr.msrb.gmra.mxu3 %vm160_vm3, %v1927_v20  ;;  %2171 = vmatpush.bf16.xpose.msra.mxu2 %v2162_v26 }
 0xede   :  { %2248 = vmatpush.bf16.xpose.msrb.mxu3 %v2239_v7 }
 0xee3   :  { %v2311_v8 = vpop.permute.xlu0 %2310 }
 0xee4   :  { %v2316_v11 = vsel %vm160_vm3, %v2311_v8, 0  ;;  %v2309_v13 = vpop.permute.xlu1 %2308 }
 0xee5   :  { %2325 = vmatpush.bf16.xpose.msrb.mxu2 %v2316_v11 }
 0xeec   :  { %3424 = vmatmul.msk.bf16.vlgmr.msra.gmra.mxu2 %vm160_vm3, %v2155_v28 }
 0xeed   :  { %3422 = vmatmul.msk.bf16.vlgmr.msra.gmra.mxu3 %vm160_vm3, %v4439_v42 }
 0xefc   :  { %3428 = vmatmul.msk.bf16.vlgmr.msrb.gmra.mxu2 %vm160_vm3, %v2309_v13 }
 0xefd   :  { %3426 = vmatmul.msk.bf16.vlgmr.msrb.gmra.mxu3 %vm160_vm3, %v2232_v50 }
 0xf4f   :  { %v1868_v15 = vpop.f32.mrf.mxu2 }
 0xf50   :  { %v1795_v48 = vpop.f32.mrf.mxu3  ;;  %v1869_v10 = vadd.f32 %v3688_v16, %v1868_v15 }
 0xf51   :  { %v1796_v18 = vadd.f32 %v3688_v16, %v1795_v48 }
 0xf52   :  { %v1872_v58 = vsel %vm5037_vm5, %v1869_v10, -inf }
 0xf53   :  { %1873 = vmax.xlane.f32.xlu2 %v1872_v58  ;;  %v1799_v19 = vsel %vm5038_vm11, %v1796_v18, -inf  ;;  %vm5046_vm11 = vmmov %vm5037_vm5 }
 0xf54   :  { %1800 = vmax.xlane.f32.xlu0 %v1799_v19 }
 0xf57   :  { %v1870_v22 = vpop.f32.mrf.mxu2 }
 0xf58   :  { %v1797_v23 = vpop.f32.mrf.mxu3 }
 0xf5f   :  { %v2022_v9 = vpop.f32.mrf.mxu2 }
 0xf60   :  { %v1945_v24 = vpop.f32.mrf.mxu3  ;;  %v4480_v25 = vadd.f32 %v3688_v16, %v2022_v9 }
 0xf61   :  { %v1946_v27 = vadd.f32 %v3688_v16, %v1945_v24 }
 0xf62   :  { %v2026_v36 = vsel %vm5039_vm6, %v4480_v25, -inf  ;;  %vm5047_vm6 = vmmov %vm5037_vm5 }
 0xf63   :  { %v1949_v29 = vsel %vm5040_vm13, %v1946_v27, -inf  ;;  %2027 = vmax.xlane.f32.xlu0 %v2026_v36  ;;  %vm5049_vm13 = vcmask 1042432  }
 0xf64   :  { %1950 = vmax.xlane.f32.xlu1 %v1949_v29 }
 0xf67   :  { %v2024_v31 = vpop.f32.mrf.mxu2 }
 0xf68   :  { %v1947_v32 = vpop.f32.mrf.mxu3 }
 0xf6f   :  { %v2173_v33 = vpop.f32.mrf.mxu2 }
 0xf70   :  { %v2100_v34 = vpop.f32.mrf.mxu3  ;;  %v4485_v37 = vadd.f32 %v3688_v16, %v2173_v33 }
 0xf71   :  { %v2101_v38 = vadd.f32 %v3688_v16, %v2100_v34 }
 0xf72   :  { %v2177_v39 = vsel %vm5041_vm7, %v4485_v37, -inf  ;;  %vm5052_vm7 = vmmov %vm5037_vm5 }
 0xf73   :  { %2178 = vmax.xlane.f32.xlu1 %v2177_v39  ;;  %v2104_v30 = vsel %vm5042_vm9, %v2101_v38, -inf  ;;  %vm5053_vm9 = vmmov %vm5037_vm5 }
 0xf74   :  { %2105 = vmax.xlane.f32.xlu2 %v2104_v30 }
 0xf77   :  { %v2175_v43 = vpop.f32.mrf.mxu2  ;;  %1827 = vrot.lane.b32.xlu0 %v4425_v52, %s5043_s2 }
 0xf78   :  { %v2102_v40 = vpop.f32.mrf.mxu3 }
 0xf7f   :  { %v2327_v41 = vpop.f32.mrf.mxu2 }
 0xf80   :  { %v2250_v17 = vpop.f32.mrf.mxu3  ;;  %v2328_v59 = vadd.f32 %v3688_v16, %v2327_v41 }
 0xf81   :  { %v2251_v4 = vadd.f32 %v3688_v16, %v2250_v17 }
 0xf82   :  { %v2331_v35 = vsel %vm5044_vm10, %v2328_v59, -inf  ;;  %vm5054_vm10 = vmmov %vm5037_vm5 }
 0xf83   :  { %2332 = vmax.xlane.f32.xlu2 %v2331_v35  ;;  %v2254_v51 = vsel %vm5045_vm12, %v2251_v4, -inf  ;;  %vm5055_vm12 = vmmov %vm5037_vm5 }
 0xf87   :  { %v2329_v47 = vpop.f32.mrf.mxu2 }
 0xf88   :  { %v2252_v49 = vpop.f32.mrf.mxu3 }
 0xfa1   :  { %2255 = vmax.xlane.f32.xlu0 %v2254_v51 }
 0xfc6   :  { %v1874_v46 = vpop.xlane.xlu2 %1873 }
 0xfc7   :  { %v1875_v53 = vmax.f32 %v1874_v46, -1e+30  ;;  %v1801_v61 = vpop.xlane.xlu0 %1800 }
 0xfc8   :  { %v1802_v56 = vmax.f32 %v1801_v61, -1e+30 }
 0xfc9   :  { %v1876_v57 = vsub.f32 %v1869_v10, %v1875_v53 }
 0xfca   :  { %v1803_v60 = vsub.f32 %v1796_v18, %v1802_v56 }
 0xfcb   :  { %v1877_v1 = vmul.f32 1.442695, %v1876_v57 }
 0xfcc   :  { %v1804_v55 = vmul.f32 1.442695, %v1803_v60 }
 0xfcd   :  { %3612 = vpow2.f32 %v1877_v1 }
 0xfce   :  { %3614 = vpow2.f32 %v1804_v55 }
 0xfd3   :  { %v4494_v62 = vpop.eup %3612 }
 0xfd4   :  { %v4496_v63 = vpop.eup %3614  ;;  %v1879_v2 = vsel %vm5037_vm5, %v4494_v62, 0.0 }
 0xfd5   :  { %v1806_v0 = vsel %vm5046_vm11, %v4496_v63, 0.0  ;;  %1880 = vadd.xlane.f32.xlu0 %v1879_v2 }
 0xfd6   :  { %1807 = vadd.xlane.f32.xlu1 %v1806_v0  ;;  %v2028_v54 = vpop.xlane.xlu0 %2027 }
 0xfd7   :  { %v1951_v20 = vpop.xlane.xlu1 %1950  ;;  %v2029_v15 = vmax.f32 %v2028_v54, -1e+30 }
 0xfd8   :  { %v1952_v3 = vmax.f32 %v1951_v20, -1e+30 }
 0xfd9   :  { %v2030_v16 = vsub.f32 %v4480_v25, %v2029_v15 }
 0xfda   :  { %v1953_v21 = vsub.f32 %v1946_v27, %v1952_v3 }
 0xfdb   :  { %v2031_v10 = vmul.f32 1.442695, %v2030_v16 }
 0xfdc   :  { %v1954_v5 = vmul.f32 1.442695, %v1953_v21 }
 0xfde   :  { %3616 = vpow2.f32 %v1954_v5 }
 0xfe4   :  { %v4502_v26 = vpop.eup %3616 }
 0xfe5   :  { %v1956_v6 = vsel %vm5047_vm6, %v4502_v26, 0.0 }
 0xfe6   :  { %1957 = vadd.xlane.f32.xlu2 %v1956_v6  ;;  %v2179_v22 = vpop.xlane.xlu1 %2178 }
 0xfe7   :  { %v2106_v11 = vpop.xlane.xlu2 %2105  ;;  %v2180_v24 = vmax.f32 %v2179_v22, -1e+30 }
 0xfe8   :  { %v2107_v18 = vmax.f32 %v2106_v11, -1e+30 }
 0xfe9   :  { %v1828_v7 = vpop.permute.xlu0 %1827  ;;  %2054 = vrot.lane.b32.xlu0 %v4425_v52, %s5048_s12  ;;  %v2181_v25 = vsub.f32 %v4485_v37, %v2180_v24 }
 0xfea   :  { %v1833_v8 = vsel %vm5049_vm13, %v1828_v7, 0  ;;  %v2108_v19 = vsub.f32 %v2101_v38, %v2107_v18 }
 0xfeb   :  { %1842 = vmatpush.bf16.msra.mxu1 %v1833_v8  ;;  %v2182_v33 = vmul.f32 1.442695, %v2181_v25 }
 0xfec   :  { %v2109_v9 = vmul.f32 1.442695, %v2108_v19 }
 0xfef   :  { %1977 = vrot.lane.b32.xlu1 %v4425_v52, %s5050_s14 }
 0xff6   :  { %v2333_v28 = vpop.xlane.xlu2 %2332 }
 0xff7   :  { %v2334_v13 = vmax.f32 %v2333_v28, -1e+30 }
 0xff9   :  { %v2335_v50 = vsub.f32 %v2328_v59, %v2334_v13 }
 0xffb   :  { %v2336_v48 = vmul.f32 1.442695, %v2335_v50 }
 0xffd   :  { %3618 = vpow2.f32 %v2336_v48 }
 0xffe   :  { %1900 = vrot.lane.b32.xlu2 %v4425_v52, %s5051_s22  ;;  %3620 = vpow2.f32 %v2031_v10 }
 0xfff   :  { %3622 = vpow2.f32 %v2109_v9 }
0x1003   :  { %v4514_v58 = vpop.eup %3618 }
0x1004   :  { %v2338_v23 = vsel %vm5052_vm7, %v4514_v58, 0.0  ;;  %v4518_v27 = vpop.eup %3620 }
0x1005   :  { %v2033_v31 = vsel %vm5053_vm9, %v4518_v27, 0.0  ;;  %v4523_v34 = vpop.eup %3622 }
0x1006   :  { %v2111_v38 = vsel %vm5054_vm10, %v4523_v34, 0.0 }
0x1013   :  { %2339 = vadd.xlane.f32.xlu0 %v2338_v23 }
0x1014   :  { %v2256_v52 = vpop.xlane.xlu0 %2255 }
0x1015   :  { %v2257_v36 = vmax.f32 %v2256_v52, -1e+30 }
0x1017   :  { %v2258_v29 = vsub.f32 %v2251_v4, %v2257_v36 }
0x1019   :  { %v2259_v32 = vmul.f32 1.442695, %v2258_v29  ;;  %2034 = vadd.xlane.f32.xlu1 %v2033_v31 }
0x101b   :  { %3624 = vpow2.f32 %v2259_v32 }
0x101c   :  { %3626 = vpow2.f32 %v2182_v33 }
0x1021   :  { %2112 = vadd.xlane.f32.xlu1 %v2111_v38  ;;  %v4527_v39 = vpop.eup %3624 }
0x1022   :  { %v4529_v30 = vpop.eup %3626  ;;  %v2261_v37 = vsel %vm5055_vm12, %v4527_v39, 0.0 }
0x1023   :  { %v2184_v43 = vsel %vm5037_vm5, %v4529_v30, 0.0 }
0x1027   :  { %2262 = vadd.xlane.f32.xlu2 %v2261_v37 }
0x1029   :  { %2185 = vadd.xlane.f32.xlu1 %v2184_v43 }
0x103f   :  { %2359 = vrot.lane.b32.xlu2 %v4439_v42, %s5048_s12  ;;  %s5075_s12 = sld [smem:[#allocation18_spill]] }
0x1042   :  { %2132 = vrot.lane.b32.xlu1 %v4439_v42, %s5043_s2  ;;  %s5077_s2 = sld [smem:[#allocation12_spill]] }
0x1048   :  { %v1881_v40 = vpop.xlane.xlu0 %1880 }
0x1049   :  { %vm1882_vm11 = vcmp.eq.f32.partialorder %v1881_v40, 0.0  ;;  %v1808_v41 = vpop.xlane.xlu1 %1807 }
0x104a   :  { %v1883_v17 = vsel %vm1882_vm11, 1.0, %v1881_v40  ;;  %vm1809_vm6 = vcmp.eq.f32.partialorder %v1808_v41, 0.0  ;;  %2205 = vrot.lane.b32.xlu1 %v4439_v42, %s5051_s22  ;;  %s5078_s22 = sld [smem:[#allocation15_spill]] }
0x104b   :  { %3628 = vrcp.f32 %v1883_v17  ;;  %v1810_v59 = vsel %vm1809_vm6, 1.0, %v1808_v41  ;;  %vm1889_vm7 = vweird.f32 %v1883_v17  ;;  %v1893_v61 = vand.u32 2147483647, %v1883_v17 }
0x104c   :  { %3630 = vrcp.f32 %v1810_v59  ;;  %v1895_v56 = vand.u32 2147483648, %v1883_v17  ;;  %v1822_v57 = vand.u32 2147483648, %v1810_v59  ;;  %v1820_v55 = vand.u32 2147483647, %v1810_v59 }
0x104d   :  { %vm1816_vm12 = vweird.f32 %v1810_v59  ;;  %vm1894_vm6 = vcmp.eq.f32.partialorder %v1893_v61, 8.507059e+37 }
0x104e   :  { %v1823_v3 = vor.u32 1.1754944e-38, %v1822_v57  ;;  %vm1821_vm4 = vcmp.eq.f32.partialorder %v1820_v55, 8.507059e+37 }
0x1051   :  { %v3629_v35 = vpop.eup %3628 }
0x1052   :  { %v1885_v47 = vmul.f32 %v3629_v35, %v1883_v17  ;;  %2282 = vrot.lane.b32.xlu1 %v4439_v42, %s5050_s14  ;;  %v3631_v49 = vpop.eup %3630  ;;  %vm1890_vm13 = vweird.f32 %v3629_v35  ;;  %v1896_v42 = vor.u32 1.1754944e-38, %v1895_v56  ;;  %s5071_s14 = sld [smem:[#allocation10_spill]] }
0x1053   :  { %v1812_v51 = vmul.f32 %v3631_v49, %v1810_v59  ;;  %vm1817_vm9 = vweird.f32 %v3631_v49  ;;  %vm1891_vm10 = vmor %vm1889_vm7, %vm1890_vm13  ;;  %vm5056_vm13 = vcmask 1042432   ;;  %vm5057_vm7 = vcmask 48128  }
0x1054   :  { %v1886_v4 = vsub.f32 1.0, %v1885_v47  ;;  %vm1818_vm11 = vmor %vm1816_vm12, %vm1817_vm9 }
0x1055   :  { %v1813_v53 = vsub.f32 1.0, %v1812_v51  ;;  %vm5058_vm9 = vmmov %vm5056_vm13 }
0x1056   :  { %v1887_v46 = vmul.f32 %v3629_v35, %v1886_v4 }
0x1057   :  { %v1814_v1 = vmul.f32 %v3631_v49, %v1813_v53 }
0x1058   :  { %v1888_v60 = vadd.f32 %v3629_v35, %v1887_v46 }
0x1059   :  { %v1958_v2 = vpop.xlane.xlu2 %1957  ;;  %v1815_v20 = vadd.f32 %v3631_v49, %v1814_v1 }
0x105a   :  { %v1892_v0 = vsel %vm1891_vm10, %v3629_v35, %v1888_v60  ;;  %vm1959_vm5 = vcmp.eq.f32.partialorder %v1958_v2, 0.0  ;;  %vm5059_vm10 = vmmov %vm5058_vm9 }
0x105b   :  { %v1960_v21 = vsel %vm1959_vm5, 1.0, %v1958_v2  ;;  %v1819_v5 = vsel %vm1818_vm11, %v3631_v49, %v1815_v20  ;;  %v1897_v54 = vsel %vm1894_vm6, %v1896_v42, %v1892_v0  ;;  %v2055_v11 = vpop.permute.xlu0 %2054 }
0x105c   :  { %3632 = vrcp.f32 %v1960_v21  ;;  %v1824_v6 = vsel %vm1821_vm4, %v1823_v3, %v1819_v5  ;;  %v1898_v8 = vmul.f32 %v4494_v62, %v1897_v54  ;;  %v2060_v18 = vsel %vm5059_vm10, %v2055_v11, 0  ;;  %vm5060_vm4 = vmmov %vm5057_vm7 }
0x105d   :  { %v1825_v7 = vmul.f32 %v4496_v63, %v1824_v6  ;;  %v1972_v62 = vand.u32 2147483648, %v1960_v21  ;;  %v1970_v23 = vand.u32 2147483647, %v1960_v21  ;;  %vm1966_vm5 = vweird.f32 %v1960_v21 }
0x105e   :  { %v1899_v63 = vpack.c.bf16 %v1898_v8, %v1898_v8 }
0x105f   :  { %v1826_v28 = vpack.c.bf16 %v1825_v7, %v1825_v7  ;;  %v1973_v24 = vor.u32 1.1754944e-38, %v1972_v62  ;;  %vm1971_vm6 = vcmp.eq.f32.partialorder %v1970_v23, 8.507059e+37 }
0x1061   :  { %v1901_v13 = vpop.permute.xlu2 %1900  ;;  %v1978_v50 = vpop.permute.xlu1 %1977  ;;  %3415 = vmatmul.msk.bf16.vlgmr.msra.gmra.mxu1 %vm5057_vm7, %v1826_v28 }
0x1062   :  { %v3633_v15 = vpop.eup %3632  ;;  %v1906_v48 = vsel %vm5056_vm13, %v1901_v13, 0  ;;  %v1983_v16 = vsel %vm5058_vm9, %v1978_v50, 0  ;;  %vm5061_vm13 = vmmov %vm5060_vm4 }
0x1063   :  { %v1962_v10 = vmul.f32 %v3633_v15, %v1960_v21  ;;  %1915 = vmatpush.bf16.msrb.mxu0 %v1906_v48  ;;  %1992 = vmatpush.bf16.msrb.mxu1 %v1983_v16  ;;  %vm1967_vm12 = vweird.f32 %v3633_v15 }
0x1064   :  { %vm1968_vm11 = vmor %vm1966_vm5, %vm1967_vm12 }
0x1065   :  { %v1963_v19 = vsub.f32 1.0, %v1962_v10 }
0x1066   :  { %3417 = vmatmul.msk.bf16.vlgmr.msrb.gmra.mxu0 %vm5060_vm4, %v1899_v63 }
0x1067   :  { %2069 = vmatpush.bf16.msra.mxu0 %v2060_v18  ;;  %v1964_v22 = vmul.f32 %v3633_v15, %v1963_v19 }
0x1069   :  { %v1965_v9 = vadd.f32 %v3633_v15, %v1964_v22 }
0x106b   :  { %v1969_v52 = vsel %vm1968_vm11, %v3633_v15, %v1965_v9 }
0x106c   :  { %v1974_v36 = vsel %vm1971_vm6, %v1973_v24, %v1969_v52 }
0x106d   :  { %v1975_v25 = vmul.f32 %v4502_v26, %v1974_v36 }
0x106f   :  { %v1976_v29 = vpack.c.bf16 %v1975_v25, %v1975_v25 }
0x1071   :  { %3419 = vmatmul.msk.bf16.vlgmr.msrb.gmra.mxu1 %vm5061_vm13, %v1976_v29 }
0x1086   :  { %v2340_v55 = vpop.xlane.xlu0 %2339 }
0x108c   :  { %v2035_v31 = vpop.xlane.xlu1 %2034 }
0x108d   :  { %vm2036_vm7 = vcmp.eq.f32.partialorder %v2035_v31, 0.0 }
0x108e   :  { %v2037_v32 = vsel %vm2036_vm7, 1.0, %v2035_v31  ;;  %vm2341_vm7 = vcmp.eq.f32.partialorder %v2340_v55, 0.0 }
0x108f   :  { %3634 = vrcp.f32 %v2037_v32  ;;  %v2047_v41 = vand.u32 2147483647, %v2037_v32  ;;  %v2049_v17 = vand.u32 2147483648, %v2037_v32  ;;  %vm2043_vm4 = vweird.f32 %v2037_v32 }
0x1090   :  { %v4554_v42 = vsel %vm2341_vm7, 1.0, %v2340_v55 }
0x1091   :  { %vm2048_vm5 = vcmp.eq.f32.partialorder %v2047_v41, 8.507059e+37  ;;  %v2050_v4 = vor.u32 1.1754944e-38, %v2049_v17 }
0x1094   :  { %v2113_v33 = vpop.xlane.xlu1 %2112 }
0x1095   :  { %v3635_v38 = vpop.eup %3634  ;;  %vm2114_vm9 = vcmp.eq.f32.partialorder %v2113_v33, 0.0 }
0x1096   :  { %v2039_v37 = vmul.f32 %v3635_v38, %v2037_v32  ;;  %v2115_v43 = vsel %vm2114_vm9, 1.0, %v2113_v33  ;;  %vm2044_vm10 = vweird.f32 %v3635_v38 }
0x1097   :  { %3636 = vrcp.f32 %v2115_v43  ;;  %vm2045_vm12 = vmor %vm2043_vm4, %vm2044_vm10  ;;  %v2127_v54 = vand.u32 2147483648, %v2115_v43  ;;  %vm2121_vm10 = vweird.f32 %v2115_v43 }
0x1098   :  { %v2040_v40 = vsub.f32 1.0, %v2039_v37 }
0x1099   :  { %v2128_v11 = vor.u32 1.1754944e-38, %v2127_v54 }
0x109a   :  { %v2041_v59 = vmul.f32 %v3635_v38, %v2040_v40  ;;  %v2263_v35 = vpop.xlane.xlu2 %2262 }
0x109b   :  { %vm2264_vm11 = vcmp.eq.f32.partialorder %v2263_v35, 0.0 }
0x109c   :  { %v2042_v26 = vadd.f32 %v3635_v38, %v2041_v59  ;;  %v2186_v47 = vpop.xlane.xlu1 %2185  ;;  %v2265_v60 = vsel %vm2264_vm11, 1.0, %v2263_v35  ;;  %v2352_v35 = vand.u32 2147483647, %v4554_v42 }
0x109d   :  { %v3637_v49 = vpop.eup %3636  ;;  %vm2187_vm6 = vcmp.eq.f32.partialorder %v2186_v47, 0.0  ;;  %v2275_v25 = vand.u32 2147483647, %v2265_v60 }
0x109e   :  { %v2046_v51 = vsel %vm2045_vm12, %v3635_v38, %v2042_v26  ;;  %v2117_v46 = vmul.f32 %v3637_v49, %v2115_v43  ;;  %v2188_v61 = vsel %vm2187_vm6, 1.0, %v2186_v47  ;;  %vm2122_vm9 = vweird.f32 %v3637_v49 }
0x109f   :  { %v2051_v53 = vsel %vm2048_vm5, %v2050_v4, %v2046_v51  ;;  %3638 = vrcp.f32 %v2188_v61  ;;  %vm2123_vm4 = vmor %vm2121_vm10, %vm2122_vm9  ;;  %v2200_v48 = vand.u32 2147483648, %v2188_v61  ;;  %vm2194_vm11 = vweird.f32 %v2188_v61 }
0x10a0   :  { %v2052_v56 = vmul.f32 %v4518_v27, %v2051_v53  ;;  %v2118_v57 = vsub.f32 1.0, %v2117_v46  ;;  %3640 = vrcp.f32 %v2265_v60  ;;  %v2125_v27 = vand.u32 2147483647, %v2115_v43 }
0x10a1   :  { %3642 = vrcp.f32 %v4554_v42  ;;  %v2198_v10 = vand.u32 2147483647, %v2188_v61  ;;  %v2201_v23 = vor.u32 1.1754944e-38, %v2200_v48  ;;  %vm5063_vm10 = vcmask 48128   ;;  %v3431_v48 = vld [vmem:[%s5070_s24 + $0x28] sm:$0xff] }
0x10a2   :  { %v2053_v1 = vpack.c.bf16 %v2052_v56, %v2052_v56  ;;  %v2119_v2 = vmul.f32 %v3637_v49, %v2118_v57  ;;  %vm2126_vm12 = vcmp.eq.f32.partialorder %v2125_v27, 8.507059e+37  ;;  %v2360_v31 = vpop.permute.xlu2 %2359 }
0x10a3   :  { %vm2199_vm7 = vcmp.eq.f32.partialorder %v2198_v10, 8.507059e+37 }
0x10a4   :  { %3421 = vmatmul.msk.bf16.vlgmr.msra.gmra.mxu0 %vm5061_vm13, %v2053_v1  ;;  %v2120_v3 = vadd.f32 %v3637_v49, %v2119_v2  ;;  %vm5062_vm13 = vcmask 1042432  }
0x10a5   :  { %v3639_v0 = vpop.eup %3638 }
0x10a6   :  { %v2190_v20 = vmul.f32 %v3639_v0, %v2188_v61  ;;  %v3641_v5 = vpop.eup %3640  ;;  %v2124_v6 = vsel %vm2123_vm4, %v3637_v49, %v2120_v3  ;;  %vm2195_vm5 = vweird.f32 %v3639_v0  ;;  %vm2271_vm4 = vweird.f32 %v2265_v60 }
0x10a7   :  { %v2267_v7 = vmul.f32 %v3641_v5, %v2265_v60  ;;  %v2129_v28 = vsel %vm2126_vm12, %v2128_v11, %v2124_v6  ;;  %v3643_v15 = vpop.eup %3642  ;;  %vm2196_vm6 = vmor %vm2194_vm11, %vm2195_vm5  ;;  %vm2272_vm9 = vweird.f32 %v3641_v5 }
0x10a8   :  { %v2191_v21 = vsub.f32 1.0, %v2190_v20  ;;  %v2130_v16 = vmul.f32 %v4523_v34, %v2129_v28  ;;  %v2344_v63 = vmul.f32 %v3643_v15, %v4554_v42  ;;  %v2277_v34 = vand.u32 2147483648, %v2265_v60  ;;  %vm2273_vm12 = vmor %vm2271_vm4, %vm2272_vm9  ;;  %v3432_v28 = vld [vmem:[%s5070_s24 + $0x30] sm:$0xff] }
0x10a9   :  { %v2268_v13 = vsub.f32 1.0, %v2267_v7  ;;  %vm5064_vm5 = vmmov %vm5062_vm13  ;;  %vm2348_vm9 = vweird.f32 %v4554_v42 }
0x10aa   :  { %v2192_v8 = vmul.f32 %v3639_v0, %v2191_v21  ;;  %v2131_v9 = vpack.c.bf16 %v2130_v16, %v2130_v16  ;;  %v2345_v52 = vsub.f32 1.0, %v2344_v63  ;;  %v2278_v43 = vor.u32 1.1754944e-38, %v2277_v34  ;;  %vm5065_vm11 = vmmov %vm5064_vm5 }
0x10ab   :  { %v2269_v19 = vmul.f32 %v3641_v5, %v2268_v13  ;;  %v2365_v40 = vsel %vm5065_vm11, %v2360_v31, 0  ;;  %vm5067_vm4 = vmmov %vm5064_vm5  ;;  %v3433_v13 = vld [vmem:[%s5070_s24 + $0x38] sm:$0xff] }
0x10ac   :  { %v2193_v50 = vadd.f32 %v3639_v0, %v2192_v8  ;;  %v2346_v33 = vmul.f32 %v3643_v15, %v2345_v52 }
0x10ad   :  { %v2270_v36 = vadd.f32 %v3641_v5, %v2269_v19 }
0x10ae   :  { %v2197_v62 = vsel %vm2196_vm6, %v3639_v0, %v2193_v50  ;;  %vm2276_vm6 = vcmp.eq.f32.partialorder %v2275_v25, 8.507059e+37  ;;  %v2347_v59 = vadd.f32 %v3643_v15, %v2346_v33  ;;  %v3430_v50 = vld [vmem:[%s5070_s24 + $0x20] sm:$0xff]  ;;  %v3447_v33 = vld [vmem:[%s5073_s5 + $0x38] sm:$0xff]  ;;  %s5079_s24 = sld [smem:[#allocation17_spill]] }
0x10af   :  { %v2202_v24 = vsel %vm2199_vm7, %v2201_v23, %v2197_v62  ;;  %v2274_v38 = vsel %vm2273_vm12, %v3641_v5, %v2270_v36  ;;  %vm5066_vm7 = vmmov %vm5063_vm10  ;;  %vm2353_vm12 = vcmp.eq.f32.partialorder %v2352_v35, 8.507059e+37  ;;  %v2395_v16 = vpack.c.bf16 %v3431_v48, %v3430_v50  ;;  %v3522_v23 = vld [vmem:[%s5071_s14 + $0x1] ss:$0 sm:$0xff] }
0x10b0   :  { %v2203_v29 = vmul.f32 %v4529_v30, %v2202_v24  ;;  %v2279_v17 = vsel %vm2276_vm6, %v2278_v43, %v2274_v38  ;;  %v2354_v30 = vand.u32 2147483648, %v4554_v42  ;;  %vm5072_vm6 = vcmask 257024  }
0x10b1   :  { %v2280_v26 = vmul.f32 %v4527_v39, %v2279_v17 }
0x10b2   :  { %v2204_v41 = vpack.c.bf16 %v2203_v29, %v2203_v29  ;;  %v2355_v51 = vor.u32 1.1754944e-38, %v2354_v30 }
0x10b3   :  { %v2281_v46 = vpack.c.bf16 %v2280_v26, %v2280_v26 }
0x10b4   :  { %v2133_v18 = vpop.permute.xlu1 %2132 }
0x10b5   :  { %v2138_v22 = vsel %vm5062_vm13, %v2133_v18, 0  ;;  %vm2349_vm13 = vweird.f32 %v3643_v15 }
0x10b6   :  { %2147 = vmatpush.bf16.msra.mxu1 %v2138_v22 }
0x10b9   :  { %3423 = vmatmul.msk.bf16.vlgmr.msra.gmra.mxu1 %vm5063_vm10, %v2131_v9  ;;  %vm2350_vm10 = vmor %vm2348_vm9, %vm2349_vm13 }
0x10ba   :  { %v2351_v49 = vsel %vm2350_vm10, %v3643_v15, %v2347_v59  ;;  %v2396_v15 = vpack.c.bf16 %v3433_v13, %v3432_v28  ;;  %vm5074_vm13 = vmmov %vm5072_vm6 }
0x10bb   :  { %v2356_v53 = vsel %vm2353_vm12, %v2355_v51, %v2351_v49 }
0x10bc   :  { %v2206_v32 = vpop.permute.xlu1 %2205  ;;  %v2357_v61 = vmul.f32 %v4514_v58, %v2356_v53  ;;  %2409 = vmatpush.bf16.msra.mxu3 %v2396_v15  ;;  %v3523_v15 = vld [vmem:[%s5077_s2 + $0x1] ss:$0 sm:$0xff] }
0x10bd   :  { %v2211_v37 = vsel %vm5064_vm5, %v2206_v32, 0  ;;  %vm5068_vm5 = vmmov %vm5066_vm7  ;;  %v3446_v32 = vld [vmem:[%s5073_s5 + $0x30] sm:$0xff] }
0x10be   :  { %2220 = vmatpush.bf16.msrb.mxu0 %v2211_v37  ;;  %v2358_v56 = vpack.c.bf16 %v2357_v61, %v2357_v61  ;;  %vm5069_vm11 = vmmov %vm5068_vm5  ;;  %v2515_v38 = vpack.c.bf16 %v3447_v33, %v3446_v32 }
0x10c0   :  { %2410 = vmatpush.bf16.msra.mxu3 %v2395_v16  ;;  %2525 = vmatpush.bf16.msra.mxu2 %v2515_v38 }
0x10c1   :  { %3425 = vmatmul.msk.bf16.vlgmr.msrb.gmra.mxu0 %vm5066_vm7, %v2204_v41 }
0x10c2   :  { %2374 = vmatpush.bf16.msra.mxu0 %v2365_v40 }
0x10c4   :  { %v2283_v47 = vpop.permute.xlu1 %2282 }
0x10c5   :  { %v2288_v4 = vsel %vm5067_vm4, %v2283_v47, 0 }
0x10c6   :  { %2297 = vmatpush.bf16.msrb.mxu1 %v2288_v4  ;;  %v3441_v4 = vld [vmem:[%s5075_s12 + $0x38] sm:$0xff] }
0x10c9   :  { %3427 = vmatmul.msk.bf16.vlgmr.msrb.gmra.mxu1 %vm5068_vm5, %v2281_v46 }
0x10d1   :  { %3429 = vmatmul.msk.bf16.vlgmr.msra.gmra.mxu0 %vm5069_vm11, %v2358_v56  ;;  %v3438_v56 = vld [vmem:[%s5075_s12 + $0x20] sm:$0xff] }
0x10de   :  { %v1844_v57 = vpop.f32.mrf.mxu1 }
0x10df   :  { %1848 = vst.msk [vmem:[#allocation2] sm:$0x3f] %vm232_vm14, %v1844_v57  ;;  %v3439_v57 = vld [vmem:[%s5075_s12 + $0x28] sm:$0xff] }
0x10e3   :  { %v1917_v39 = vpop.f32.mrf.mxu0 }
0x10e4   :  { %1922 = vrot.lane.b32.xlu1 %v1917_v39, %s5031_s1  ;;  %v2485_v39 = vpack.c.bf16 %v3439_v57, %v3438_v56 }
0x10e6   :  { %v1846_v60 = vpop.f32.mrf.mxu1 }
0x10e7   :  { %v3525_v60 = vld [vmem:[%s5076_s4 + $0x1] ss:$0 sm:$0xff] }
0x10eb   :  { %v1919_v1 = vpop.f32.mrf.mxu0 }
0x10ee   :  { %v1994_v55 = vpop.f32.mrf.mxu1 }
0x10ef   :  { %1999 = vrot.lane.b32.xlu1 %v1994_v55, %s5032_s3 }
0x10f6   :  { %v1996_v2 = vpop.f32.mrf.mxu1 }
0x1121   :  { %v2071_v0 = vpop.f32.mrf.mxu0 }
0x1122   :  { %2076 = vrot.lane.b32.xlu2 %v2071_v0, %s5033_s21 }
0x1129   :  { %v2073_v20 = vpop.f32.mrf.mxu0 }
0x1136   :  { %v2149_v58 = vpop.f32.mrf.mxu1 }
0x1137   :  { %2153 = vst.msk [vmem:[#allocation2 + $0x6] sm:$0x3f] %vm232_vm14, %v2149_v58 }
0x113e   :  { %v2151_v42 = vpop.f32.mrf.mxu1  ;;  %v2222_v3 = vpop.f32.mrf.mxu0 }
0x113f   :  { %2227 = vrot.lane.b32.xlu0 %v2222_v3, %s5031_s1 }
0x1146   :  { %v2224_v21 = vpop.f32.mrf.mxu0  ;;  %v2299_v5 = vpop.f32.mrf.mxu1 }
0x1147   :  { %2304 = vrot.lane.b32.xlu1 %v2299_v5, %s5032_s3 }
0x114e   :  { %v2301_v54 = vpop.f32.mrf.mxu1  ;;  %v2376_v27 = vpop.f32.mrf.mxu0 }
0x114f   :  { %2381 = vrot.lane.b32.xlu0 %v2376_v27, %s5033_s21 }
0x1156   :  { %v2378_v6 = vpop.f32.mrf.mxu0  ;;  %v1923_v7 = vpop.permute.xlu1 %1922 }
0x1157   :  { %1925 = vst.msk [vmem:[#allocation2] sm:$0x3f] %vm310_vm15, %v1923_v7 }
0x1161   :  { %v2000_v8 = vpop.permute.xlu1 %1999 }
0x1162   :  { %2002 = vst.msk [vmem:[#allocation2] sm:$0x3f] %vm388_vm0, %v2000_v8 }
0x117c   :  { %v2077_v11 = vpop.permute.xlu2 %2076 }
0x117d   :  { %2079 = vst.msk [vmem:[#allocation2] sm:$0x3f] %vm466_vm1, %v2077_v11 }
0x11b1   :  { %v2228_v10 = vpop.permute.xlu0 %2227 }
0x11b2   :  { %2230 = vst.msk [vmem:[#allocation2 + $0x6] sm:$0x3f] %vm310_vm15, %v2228_v10 }
0x11b9   :  { %v2305_v18 = vpop.permute.xlu1 %2304 }
0x11ba   :  { %2307 = vst.msk [vmem:[#allocation2 + $0x6] sm:$0x3f] %vm388_vm0, %v2305_v18  ;;  %v3524_v18 = vld [vmem:[%s5078_s22 + $0x1] ss:$0 sm:$0xff] }
0x11c1   :  { %v2382_v63 = vpop.permute.xlu0 %2381 }
0x11c2   :  { %2384 = vst.msk [vmem:[#allocation2 + $0x6] sm:$0x3f] %vm466_vm1, %v2382_v63 }
0x11c9   :  { %v2385_v19 = vld [vmem:[#allocation2] sm:$0xff]  ;;  %v2386_v62 = vld [vmem:[#allocation2 + $0x8] sm:$0xf] }
0x11ca   :  { %v2394_v22 = vpack.c.bf16 %v2386_v62, %v2385_v19 }
0x11cc   :  { %3435 = vmatmul.msk.bf16.vlgmr.msra.gmra.mxu3 %vm138_vm2, %v2394_v22 }
0x124f   :  { %v2412_v9 = vpop.f32.mrf.mxu3 }
0x1250   :  { %v2413_v24 = vadd.f32 %v3522_v23, %v2412_v9 }
0x1252   :  { %v2417_v52 = vadd.f32 %v2413_v24, %v4415_v44  ;;  %v3444_v44 = vld [vmem:[%s5073_s5 + $0x20] sm:$0xff] }
0x1254   :  { %v2423_v36 = vsel %vm138_vm2, %v2417_v52, 0.0 }
0x1255   :  { %2424 = vadd.xlane.f32.xlu1 %v2423_v36 }
0x1257   :  { %v2414_v34 = vpop.f32.mrf.mxu3 }
0x1258   :  { %v2415_v25 = vadd.f32 %v3522_v23, %v2414_v34 }
0x125a   :  { %v2418_v29 = vadd.f32 %v2415_v25, %v4417_v45  ;;  %v3445_v45 = vld [vmem:[%s5073_s5 + $0x28] sm:$0xff]  ;;  %v3526_v25 = vld [vmem:[%s5079_s24 + $0x1] ss:$0 sm:$0xff]  ;;  %s5088_s5 = sld [smem:[#allocation22_spill]] }
0x125b   :  { %v2514_v37 = vpack.c.bf16 %v3445_v45, %v3444_v44 }
0x125c   :  { %v2426_v31 = vsel %vm5072_vm6, %v2418_v29, 0.0 }
0x125d   :  { %2427 = vadd.xlane.f32.xlu2 %v2426_v31  ;;  %2526 = vmatpush.bf16.msra.mxu2 %v2514_v37 }
0x1260   :  { %3449 = vmatmul.msk.bf16.vlgmr.msra.gmra.mxu2 %vm138_vm2, %v4123_v12  ;;  %v3440_v12 = vld [vmem:[%s5075_s12 + $0x30] sm:$0xff] }
0x1261   :  { %v2486_v46 = vpack.c.bf16 %v3441_v4, %v3440_v12 }
0x1263   :  { %2499 = vmatpush.bf16.msra.mxu1 %v2486_v46 }
0x1267   :  { %2500 = vmatpush.bf16.msra.mxu1 %v2485_v39 }
0x12c8   :  { %v2425_v43 = vpop.xlane.xlu1 %2424 }
0x12c9   :  { %v2429_v40 = vmul.f32 %v2425_v43, %v4127_v14 }
0x12cb   :  { %v2431_v41 = vsub.f32 %v2417_v52, %v2429_v40 }
0x12cd   :  { %v2433_v17 = vmul.f32 %v2431_v41, %v2431_v41 }
0x12cf   :  { %v2435_v59 = vsel %vm138_vm2, %v2433_v17, 0.0 }
0x12d0   :  { %v2428_v30 = vpop.xlane.xlu2 %2427  ;;  %2436 = vadd.xlane.f32.xlu0 %v2435_v59 }
0x12d1   :  { %v2430_v35 = vmul.f32 %v2428_v30, %v4127_v14 }
0x12d3   :  { %v2432_v26 = vsub.f32 %v2418_v29, %v2430_v35 }
0x12d5   :  { %v2434_v47 = vmul.f32 %v2432_v26, %v2432_v26 }
0x12d7   :  { %v2438_v49 = vsel %vm5074_vm13, %v2434_v47, 0.0 }
0x12d8   :  { %2439 = vadd.xlane.f32.xlu1 %v2438_v49 }
0x12e3   :  { %v2528_v1 = vpop.f32.mrf.mxu2 }
0x12e4   :  { %v2529_v0 = vadd.f32 %v3525_v60, %v2528_v1 }
0x12e6   :  { %v4642_v42 = vpack.c.bf16 %v2529_v0, %v2529_v0 }
0x12e8   :  { %2608 = vrot.lane.b32.xlu2 %v4642_v42, %s5022_s27  ;;  %v2539_v21 = vsel %vm160_vm3, %v4642_v42, 0 }
0x12e9   :  { %2548 = vmatpush.bf16.xpose.msrb.mxu0 %v2539_v21 }
0x12eb   :  { %v2530_v36 = vpop.f32.mrf.mxu2 }
0x12ec   :  { %v2531_v34 = vadd.f32 %v3525_v60, %v2530_v36 }
0x12ee   :  { %v4668_v33 = vpack.c.bf16 %v2531_v34, %v2531_v34 }
0x12f0   :  { %v2845_v45 = vsel %vm160_vm3, %v4668_v33, 0 }
0x12f1   :  { %2685 = vrot.lane.b32.xlu1 %v4642_v42, %s5021_s6 }
0x1342   :  { %v2609_v29 = vpop.permute.xlu2 %2608 }
0x1343   :  { %v2437_v51 = vpop.xlane.xlu0 %2436  ;;  %v2614_v31 = vsel %vm160_vm3, %v2609_v29, 0 }
0x1344   :  { %v2441_v53 = vmul.f32 %v2437_v51, %v4127_v14  ;;  %2623 = vmatpush.bf16.xpose.msrb.mxu1 %v2614_v31 }
0x1346   :  { %v2443_v61 = vadd.f32 1e-05, %v2441_v53 }
0x1348   :  { %3644 = vrsqrt.f32 %v2443_v61  ;;  %vm2451_vm9 = vweird.f32 %v2443_v61 }
0x134b   :  { %v2440_v55 = vpop.xlane.xlu1 %2439 }
0x134c   :  { %v2442_v2 = vmul.f32 %v2440_v55, %v4127_v14 }
0x134e   :  { %v3645_v20 = vpop.eup %3644  ;;  %v2444_v58 = vadd.f32 1e-05, %v2442_v2 }
0x134f   :  { %v2446_v3 = vmul.f32 %v3645_v20, %v2443_v61  ;;  %vm2452_vm7 = vweird.f32 %v3645_v20 }
0x1350   :  { %3646 = vrsqrt.f32 %v2444_v58  ;;  %vm2453_vm10 = vmor %vm2451_vm9, %vm2452_vm7  ;;  %vm2461_vm12 = vweird.f32 %v2444_v58 }
0x1351   :  { %v2447_v5 = vmul.f32 %v3645_v20, %v2446_v3 }
0x1353   :  { %v2448_v54 = vmul.f32 0.5, %v2447_v5 }
0x1355   :  { %v2449_v27 = vsub.f32 1.5, %v2448_v54 }
0x1356   :  { %v3647_v6 = vpop.eup %3646 }
0x1357   :  { %v2450_v7 = vmul.f32 %v3645_v20, %v2449_v27  ;;  %v2456_v8 = vmul.f32 %v3647_v6, %v2444_v58  ;;  %vm2462_vm4 = vweird.f32 %v3647_v6 }
0x1358   :  { %vm2463_vm5 = vmor %vm2461_vm12, %vm2462_vm4 }
0x1359   :  { %v2457_v11 = vmul.f32 %v3647_v6, %v2456_v8  ;;  %v2454_v28 = vsel %vm2453_vm10, %v3645_v20, %v2450_v7 }
0x135a   :  { %v2465_v48 = vmul.f32 %v2454_v28, %v2431_v41 }
0x135b   :  { %v2458_v13 = vmul.f32 0.5, %v2457_v11 }
0x135c   :  { %v2470_v63 = vmul.f32 %v3523_v15, %v2465_v48 }
0x135d   :  { %v2459_v50 = vsub.f32 1.5, %v2458_v13 }
0x135e   :  { %v4656_v22 = vadd.f32 %v3524_v18, %v2470_v63 }
0x135f   :  { %v2460_v16 = vmul.f32 %v3647_v6, %v2459_v50 }
0x1361   :  { %v2464_v10 = vsel %vm2463_vm5, %v3647_v6, %v2460_v16 }
0x1362   :  { %v2466_v19 = vmul.f32 %v2464_v10, %v2432_v26 }
0x1363   :  { %v2686_v24 = vpop.permute.xlu1 %2685 }
0x1364   :  { %v2471_v62 = vmul.f32 %v3523_v15, %v2466_v19  ;;  %v2691_v52 = vsel %vm160_vm3, %v2686_v24, 0 }
0x1365   :  { %2700 = vmatpush.bf16.xpose.msra.mxu0 %v2691_v52 }
0x1366   :  { %v4658_v23 = vadd.f32 %v3524_v18, %v2471_v62 }
0x1368   :  { %v2484_v9 = vpack.c.bf16 %v4658_v23, %v4656_v22 }
0x136a   :  { %3443 = vmatmul.msk.bf16.vlgmr.msra.gmra.mxu1 %vm138_vm2, %v2484_v9 }
0x13e7   :  { %v2502_v32 = vpop.f32.mrf.mxu1 }
0x13e8   :  { %v2503_v44 = vadd.f32 %v3526_v25, %v2502_v32 }
0x13ea   :  { %v2533_v38 = vpack.c.bf16 %v2503_v44, %v2503_v44 }
0x13ec   :  { %2760 = vrot.lane.b32.xlu1 %v2533_v38, %s5023_s9  ;;  %2683 = vrot.lane.b32.xlu2 %v2533_v38, %s5021_s6 }
0x13ed   :  { %2606 = vrot.lane.b32.xlu0 %v2533_v38, %s5022_s27  ;;  %3450 = vmatmul.msk.bf16.vlgmr.msrb.gmra.mxu0 %vm160_vm3, %v2533_v38 }
0x13ee   :  { %2854 = vmatpush.bf16.xpose.msrb.mxu0 %v2845_v45 }
0x13ef   :  { %v2504_v37 = vpop.f32.mrf.mxu1 }
0x13f0   :  { %v2505_v43 = vadd.f32 %v3526_v25, %v2504_v37 }
0x13f2   :  { %v2837_v40 = vpack.c.bf16 %v2505_v43, %v2503_v44 }
0x13f4   :  { %v2840_v41 = vrot.slane %v2837_v40, 3  ;;  %2990 = vrot.lane.b32.xlu1 %v4668_v33, %s5021_s6 }
0x13f5   :  { %2762 = vrot.lane.b32.xlu0 %v4642_v42, %s5023_s9 }
0x13f6   :  { %2911 = vrot.lane.b32.xlu2 %v2840_v41, %s5022_s27 }
0x13fc   :  { %3065 = vrot.lane.b32.xlu1 %v2840_v41, %s5023_s9 }
0x13fd   :  { %2913 = vrot.lane.b32.xlu0 %v4668_v33, %s5022_s27 }
0x13fe   :  { %2988 = vrot.lane.b32.xlu2 %v2840_v41, %s5021_s6  ;;  %s5084_s6 = sld [smem:[#allocation21_spill]] }
0x1405   :  { %3067 = vrot.lane.b32.xlu0 %v4668_v33, %s5023_s9  ;;  %s5080_s9 = sld [smem:[#allocation19_spill]] }
0x140b   :  { %v3689_v51 = vld [vmem:[%s5080_s9] sm:$0x3f] }
0x1446   :  { %v2684_v17 = vpop.permute.xlu2 %2683 }
0x1447   :  { %3454 = vmatmul.msk.bf16.vlgmr.msra.gmra.mxu0 %vm160_vm3, %v2684_v17 }
0x1450   :  { %v2912_v35 = vpop.permute.xlu2 %2911 }
0x1457   :  { %3458 = vmatmul.msk.bf16.vlgmr.msrb.gmra.mxu0 %vm160_vm3, %v2840_v41 }
0x1458   :  { %v2989_v61 = vpop.permute.xlu2 %2988 }
0x145e   :  { %v2761_v59 = vpop.permute.xlu1 %2760 }
0x145f   :  { %v2607_v30 = vpop.permute.xlu0 %2606 }
0x1460   :  { %3452 = vmatmul.msk.bf16.vlgmr.msrb.gmra.mxu1 %vm160_vm3, %v2607_v30 }
0x1466   :  { %v2991_v26 = vpop.permute.xlu1 %2990 }
0x1467   :  { %v2763_v47 = vpop.permute.xlu0 %2762  ;;  %v2996_v49 = vsel %vm160_vm3, %v2991_v26, 0 }
0x1468   :  { %v2768_v12 = vsel %vm160_vm3, %v2763_v47, 0  ;;  %3005 = vmatpush.bf16.xpose.msra.mxu0 %v2996_v49 }
0x1469   :  { %2777 = vmatpush.bf16.xpose.msra.mxu1 %v2768_v12 }
0x146a   :  { %v2550_v4 = vpop.f32.mrf.mxu0 }
0x146b   :  { %v2551_v46 = vadd.f32 %v3689_v51, %v2550_v4 }
0x146d   :  { %v2554_v53 = vsel %vm232_vm14, %v2551_v46, -inf }
0x146e   :  { %2555 = vmax.xlane.f32.xlu0 %v2554_v53  ;;  %v3066_v55 = vpop.permute.xlu1 %3065 }
0x146f   :  { %v2914_v56 = vpop.permute.xlu0 %2913  ;;  %3462 = vmatmul.msk.bf16.vlgmr.msra.gmra.mxu0 %vm160_vm3, %v2989_v61 }
0x1470   :  { %v2919_v57 = vsel %vm160_vm3, %v2914_v56, 0  ;;  %3456 = vmatmul.msk.bf16.vlgmr.msra.gmra.mxu1 %vm160_vm3, %v2761_v59 }
0x1471   :  { %2928 = vmatpush.bf16.xpose.msrb.mxu1 %v2919_v57 }
0x1472   :  { %v2552_v39 = vpop.f32.mrf.mxu0 }
0x1477   :  { %v3068_v60 = vpop.permute.xlu0 %3067 }
0x1478   :  { %v3073_v1 = vsel %vm160_vm3, %v3068_v60, 0 }
0x1479   :  { %3082 = vmatpush.bf16.xpose.msra.mxu1 %v3073_v1 }
0x1480   :  { %3460 = vmatmul.msk.bf16.vlgmr.msrb.gmra.mxu1 %vm160_vm3, %v2912_v35 }
0x1490   :  { %3464 = vmatmul.msk.bf16.vlgmr.msra.gmra.mxu1 %vm160_vm3, %v3066_v55 }
0x14c4   :  { %v2702_v2 = vpop.f32.mrf.mxu0 }
0x14c5   :  { %v2703_v0 = vadd.f32 %v3689_v51, %v2702_v2 }
0x14c7   :  { %v2706_v20 = vsel %vm232_vm14, %v2703_v0, -inf }
0x14c8   :  { %2707 = vmax.xlane.f32.xlu1 %v2706_v20 }
0x14cc   :  { %v2704_v58 = vpop.f32.mrf.mxu0 }
0x14d4   :  { %v2856_v3 = vpop.f32.mrf.mxu0 }
0x14d5   :  { %v2857_v8 = vadd.f32 %v3689_v51, %v2856_v3 }
0x14d7   :  { %v2860_v50 = vsel %vm232_vm14, %v2857_v8, -inf }
0x14dc   :  { %v2858_v21 = vpop.f32.mrf.mxu0 }
0x14dd   :  { %v2625_v5 = vpop.f32.mrf.mxu1 }
0x14de   :  { %v2626_v54 = vadd.f32 %v3689_v51, %v2625_v5 }
0x14e0   :  { %v2629_v27 = vsel %vm232_vm14, %v2626_v54, -inf }
0x14e1   :  { %2630 = vmax.xlane.f32.xlu2 %v2629_v27  ;;  %v2556_v6 = vpop.xlane.xlu0 %2555 }
0x14e2   :  { %v2557_v7 = vmax.f32 %v2556_v6, -1e+30 }
0x14e4   :  { %v2558_v11 = vsub.f32 %v2551_v46, %v2557_v7 }
0x14e5   :  { %v2627_v28 = vpop.f32.mrf.mxu1 }
0x14e6   :  { %v2559_v13 = vmul.f32 1.442695, %v2558_v11 }
0x14e8   :  { %3648 = vpow2.f32 %v2559_v13 }
0x14e9   :  { %2861 = vmax.xlane.f32.xlu2 %v2860_v50 }
0x14ec   :  { %v3007_v15 = vpop.f32.mrf.mxu0 }
0x14ed   :  { %v2779_v48 = vpop.f32.mrf.mxu1  ;;  %v4722_v32 = vadd.f32 %v3689_v51, %v3007_v15 }
0x14ee   :  { %v4705_v16 = vpop.eup %3648  ;;  %v2780_v10 = vadd.f32 %v3689_v51, %v2779_v48 }
0x14ef   :  { %v2561_v18 = vsel %vm232_vm14, %v4705_v16, 0.0  ;;  %v3011_v44 = vsel %vm232_vm14, %v4722_v32, -inf }
0x14f0   :  { %2562 = vadd.xlane.f32.xlu1 %v2561_v18  ;;  %v2783_v63 = vsel %vm232_vm14, %v2780_v10, -inf }
0x14f1   :  { %2784 = vmax.xlane.f32.xlu0 %v2783_v63 }
0x14f4   :  { %v3009_v19 = vpop.f32.mrf.mxu0 }
0x14f5   :  { %v2781_v62 = vpop.f32.mrf.mxu1 }
0x14fd   :  { %v2930_v9 = vpop.f32.mrf.mxu1 }
0x14fe   :  { %v4710_v24 = vadd.f32 %v3689_v51, %v2930_v9 }
0x1500   :  { %v2934_v52 = vsel %vm232_vm14, %v4710_v24, -inf }
0x1501   :  { %2935 = vmax.xlane.f32.xlu1 %v2934_v52 }
0x1505   :  { %v2932_v36 = vpop.f32.mrf.mxu1  ;;  %2583 = vrot.lane.b32.xlu0 %v4642_v42, %s5027_s29 }
0x150d   :  { %v3084_v34 = vpop.f32.mrf.mxu1 }
0x150e   :  { %v4716_v25 = vadd.f32 %v3689_v51, %v3084_v34 }
0x1510   :  { %v3088_v29 = vsel %vm232_vm14, %v4716_v25, -inf }
0x1511   :  { %3089 = vmax.xlane.f32.xlu2 %v3088_v29 }
0x1515   :  { %v3086_v31 = vpop.f32.mrf.mxu1 }
0x151a   :  { %2811 = vrot.lane.b32.xlu1 %v4642_v42, %s5028_s30 }
0x152f   :  { %3012 = vmax.xlane.f32.xlu0 %v3011_v44 }
0x153b   :  { %v2708_v38 = vpop.xlane.xlu1 %2707 }
0x153c   :  { %v2709_v45 = vmax.f32 %v2708_v38, -1e+30 }
0x153e   :  { %v2710_v37 = vsub.f32 %v2703_v0, %v2709_v45 }
0x1540   :  { %v2711_v43 = vmul.f32 1.442695, %v2710_v37 }
0x1542   :  { %3650 = vpow2.f32 %v2711_v43 }
0x1548   :  { %v4726_v40 = vpop.eup %3650 }
0x1549   :  { %v2713_v41 = vsel %vm232_vm14, %v4726_v40, 0.0 }
0x154a   :  { %2714 = vadd.xlane.f32.xlu2 %v2713_v41 }
0x1554   :  { %v2631_v17 = vpop.xlane.xlu2 %2630 }
0x1555   :  { %v2632_v59 = vmax.f32 %v2631_v17, -1e+30 }
0x1557   :  { %v2633_v30 = vsub.f32 %v2626_v54, %v2632_v59 }
0x1559   :  { %v2634_v35 = vmul.f32 1.442695, %v2633_v30 }
0x155b   :  { %3652 = vpow2.f32 %v2634_v35 }
0x155c   :  { %v2862_v47 = vpop.xlane.xlu2 %2861 }
0x155d   :  { %v2863_v51 = vmax.f32 %v2862_v47, -1e+30 }
0x155f   :  { %v2864_v56 = vsub.f32 %v2857_v8, %v2863_v51 }
0x1561   :  { %v4730_v26 = vpop.eup %3652  ;;  %v2865_v60 = vmul.f32 1.442695, %v2864_v56 }
0x1562   :  { %v2636_v49 = vsel %vm232_vm14, %v4730_v26, 0.0  ;;  %2657 = vrot.lane.b32.xlu2 %v4642_v42, %s5025_s0 }
0x1563   :  { %2637 = vadd.xlane.f32.xlu0 %v2636_v49  ;;  %v2563_v12 = vpop.xlane.xlu1 %2562 }
0x1564   :  { %vm2564_vm11 = vcmp.eq.f32.partialorder %v2563_v12, 0.0  ;;  %v2785_v4 = vpop.xlane.xlu0 %2784 }
0x1565   :  { %v2565_v46 = vsel %vm2564_vm11, 1.0, %v2563_v12  ;;  %v2786_v53 = vmax.f32 %v2785_v4, -1e+30 }
0x1566   :  { %3654 = vrcp.f32 %v2565_v46  ;;  %v2577_v2 = vand.u32 2147483648, %v2565_v46  ;;  %v2575_v58 = vand.u32 2147483647, %v2565_v46  ;;  %vm2571_vm13 = vweird.f32 %v2565_v46 }
0x1567   :  { %v2787_v61 = vsub.f32 %v2780_v10, %v2786_v53 }
0x1568   :  { %v2578_v5 = vor.u32 1.1754944e-38, %v2577_v2  ;;  %vm2576_vm9 = vcmp.eq.f32.partialorder %v2575_v58, 8.507059e+37 }
0x1569   :  { %v2788_v57 = vmul.f32 1.442695, %v2787_v61 }
0x156b   :  { %3656 = vpow2.f32 %v2788_v57 }
0x156c   :  { %v3655_v39 = vpop.eup %3654  ;;  %3658 = vpow2.f32 %v2865_v60 }
0x156d   :  { %v2567_v1 = vmul.f32 %v3655_v39, %v2565_v46  ;;  %vm2572_vm6 = vweird.f32 %v3655_v39 }
0x156e   :  { %vm2573_vm7 = vmor %vm2571_vm13, %vm2572_vm6 }
0x156f   :  { %v2568_v55 = vsub.f32 1.0, %v2567_v1 }
0x1571   :  { %v4736_v0 = vpop.eup %3656  ;;  %v2569_v20 = vmul.f32 %v3655_v39, %v2568_v55 }
0x1572   :  { %v2790_v3 = vsel %vm232_vm14, %v4736_v0, 0.0  ;;  %v4740_v8 = vpop.eup %3658 }
0x1573   :  { %v2570_v21 = vadd.f32 %v3655_v39, %v2569_v20  ;;  %2791 = vadd.xlane.f32.xlu1 %v2790_v3  ;;  %v2867_v10 = vsel %vm232_vm14, %v4740_v8, 0.0 }
0x1574   :  { %v2936_v54 = vpop.xlane.xlu1 %2935 }
0x1575   :  { %v2574_v27 = vsel %vm2573_vm7, %v3655_v39, %v2570_v21  ;;  %v2937_v6 = vmax.f32 %v2936_v54, -1e+30 }
0x1576   :  { %v2579_v7 = vsel %vm2576_vm9, %v2578_v5, %v2574_v27 }
0x1577   :  { %v2580_v11 = vmul.f32 %v4705_v16, %v2579_v7  ;;  %v2938_v28 = vsub.f32 %v4710_v24, %v2937_v6  ;;  %v2584_v13 = vpop.permute.xlu0 %2583  ;;  %2734 = vrot.lane.b32.xlu0 %v4642_v42, %s5026_s13 }
0x1578   :  { %v2589_v50 = vsel %vm980_vm8, %v2584_v13, 0 }
0x1579   :  { %v2581_v15 = vpack.c.bf16 %v2580_v11, %v2580_v11  ;;  %v2939_v48 = vmul.f32 1.442695, %v2938_v28  ;;  %2598 = vmatpush.bf16.msrb.mxu3 %v2589_v50 }
0x157b   :  { %3660 = vpow2.f32 %v2939_v48  ;;  %2868 = vadd.xlane.f32.xlu1 %v2867_v10 }
0x157c   :  { %3451 = vmatmul.msk.bf16.vlgmr.msrb.gmra.mxu3 %vm160_vm3, %v2581_v15 }
0x1581   :  { %v4750_v18 = vpop.eup %3660 }
0x1582   :  { %v2941_v16 = vsel %vm232_vm14, %v4750_v18, 0.0 }
0x1583   :  { %2942 = vadd.xlane.f32.xlu1 %v2941_v16 }
0x1584   :  { %v3090_v63 = vpop.xlane.xlu2 %3089 }
0x1585   :  { %v3091_v42 = vmax.f32 %v3090_v63, -1e+30 }
0x1587   :  { %v3092_v19 = vsub.f32 %v4716_v25, %v3091_v42 }
0x1589   :  { %v3093_v62 = vmul.f32 1.442695, %v3092_v19 }
0x158b   :  { %3662 = vpow2.f32 %v3093_v62 }
0x158c   :  { %v2812_v38 = vpop.permute.xlu1 %2811 }
0x1591   :  { %v4757_v9 = vpop.eup %3662 }
0x1592   :  { %v3095_v24 = vsel %vm232_vm14, %v4757_v9, 0.0 }
0x159c   :  { %2889 = vrot.lane.b32.xlu1 %v4668_v33, %s5027_s29 }
0x15a1   :  { %3096 = vadd.xlane.f32.xlu0 %v3095_v24 }
0x15a2   :  { %v3013_v52 = vpop.xlane.xlu0 %3012 }
0x15a3   :  { %v3014_v36 = vmax.f32 %v3013_v52, -1e+30 }
0x15a4   :  { %2962 = vrot.lane.b32.xlu1 %v4668_v33, %s5025_s0 }
0x15a5   :  { %v3015_v34 = vsub.f32 %v4722_v32, %v3014_v36  ;;  %v2817_v32 = vsel %vm980_vm8, %v2812_v38, 0 }
0x15a7   :  { %v3016_v29 = vmul.f32 1.442695, %v3015_v34 }
0x15a9   :  { %3664 = vpow2.f32 %v3016_v29 }
0x15ac   :  { %3039 = vrot.lane.b32.xlu1 %v4668_v33, %s5026_s13 }
0x15af   :  { %v4766_v25 = vpop.eup %3664 }
0x15b0   :  { %v3018_v31 = vsel %vm232_vm14, %v4766_v25, 0.0 }
0x15b1   :  { %3019 = vadd.xlane.f32.xlu2 %v3018_v31 }
0x15bd   :  { %v2715_v44 = vpop.xlane.xlu2 %2714 }
0x15be   :  { %vm2716_vm10 = vcmp.eq.f32.partialorder %v2715_v44, 0.0 }
0x15bf   :  { %v2717_v37 = vsel %vm2716_vm10, 1.0, %v2715_v44 }
0x15c0   :  { %3666 = vrcp.f32 %v2717_v37  ;;  %v2729_v4 = vand.u32 2147483648, %v2717_v37  ;;  %vm2723_vm5 = vweird.f32 %v2717_v37  ;;  %v2727_v51 = vand.u32 2147483647, %v2717_v37 }
0x15c2   :  { %v2730_v56 = vor.u32 1.1754944e-38, %v2729_v4  ;;  %vm2728_vm6 = vcmp.eq.f32.partialorder %v2727_v51, 8.507059e+37 }
0x15c5   :  { %v2658_v45 = vpop.permute.xlu2 %2657 }
0x15c6   :  { %v2663_v43 = vsel %vm980_vm8, %v2658_v45, 0  ;;  %v3667_v41 = vpop.eup %3666 }
0x15c7   :  { %2672 = vmatpush.bf16.msrb.mxu2 %v2663_v43  ;;  %v2719_v17 = vmul.f32 %v3667_v41, %v2717_v37  ;;  %vm2724_vm12 = vweird.f32 %v3667_v41 }
0x15c8   :  { %vm2725_vm11 = vmor %vm2723_vm5, %vm2724_vm12 }
0x15c9   :  { %3116 = vrot.lane.b32.xlu2 %v4668_v33, %s5028_s30  ;;  %v2720_v59 = vsub.f32 1.0, %v2719_v17 }
0x15cb   :  { %2826 = vmatpush.bf16.msra.mxu2 %v2817_v32  ;;  %v2721_v47 = vmul.f32 %v3667_v41, %v2720_v59 }
0x15cd   :  { %v2722_v49 = vadd.f32 %v3667_v41, %v2721_v47 }
0x15cf   :  { %v2726_v53 = vsel %vm2725_vm11, %v3667_v41, %v2722_v49 }
0x15d0   :  { %v2731_v60 = vsel %vm2728_vm6, %v2730_v56, %v2726_v53 }
0x15d1   :  { %v2732_v20 = vmul.f32 %v4726_v40, %v2731_v60 }
0x15d3   :  { %v2733_v6 = vpack.c.bf16 %v2732_v20, %v2732_v20 }
0x15d6   :  { %v2638_v30 = vpop.xlane.xlu0 %2637 }
0x15d7   :  { %vm2639_vm4 = vcmp.eq.f32.partialorder %v2638_v30, 0.0 }
0x15d8   :  { %v2640_v35 = vsel %vm2639_vm4, 1.0, %v2638_v30 }
0x15d9   :  { %3668 = vrcp.f32 %v2640_v35  ;;  %v2652_v33 = vand.u32 2147483648, %v2640_v35  ;;  %v2650_v39 = vand.u32 2147483647, %v2640_v35  ;;  %vm2646_vm7 = vweird.f32 %v2640_v35 }
0x15db   :  { %v2653_v2 = vor.u32 1.1754944e-38, %v2652_v33  ;;  %vm2651_vm4 = vcmp.eq.f32.partialorder %v2650_v39, 8.507059e+37 }
0x15df   :  { %v3669_v12 = vpop.eup %3668 }
0x15e0   :  { %v2642_v46 = vmul.f32 %v3669_v12, %v2640_v35  ;;  %vm2647_vm13 = vweird.f32 %v3669_v12 }
0x15e1   :  { %vm2648_vm9 = vmor %vm2646_vm7, %vm2647_vm13 }
0x15e2   :  { %v2643_v61 = vsub.f32 1.0, %v2642_v46 }
0x15e4   :  { %v2644_v57 = vmul.f32 %v3669_v12, %v2643_v61 }
0x15e6   :  { %v2645_v1 = vadd.f32 %v3669_v12, %v2644_v57  ;;  %v2792_v55 = vpop.xlane.xlu1 %2791 }
0x15e7   :  { %vm2793_vm10 = vcmp.eq.f32.partialorder %v2792_v55, 0.0 }
0x15e8   :  { %v2649_v58 = vsel %vm2648_vm9, %v3669_v12, %v2645_v1  ;;  %v2794_v3 = vsel %vm2793_vm10, 1.0, %v2792_v55 }
0x15e9   :  { %v2654_v21 = vsel %vm2651_vm4, %v2653_v2, %v2649_v58  ;;  %3670 = vrcp.f32 %v2794_v3  ;;  %v2735_v5 = vpop.permute.xlu0 %2734  ;;  %v2806_v15 = vand.u32 2147483648, %v2794_v3  ;;  %vm2800_vm11 = vweird.f32 %v2794_v3 }
0x15ea   :  { %v2655_v54 = vmul.f32 %v4730_v26, %v2654_v21  ;;  %v2740_v27 = vsel %vm980_vm8, %v2735_v5, 0  ;;  %v2804_v26 = vand.u32 2147483647, %v2794_v3 }
0x15eb   :  { %2749 = vmatpush.bf16.msra.mxu3 %v2740_v27  ;;  %v2807_v42 = vor.u32 1.1754944e-38, %v2806_v15 }
0x15ec   :  { %v2656_v7 = vpack.c.bf16 %v2655_v54, %v2655_v54  ;;  %vm2805_vm7 = vcmp.eq.f32.partialorder %v2804_v26, 8.507059e+37 }
0x15ee   :  { %3453 = vmatmul.msk.bf16.vlgmr.msrb.gmra.mxu2 %vm160_vm3, %v2656_v7  ;;  %3455 = vmatmul.msk.bf16.vlgmr.msra.gmra.mxu3 %vm160_vm3, %v2733_v6  ;;  %v2869_v11 = vpop.xlane.xlu1 %2868 }
0x15ef   :  { %v3671_v28 = vpop.eup %3670  ;;  %vm2870_vm12 = vcmp.eq.f32.partialorder %v2869_v11, 0.0 }
0x15f0   :  { %v2796_v40 = vmul.f32 %v3671_v28, %v2794_v3  ;;  %v2871_v13 = vsel %vm2870_vm12, 1.0, %v2869_v11  ;;  %vm2801_vm5 = vweird.f32 %v3671_v28 }
0x15f1   :  { %3672 = vrcp.f32 %v2871_v13  ;;  %vm2802_vm6 = vmor %vm2800_vm11, %vm2801_vm5  ;;  %v2883_v43 = vand.u32 2147483648, %v2871_v13  ;;  %vm2877_vm10 = vweird.f32 %v2871_v13  ;;  %v2881_v41 = vand.u32 2147483647, %v2871_v13 }
0x15f2   :  { %v2797_v50 = vsub.f32 1.0, %v2796_v40 }
0x15f3   :  { %vm2882_vm12 = vcmp.eq.f32.partialorder %v2881_v41, 8.507059e+37 }
0x15f4   :  { %v2798_v48 = vmul.f32 %v3671_v28, %v2797_v50 }
0x15f6   :  { %v2799_v10 = vadd.f32 %v3671_v28, %v2798_v48  ;;  %v2943_v16 = vpop.xlane.xlu1 %2942 }
0x15f7   :  { %v3673_v63 = vpop.eup %3672  ;;  %vm2944_vm13 = vcmp.eq.f32.partialorder %v2943_v16, 0.0 }
0x15f8   :  { %v2803_v19 = vsel %vm2802_vm6, %v3671_v28, %v2799_v10  ;;  %v2873_v62 = vmul.f32 %v3673_v63, %v2871_v13  ;;  %v2945_v24 = vsel %vm2944_vm13, 1.0, %v2943_v16  ;;  %vm2878_vm9 = vweird.f32 %v3673_v63 }
0x15f9   :  { %v2808_v52 = vsel %vm2805_vm7, %v2807_v42, %v2803_v19  ;;  %3674 = vrcp.f32 %v2945_v24  ;;  %vm2879_vm4 = vmor %vm2877_vm10, %vm2878_vm9  ;;  %v2957_v12 = vand.u32 2147483648, %v2945_v24  ;;  %vm2951_vm11 = vweird.f32 %v2945_v24 }
0x15fa   :  { %v2809_v36 = vmul.f32 %v4736_v0, %v2808_v52  ;;  %v2874_v34 = vsub.f32 1.0, %v2873_v62  ;;  %v2884_v0 = vor.u32 1.1754944e-38, %v2883_v43  ;;  %v2955_v4 = vand.u32 2147483647, %v2945_v24 }
0x15fb   :  { %v2958_v56 = vor.u32 1.1754944e-38, %v2957_v12 }
0x15fc   :  { %v2810_v29 = vpack.c.bf16 %v2809_v36, %v2809_v36  ;;  %v2875_v44 = vmul.f32 %v3673_v63, %v2874_v34  ;;  %vm2956_vm13 = vcmp.eq.f32.partialorder %v2955_v4, 8.507059e+37  ;;  %v3468_v4 = vld [vmem:[%s4923_s15 + $0x30] sm:$0xff] }
0x15fe   :  { %3457 = vmatmul.msk.bf16.vlgmr.msra.gmra.mxu2 %vm160_vm3, %v2810_v29  ;;  %v2876_v37 = vadd.f32 %v3673_v63, %v2875_v44 }
0x15ff   :  { %v3675_v31 = vpop.eup %3674  ;;  %v2600_v38 = vpop.f32.mrf.mxu3 }
0x1600   :  { %v2947_v45 = vmul.f32 %v3675_v31, %v2945_v24  ;;  %2604 = vst.msk [vmem:[#allocation2] sm:$0x3f] %vm232_vm14, %v2600_v38  ;;  %v2880_v17 = vsel %vm2879_vm4, %v3673_v63, %v2876_v37  ;;  %vm2952_vm5 = vweird.f32 %v3675_v31 }
0x1601   :  { %v2885_v35 = vsel %vm2882_vm12, %v2884_v0, %v2880_v17  ;;  %vm2953_vm6 = vmor %vm2951_vm11, %vm2952_vm5 }
0x1602   :  { %v2948_v32 = vsub.f32 1.0, %v2947_v45  ;;  %v2886_v49 = vmul.f32 %v4740_v8, %v2885_v35 }
0x1604   :  { %v2949_v30 = vmul.f32 %v3675_v31, %v2948_v32  ;;  %v2887_v61 = vpack.c.bf16 %v2886_v49, %v2886_v49 }
0x1606   :  { %v2950_v47 = vadd.f32 %v3675_v31, %v2949_v30 }
0x1607   :  { %v2602_v59 = vpop.f32.mrf.mxu3 }
0x1608   :  { %v2954_v53 = vsel %vm2953_vm6, %v3675_v31, %v2950_v47 }
0x1609   :  { %v2959_v33 = vsel %vm2956_vm13, %v2958_v56, %v2954_v53 }
0x160a   :  { %v2960_v39 = vmul.f32 %v4750_v18, %v2959_v33 }
0x160c   :  { %v2961_v55 = vpack.c.bf16 %v2960_v39, %v2960_v39 }
0x160e   :  { %v2890_v51 = vpop.permute.xlu1 %2889 }
0x160f   :  { %v2895_v46 = vsel %vm980_vm8, %v2890_v51, 0  ;;  %v3469_v51 = vld [vmem:[%s4923_s15 + $0x38] sm:$0xff] }
0x1610   :  { %2904 = vmatpush.bf16.msrb.mxu3 %v2895_v46  ;;  %v3466_v46 = vld [vmem:[%s4923_s15 + $0x20] sm:$0xff]  ;;  %v3153_v53 = vpack.c.bf16 %v3469_v51, %v3468_v4 }
0x1612   :  { %3166 = vmatpush.bf16.msrb.mxu0 %v3153_v53  ;;  %v3487_v53 = vld [vmem:[%s4929_s19 + $0x78] sm:$0xff] }
0x1613   :  { %3459 = vmatmul.msk.bf16.vlgmr.msrb.gmra.mxu3 %vm160_vm3, %v2887_v61  ;;  %v3467_v61 = vld [vmem:[%s4923_s15 + $0x28] sm:$0xff] }
0x1614   :  { %v3097_v57 = vpop.xlane.xlu0 %3096  ;;  %v3152_v56 = vpack.c.bf16 %v3467_v61, %v3466_v46  ;;  %v3486_v46 = vld [vmem:[%s4929_s19 + $0x70] sm:$0xff] }
0x1615   :  { %vm3098_vm7 = vcmp.eq.f32.partialorder %v3097_v57, 0.0  ;;  %v3281_v61 = vpack.c.bf16 %v3487_v53, %v3486_v46 }
0x1616   :  { %v3099_v8 = vsel %vm3098_vm7, 1.0, %v3097_v57  ;;  %v2963_v60 = vpop.permute.xlu1 %2962  ;;  %3167 = vmatpush.bf16.msrb.mxu0 %v3152_v56  ;;  %v3484_v56 = vld [vmem:[%s4929_s19 + $0x60] sm:$0xff] }
0x1617   :  { %3676 = vrcp.f32 %v3099_v8  ;;  %v2968_v1 = vsel %vm980_vm8, %v2963_v60, 0  ;;  %v3111_v54 = vand.u32 2147483648, %v3099_v8  ;;  %v3109_v18 = vand.u32 2147483647, %v3099_v8  ;;  %3292 = vmatpush.bf16.msrb.mxu1 %v3281_v61 }
0x1618   :  { %2977 = vmatpush.bf16.msrb.mxu2 %v2968_v1  ;;  %vm3105_vm10 = vweird.f32 %v3099_v8  ;;  %v3527_v1 = vld [vmem:[%s4922_s16 + $0x1] ss:$0 sm:$0xff] }
0x1619   :  { %v3112_v11 = vor.u32 1.1754944e-38, %v3111_v54  ;;  %vm3110_vm5 = vcmp.eq.f32.partialorder %v3109_v18, 8.507059e+37 }
0x161b   :  { %3461 = vmatmul.msk.bf16.vlgmr.msrb.gmra.mxu2 %vm160_vm3, %v2961_v55 }
0x161d   :  { %v3677_v2 = vpop.eup %3676 }
0x161e   :  { %v3101_v20 = vmul.f32 %v3677_v2, %v3099_v8  ;;  %v3040_v58 = vpop.permute.xlu1 %3039  ;;  %vm3106_vm9 = vweird.f32 %v3677_v2 }
0x161f   :  { %v3045_v3 = vsel %vm980_vm8, %v3040_v58, 0  ;;  %vm3107_vm4 = vmor %vm3105_vm10, %vm3106_vm9 }
0x1620   :  { %v3102_v21 = vsub.f32 1.0, %v3101_v20  ;;  %3054 = vmatpush.bf16.msra.mxu3 %v3045_v3 }
0x1622   :  { %v3103_v5 = vmul.f32 %v3677_v2, %v3102_v21 }
0x1624   :  { %v3104_v27 = vadd.f32 %v3677_v2, %v3103_v5  ;;  %v3020_v6 = vpop.xlane.xlu2 %3019 }
0x1625   :  { %vm3021_vm12 = vcmp.eq.f32.partialorder %v3020_v6, 0.0 }
0x1626   :  { %v3108_v7 = vsel %vm3107_vm4, %v3677_v2, %v3104_v27  ;;  %v3022_v28 = vsel %vm3021_vm12, 1.0, %v3020_v6  ;;  %vm5085_vm4 = vcmask 523264  }
0x1627   :  { %3678 = vrcp.f32 %v3022_v28  ;;  %v3113_v40 = vsel %vm3110_vm5, %v3112_v11, %v3108_v7  ;;  %v3034_v63 = vand.u32 2147483648, %v3022_v28  ;;  %v3032_v19 = vand.u32 2147483647, %v3022_v28 }
0x1628   :  { %v3114_v13 = vmul.f32 %v4757_v9, %v3113_v40  ;;  %vm3028_vm6 = vweird.f32 %v3022_v28 }
0x1629   :  { %v3035_v24 = vor.u32 1.1754944e-38, %v3034_v63  ;;  %vm3033_vm7 = vcmp.eq.f32.partialorder %v3032_v19, 8.507059e+37  ;;  %v3475_v63 = vld [vmem:[%s4927_s17 + $0x28] sm:$0xff] }
0x162a   :  { %v3115_v10 = vpack.c.bf16 %v3114_v13, %v3114_v13 }
0x162c   :  { %v3117_v50 = vpop.permute.xlu2 %3116 }
0x162d   :  { %v3679_v15 = vpop.eup %3678  ;;  %v3122_v48 = vsel %vm980_vm8, %v3117_v50, 0 }
0x162e   :  { %v3024_v26 = vmul.f32 %v3679_v15, %v3022_v28  ;;  %3131 = vmatpush.bf16.msra.mxu2 %v3122_v48  ;;  %vm3029_vm11 = vweird.f32 %v3679_v15 }
0x162f   :  { %vm3030_vm13 = vmor %vm3028_vm6, %vm3029_vm11 }
0x1630   :  { %v3025_v16 = vsub.f32 1.0, %v3024_v26 }
0x1631   :  { %3465 = vmatmul.msk.bf16.vlgmr.msra.gmra.mxu2 %vm160_vm3, %v3115_v10 }
0x1632   :  { %v3026_v42 = vmul.f32 %v3679_v15, %v3025_v16  ;;  %v3474_v16 = vld [vmem:[%s4927_s17 + $0x20] sm:$0xff] }
0x1633   :  { %v3242_v19 = vpack.c.bf16 %v3475_v63, %v3474_v16 }
0x1634   :  { %v3027_v62 = vadd.f32 %v3679_v15, %v3026_v42 }
0x1636   :  { %v3031_v52 = vsel %vm3030_vm13, %v3679_v15, %v3027_v62  ;;  %v3477_v15 = vld [vmem:[%s4927_s17 + $0x38] sm:$0xff] }
0x1637   :  { %v3036_v9 = vsel %vm3033_vm7, %v3035_v24, %v3031_v52 }
0x1638   :  { %v3037_v36 = vmul.f32 %v4766_v25, %v3036_v9 }
0x163a   :  { %v3038_v34 = vpack.c.bf16 %v3037_v36, %v3037_v36 }
0x163c   :  { %3463 = vmatmul.msk.bf16.vlgmr.msra.gmra.mxu3 %vm160_vm3, %v3038_v34  ;;  %vm5081_vm3 = vcmask 257024  }
0x163d   :  { %vm5086_vm12 = vmmov %vm5081_vm3 }
0x163e   :  { %vm5087_vm5 = vmmov %vm5081_vm3 }
0x1671   :  { %v2674_v29 = vpop.f32.mrf.mxu2  ;;  %v2751_v31 = vpop.f32.mrf.mxu3 }
0x1672   :  { %2679 = vrot.lane.b32.xlu0 %v2674_v29, %s5031_s1  ;;  %2756 = vrot.lane.b32.xlu1 %v2751_v31, %s5032_s3 }
0x1679   :  { %v2676_v44 = vpop.f32.mrf.mxu2  ;;  %v2753_v38 = vpop.f32.mrf.mxu3 }
0x1681   :  { %v2828_v45 = vpop.f32.mrf.mxu2 }
0x1682   :  { %2833 = vrot.lane.b32.xlu0 %v2828_v45, %s5033_s21 }
0x1689   :  { %v2830_v37 = vpop.f32.mrf.mxu2 }
0x1696   :  { %v2906_v43 = vpop.f32.mrf.mxu3 }
0x1697   :  { %2910 = vst.msk [vmem:[#allocation2 + $0x6] sm:$0x3f] %vm232_vm14, %v2906_v43  ;;  %vm5082_vm14 = vmmov %vm5081_vm3 }
0x169e   :  { %v2908_v32 = vpop.f32.mrf.mxu3  ;;  %v2979_v25 = vpop.f32.mrf.mxu2 }
0x169f   :  { %2984 = vrot.lane.b32.xlu1 %v2979_v25, %s5031_s1 }
0x16a6   :  { %v2981_v41 = vpop.f32.mrf.mxu2 }
0x16a7   :  { %v3528_v41 = vld [vmem:[%s5083_s23 + $0x1] ss:$0 sm:$0xff] }
0x16b4   :  { %v3133_v17 = vpop.f32.mrf.mxu2 }
0x16b5   :  { %3138 = vrot.lane.b32.xlu2 %v3133_v17, %s5033_s21 }
0x16bc   :  { %v3135_v59 = vpop.f32.mrf.mxu2 }
0x16bf   :  { %v3056_v0 = vpop.f32.mrf.mxu3 }
0x16c0   :  { %3061 = vrot.lane.b32.xlu1 %v3056_v0, %s5032_s3 }
0x16c7   :  { %v3058_v30 = vpop.f32.mrf.mxu3 }
0x16c8   :  { %v3529_v30 = vld [vmem:[%s5084_s6 + $0x1] ss:$0 sm:$0xff] }
0x16e4   :  { %v2680_v35 = vpop.permute.xlu0 %2679  ;;  %v2757_v47 = vpop.permute.xlu1 %2756 }
0x16e5   :  { %2682 = vst.msk [vmem:[#allocation2] sm:$0x3f] %vm310_vm15, %v2680_v35 }
0x16e6   :  { %2759 = vst.msk [vmem:[#allocation2] sm:$0x3f] %vm388_vm0, %v2757_v47 }
0x16f4   :  { %v2834_v49 = vpop.permute.xlu0 %2833 }
0x16f5   :  { %2836 = vst.msk [vmem:[#allocation2] sm:$0x3f] %vm466_vm1, %v2834_v49 }
0x170f   :  { %v3139_v57 = vpop.permute.xlu2 %3138 }
0x1711   :  { %v2985_v12 = vpop.permute.xlu1 %2984 }
0x1712   :  { %2987 = vst.msk [vmem:[#allocation2 + $0x6] sm:$0x3f] %vm310_vm15, %v2985_v12 }
0x1732   :  { %v3062_v33 = vpop.permute.xlu1 %3061 }
0x1733   :  { %3064 = vst.msk [vmem:[#allocation2 + $0x6] sm:$0x3f] %vm388_vm0, %v3062_v33  ;;  %v3485_v33 = vld [vmem:[%s4929_s19 + $0x68] sm:$0xff] }
0x1734   :  { %3141 = vst.msk [vmem:[#allocation2 + $0x6] sm:$0x3f] %vm466_vm1, %v3139_v57  ;;  %v3280_v57 = vpack.c.bf16 %v3485_v33, %v3484_v56 }
0x1736   :  { %3293 = vmatpush.bf16.msrb.mxu1 %v3280_v57 }
0x173b   :  { %v3142_v39 = vld [vmem:[#allocation2] sm:$0xff]  ;;  %v3143_v8 = vld [vmem:[#allocation2 + $0x8] sm:$0xf] }
0x173c   :  { %v3151_v60 = vpack.c.bf16 %v3143_v8, %v3142_v39  ;;  %v3482_v39 = vld [vmem:[%s4929_s19 + $0x50] sm:$0xff]  ;;  %v3483_v8 = vld [vmem:[%s4929_s19 + $0x58] sm:$0xff] }
0x173e   :  { %3471 = vmatmul.msk.bf16.vlgmr.msrb.gmra.mxu0 %vm138_vm2, %v3151_v60  ;;  %v3279_v60 = vpack.c.bf16 %v3483_v8, %v3482_v39 }
0x1740   :  { %3294 = vmatpush.bf16.msrb.mxu1 %v3279_v60 }
0x17bb   :  { %v3169_v55 = vpop.f32.mrf.mxu0 }
0x17bc   :  { %v3170_v2 = vadd.f32 %v3527_v1, %v3169_v55  ;;  %v3481_v55 = vld [vmem:[%s4929_s19 + $0x48] sm:$0xff] }
0x17be   :  { %v3174_v20 = vadd.f32 %v3170_v2, %v4656_v22 }
0x17c0   :  { %v3180_v58 = vsel %vm138_vm2, %v3174_v20, 0.0 }
0x17c1   :  { %3181 = vadd.xlane.f32.xlu1 %v3180_v58  ;;  %v3530_v58 = vld [vmem:[%s4926_s18 + $0x1] ss:$0 sm:$0xff] }
0x17c3   :  { %v3171_v3 = vpop.f32.mrf.mxu0 }
0x17c4   :  { %v3172_v21 = vadd.f32 %v3527_v1, %v3171_v3  ;;  %v3480_v1 = vld [vmem:[%s4929_s19 + $0x40] sm:$0xff] }
0x17c5   :  { %v3278_v2 = vpack.c.bf16 %v3481_v55, %v3480_v1 }
0x17c6   :  { %v3175_v5 = vadd.f32 %v3172_v21, %v4658_v23  ;;  %v3476_v23 = vld [vmem:[%s4927_s17 + $0x30] sm:$0xff] }
0x17c7   :  { %v3243_v48 = vpack.c.bf16 %v3477_v15, %v3476_v23  ;;  %3295 = vmatpush.bf16.msrb.mxu1 %v3278_v2 }
0x17c8   :  { %v3183_v54 = vsel %vm5081_vm3, %v3175_v5, 0.0 }
0x17c9   :  { %3184 = vadd.xlane.f32.xlu0 %v3183_v54  ;;  %3256 = vmatpush.bf16.msrb.mxu3 %v3243_v48 }
0x17cd   :  { %3257 = vmatpush.bf16.msrb.mxu3 %v3242_v19 }
0x1834   :  { %v3182_v18 = vpop.xlane.xlu1 %3181 }
0x1835   :  { %v3186_v27 = vmul.f32 %v3182_v18, %v4127_v14 }
0x1837   :  { %v3188_v6 = vsub.f32 %v3174_v20, %v3186_v27 }
0x1839   :  { %v3190_v7 = vmul.f32 %v3188_v6, %v3188_v6 }
0x183b   :  { %v3192_v11 = vsel %vm138_vm2, %v3190_v7, 0.0 }
0x183c   :  { %v3185_v28 = vpop.xlane.xlu0 %3184  ;;  %3193 = vadd.xlane.f32.xlu2 %v3192_v11 }
0x183d   :  { %v3187_v22 = vmul.f32 %v3185_v28, %v4127_v14 }
0x183f   :  { %v3189_v40 = vsub.f32 %v3175_v5, %v3187_v22 }
0x1841   :  { %v3191_v13 = vmul.f32 %v3189_v40, %v3189_v40 }
0x1843   :  { %v3195_v50 = vsel %vm5082_vm14, %v3191_v13, 0.0 }
0x1844   :  { %3196 = vadd.xlane.f32.xlu1 %v3195_v50 }
0x18af   :  { %v3194_v26 = vpop.xlane.xlu2 %3193 }
0x18b0   :  { %v3198_v10 = vmul.f32 %v3194_v26, %v4127_v14 }
0x18b2   :  { %v3200_v42 = vadd.f32 1e-05, %v3198_v10 }
0x18b4   :  { %3680 = vrsqrt.f32 %v3200_v42  ;;  %vm3208_vm0 = vweird.f32 %v3200_v42 }
0x18b7   :  { %v3197_v62 = vpop.xlane.xlu1 %3196 }
0x18b8   :  { %v3199_v24 = vmul.f32 %v3197_v62, %v4127_v14 }
0x18ba   :  { %v3681_v52 = vpop.eup %3680  ;;  %v3201_v9 = vadd.f32 1e-05, %v3199_v24 }
0x18bb   :  { %v3203_v36 = vmul.f32 %v3681_v52, %v3200_v42  ;;  %vm3209_vm15 = vweird.f32 %v3681_v52 }
0x18bc   :  { %3682 = vrsqrt.f32 %v3201_v9  ;;  %vm3210_vm1 = vmor %vm3208_vm0, %vm3209_vm15  ;;  %vm3218_vm9 = vweird.f32 %v3201_v9 }
0x18bd   :  { %v3204_v34 = vmul.f32 %v3681_v52, %v3203_v36  ;;  %vm5089_vm15 = vmmov %vm5087_vm5 }
0x18bf   :  { %v3205_v29 = vmul.f32 0.5, %v3204_v34 }
0x18c1   :  { %v3206_v31 = vsub.f32 1.5, %v3205_v29 }
0x18c2   :  { %v3683_v44 = vpop.eup %3682 }
0x18c3   :  { %v3207_v38 = vmul.f32 %v3681_v52, %v3206_v31  ;;  %v3213_v45 = vmul.f32 %v3683_v44, %v3201_v9  ;;  %vm3219_vm8 = vweird.f32 %v3683_v44 }
0x18c4   :  { %vm3220_vm10 = vmor %vm3218_vm9, %vm3219_vm8 }
0x18c5   :  { %v3214_v37 = vmul.f32 %v3683_v44, %v3213_v45  ;;  %v3211_v43 = vsel %vm3210_vm1, %v3681_v52, %v3207_v38 }
0x18c6   :  { %v3222_v17 = vmul.f32 %v3211_v43, %v3188_v6  ;;  %v3531_v6 = vld [vmem:[%s4928_s20 + $0x1] ss:$0 sm:$0xff] }
0x18c7   :  { %v3215_v32 = vmul.f32 0.5, %v3214_v37 }
0x18c8   :  { %v3227_v35 = vmul.f32 %v3528_v41, %v3222_v17  ;;  %v3532_v17 = vld [vmem:[%s4930_s25 + $0x1] ss:$0 sm:$0xff] }
0x18c9   :  { %v3216_v25 = vsub.f32 1.5, %v3215_v32 }
0x18ca   :  { %v3232_v12 = vadd.f32 %v3529_v30, %v3227_v35 }
0x18cb   :  { %v3217_v59 = vmul.f32 %v3683_v44, %v3216_v25 }
0x18cd   :  { %v3221_v0 = vsel %vm3220_vm10, %v3683_v44, %v3217_v59 }
0x18ce   :  { %v3223_v47 = vmul.f32 %v3221_v0, %v3189_v40 }
0x18d0   :  { %v3228_v49 = vmul.f32 %v3528_v41, %v3223_v47 }
0x18d2   :  { %v3233_v4 = vadd.f32 %v3529_v30, %v3228_v49 }
0x18d4   :  { %v3241_v51 = vpack.c.bf16 %v3233_v4, %v3232_v12 }
0x18d6   :  { %3479 = vmatmul.msk.bf16.vlgmr.msrb.gmra.mxu3 %vm138_vm2, %v3241_v51 }
0x1959   :  { %v3259_v20 = vpop.f32.mrf.mxu3 }
0x195a   :  { %v3260_v3 = vadd.f32 %v3530_v58, %v3259_v20 }
0x195c   :  { %v3264_v54 = vmax.f32 %v3260_v3, 0.0 }
0x1961   :  { %v3261_v21 = vpop.f32.mrf.mxu3 }
0x1962   :  { %v3262_v5 = vadd.f32 %v3530_v58, %v3261_v21 }
0x1964   :  { %v3265_v18 = vmax.f32 %v3262_v5, 0.0 }
0x1966   :  { %v3277_v27 = vpack.c.bf16 %v3265_v18, %v3264_v54 }
0x1968   :  { %3489 = vmatmul.msk.bf16.vlgmr.msrb.gmra.mxu1 %vm5085_vm4, %v3277_v27 }
0x19e5   :  { %v3297_v7 = vpop.f32.mrf.mxu1 }
0x19e6   :  { %v3298_v11 = vadd.f32 %v3531_v6, %v3297_v7 }
0x19e8   :  { %v3302_v28 = vadd.f32 %v3298_v11, %v3232_v12 }
0x19ea   :  { %v3308_v22 = vsel %vm138_vm2, %v3302_v28, 0.0 }
0x19eb   :  { %3309 = vadd.xlane.f32.xlu2 %v3308_v22 }
0x19ed   :  { %v3299_v40 = vpop.f32.mrf.mxu1 }
0x19ee   :  { %v3300_v13 = vadd.f32 %v3531_v6, %v3299_v40 }
0x19f0   :  { %v3303_v50 = vadd.f32 %v3300_v13, %v3233_v4 }
0x19f2   :  { %v3311_v23 = vsel %vm5086_vm12, %v3303_v50, 0.0 }
0x19f3   :  { %3312 = vadd.xlane.f32.xlu0 %v3311_v23 }
0x1a5e   :  { %v3310_v15 = vpop.xlane.xlu2 %3309 }
0x1a5f   :  { %v3314_v48 = vmul.f32 %v3310_v15, %v4127_v14 }
0x1a61   :  { %v3316_v26 = vsub.f32 %v3302_v28, %v3314_v48 }
0x1a63   :  { %v3318_v10 = vmul.f32 %v3316_v26, %v3316_v26 }
0x1a65   :  { %v3320_v16 = vsel %vm138_vm2, %v3318_v10, 0.0 }
0x1a66   :  { %v3313_v63 = vpop.xlane.xlu0 %3312  ;;  %3321 = vadd.xlane.f32.xlu1 %v3320_v16 }
0x1a67   :  { %v3315_v42 = vmul.f32 %v3313_v63, %v4127_v14 }
0x1a69   :  { %v3317_v19 = vsub.f32 %v3303_v50, %v3315_v42 }
0x1a6b   :  { %v3319_v62 = vmul.f32 %v3317_v19, %v3317_v19 }
0x1a6d   :  { %v3323_v24 = vsel %vm5087_vm5, %v3319_v62, 0.0 }
0x1a6e   :  { %3324 = vadd.xlane.f32.xlu2 %v3323_v24 }
0x1ad9   :  { %v3322_v52 = vpop.xlane.xlu1 %3321 }
0x1ada   :  { %v3326_v9 = vmul.f32 %v3322_v52, %v4127_v14 }
0x1adc   :  { %v3328_v36 = vadd.f32 1e-05, %v3326_v9 }
0x1ade   :  { %3684 = vrsqrt.f32 %v3328_v36  ;;  %vm3336_vm6 = vweird.f32 %v3328_v36 }
0x1ae1   :  { %v3325_v34 = vpop.xlane.xlu2 %3324 }
0x1ae2   :  { %v3327_v29 = vmul.f32 %v3325_v34, %v4127_v14  ;;  %v3533_v14 = vld [vmem:[%s4931_s26 + $0x1] ss:$0 sm:$0xff] }
0x1ae4   :  { %v3685_v31 = vpop.eup %3684  ;;  %v3329_v44 = vadd.f32 1e-05, %v3327_v29 }
0x1ae5   :  { %v3331_v38 = vmul.f32 %v3685_v31, %v3328_v36  ;;  %vm3337_vm11 = vweird.f32 %v3685_v31 }
0x1ae6   :  { %3686 = vrsqrt.f32 %v3329_v44  ;;  %vm3338_vm13 = vmor %vm3336_vm6, %vm3337_vm11  ;;  %vm3346_vm3 = vweird.f32 %v3329_v44 }
0x1ae7   :  { %v3332_v45 = vmul.f32 %v3685_v31, %v3331_v38 }
0x1ae9   :  { %v3333_v37 = vmul.f32 0.5, %v3332_v45 }
0x1aeb   :  { %v3334_v43 = vsub.f32 1.5, %v3333_v37 }
0x1aec   :  { %v3687_v32 = vpop.eup %3686 }
0x1aed   :  { %v3335_v25 = vmul.f32 %v3685_v31, %v3334_v43  ;;  %v3341_v41 = vmul.f32 %v3687_v32, %v3329_v44  ;;  %vm3347_vm7 = vweird.f32 %v3687_v32 }
0x1aee   :  { %vm3348_vm14 = vmor %vm3346_vm3, %vm3347_vm7 }
0x1aef   :  { %v3339_v59 = vsel %vm3338_vm13, %v3685_v31, %v3335_v25  ;;  %v3342_v0 = vmul.f32 %v3687_v32, %v3341_v41 }
0x1af0   :  { %v3350_v30 = vmul.f32 %v3339_v59, %v3316_v26 }
0x1af1   :  { %v3343_v35 = vmul.f32 0.5, %v3342_v0 }
0x1af2   :  { %v3355_v47 = vmul.f32 %v3532_v17, %v3350_v30 }
0x1af3   :  { %v3344_v49 = vsub.f32 1.5, %v3343_v35 }
0x1af4   :  { %v3360_v12 = vadd.f32 %v3533_v14, %v3355_v47 }
0x1af5   :  { %v3345_v4 = vmul.f32 %v3687_v32, %v3344_v49 }
0x1af6   :  { %3362 = vst.msk [vmem:[%s5088_s5] sm:$0xff] %vm138_vm2, %v3360_v12 }
0x1af7   :  { %v3349_v51 = vsel %vm3348_vm14, %v3687_v32, %v3345_v4 }
0x1af8   :  { %v3351_v46 = vmul.f32 %v3349_v51, %v3317_v19 }
0x1afa   :  { %v3356_v53 = vmul.f32 %v3532_v17, %v3351_v46 }
0x1afc   :  { %v3361_v61 = vadd.f32 %v3533_v14, %v3356_v53 }
0x1afe   :  { %3363 = vst.msk [vmem:[%s5088_s5 + $0x8] sm:$0xf] %vm5089_vm15, %v3361_v61 }

</bundles_post_ra>
